<compile_context>
chip_gen: v6e
topology: v6e:2x2x1
jax: 0.10.0
libtpu: 0.0.40
codegen_flags: <defaults>
</compile_context>

<pallas_src>
import functools
import math

import jax
import jax.numpy as jnp
from jax.experimental import pallas as pl
from jax.experimental.pallas import tpu as pltpu

LANE = 128     # TPU lane width (last dim)
SUBLANE = 8    # f32 sublane width (second-to-last dim)


def _round_up(x, m):
    return (x + m - 1) // m * m


def _pick_row_tile(H, W):
    """Rows per grid step: ~512 output pixels per tile (amortizes the ~0.35us
    per-grid-step overhead) while keeping (th*W, Np) sublane-aligned and
    th a divisor of H.  For the demo (H=W=32) -> th=16, 2 row tiles/batch."""
    target = max(1, 512 // max(W, 1))
    cands = [t for t in range(1, H + 1)
             if H % t == 0 and (t * W) % SUBLANE == 0 and t <= target]
    return max(cands) if cands else H


# ----------------------------------------------------------------------------
# Pallas kernel: fused 3x3 conv (implicit GEMM) + bias + ReLU on one row tile
# ----------------------------------------------------------------------------
def _conv3x3_kernel(x_ref, w_ref, b_ref, o_ref, *, th, out_w, cin, np_):
    # x_ref : (H+2, W+2, Cin)  bf16   whole padded image (resident per batch)
    # w_ref : (3, 3, Cin, Np)  bf16   per-tap weight slabs
    # b_ref : (1, Np)          f32
    # o_ref : (th*W, Np)       f32    one row tile of the flattened output
    r = pl.program_id(1)
    row0 = r * th
    acc = jnp.zeros((th * out_w, np_), jnp.float32)
    for dy in range(3):
        rows = x_ref[pl.ds(row0 + dy, th), :, :]            # (th, W+2, Cin)
        for dx in range(3):
            tap = rows[:, dx:dx + out_w, :].reshape(th * out_w, cin)
            acc = acc + jnp.dot(tap, w_ref[dy, dx],
                                preferred_element_type=jnp.float32)
    acc = acc + b_ref[...]                                   # (1, Np) broadcast
    o_ref[...] = jnp.maximum(acc, 0.0)


def conv3x3_bias_relu_nhwc(xpad, w_taps, bias_p):
    """relu(conv3x3(x, pad=1) + b) over NHWC input.

    xpad   : (B, H+2, W+2, Cin) bf16   spatially padded activation
    w_taps : (3, 3, Cin, Np)    bf16
    bias_p : (1, Np)            f32
    returns (B, H*W, Np)        f32   (row-major flattened spatial dims)
    """
    B, Hp2, Wp2, Cin = xpad.shape
    H, W = Hp2 - 2, Wp2 - 2
    Np = w_taps.shape[-1]
    th = _pick_row_tile(H, W)
    n_rt = H // th
    grid = (B, n_rt)

    kernel = functools.partial(_conv3x3_kernel, th=th, out_w=W, cin=Cin, np_=Np)
    return pl.pallas_call(
        kernel,
        out_shape=jax.ShapeDtypeStruct((B, H * W, Np), jnp.float32),
        grid=grid,
        in_specs=[
            # whole padded image per batch; index depends only on b so it is
            # DMA'd once and stays VMEM-resident across the row-tile steps.
            pl.BlockSpec((None, Hp2, Wp2, Cin), lambda b, r: (b, 0, 0, 0)),
            pl.BlockSpec((3, 3, Cin, Np), lambda b, r: (0, 0, 0, 0)),
            pl.BlockSpec((1, Np), lambda b, r: (0, 0)),
        ],
        out_specs=pl.BlockSpec((None, th * W, Np), lambda b, r: (b, r, 0)),
        compiler_params=pltpu.CompilerParams(
            dimension_semantics=("parallel", "parallel"),
            vmem_limit_bytes=32 * 1024 * 1024,
        ),
    )(xpad, w_taps, bias_p)


# ----------------------------------------------------------------------------
# NormalFusion module (init / apply factory; static config lives in closure)
# ----------------------------------------------------------------------------
def make_normal_fusion(HSI_bands, MSI_bands, hidden_dim, *, scale=4, k=3):
    assert k == 3, "NormalFusion uses a 3x3 conv"
    Cin = HSI_bands + MSI_bands
    Np = _round_up(hidden_dim, LANE)

    def init(key):
        kw_, kb_ = jax.random.split(key)
        fan_in = Cin * k * k
        bound = 1.0 / math.sqrt(fan_in)          # PyTorch Conv2d default range
        w = jax.random.uniform(kw_, (hidden_dim, Cin, k, k), jnp.float32, -bound, bound)
        b = jax.random.uniform(kb_, (hidden_dim,), jnp.float32, -bound, bound)
        # Pre-packed per-tap weight slabs (kh, kw, Cin, Np), bf16, laid out once.
        # Padded output channels get zero weight + zero bias (sliced off later).
        w_taps = jnp.transpose(w, (2, 3, 1, 0))                       # (3,3,Cin,Cout)
        w_taps = jnp.pad(w_taps, ((0, 0), (0, 0), (0, 0), (0, Np - hidden_dim)))
        w_taps = w_taps.astype(jnp.bfloat16)
        bias_p = jnp.pad(b, (0, Np - hidden_dim)).reshape(1, Np).astype(jnp.float32)
        return {"w_taps": w_taps, "bias_p": bias_p, "w": w, "b": b}

    def apply(params, hsi, msi):
        B = hsi.shape[0]
        H, W = msi.shape[2], msi.shape[3]
        # boundary: NCHW -> NHWC (the only layout conversions in the pipeline)
        hsi_nhwc = jnp.transpose(hsi, (0, 2, 3, 1))
        msi_nhwc = jnp.transpose(msi, (0, 2, 3, 1))
        # nearest x4 upsample + channel concat (MSI first, matching torch.concat
        # order) + 1-pixel spatial pad + bf16 cast: these fuse under jit into the
        # single (B, H+2, W+2, Cin) bf16 kernel input — no im2col patch matrix.
        up = jnp.repeat(jnp.repeat(hsi_nhwc, scale, axis=1), scale, axis=2)
        fused = jnp.concatenate([msi_nhwc, up], axis=-1)
        xpad = jnp.pad(fused, ((0, 0), (1, 1), (1, 1), (0, 0))).astype(jnp.bfloat16)

        out = conv3x3_bias_relu_nhwc(xpad, params["w_taps"], params["bias_p"])
        # lane-dense (Np) kernel store kept; XLA fuses the channel slice into the
        # boundary NHWC -> NCHW transpose (single output pass).
        out = out.reshape(B, H, W, Np)[..., :hidden_dim]
        return jnp.transpose(out, (0, 3, 1, 2))

    return init, apply


# ----------------------------------------------------------------------------
if __name__ == "__main__":
    HSI_bands, MSI_bands, hidden_dim = 31, 3, 64
    B, h, w = 2, 8, 8                       # HSI spatial; MSI is 4x larger

    key = jax.random.PRNGKey(0)
    k_hsi, k_msi, k_par = jax.random.split(key, 3)
    hsi = jax.random.uniform(k_hsi, (B, HSI_bands, h, w), jnp.float32)
    msi = jax.random.uniform(k_msi, (B, MSI_bands, 4 * h, 4 * w), jnp.float32)

    init_fn, apply_fn = make_normal_fusion(HSI_bands, MSI_bands, hidden_dim)
    params = init_fn(k_par)

    fwd = jax.jit(apply_fn)
    out = jax.block_until_ready(fwd(params, hsi, msi))

    assert out.shape == (B, hidden_dim, 4 * h, 4 * w), out.shape
    assert out.dtype == jnp.float32
    assert bool(jnp.all(out >= 0.0))        # ReLU output is non-negative

    # Reference: same math with the same bf16-rounded matmul inputs (f32 accum),
    # so the comparison isolates kernel correctness from the intended bf16 cast.
    up_ref = jnp.repeat(jnp.repeat(hsi, 4, axis=2), 4, axis=3)
    fused_ref = jnp.concatenate([msi, up_ref], axis=1)
    fused_bf = fused_ref.astype(jnp.bfloat16).astype(jnp.float32)
    w_bf = params["w"].astype(jnp.bfloat16).astype(jnp.float32)
    ref = jax.lax.conv_general_dilated(
        fused_bf, w_bf, window_strides=(1, 1), padding=((1, 1), (1, 1)),
        dimension_numbers=("NCHW", "OIHW", "NCHW"),
        precision=jax.lax.Precision.HIGHEST,
    ) + params["b"].reshape(1, hidden_dim, 1, 1)
    ref = jnp.maximum(ref, 0.0)
    assert bool(jnp.max(jnp.abs(out - ref)) < 2e-3), float(jnp.max(jnp.abs(out - ref)))

    print("KERNEL_OK")
</pallas_src>

<mosaic_0001>
module attributes {stable_mosaic.version = 11 : i64} {
  func.func @_conv3x3_kernel(%arg0: i32, %arg1: i32, %arg2: memref<1x34x34x34xbf16, #tpu.memory_space<vmem>>, %arg3: memref<3x3x34x128xbf16, #tpu.memory_space<vmem>>, %arg4: memref<1x128xf32, #tpu.memory_space<vmem>>, %arg5: memref<1x512x128xf32, #tpu.memory_space<vmem>>) attributes {dimension_semantics = [#tpu.dimension_semantics<parallel>, #tpu.dimension_semantics<parallel>], iteration_bounds = array<i64: 2, 2>, scalar_prefetch = 0 : i64, scratch_operands = 0 : i64, tpu.core_type = #tpu.core_type<tc>, window_params = [{transform_indices = @transform_0, window_bounds = array<i64: 1, 34, 34, 34>}, {pipeline_mode = #tpu.pipeline_mode<synchronous>, transform_indices = @transform_1, window_bounds = array<i64: 3, 3, 34, 128>}, {pipeline_mode = #tpu.pipeline_mode<synchronous>, transform_indices = @transform_2, window_bounds = array<i64: 1, 128>}, {transform_indices = @transform_3, window_bounds = array<i64: 1, 512, 128>}]} {
    %c16_i32 = arith.constant 16 : i32
    %0 = arith.muli %arg1, %c16_i32 : i32
    %cst = arith.constant 0.000000e+00 : f32
    %1 = vector.broadcast %cst : f32 to vector<512x128xf32>
    %c0_i32 = arith.constant 0 : i32
    %2 = arith.addi %0, %c0_i32 : i32
    %c0 = arith.constant 0 : index
    %3 = arith.index_cast %2 : i32 to index
    %c0_0 = arith.constant 0 : index
    %c0_1 = arith.constant 0 : index
    %4 = vector.load %arg2[%c0, %3, %c0_0, %c0_1] : memref<1x34x34x34xbf16, #tpu.memory_space<vmem>>, vector<1x16x34x34xbf16>
    %5 = vector.shape_cast %4 : vector<1x16x34x34xbf16> to vector<16x34x34xbf16>
    %6 = vector.extract_strided_slice %5 {offsets = [0, 0, 0], sizes = [16, 32, 34], strides = [1, 1, 1]} : vector<16x34x34xbf16> to vector<16x32x34xbf16>
    %7 = vector.shape_cast %6 : vector<16x32x34xbf16> to vector<512x34xbf16>
    %c0_2 = arith.constant 0 : index
    %c0_3 = arith.constant 0 : index
    %c0_4 = arith.constant 0 : index
    %c0_5 = arith.constant 0 : index
    %8 = vector.load %arg3[%c0_2, %c0_3, %c0_4, %c0_5] : memref<3x3x34x128xbf16, #tpu.memory_space<vmem>>, vector<1x1x34x128xbf16>
    %9 = vector.shape_cast %8 : vector<1x1x34x128xbf16> to vector<34x128xbf16>
    %cst_6 = arith.constant dense<0.000000e+00> : vector<512x128xf32>
    %10 = tpu.matmul %7, %9, %cst_6 {dimension_numbers = #tpu.dot_dimension_numbers<[1], [0], [0], [1], [0, 0, 1, 1], [], []>} : vector<512x34xbf16>, vector<34x128xbf16>, vector<512x128xf32> -> vector<512x128xf32>
    %11 = arith.addf %1, %10 : vector<512x128xf32>
    %12 = vector.extract_strided_slice %5 {offsets = [0, 1, 0], sizes = [16, 32, 34], strides = [1, 1, 1]} : vector<16x34x34xbf16> to vector<16x32x34xbf16>
    %13 = vector.shape_cast %12 : vector<16x32x34xbf16> to vector<512x34xbf16>
    %c0_7 = arith.constant 0 : index
    %c1 = arith.constant 1 : index
    %c0_8 = arith.constant 0 : index
    %c0_9 = arith.constant 0 : index
    %14 = vector.load %arg3[%c0_7, %c1, %c0_8, %c0_9] : memref<3x3x34x128xbf16, #tpu.memory_space<vmem>>, vector<1x1x34x128xbf16>
    %15 = vector.shape_cast %14 : vector<1x1x34x128xbf16> to vector<34x128xbf16>
    %cst_10 = arith.constant dense<0.000000e+00> : vector<512x128xf32>
    %16 = tpu.matmul %13, %15, %cst_10 {dimension_numbers = #tpu.dot_dimension_numbers<[1], [0], [0], [1], [0, 0, 1, 1], [], []>} : vector<512x34xbf16>, vector<34x128xbf16>, vector<512x128xf32> -> vector<512x128xf32>
    %17 = arith.addf %11, %16 : vector<512x128xf32>
    %18 = vector.extract_strided_slice %5 {offsets = [0, 2, 0], sizes = [16, 32, 34], strides = [1, 1, 1]} : vector<16x34x34xbf16> to vector<16x32x34xbf16>
    %19 = vector.shape_cast %18 : vector<16x32x34xbf16> to vector<512x34xbf16>
    %c0_11 = arith.constant 0 : index
    %c2 = arith.constant 2 : index
    %c0_12 = arith.constant 0 : index
    %c0_13 = arith.constant 0 : index
    %20 = vector.load %arg3[%c0_11, %c2, %c0_12, %c0_13] : memref<3x3x34x128xbf16, #tpu.memory_space<vmem>>, vector<1x1x34x128xbf16>
    %21 = vector.shape_cast %20 : vector<1x1x34x128xbf16> to vector<34x128xbf16>
    %cst_14 = arith.constant dense<0.000000e+00> : vector<512x128xf32>
    %22 = tpu.matmul %19, %21, %cst_14 {dimension_numbers = #tpu.dot_dimension_numbers<[1], [0], [0], [1], [0, 0, 1, 1], [], []>} : vector<512x34xbf16>, vector<34x128xbf16>, vector<512x128xf32> -> vector<512x128xf32>
    %23 = arith.addf %17, %22 : vector<512x128xf32>
    %c1_i32 = arith.constant 1 : i32
    %24 = arith.addi %0, %c1_i32 : i32
    %c0_15 = arith.constant 0 : index
    %25 = arith.index_cast %24 : i32 to index
    %c0_16 = arith.constant 0 : index
    %c0_17 = arith.constant 0 : index
    %26 = vector.load %arg2[%c0_15, %25, %c0_16, %c0_17] : memref<1x34x34x34xbf16, #tpu.memory_space<vmem>>, vector<1x16x34x34xbf16>
    %27 = vector.shape_cast %26 : vector<1x16x34x34xbf16> to vector<16x34x34xbf16>
    %28 = vector.extract_strided_slice %27 {offsets = [0, 0, 0], sizes = [16, 32, 34], strides = [1, 1, 1]} : vector<16x34x34xbf16> to vector<16x32x34xbf16>
    %29 = vector.shape_cast %28 : vector<16x32x34xbf16> to vector<512x34xbf16>
    %c1_18 = arith.constant 1 : index
    %c0_19 = arith.constant 0 : index
    %c0_20 = arith.constant 0 : index
    %c0_21 = arith.constant 0 : index
    %30 = vector.load %arg3[%c1_18, %c0_19, %c0_20, %c0_21] : memref<3x3x34x128xbf16, #tpu.memory_space<vmem>>, vector<1x1x34x128xbf16>
    %31 = vector.shape_cast %30 : vector<1x1x34x128xbf16> to vector<34x128xbf16>
    %cst_22 = arith.constant dense<0.000000e+00> : vector<512x128xf32>
    %32 = tpu.matmul %29, %31, %cst_22 {dimension_numbers = #tpu.dot_dimension_numbers<[1], [0], [0], [1], [0, 0, 1, 1], [], []>} : vector<512x34xbf16>, vector<34x128xbf16>, vector<512x128xf32> -> vector<512x128xf32>
    %33 = arith.addf %23, %32 : vector<512x128xf32>
    %34 = vector.extract_strided_slice %27 {offsets = [0, 1, 0], sizes = [16, 32, 34], strides = [1, 1, 1]} : vector<16x34x34xbf16> to vector<16x32x34xbf16>
    %35 = vector.shape_cast %34 : vector<16x32x34xbf16> to vector<512x34xbf16>
    %c1_23 = arith.constant 1 : index
    %c1_24 = arith.constant 1 : index
    %c0_25 = arith.constant 0 : index
    %c0_26 = arith.constant 0 : index
    %36 = vector.load %arg3[%c1_23, %c1_24, %c0_25, %c0_26] : memref<3x3x34x128xbf16, #tpu.memory_space<vmem>>, vector<1x1x34x128xbf16>
    %37 = vector.shape_cast %36 : vector<1x1x34x128xbf16> to vector<34x128xbf16>
    %cst_27 = arith.constant dense<0.000000e+00> : vector<512x128xf32>
    %38 = tpu.matmul %35, %37, %cst_27 {dimension_numbers = #tpu.dot_dimension_numbers<[1], [0], [0], [1], [0, 0, 1, 1], [], []>} : vector<512x34xbf16>, vector<34x128xbf16>, vector<512x128xf32> -> vector<512x128xf32>
    %39 = arith.addf %33, %38 : vector<512x128xf32>
    %40 = vector.extract_strided_slice %27 {offsets = [0, 2, 0], sizes = [16, 32, 34], strides = [1, 1, 1]} : vector<16x34x34xbf16> to vector<16x32x34xbf16>
    %41 = vector.shape_cast %40 : vector<16x32x34xbf16> to vector<512x34xbf16>
    %c1_28 = arith.constant 1 : index
    %c2_29 = arith.constant 2 : index
    %c0_30 = arith.constant 0 : index
    %c0_31 = arith.constant 0 : index
    %42 = vector.load %arg3[%c1_28, %c2_29, %c0_30, %c0_31] : memref<3x3x34x128xbf16, #tpu.memory_space<vmem>>, vector<1x1x34x128xbf16>
    %43 = vector.shape_cast %42 : vector<1x1x34x128xbf16> to vector<34x128xbf16>
    %cst_32 = arith.constant dense<0.000000e+00> : vector<512x128xf32>
    %44 = tpu.matmul %41, %43, %cst_32 {dimension_numbers = #tpu.dot_dimension_numbers<[1], [0], [0], [1], [0, 0, 1, 1], [], []>} : vector<512x34xbf16>, vector<34x128xbf16>, vector<512x128xf32> -> vector<512x128xf32>
    %45 = arith.addf %39, %44 : vector<512x128xf32>
    %c2_i32 = arith.constant 2 : i32
    %46 = arith.addi %0, %c2_i32 : i32
    %c0_33 = arith.constant 0 : index
    %47 = arith.index_cast %46 : i32 to index
    %c0_34 = arith.constant 0 : index
    %c0_35 = arith.constant 0 : index
    %48 = vector.load %arg2[%c0_33, %47, %c0_34, %c0_35] : memref<1x34x34x34xbf16, #tpu.memory_space<vmem>>, vector<1x16x34x34xbf16>
    %49 = vector.shape_cast %48 : vector<1x16x34x34xbf16> to vector<16x34x34xbf16>
    %50 = vector.extract_strided_slice %49 {offsets = [0, 0, 0], sizes = [16, 32, 34], strides = [1, 1, 1]} : vector<16x34x34xbf16> to vector<16x32x34xbf16>
    %51 = vector.shape_cast %50 : vector<16x32x34xbf16> to vector<512x34xbf16>
    %c2_36 = arith.constant 2 : index
    %c0_37 = arith.constant 0 : index
    %c0_38 = arith.constant 0 : index
    %c0_39 = arith.constant 0 : index
    %52 = vector.load %arg3[%c2_36, %c0_37, %c0_38, %c0_39] : memref<3x3x34x128xbf16, #tpu.memory_space<vmem>>, vector<1x1x34x128xbf16>
    %53 = vector.shape_cast %52 : vector<1x1x34x128xbf16> to vector<34x128xbf16>
    %cst_40 = arith.constant dense<0.000000e+00> : vector<512x128xf32>
    %54 = tpu.matmul %51, %53, %cst_40 {dimension_numbers = #tpu.dot_dimension_numbers<[1], [0], [0], [1], [0, 0, 1, 1], [], []>} : vector<512x34xbf16>, vector<34x128xbf16>, vector<512x128xf32> -> vector<512x128xf32>
    %55 = arith.addf %45, %54 : vector<512x128xf32>
    %56 = vector.extract_strided_slice %49 {offsets = [0, 1, 0], sizes = [16, 32, 34], strides = [1, 1, 1]} : vector<16x34x34xbf16> to vector<16x32x34xbf16>
    %57 = vector.shape_cast %56 : vector<16x32x34xbf16> to vector<512x34xbf16>
    %c2_41 = arith.constant 2 : index
    %c1_42 = arith.constant 1 : index
    %c0_43 = arith.constant 0 : index
    %c0_44 = arith.constant 0 : index
    %58 = vector.load %arg3[%c2_41, %c1_42, %c0_43, %c0_44] : memref<3x3x34x128xbf16, #tpu.memory_space<vmem>>, vector<1x1x34x128xbf16>
    %59 = vector.shape_cast %58 : vector<1x1x34x128xbf16> to vector<34x128xbf16>
    %cst_45 = arith.constant dense<0.000000e+00> : vector<512x128xf32>
    %60 = tpu.matmul %57, %59, %cst_45 {dimension_numbers = #tpu.dot_dimension_numbers<[1], [0], [0], [1], [0, 0, 1, 1], [], []>} : vector<512x34xbf16>, vector<34x128xbf16>, vector<512x128xf32> -> vector<512x128xf32>
    %61 = arith.addf %55, %60 : vector<512x128xf32>
    %62 = vector.extract_strided_slice %49 {offsets = [0, 2, 0], sizes = [16, 32, 34], strides = [1, 1, 1]} : vector<16x34x34xbf16> to vector<16x32x34xbf16>
    %63 = vector.shape_cast %62 : vector<16x32x34xbf16> to vector<512x34xbf16>
    %c2_46 = arith.constant 2 : index
    %c2_47 = arith.constant 2 : index
    %c0_48 = arith.constant 0 : index
    %c0_49 = arith.constant 0 : index
    %64 = vector.load %arg3[%c2_46, %c2_47, %c0_48, %c0_49] : memref<3x3x34x128xbf16, #tpu.memory_space<vmem>>, vector<1x1x34x128xbf16>
    %65 = vector.shape_cast %64 : vector<1x1x34x128xbf16> to vector<34x128xbf16>
    %cst_50 = arith.constant dense<0.000000e+00> : vector<512x128xf32>
    %66 = tpu.matmul %63, %65, %cst_50 {dimension_numbers = #tpu.dot_dimension_numbers<[1], [0], [0], [1], [0, 0, 1, 1], [], []>} : vector<512x34xbf16>, vector<34x128xbf16>, vector<512x128xf32> -> vector<512x128xf32>
    %67 = arith.addf %61, %66 : vector<512x128xf32>
    %c0_51 = arith.constant 0 : index
    %c0_52 = arith.constant 0 : index
    %68 = vector.load %arg4[%c0_51, %c0_52] : memref<1x128xf32, #tpu.memory_space<vmem>>, vector<1x128xf32>
    %69 = vector.broadcast %68 : vector<1x128xf32> to vector<512x128xf32>
    %70 = arith.addf %67, %69 : vector<512x128xf32>
    %cst_53 = arith.constant 0.000000e+00 : f32
    %71 = vector.broadcast %cst_53 : f32 to vector<512x128xf32>
    %72 = arith.maximumf %70, %71 : vector<512x128xf32>
    %c0_54 = arith.constant 0 : index
    %c0_55 = arith.constant 0 : index
    %c0_56 = arith.constant 0 : index
    %73 = vector.load %arg5[%c0_54, %c0_55, %c0_56] : memref<1x512x128xf32, #tpu.memory_space<vmem>>, vector<1x512x128xf32>
    %74 = vector.shape_cast %73 : vector<1x512x128xf32> to vector<512x128xf32>
    %75 = vector.shape_cast %72 : vector<512x128xf32> to vector<1x512x128xf32>
    tpu.vector_store %arg5[%c0_54, %c0_55, %c0_56], %75 {strides = array<i32>} : memref<1x512x128xf32, #tpu.memory_space<vmem>>, vector<1x512x128xf32>,
    return
  }
  func.func @transform_0(%arg0: i32, %arg1: i32) -> (i32, i32, i32, i32) {
    %c0_i32 = arith.constant 0 : i32
    %c0_i32_0 = arith.constant 0 : i32
    %c0_i32_1 = arith.constant 0 : i32
    %c0_i32_2 = arith.constant 0 : i32
    return %arg0, %c0_i32, %c0_i32_0, %c0_i32_1 : i32, i32, i32, i32
  }
  func.func @transform_1(%arg0: i32, %arg1: i32) -> (i32, i32, i32, i32) {
    %c0_i32 = arith.constant 0 : i32
    %c0_i32_0 = arith.constant 0 : i32
    %c0_i32_1 = arith.constant 0 : i32
    %c0_i32_2 = arith.constant 0 : i32
    %c0_i32_3 = arith.constant 0 : i32
    return %c0_i32, %c0_i32_0, %c0_i32_1, %c0_i32_2 : i32, i32, i32, i32
  }
  func.func @transform_2(%arg0: i32, %arg1: i32) -> (i32, i32) {
    %c0_i32 = arith.constant 0 : i32
    %c0_i32_0 = arith.constant 0 : i32
    %c0_i32_1 = arith.constant 0 : i32
    return %c0_i32, %c0_i32_0 : i32, i32
  }
  func.func @transform_3(%arg0: i32, %arg1: i32) -> (i32, i32, i32) {
    %c0_i32 = arith.constant 0 : i32
    %c0_i32_0 = arith.constant 0 : i32
    return %arg0, %arg1, %c0_i32 : i32, i32, i32
  }
}

</mosaic_0001>

<bundles_post_ra>
// kernel: apply.1
= control target key start
LH: loop header
LB: loop body
LE: loop exit
PB: predicated region body
PF: predicated region fallthrough
CT: control target
= control target key end

     0   :  { %s10948_s12 = smov 0   ;;  %s10950_s13 = smov 0   ;;  %s15814_s0 = inlined_call_operand.vmem [shape: bf16[2,34,34,34], index: 0, kind: input, shape index: {}]   ;;  %s15815_s1 = inlined_call_operand.vmem [shape: bf16[3,3,34,128], index: 1, kind: input, shape index: {}]   ;;  %s15816_s2 = inlined_call_operand.vmem [shape: f32[1,128], index: 2, kind: input, shape index: {}]   ;;  %s15817_s3 = inlined_call_operand.vmem [shape: f32[2,1024,128], index: 3, kind: output, shape index: {}]  }
   0x1   :  { %s10952_s14 = smov 0   ;;  %s10954_s15 = smov 0  }
   0x2   :  { %s10956_s16 = smov 0  }
   0x3 LB: > { %s22_s17 = sadd.s32 1, %s10918_s14  ;;  %s25_s18 = sadd.s32 1, %s10922_s15  ;;  %s10926_s16 = sphi %s10956_s16, %s13_s16   ;;  %s10922_s15 = sphi %s10954_s15, %s16970_s15   ;;  %s10918_s14 = sphi %s10952_s14, %s16969_s14   ;;  %s10914_s13 = sphi %s10950_s13, %s16968_s13   ;;  %s10910_s12 = sphi %s10948_s12, %s16967_s12  }
   0x4   : > { %p23_p0 = scmp.ge.s32.totalorder %s22_s17, 2  ;;  %p8720_p1 = scmp.ge.s32.totalorder %s10926_s16, 1 }
   0x5   : > { %p151_p2 = scmp.lt.s32.totalorder %s10926_s16, 5 }
   0x6   : > { %s16972_s17 = smov (%p23_p0, %s22_s17), 0  ;;  %s16974_s18 = smov (!%p23_p0, %s25_s18), %s10922_s15 }
   0x7   : > { %p152_p3 = pnand %p8720_p1, %p151_p2  ;;  %p27_p4 = scmp.ge.s32.totalorder %s16974_s18, 2 }
   0x9   : > { %s16976_s18 = smov (%p27_p4, %s16974_s18), 0  ;;  %155 = sbr.rel (%p152_p3) target bundleno = 930 (0x3a2), region = 32 }
   0xe   : > { %v10589_v0 = vld [vmem:[%s15815_s1 + $0x24] ss:$0 sps:$4 sm:$0x11]   ;;  %vm1205_vm0 = vcmask 1040384   ;;  %v10590_v1 = vld [vmem:[%s15815_s1 + $0x1c] sm:$0xff]   ;;  %p179_p5 = scmp.lt.s32.totalorder %s10914_s13, 1 }
   0xf   : > { %10539 = vmatprep.subr.msk.bf16.mxu1 %vm1205_vm0, %v10589_v0  ;;  %10538 = vmatprep.subr.msk.bf16.mxu0 %vm1205_vm0, %v10589_v0  ;;  %v1207_v2 = vsel %vm1205_vm0, %v10589_v0, 0  ;;  %v10591_v3 = vld [vmem:[%s15815_s1 + $0x14] sm:$0xff]   ;;  %s9586_s25 = smul.u32 320, %s10910_s12  ;;  %v10593_v4 = vld [vmem:[%s15815_s1 + $0x10] ss:$0 sps:$4 sm:$0x11]  }
  0x10   : > { %10535 = vmatpush3.bf16.msra.mxu1 %v1207_v2  ;;  %9903 = vmatpush3.bf16.msra.mxu0 %v1207_v2  ;;  %s16978_s13 = smov (!%p179_p5, %s10914_s13), 1  ;;  %v10594_v5 = vld [vmem:[%s15815_s1 + $0x38] ss:$0 sps:$4 sm:$0x11]   ;;  %vm284_vm1 = vsmask.f32 3328 }
  0x11   : > { %10533 = vmatprep.subr.bf16.mxu1 %v10590_v1  ;;  %9904 = vmatprep.subr.bf16.mxu0 %v10590_v1  ;;  %s10548_s28 = smul.u32 680, %s16978_s13  ;;  %vm285_vm2 = vsmask.f32 7440  ;;  %v11008_v6 = vsel %vm1205_vm0, %v10593_v4, 0  ;;  %v11011_v7 = vsel %vm1205_vm0, %v10594_v5, 0  ;;  %vm1108_vm3 = vcmask 277504  }
  0x12   : > { %vm11032_vm4 = vmor %vm284_vm1, %vm285_vm2  ;;  %v16012_v34 = vmov 0  ;;  %vm2077_vm5 = vcmask 1042432   ;;  %vm2078_vm6 = vcmask 1046532  }
  0x13   : > { %s183_s6 = scalar_lea.vmem %s15814_s0, %s10548_s28  ;;  %v16013_v34 = vsel %vm11032_vm4, 4294967295, %v16012_v34  ;;  %vm11451_vm7 = vmor %vm2077_vm5, %vm2078_vm6 }
  0x14   : > { %10536 = vmatpush3.bf16.msra.mxu1 %v10590_v1  ;;  %9905 = vmatpush3.bf16.msra.mxu0 %v10590_v1  ;;  %s11005_s7 = scalar_lea.vmem %s183_s6, %s9586_s25  ;;  %16014 = vst [vmem:[#allocation2_spill] sm:$0xff] %v16013_v34 }
  0x15   : > { %10534 = vmatprep.subr.bf16.mxu1 %v10591_v3  ;;  %9906 = vmatprep.subr.bf16.mxu0 %v10591_v3  ;;  %v199_v8 = vld [vmem:[%s11005_s7] sm:$0xf]  ;;  %v200_v9 = vld [vmem:[%s11005_s7 + $0x4] sm:$0xf]  ;;  %v11016_v10 = vld [vmem:[%s11005_s7 + $0x8] sm:$0xf] }
  0x16   : > { %v11019_v11 = vld [vmem:[%s11005_s7 + $0xc] sm:$0xf]  ;;  %v288_v12 = vshrl.u32 %v199_v8, 16  ;;  %v291_v13 = vshll.u32 %v199_v8, 16  ;;  %v297_v14 = vshll.u32 %v200_v9, 16  ;;  %v301_v15 = vshrl.u32 %v200_v9, 16 }
  0x17   : > { %v307_v16 = vshll.u32 %v11016_v10, 16  ;;  %v311_v17 = vshrl.u32 %v11016_v10, 16  ;;  %v239_v19 = vld [vmem:[%s11005_s7 + $0xa0] sm:$0xf]  ;;  %v240_v20 = vld [vmem:[%s11005_s7 + $0xa4] sm:$0xf] }
  0x18   : > { %10537 = vmatpush3.bf16.msra.mxu1 %v10591_v3  ;;  %9907 = vmatpush3.bf16.msra.mxu0 %v10591_v3  ;;  %v290_v21 = vrot.slane %v288_v12, 4  ;;  %v293_v22 = vrot.slane %v291_v13, 5  ;;  %v299_v23 = vrot.slane %v297_v14, 5  ;;  %v303_v24 = vrot.slane %v301_v15, 4  ;;  %v241_v25 = vld [vmem:[%s11005_s7 + $0xa8] sm:$0xf] }
  0x19   : > { %10540 = vmatprep.subr.msk.bf16.mxu1 %vm1205_vm0, %v10593_v4  ;;  %10541 = vmatprep.subr.msk.bf16.mxu0 %vm1205_vm0, %v10594_v5  ;;  %v309_v26 = vrot.slane %v307_v16, 5  ;;  %v313_v27 = vrot.slane %v311_v17, 4  ;;  %v640_v28 = vshrl.u32 %v239_v19, 16  ;;  %v643_v29 = vshll.u32 %v239_v19, 16  ;;  %v11037_v47 = vld [vmem:[%s11005_s7 + $0x10] sm:$0x1] }
  0x1a   : > { %v294_v30 = vor.u32 %v293_v22, %v290_v21  ;;  %v304_v31 = vor.u32 %v303_v24, %v299_v23  ;;  %v649_v32 = vshll.u32 %v240_v20, 16  ;;  %v653_v33 = vshrl.u32 %v240_v20, 16  ;;  %v242_v52 = vld [vmem:[%s11005_s7 + $0xac] sm:$0xf]  ;;  %v243_v0 = vld [vmem:[%s11005_s7 + $0xb0] sm:$0x1] }
  0x1b   : > { %v314_v35 = vor.u32 %v313_v27, %v309_v26  ;;  %v642_v36 = vrot.slane %v640_v28, 4  ;;  %v645_v37 = vrot.slane %v643_v29, 5  ;;  %v659_v38 = vshll.u32 %v241_v25, 16  ;;  %v204_v2 = vld [vmem:[%s11005_s7 + $0x14] sm:$0xf] }
  0x1c   : > { %v295_v39 = vrot.slane %v294_v30, 4  ;;  %v305_v40 = vrot.slane %v304_v31, 4  ;;  %v651_v41 = vrot.slane %v649_v32, 5  ;;  %v655_v42 = vrot.slane %v653_v33, 4  ;;  %v205_v9 = vld [vmem:[%s11005_s7 + $0x18] sm:$0xf] }
  0x1d   : > { %v315_v43 = vrot.slane %v314_v35, 4  ;;  %v646_v44 = vor.u32 %v645_v37, %v642_v36  ;;  %v661_v45 = vrot.slane %v659_v38, 5  ;;  %v663_v46 = vshrl.u32 %v241_v25, 16  ;;  %v206_v19 = vld [vmem:[%s11005_s7 + $0x1c] sm:$0xf] }
  0x1e   : > { %v300_v48 = vsel %vm11032_vm4, %v295_v39, %v299_v23  ;;  %v310_v49 = vsel %vm11032_vm4, %v305_v40, %v309_v26  ;;  %v656_v50 = vor.u32 %v655_v42, %v651_v41  ;;  %v317_v51 = vshll.u32 %v11019_v11, 16  ;;  %v244_v26 = vld [vmem:[%s11005_s7 + $0xb4] sm:$0xf]  ;;  %v245_v31 = vld [vmem:[%s11005_s7 + $0xb8] sm:$0xf] }
  0x1f   : > { %v8733_v53 = vcombine.low %v300_v48, %v310_v49  ;;  %v647_v54 = vrot.slane %v646_v44, 4  ;;  %v665_v55 = vrot.slane %v663_v46, 4  ;;  %v321_v56 = vshrl.u32 %v11019_v11, 16  ;;  %v246_v44 = vld [vmem:[%s11005_s7 + $0xbc] sm:$0xf] }
  0x20   : > { %v657_v57 = vrot.slane %v656_v50, 4  ;;  %v319_v58 = vrot.slane %v317_v51, 5  ;;  %v327_v59 = vshll.u32 %v11037_v47, 16  ;;  %v669_v1 = vshll.u32 %v242_v52, 16 }
  0x21   : > { %9908 = vmatprep.mubr.msk.bf16.mxu0 %vm1108_vm3, %v8733_v53  ;;  %v652_v61 = vsel %vm11032_vm4, %v647_v54, %v651_v41  ;;  %v666_v62 = vor.u32 %v665_v55, %v661_v45  ;;  %v323_v63 = vrot.slane %v321_v56, 4  ;;  %v673_v8 = vshrl.u32 %v242_v52, 16  ;;  %v10596_v41 = vld [vmem:[%s15815_s1 + $0x30] sm:$0xff]   ;;  %v207_v52 = vld [vmem:[%s11005_s7 + $0x20] sm:$0xf] }
  0x22   : > { %v662_v3 = vsel %vm11032_vm4, %v657_v57, %v661_v45  ;;  %v320_v4 = vsel %vm11032_vm4, %v315_v43, %v319_v58  ;;  %v329_v5 = vrot.slane %v327_v59, 5  ;;  %v671_v15 = vrot.slane %v669_v1, 5  ;;  %v10595_v57 = vld [vmem:[%s15815_s1 + $0x8] sm:$0xff]  }
  0x23   : > { %v667_v12 = vrot.slane %v666_v62, 4  ;;  %v8749_v13 = vcombine.low %v652_v61, %v662_v3  ;;  %v324_v14 = vor.u32 %v323_v63, %v319_v58  ;;  %v675_v16 = vrot.slane %v673_v8, 4  ;;  %v208_v62 = vld [vmem:[%s11005_s7 + $0x24] sm:$0x1] }
  0x24   : > { %v679_v17 = vshll.u32 %v243_v0, 16  ;;  %v332_v20 = vshrl.u32 %v204_v2, 16  ;;  %v335_v21 = vshll.u32 %v204_v2, 16  ;;  %v341_v24 = vshll.u32 %v205_v9, 16 }
  0x25   : > { %9940 = vmatprep.mubr.msk.bf16.mxu1 %vm1108_vm3, %v8749_v13  ;;  %v325_v22 = vrot.slane %v324_v14, 4  ;;  %v672_v23 = vsel %vm11032_vm4, %v667_v12, %v671_v15  ;;  %v345_v25 = vshrl.u32 %v205_v9, 16  ;;  %v676_v27 = vor.u32 %v675_v16, %v671_v15 }
  0x26   : > { %v681_v28 = vrot.slane %v679_v17, 5  ;;  %v334_v29 = vrot.slane %v332_v20, 4  ;;  %v337_v30 = vrot.slane %v335_v21, 5  ;;  %v343_v33 = vrot.slane %v341_v24, 5  ;;  %v10597_v17 = vld [vmem:[%s15815_s1] sm:$0xff]  }
  0x27   : > { %v330_v32 = vsel %vm11032_vm4, %v325_v22, %v329_v5  ;;  %v347_v35 = vrot.slane %v345_v25, 4  ;;  %v351_v36 = vshll.u32 %v206_v19, 16  ;;  %v677_v38 = vrot.slane %v676_v27, 4  ;;  %v248_v20 = vld [vmem:[%s11005_s7 + $0xc4] sm:$0x1] }
  0x28   : > { %v8734_v37 = vcombine.low %v320_v4, %v330_v32  ;;  %v338_v39 = vor.u32 %v337_v30, %v334_v29  ;;  %v684_v40 = vshrl.u32 %v244_v26, 16  ;;  %v687_v45 = vshll.u32 %v244_v26, 16  ;;  %v247_v4 = vld [vmem:[%s11005_s7 + $0xc0] sm:$0xf]  ;;  %v209_v27 = vld [vmem:[%s11005_s7 + $0x28] sm:$0xf] }
  0x29   : > { %v348_v42 = vor.u32 %v347_v35, %v343_v33  ;;  %v353_v43 = vrot.slane %v351_v36, 5  ;;  %v693_v46 = vshll.u32 %v245_v31, 16  ;;  %v682_v48 = vsel %vm11032_vm4, %v677_v38, %v681_v28  ;;  %v210_v32 = vld [vmem:[%s11005_s7 + $0x2c] sm:$0xf] }
  0x2a   : > { %9909 = vmatmul.mubr.msk.bf16.vlgmr.msra.gmra.mxu0 %vm1108_vm3, %v8734_v37  ;;  %v339_v49 = vrot.slane %v338_v39, 4  ;;  %v686_v50 = vrot.slane %v684_v40, 4  ;;  %v697_v51 = vshrl.u32 %v245_v31, 16  ;;  %v8750_v53 = vcombine.low %v672_v23, %v682_v48  ;;  %v211_v40 = vld [vmem:[%s11005_s7 + $0x30] sm:$0xf] }
  0x2b   : > { %10043 = vmatpush3.bf16.msra.mxu0 %v11011_v7  ;;  %v349_v54 = vrot.slane %v348_v42, 4  ;;  %v689_v55 = vrot.slane %v687_v45, 5  ;;  %v695_v56 = vrot.slane %v693_v46, 5  ;;  %v703_v61 = vshll.u32 %v246_v44, 16  ;;  %v10598_v7 = vld [vmem:[%s15815_s1 + $0x28] sm:$0xff]  }
  0x2c   : > { %v344_v58 = vsel %vm11032_vm4, %v339_v49, %v343_v33  ;;  %v699_v59 = vrot.slane %v697_v51, 4  ;;  %v355_v63 = vshrl.u32 %v206_v19, 16  ;;  %10044 = vmatprep.subr.bf16.mxu0 %v10596_v41  ;;  %9941 = vmatmul.mubr.msk.bf16.vlgmr.msra.gmra.mxu1 %vm1108_vm3, %v8750_v53  ;;  %v361_v2 = vshll.u32 %v207_v52, 16  ;;  %v249_v48 = vld [vmem:[%s11005_s7 + $0xc8] sm:$0xf] }
  0x2d   : > { %v354_v0 = vsel %vm11032_vm4, %v349_v54, %v353_v43  ;;  %v690_v1 = vor.u32 %v689_v55, %v686_v50  ;;  %v365_v3 = vshrl.u32 %v207_v52, 16  ;;  %9973 = vmatpush3.bf16.msra.mxu1 %v11008_v6  ;;  %v705_v9 = vrot.slane %v703_v61, 5  ;;  %v250_v53 = vld [vmem:[%s11005_s7 + $0xcc] sm:$0xf]  ;;  %v251_v61 = vld [vmem:[%s11005_s7 + $0xd0] sm:$0xf] }
  0x2e   : > { %v8735_v5 = vcombine.low %v344_v58, %v354_v0  ;;  %v700_v8 = vor.u32 %v699_v59, %v695_v56  ;;  %v357_v12 = vrot.slane %v355_v63, 4  ;;  %v363_v14 = vrot.slane %v361_v2, 5  ;;  %9974 = vmatprep.subr.bf16.mxu1 %v10595_v57 }
  0x2f   : > { %v691_v13 = vrot.slane %v690_v1, 4  ;;  %v367_v15 = vrot.slane %v365_v3, 4  ;;  %v371_v16 = vshll.u32 %v208_v62, 16  ;;  %10045 = vmatpush3.bf16.msra.mxu0 %v10596_v41  ;;  %v707_v21 = vshrl.u32 %v246_v44, 16  ;;  %v212_v3 = vld [vmem:[%s11005_s7 + $0x34] sm:$0xf] }
  0x30   : > { %9912 = vmatprep.mubr.msk.bf16.mxu0 %vm1108_vm3, %v8735_v5  ;;  %v701_v19 = vrot.slane %v700_v8, 4  ;;  %v358_v6 = vor.u32 %v357_v12, %v353_v43  ;;  %v713_v22 = vshll.u32 %v247_v4, 16  ;;  %10046 = vmatprep.subr.bf16.mxu0 %v10598_v7  ;;  %v717_v26 = vshrl.u32 %v247_v4, 16 }
  0x31   : > { %v696_v23 = vsel %vm11032_vm4, %v691_v13, %v695_v56  ;;  %v368_v24 = vor.u32 %v367_v15, %v363_v14  ;;  %v373_v25 = vrot.slane %v371_v16, 5  ;;  %v709_v30 = vrot.slane %v707_v21, 4  ;;  %9975 = vmatpush3.bf16.msra.mxu1 %v10595_v57  ;;  %v213_v16 = vld [vmem:[%s11005_s7 + $0x38] sm:$0x1] }
  0x32   : > { %v706_v28 = vsel %vm11032_vm4, %v701_v19, %v705_v9  ;;  %v359_v29 = vrot.slane %v358_v6, 4  ;;  %v715_v31 = vrot.slane %v713_v22, 5  ;;  %v719_v36 = vrot.slane %v717_v26, 4  ;;  %9976 = vmatprep.subr.bf16.mxu1 %v10597_v17 }
  0x33   : > { %v8751_v33 = vcombine.low %v696_v23, %v706_v28  ;;  %v369_v35 = vrot.slane %v368_v24, 4  ;;  %v723_v37 = vshll.u32 %v248_v20, 16  ;;  %10047 = vmatpush3.bf16.msra.mxu0 %v10598_v7  ;;  %v710_v39 = vor.u32 %v709_v30, %v705_v9 }
  0x34   : > { %v364_v38 = vsel %vm11032_vm4, %v359_v29, %v363_v14  ;;  %v376_v41 = vshrl.u32 %v209_v27, 16  ;;  %v379_v42 = vshll.u32 %v209_v27, 16  ;;  %v720_v44 = vor.u32 %v719_v36, %v715_v31  ;;  %v252_v29 = vld [vmem:[%s11005_s7 + $0xd4] sm:$0xf]  ;;  %v11124_v36 = vld [vmem:[%s11005_s7 + $0x3c] sm:$0xf] }
  0x35   : > { %9944 = vmatprep.mubr.msk.bf16.mxu1 %vm1108_vm3, %v8751_v33  ;;  %v374_v43 = vsel %vm11032_vm4, %v369_v35, %v373_v25  ;;  %v725_v45 = vrot.slane %v723_v37, 5  ;;  %v385_v46 = vshll.u32 %v210_v32, 16  ;;  %v711_v50 = vrot.slane %v710_v39, 4  ;;  %9977 = vmatpush3.bf16.msra.mxu1 %v10597_v17  ;;  %v253_v33 = vld [vmem:[%s11005_s7 + $0xd8] sm:$0x1] }
  0x36   : > { %v8736_v49 = vcombine.low %v364_v38, %v374_v43  ;;  %v378_v51 = vrot.slane %v376_v41, 4  ;;  %v381_v52 = vrot.slane %v379_v42, 5  ;;  %v721_v54 = vrot.slane %v720_v44, 4 }
  0x37   : > { %v387_v55 = vrot.slane %v385_v46, 5  ;;  %v389_v56 = vshrl.u32 %v210_v32, 16  ;;  %v395_v57 = vshll.u32 %v211_v40, 16  ;;  %v716_v58 = vsel %vm11032_vm4, %v711_v50, %v715_v31 }
  0x38   : > { %9913 = vmatmul.mubr.msk.bf16.gmra.mxu0 %vm1108_vm3, %v8736_v49  ;;  %v382_v59 = vor.u32 %v381_v52, %v378_v51  ;;  %v728_v62 = vshrl.u32 %v249_v48, 16  ;;  %v731_v63 = vshll.u32 %v249_v48, 16  ;;  %v726_v7 = vsel %vm11032_vm4, %v721_v54, %v725_v45  ;;  %v11133_v54 = vld [vmem:[%s11005_s7 + $0x40] sm:$0xf] }
  0x39   : > { %v391_v0 = vrot.slane %v389_v56, 4  ;;  %v397_v1 = vrot.slane %v395_v57, 5  ;;  %v737_v2 = vshll.u32 %v250_v53, 16  ;;  %v8752_v4 = vcombine.low %v716_v58, %v726_v7 }
  0x3a   : > { %v383_v5 = vrot.slane %v382_v59, 4  ;;  %v730_v8 = vrot.slane %v728_v62, 4  ;;  %v733_v9 = vrot.slane %v731_v63, 5  ;;  %v741_v14 = vshrl.u32 %v250_v53, 16  ;;  %v11138_v59 = vld [vmem:[%s11005_s7 + $0x44] sm:$0xf] }
  0x3b   : > { %v392_v12 = vor.u32 %v391_v0, %v387_v55  ;;  %v739_v13 = vrot.slane %v737_v2, 5  ;;  %v747_v15 = vshll.u32 %v251_v61, 16  ;;  %9945 = vmatmul.mubr.msk.bf16.gmra.mxu1 %vm1108_vm3, %v8752_v4  ;;  %v399_v6 = vshrl.u32 %v211_v40, 16 }
  0x3c   : > { %v388_v17 = vsel %vm11032_vm4, %v383_v5, %v387_v55  ;;  %v734_v19 = vor.u32 %v733_v9, %v730_v8  ;;  %v405_v20 = vshll.u32 %v212_v3, 16  ;;  %v743_v22 = vrot.slane %v741_v14, 4  ;;  %v255_v5 = vld [vmem:[%s11005_s7 + $0xe0] sm:$0xf] }
  0x3d   : > { %v393_v21 = vrot.slane %v392_v12, 4  ;;  %v749_v23 = vrot.slane %v747_v15, 5  ;;  %v409_v24 = vshrl.u32 %v212_v3, 16  ;;  %v401_v26 = vrot.slane %v399_v6, 4 }
  0x3e   : > { %v735_v25 = vrot.slane %v734_v19, 4  ;;  %v407_v27 = vrot.slane %v405_v20, 5  ;;  %v415_v28 = vshll.u32 %v213_v16, 16  ;;  %v744_v31 = vor.u32 %v743_v22, %v739_v13 }
  0x3f   : > { %v398_v30 = vsel %vm11032_vm4, %v393_v21, %v397_v1  ;;  %v411_v32 = vrot.slane %v409_v24, 4  ;;  %v751_v35 = vshrl.u32 %v251_v61, 16  ;;  %v402_v39 = vor.u32 %v401_v26, %v397_v1  ;;  %v254_v61 = vld [vmem:[%s11005_s7 + $0xdc] sm:$0xf] }
  0x40   : > { %v8737_v37 = vcombine.low %v388_v17, %v398_v30  ;;  %v740_v38 = vsel %vm11032_vm4, %v735_v25, %v739_v13  ;;  %v417_v40 = vrot.slane %v415_v28, 5  ;;  %v745_v41 = vrot.slane %v744_v31, 4  ;;  %v256_v17 = vld [vmem:[%s11005_s7 + $0xe4] sm:$0xf] }
  0x41   : > { %v412_v42 = vor.u32 %v411_v32, %v407_v27  ;;  %v753_v43 = vrot.slane %v751_v35, 4  ;;  %v757_v44 = vshll.u32 %v252_v29, 16  ;;  %v403_v45 = vrot.slane %v402_v39, 4 }
  0x42   : > { %9916 = vmatprep.mubr.msk.bf16.mxu0 %vm1108_vm3, %v8737_v37  ;;  %v761_v46 = vshrl.u32 %v252_v29, 16  ;;  %v767_v48 = vshll.u32 %v253_v33, 16  ;;  %v420_v49 = vshrl.u32 %v11124_v36, 16  ;;  %v750_v50 = vsel %vm11032_vm4, %v745_v41, %v749_v23  ;;  %v11159_v37 = vld [vmem:[%s11005_s7 + $0x4c] sm:$0x1] }
  0x43   : > { %v413_v51 = vrot.slane %v412_v42, 4  ;;  %v754_v52 = vor.u32 %v753_v43, %v749_v23  ;;  %v759_v53 = vrot.slane %v757_v44, 5  ;;  %v8753_v55 = vcombine.low %v740_v38, %v750_v50 }
  0x44   : > { %v408_v56 = vsel %vm11032_vm4, %v403_v45, %v407_v27  ;;  %v763_v57 = vrot.slane %v761_v46, 4  ;;  %v769_v58 = vrot.slane %v767_v48, 5  ;;  %v422_v7 = vrot.slane %v420_v49, 4  ;;  %v11156_v27 = vld [vmem:[%s11005_s7 + $0x48] sm:$0xf] }
  0x45   : > { %v418_v62 = vsel %vm11032_vm4, %v413_v51, %v417_v40  ;;  %v755_v63 = vrot.slane %v754_v52, 4  ;;  %v423_v0 = vshll.u32 %v11124_v36, 16  ;;  %9948 = vmatprep.mubr.msk.bf16.mxu1 %vm1108_vm3, %v8753_v55  ;;  %v429_v3 = vshll.u32 %v11133_v54, 16  ;;  %v257_v48 = vld [vmem:[%s11005_s7 + $0xe8] sm:$0xf] }
  0x46   : > { %v8738_v1 = vcombine.low %v408_v56, %v418_v62  ;;  %v764_v2 = vor.u32 %v763_v57, %v759_v53  ;;  %v433_v4 = vshrl.u32 %v11133_v54, 16  ;;  %v439_v12 = vshll.u32 %v11138_v59, 16  ;;  %v258_v49 = vld [vmem:[%s11005_s7 + $0xec] sm:$0x1]  ;;  %v11173_v55 = vld [vmem:[%s11005_s7 + $0x50] sm:$0xf] }
  0x47   : > { %v760_v8 = vsel %vm11032_vm4, %v755_v63, %v759_v53  ;;  %v425_v9 = vrot.slane %v423_v0, 5  ;;  %v772_v13 = vshrl.u32 %v254_v61, 16  ;;  %v431_v15 = vrot.slane %v429_v3, 5  ;;  %v11178_v62 = vld [vmem:[%s11005_s7 + $0x54] sm:$0xf] }
  0x48   : > { %9917 = vmatmul.mubr.msk.bf16.gmra.mxu0 %vm1108_vm3, %v8738_v1  ;;  %v765_v14 = vrot.slane %v764_v2, 4  ;;  %v435_v16 = vrot.slane %v433_v4, 4  ;;  %v775_v19 = vshll.u32 %v254_v61, 16  ;;  %v441_v20 = vrot.slane %v439_v12, 5 }
  0x49   : > { %v426_v6 = vor.u32 %v425_v9, %v422_v7  ;;  %v774_v21 = vrot.slane %v772_v13, 4  ;;  %v781_v22 = vshll.u32 %v255_v5, 16  ;;  %v785_v26 = vshrl.u32 %v255_v5, 16  ;;  %v11184_v2 = vld [vmem:[%s15815_s1 + $0x4c] ss:$0 sps:$4 sm:$0x11]  }
  0x4a   : > { %v770_v23 = vsel %vm11032_vm4, %v765_v14, %v769_v58  ;;  %v436_v24 = vor.u32 %v435_v16, %v431_v15  ;;  %v777_v25 = vrot.slane %v775_v19, 5  ;;  %v791_v31 = vshll.u32 %v256_v17, 16  ;;  %v11189_v9 = vld [vmem:[%s11005_s7 + $0x58] sm:$0xf]  ;;  %10542 = vmatprep.subr.msk.bf16.mxu1 %vm1205_vm0, %v11184_v2 }
  0x4b   : > { %v8754_v28 = vcombine.low %v760_v8, %v770_v23  ;;  %v427_v29 = vrot.slane %v426_v6, 4  ;;  %v783_v30 = vrot.slane %v781_v22, 5  ;;  %v787_v35 = vrot.slane %v785_v26, 4  ;;  %v11194_v12 = vld [vmem:[%s15815_s1 + $0x60] ss:$0 sps:$4 sm:$0x11]  }
  0x4c   : > { %v437_v32 = vrot.slane %v436_v24, 4  ;;  %v778_v33 = vor.u32 %v777_v25, %v774_v21  ;;  %v443_v38 = vshrl.u32 %v11138_v59, 16  ;;  %v793_v40 = vrot.slane %v791_v31, 5  ;;  %v260_v22 = vld [vmem:[%s11005_s7 + $0xf4] sm:$0xf]  ;;  %10543 = vmatprep.subr.msk.bf16.mxu0 %vm1205_vm0, %v11194_v12 }
  0x4d   : > { %9949 = vmatmul.mubr.msk.bf16.gmra.mxu1 %vm1108_vm3, %v8754_v28  ;;  %v432_v39 = vsel %vm11032_vm4, %v427_v29, %v431_v15  ;;  %v449_v41 = vshll.u32 %v11156_v27, 16  ;;  %v453_v42 = vshrl.u32 %v11156_v27, 16  ;;  %v788_v45 = vor.u32 %v787_v35, %v783_v30 }
  0x4e   : > { %v442_v43 = vsel %vm11032_vm4, %v437_v32, %v441_v20  ;;  %v779_v44 = vrot.slane %v778_v33, 4  ;;  %v445_v46 = vrot.slane %v443_v38, 4  ;;  %v459_v53 = vshll.u32 %v11159_v37, 16  ;;  %v261_v32 = vld [vmem:[%s11005_s7 + $0xf8] sm:$0xf] }
  0x4f   : > { %v8739_v50 = vcombine.low %v432_v39, %v442_v43  ;;  %v451_v51 = vrot.slane %v449_v41, 5  ;;  %v455_v52 = vrot.slane %v453_v42, 4  ;;  %v789_v57 = vrot.slane %v788_v45, 4 }
  0x50   : > { %v784_v56 = vsel %vm11032_vm4, %v779_v44, %v783_v30  ;;  %v446_v58 = vor.u32 %v445_v46, %v441_v20  ;;  %v795_v61 = vshrl.u32 %v256_v17, 16  ;;  %v461_v7 = vrot.slane %v459_v53, 5  ;;  %v259_v17 = vld [vmem:[%s11005_s7 + $0xf0] sm:$0xf] }
  0x51   : > { %9920 = vmatprep.mubr.msk.bf16.mxu0 %vm1108_vm3, %v8739_v50  ;;  %v456_v63 = vor.u32 %v455_v52, %v451_v51  ;;  %v801_v0 = vshll.u32 %v257_v48, 16  ;;  %v805_v1 = vshrl.u32 %v257_v48, 16  ;;  %v794_v3 = vsel %vm11032_vm4, %v789_v57, %v793_v40 }
  0x52   : > { %v447_v4 = vrot.slane %v446_v58, 4  ;;  %v797_v5 = vrot.slane %v795_v61, 4  ;;  %v811_v8 = vshll.u32 %v258_v49, 16  ;;  %v8755_v13 = vcombine.low %v784_v56, %v794_v3  ;;  %v11222_v56 = vld [vmem:[%s11005_s7 + $0x60] sm:$0x1] }
  0x53   : > { %v457_v14 = vrot.slane %v456_v63, 4  ;;  %v803_v15 = vrot.slane %v801_v0, 5  ;;  %v807_v16 = vrot.slane %v805_v1, 4  ;;  %v464_v21 = vshrl.u32 %v11173_v55, 16 }
  0x54   : > { %v452_v19 = vsel %vm11032_vm4, %v447_v4, %v451_v51  ;;  %v798_v6 = vor.u32 %v797_v5, %v793_v40  ;;  %v813_v20 = vrot.slane %v811_v8, 5  ;;  %9952 = vmatprep.mubr.msk.bf16.mxu1 %vm1108_vm3, %v8755_v13  ;;  %v467_v25 = vshll.u32 %v11173_v55, 16  ;;  %v11214_v40 = vld [vmem:[%s11005_s7 + $0x5c] sm:$0xf] }
  0x55   : > { %v462_v23 = vsel %vm11032_vm4, %v457_v14, %v461_v7  ;;  %v808_v24 = vor.u32 %v807_v16, %v803_v15  ;;  %v473_v26 = vshll.u32 %v11178_v62, 16  ;;  %v466_v30 = vrot.slane %v464_v21, 4  ;;  %v262_v7 = vld [vmem:[%s11005_s7 + $0xfc] sm:$0xf] }
  0x56   : > { %v8740_v28 = vcombine.low %v452_v19, %v462_v23  ;;  %v799_v29 = vrot.slane %v798_v6, 4  ;;  %v477_v31 = vshrl.u32 %v11178_v62, 16  ;;  %v469_v35 = vrot.slane %v467_v25, 5 }
  0x57   : > { %v809_v33 = vrot.slane %v808_v24, 4  ;;  %v475_v38 = vrot.slane %v473_v26, 5  ;;  %v483_v39 = vshll.u32 %v11189_v9, 16  ;;  %v816_v43 = vshrl.u32 %v259_v17, 16 }
  0x58   : > { %9921 = vmatmul.mubr.msk.bf16.gmra.mxu0 %vm1108_vm3, %v8740_v28  ;;  %v804_v41 = vsel %vm11032_vm4, %v799_v29, %v803_v15  ;;  %v479_v42 = vrot.slane %v477_v31, 4  ;;  %v819_v44 = vshll.u32 %v259_v17, 16  ;;  %v470_v46 = vor.u32 %v469_v35, %v466_v30  ;;  %v263_v15 = vld [vmem:[%s11005_s7 + $0x100] sm:$0x1] }
  0x59   : > { %v814_v45 = vsel %vm11032_vm4, %v809_v33, %v813_v20  ;;  %v485_v48 = vrot.slane %v483_v39, 5  ;;  %v825_v49 = vshll.u32 %v260_v22, 16  ;;  %v818_v52 = vrot.slane %v816_v43, 4  ;;  %v11235_v20 = vld [vmem:[%s11005_s7 + $0x64] sm:$0xf] }
  0x5a   : > { %v8756_v50 = vcombine.low %v804_v41, %v814_v45  ;;  %v480_v51 = vor.u32 %v479_v42, %v475_v38  ;;  %v821_v53 = vrot.slane %v819_v44, 5  ;;  %v471_v57 = vrot.slane %v470_v46, 4  ;;  %v11245_v44 = vld [vmem:[%s11005_s7 + $0x6c] sm:$0xf]  ;;  %v11248_v45 = vld [vmem:[%s11005_s7 + $0x104] sm:$0xf] }
  0x5b   : > { %v827_v58 = vrot.slane %v825_v49, 5  ;;  %v829_v61 = vshrl.u32 %v260_v22, 16  ;;  %v835_v63 = vshll.u32 %v261_v32, 16  ;;  %v487_v3 = vshrl.u32 %v11189_v9, 16 }
  0x5c   : > { %9953 = vmatmul.mubr.msk.bf16.gmra.mxu1 %vm1108_vm3, %v8756_v50  ;;  %v481_v0 = vrot.slane %v480_v51, 4  ;;  %v822_v1 = vor.u32 %v821_v53, %v818_v52  ;;  %v493_v4 = vshll.u32 %v11214_v40, 16  ;;  %v476_v5 = vsel %vm11032_vm4, %v471_v57, %v475_v38  ;;  %v11242_v38 = vld [vmem:[%s11005_s7 + $0x68] sm:$0xf] }
  0x5d   : > { %v831_v8 = vrot.slane %v829_v61, 4  ;;  %v837_v13 = vrot.slane %v835_v63, 5  ;;  %v497_v14 = vshrl.u32 %v11214_v40, 16  ;;  %v489_v19 = vrot.slane %v487_v3, 4 }
  0x5e   : > { %v486_v16 = vsel %vm11032_vm4, %v481_v0, %v485_v48  ;;  %v823_v17 = vrot.slane %v822_v1, 4  ;;  %v495_v6 = vrot.slane %v493_v4, 5  ;;  %v503_v24 = vshll.u32 %v11222_v56, 16 }
  0x5f   : > { %v8741_v21 = vcombine.low %v476_v5, %v486_v16  ;;  %v832_v22 = vor.u32 %v831_v8, %v827_v58  ;;  %v499_v23 = vrot.slane %v497_v14, 4  ;;  %v490_v26 = vor.u32 %v489_v19, %v485_v48  ;;  %v11270_v19 = vld [vmem:[%s11005_s7 + $0x10c] sm:$0xf] }
  0x60   : > { %v828_v25 = vsel %vm11032_vm4, %v823_v17, %v827_v58  ;;  %v839_v28 = vshrl.u32 %v261_v32, 16  ;;  %v845_v29 = vshll.u32 %v262_v7, 16  ;;  %v505_v33 = vrot.slane %v503_v24, 5 }
  0x61   : > { %9924 = vmatprep.mubr.msk.bf16.mxu0 %vm1108_vm3, %v8741_v21  ;;  %v833_v30 = vrot.slane %v832_v22, 4  ;;  %v500_v31 = vor.u32 %v499_v23, %v495_v6  ;;  %v849_v35 = vshrl.u32 %v262_v7, 16  ;;  %v491_v39 = vrot.slane %v490_v26, 4 }
  0x62   : > { %v841_v41 = vrot.slane %v839_v28, 4  ;;  %v847_v42 = vrot.slane %v845_v29, 5  ;;  %v855_v43 = vshll.u32 %v263_v15, 16  ;;  %v508_v49 = vshrl.u32 %v11235_v20, 16 }
  0x63   : > { %v838_v32 = vsel %vm11032_vm4, %v833_v30, %v837_v13  ;;  %v501_v46 = vrot.slane %v500_v31, 4  ;;  %v851_v48 = vrot.slane %v849_v35, 4  ;;  %v496_v51 = vsel %vm11032_vm4, %v491_v39, %v495_v6 }
  0x64   : > { %v8757_v50 = vcombine.low %v828_v25, %v838_v32  ;;  %v842_v52 = vor.u32 %v841_v41, %v837_v13  ;;  %v857_v53 = vrot.slane %v855_v43, 5  ;;  %v510_v61 = vrot.slane %v508_v49, 4  ;;  %v11263_v13 = vld [vmem:[%s11005_s7 + $0x108] sm:$0xf]  ;;  %v11276_v25 = vld [vmem:[%s11005_s7 + $0x70] sm:$0xf] }
  0x65   : > { %v506_v57 = vsel %vm11032_vm4, %v501_v46, %v505_v33  ;;  %v852_v58 = vor.u32 %v851_v48, %v847_v42  ;;  %v511_v63 = vshll.u32 %v11235_v20, 16  ;;  %v517_v1 = vshll.u32 %v11242_v38, 16  ;;  %v11284_v32 = vld [vmem:[%s11005_s7 + $0x74] sm:$0x1] }
  0x66   : > { %9956 = vmatprep.mubr.msk.bf16.mxu1 %vm1108_vm3, %v8757_v50  ;;  %v8742_v7 = vcombine.low %v496_v51, %v506_v57  ;;  %v843_v0 = vrot.slane %v842_v52, 4  ;;  %v521_v3 = vshrl.u32 %v11242_v38, 16  ;;  %v527_v8 = vshll.u32 %v11245_v44, 16  ;;  %v11290_v52 = vld [vmem:[%s11005_s7 + $0x110] sm:$0xf] }
  0x67   : > { %v853_v4 = vrot.slane %v852_v58, 4  ;;  %v513_v5 = vrot.slane %v511_v63, 5  ;;  %v860_v14 = vshrl.u32 %v11248_v45, 16  ;;  %v519_v16 = vrot.slane %v517_v1, 5 }
  0x68   : > { %9925 = vmatmul.mubr.msk.bf16.gmra.mxu0 %vm1108_vm3, %v8742_v7  ;;  %v848_v15 = vsel %vm11032_vm4, %v843_v0, %v847_v42  ;;  %v523_v17 = vrot.slane %v521_v3, 4  ;;  %v863_v6 = vshll.u32 %v11248_v45, 16  ;;  %v529_v23 = vrot.slane %v527_v8, 5  ;;  %v11297_v3 = vld [vmem:[%s11005_s7 + $0x114] sm:$0x1] }
  0x69   : > { %v858_v21 = vsel %vm11032_vm4, %v853_v4, %v857_v53  ;;  %v514_v22 = vor.u32 %v513_v5, %v510_v61  ;;  %v862_v24 = vrot.slane %v860_v14, 4  ;;  %v869_v30 = vshll.u32 %v11263_v13, 16 }
  0x6a   : > { %v8758_v26 = vcombine.low %v848_v15, %v858_v21  ;;  %v524_v28 = vor.u32 %v523_v17, %v519_v16  ;;  %v865_v29 = vrot.slane %v863_v6, 5  ;;  %v873_v33 = vshrl.u32 %v11263_v13, 16  ;;  %v11304_v15 = vld [vmem:[%s11005_s7 + $0x78] sm:$0xf] }
  0x6b   : > { %v515_v31 = vrot.slane %v514_v22, 4  ;;  %v879_v35 = vshll.u32 %v11270_v19, 16  ;;  %v531_v39 = vshrl.u32 %v11245_v44, 16  ;;  %v871_v43 = vrot.slane %v869_v30, 5 }
  0x6c   : > { %9957 = vmatmul.mubr.msk.bf16.gmra.mxu1 %vm1108_vm3, %v8758_v26  ;;  %v525_v41 = vrot.slane %v524_v28, 4  ;;  %v866_v42 = vor.u32 %v865_v29, %v862_v24  ;;  %v537_v46 = vshll.u32 %v11276_v25, 16  ;;  %v875_v49 = vrot.slane %v873_v33, 4  ;;  %v11310_v28 = vld [vmem:[%s11005_s7 + $0x7c] sm:$0xf] }
  0x6d   : > { %v520_v48 = vsel %vm11032_vm4, %v515_v31, %v519_v16  ;;  %v881_v50 = vrot.slane %v879_v35, 5  ;;  %v533_v51 = vrot.slane %v531_v39, 4  ;;  %v541_v61 = vshrl.u32 %v11276_v25, 16  ;;  %v11317_v33 = vld [vmem:[%s11005_s7 + $0x80] sm:$0xf] }
  0x6e   : > { %v530_v53 = vsel %vm11032_vm4, %v525_v41, %v529_v23  ;;  %v867_v57 = vrot.slane %v866_v42, 4  ;;  %v539_v58 = vrot.slane %v537_v46, 5  ;;  %v876_v7 = vor.u32 %v875_v49, %v871_v43 }
  0x6f   : > { %v8743_v63 = vcombine.low %v520_v48, %v530_v53  ;;  %v534_v0 = vor.u32 %v533_v51, %v529_v23  ;;  %v547_v1 = vshll.u32 %v11284_v32, 16  ;;  %v543_v5 = vrot.slane %v541_v61, 4  ;;  %v11323_v53 = vld [vmem:[%s11005_s7 + $0x118] sm:$0xf] }
  0x70   : > { %v872_v4 = vsel %vm11032_vm4, %v867_v57, %v871_v43  ;;  %v883_v8 = vshrl.u32 %v11270_v19, 16  ;;  %v889_v14 = vshll.u32 %v11290_v52, 16  ;;  %v877_v16 = vrot.slane %v876_v7, 4  ;;  %16015 = vst [vmem:[#allocation3_spill] sm:$0xff] %v11323_v53 }
  0x71   : > { %9928 = vmatprep.mubr.msk.bf16.mxu0 %vm1108_vm3, %v8743_v63  ;;  %v535_v17 = vrot.slane %v534_v0, 4  ;;  %v549_v6 = vrot.slane %v547_v1, 5  ;;  %v893_v21 = vshrl.u32 %v11290_v52, 16  ;;  %v544_v22 = vor.u32 %v543_v5, %v539_v58  ;;  %v11331_v63 = vld [vmem:[%s11005_s7 + $0x11c] sm:$0xf] }
  0x72   : > { %v885_v23 = vrot.slane %v883_v8, 4  ;;  %v891_v24 = vrot.slane %v889_v14, 5  ;;  %v899_v26 = vshll.u32 %v11297_v3, 16  ;;  %v882_v29 = vsel %vm11032_vm4, %v877_v16, %v881_v50  ;;  %16016 = vst [vmem:[#allocation4_spill] sm:$0xff] %v11331_v63  ;;  %v11336_v16 = vld [vmem:[%s11005_s7 + $0x120] sm:$0xf] }
  0x73   : > { %v540_v30 = vsel %vm11032_vm4, %v535_v17, %v539_v58  ;;  %v895_v31 = vrot.slane %v893_v21, 4  ;;  %v552_v35 = vshrl.u32 %v11304_v15, 16  ;;  %v8759_v39 = vcombine.low %v872_v4, %v882_v29  ;;  %16017 = vst [vmem:[#allocation5_spill] sm:$0xff] %v11336_v16 }
  0x74   : > { %v545_v41 = vrot.slane %v544_v22, 4  ;;  %v886_v42 = vor.u32 %v885_v23, %v881_v50  ;;  %v901_v43 = vrot.slane %v899_v26, 5  ;;  %v555_v49 = vshll.u32 %v11304_v15, 16  ;;  %v11345_v26 = vld [vmem:[%s11005_s7 + $0x84] sm:$0xf] }
  0x75   : > { %v896_v46 = vor.u32 %v895_v31, %v891_v24  ;;  %v554_v48 = vrot.slane %v552_v35, 4  ;;  %v561_v51 = vshll.u32 %v11310_v28, 16  ;;  %9960 = vmatprep.mubr.msk.bf16.mxu1 %vm1108_vm3, %v8759_v39  ;;  %v565_v61 = vshrl.u32 %v11310_v28, 16 }
  0x76   : > { %v550_v57 = vsel %vm11032_vm4, %v545_v41, %v549_v6  ;;  %v887_v58 = vrot.slane %v886_v42, 4  ;;  %v571_v50 = vshll.u32 %v11317_v33, 16  ;;  %v557_v1 = vrot.slane %v555_v49, 5 }
  0x77   : > { %v8744_v7 = vcombine.low %v540_v30, %v550_v57  ;;  %v897_v0 = vrot.slane %v896_v46, 4  ;;  %v563_v4 = vrot.slane %v561_v51, 5  ;;  %v567_v8 = vrot.slane %v565_v61, 4 }
  0x78   : > { %v892_v5 = vsel %vm11032_vm4, %v887_v58, %v891_v24  ;;  %v573_v14 = vrot.slane %v571_v50, 5  ;;  %v904_v17 = vshrl.u32 %v11323_v53, 16  ;;  %v558_v21 = vor.u32 %v557_v1, %v554_v48  ;;  %v11351_v48 = vld [vmem:[%s11005_s7 + $0x88] sm:$0x1] }
  0x79   : > { %9929 = vmatmul.mubr.msk.bf16.gmra.mxu0 %vm1108_vm3, %v8744_v7  ;;  %v902_v6 = vsel %vm11032_vm4, %v897_v0, %v901_v43  ;;  %v907_v22 = vshll.u32 %v11323_v53, 16  ;;  %v913_v23 = vshll.u32 %v11331_v63, 16  ;;  %v568_v29 = vor.u32 %v567_v8, %v563_v4  ;;  %v11359_v7 = vld [vmem:[%s11005_s7 + $0x124] sm:$0xf]  ;;  %v10712_v53 = vld [vmem:[%s11005_s7] sm:$0xf] }
  0x7a   : > { %v8760_v24 = vcombine.low %v892_v5, %v902_v6  ;;  %v906_v30 = vrot.slane %v904_v17, 4  ;;  %v917_v31 = vshrl.u32 %v11331_v63, 16  ;;  %v559_v35 = vrot.slane %v558_v21, 4  ;;  %16018 = vst [vmem:[#allocation6_spill] sm:$0xff] %v11359_v7 }
  0x7b   : > { %v909_v39 = vrot.slane %v907_v22, 5  ;;  %v915_v41 = vrot.slane %v913_v23, 5  ;;  %v923_v42 = vshll.u32 %v11336_v16, 16  ;;  %v569_v43 = vrot.slane %v568_v29, 4 }
  0x7c   : > { %9961 = vmatmul.mubr.msk.bf16.gmra.mxu1 %vm1108_vm3, %v8760_v24  ;;  %v919_v46 = vrot.slane %v917_v31, 4  ;;  %v575_v49 = vshrl.u32 %v11317_v33, 16  ;;  %v581_v51 = vshll.u32 %v11345_v26, 16  ;;  %v564_v57 = vsel %vm11032_vm4, %v559_v35, %v563_v4  ;;  %v11365_v24 = vld [vmem:[%s11005_s7 + $0x128] sm:$0x1] }
  0x7d   : > { %v910_v58 = vor.u32 %v909_v39, %v906_v30  ;;  %v925_v61 = vrot.slane %v923_v42, 5  ;;  %v585_v50 = vshrl.u32 %v11345_v26, 16  ;;  %v574_v0 = vsel %vm11032_vm4, %v569_v43, %v573_v14  ;;  %16019 = vst [vmem:[#allocation7_spill] sm:$0xff] %v11365_v24  ;;  %v11374_v43 = vld [vmem:[%s11005_s7 + $0x8c] sm:$0xf] }
  0x7e   : > { %v920_v1 = vor.u32 %v919_v46, %v915_v41  ;;  %v577_v5 = vrot.slane %v575_v49, 4  ;;  %v583_v8 = vrot.slane %v581_v51, 5  ;;  %v8745_v17 = vcombine.low %v564_v57, %v574_v0  ;;  %v11379_v57 = vld [vmem:[%s11005_s7 + $0x90] sm:$0xf] }
  0x7f   : > { %v911_v6 = vrot.slane %v910_v58, 4  ;;  %v587_v21 = vrot.slane %v585_v50, 4  ;;  %v591_v22 = vshll.u32 %v11351_v48, 16  ;;  %v927_v29 = vshrl.u32 %v11336_v16, 16 }
  0x80   : > { %v921_v4 = vrot.slane %v920_v1, 4  ;;  %v578_v23 = vor.u32 %v577_v5, %v573_v14  ;;  %v933_v30 = vshll.u32 %v11359_v7, 16  ;;  %9932 = vmatprep.mubr.msk.bf16.mxu0 %vm1108_vm3, %v8745_v17  ;;  %v937_v42 = vshrl.u32 %v11359_v7, 16  ;;  %v11385_v17 = vld [vmem:[%s11005_s7 + $0x94] sm:$0xf] }
  0x81   : > { %v916_v31 = vsel %vm11032_vm4, %v911_v6, %v915_v41  ;;  %v588_v35 = vor.u32 %v587_v21, %v583_v8  ;;  %v593_v39 = vrot.slane %v591_v22, 5  ;;  %v929_v49 = vrot.slane %v927_v29, 4 }
  0x82   : > { %v926_v14 = vsel %vm11032_vm4, %v921_v4, %v925_v61  ;;  %v579_v46 = vrot.slane %v578_v23, 4  ;;  %v935_v51 = vrot.slane %v933_v30, 5  ;;  %v939_v0 = vrot.slane %v937_v42, 4  ;;  %v11394_v30 = vld [vmem:[%s11005_s7 + $0x12c] sm:$0xf] }
  0x83   : > { %v8761_v58 = vcombine.low %v916_v31, %v926_v14  ;;  %v589_v50 = vrot.slane %v588_v35, 4  ;;  %v943_v41 = vshll.u32 %v11365_v24, 16  ;;  %v930_v5 = vor.u32 %v929_v49, %v925_v61  ;;  %16020 = vst [vmem:[#allocation8_spill] sm:$0xff] %v11394_v30  ;;  %v11397_v42 = vld [vmem:[%s11005_s7 + $0x130] sm:$0xf] }
  0x84   : > { %v584_v1 = vsel %vm11032_vm4, %v579_v46, %v583_v8  ;;  %v596_v6 = vshrl.u32 %v11374_v43, 16  ;;  %v599_v21 = vshll.u32 %v11374_v43, 16  ;;  %v940_v4 = vor.u32 %v939_v0, %v935_v51  ;;  %16021 = vst [vmem:[#allocation9_spill] sm:$0xff] %v11397_v42  ;;  %v11405_v0 = vld [vmem:[%s11005_s7 + $0x134] sm:$0xf] }
  0x85   : > { %9964 = vmatprep.mubr.msk.bf16.mxu1 %vm1108_vm3, %v8761_v58  ;;  %v594_v22 = vsel %vm11032_vm4, %v589_v50, %v593_v39  ;;  %v945_v23 = vrot.slane %v943_v41, 5  ;;  %v605_v29 = vshll.u32 %v11379_v57, 16  ;;  %v931_v61 = vrot.slane %v930_v5, 4  ;;  %16022 = vst [vmem:[#allocation10_spill] sm:$0xff] %v11405_v0 }
  0x86   : > { %v8746_v8 = vcombine.low %v584_v1, %v594_v22  ;;  %v598_v31 = vrot.slane %v596_v6, 4  ;;  %v601_v35 = vrot.slane %v599_v21, 5  ;;  %v941_v14 = vrot.slane %v940_v4, 4  ;;  %v11413_v4 = vld [vmem:[%s11005_s7 + $0x98] sm:$0xf] }
  0x87   : > { %v607_v46 = vrot.slane %v605_v29, 5  ;;  %v609_v49 = vshrl.u32 %v11379_v57, 16  ;;  %v615_v39 = vshll.u32 %v11385_v17, 16  ;;  %v936_v58 = vsel %vm11032_vm4, %v931_v61, %v935_v51 }
  0x88   : > { %9933 = vmatmul.mubr.msk.bf16.gmra.mxu0 %vm1108_vm3, %v8746_v8  ;;  %v602_v50 = vor.u32 %v601_v35, %v598_v31  ;;  %v948_v41 = vshrl.u32 %v11394_v30, 16  ;;  %v951_v1 = vshll.u32 %v11394_v30, 16  ;;  %v946_v5 = vsel %vm11032_vm4, %v941_v14, %v945_v23  ;;  %v11418_v30 = vld [vmem:[%s11005_s7 + $0x9c] sm:$0x1] }
  0x89   : > { %v611_v6 = vrot.slane %v609_v49, 4  ;;  %v617_v21 = vrot.slane %v615_v39, 5  ;;  %v957_v22 = vshll.u32 %v11397_v42, 16  ;;  %v8762_v29 = vcombine.low %v936_v58, %v946_v5 }
  0x8a   : > { %v603_v8 = vrot.slane %v602_v50, 4  ;;  %v950_v51 = vrot.slane %v948_v41, 4  ;;  %v953_v61 = vrot.slane %v951_v1, 5  ;;  %v961_v18 = vshrl.u32 %v11397_v42, 16 }
  0x8b   : > { %v612_v31 = vor.u32 %v611_v6, %v607_v46  ;;  %v959_v35 = vrot.slane %v957_v22, 5  ;;  %v967_v60 = vshll.u32 %v11405_v0, 16  ;;  %9965 = vmatmul.mubr.msk.bf16.gmra.mxu1 %vm1108_vm3, %v8762_v29  ;;  %v619_v49 = vshrl.u32 %v11385_v17, 16  ;;  %v11428_v29 = vld [vmem:[%s11005_s7 + $0x138] sm:$0xf] }
  0x8c   : > { %v608_v23 = vsel %vm11032_vm4, %v603_v8, %v607_v46  ;;  %v954_v14 = vor.u32 %v953_v61, %v950_v51  ;;  %v625_v39 = vshll.u32 %v11413_v4, 16  ;;  %v963_v50 = vrot.slane %v961_v18, 4  ;;  %16023 = vst [vmem:[#allocation11_spill] sm:$0xff] %v11428_v29  ;;  %v11433_v61 = vld [vmem:[%s11005_s7 + $0x13c] sm:$0x1] }
  0x8d   : > { %v613_v58 = vrot.slane %v612_v31, 4  ;;  %v969_v41 = vrot.slane %v967_v60, 5  ;;  %v629_v1 = vshrl.u32 %v11413_v4, 16  ;;  %v621_v6 = vrot.slane %v619_v49, 4 }
  0x8e   : > { %v955_v5 = vrot.slane %v954_v14, 4  ;;  %v627_v22 = vrot.slane %v625_v39, 5  ;;  %v635_v42 = vshll.u32 %v11418_v30, 16  ;;  %v964_v8 = vor.u32 %v963_v50, %v959_v35 }
  0x8f   : > { %v618_v46 = vsel %vm11032_vm4, %v613_v58, %v617_v21  ;;  %v631_v51 = vrot.slane %v629_v1, 4  ;;  %v971_v18 = vshrl.u32 %v11405_v0, 16  ;;  %v622_v14 = vor.u32 %v621_v6, %v617_v21  ;;  %v10713_v0 = vld [vmem:[%s11005_s7 + $0x4] sm:$0xf] }
  0x90   : > { %v8747_v60 = vcombine.low %v608_v23, %v618_v46  ;;  %v960_v31 = vsel %vm11032_vm4, %v955_v5, %v959_v35  ;;  %v637_v49 = vrot.slane %v635_v42, 5  ;;  %v965_v39 = vrot.slane %v964_v8, 4 }
  0x91   : > { %v632_v24 = vor.u32 %v631_v51, %v627_v22  ;;  %v973_v7 = vrot.slane %v971_v18, 4  ;;  %v977_v16 = vshll.u32 %v11428_v29, 16  ;;  %v623_v58 = vrot.slane %v622_v14, 4 }
  0x92   : > { %9936 = vmatprep.mubr.msk.bf16.mxu0 %vm1108_vm3, %v8747_v60  ;;  %v981_v50 = vshrl.u32 %v11428_v29, 16  ;;  %v987_v1 = vshll.u32 %v11433_v61, 16  ;;  %v8800_v23 = vcombine.low %v10712_v53, %v10713_v0  ;;  %v970_v35 = vsel %vm11032_vm4, %v965_v39, %v969_v41  ;;  %v10715_v39 = vld [vmem:[%s11005_s7 + $0xc] sm:$0xf] }
  0x93   : > { %v633_v21 = vrot.slane %v632_v24, 4  ;;  %v974_v42 = vor.u32 %v973_v7, %v969_v41  ;;  %v979_v5 = vrot.slane %v977_v16, 5  ;;  %v8763_v6 = vcombine.low %v960_v31, %v970_v35  ;;  %v10714_v31 = vld [vmem:[%s11005_s7 + $0x8] sm:$0xf] }
  0x94   : > { %v628_v46 = vsel %vm11032_vm4, %v623_v58, %v627_v22  ;;  %v983_v8 = vrot.slane %v981_v50, 4  ;;  %v989_v51 = vrot.slane %v987_v1, 5  ;;  %v16024_v16 = vmov 0 }
  0x95   : > { %v638_v18 = vsel %vm11032_vm4, %v633_v21, %v637_v49  ;;  %v975_v60 = vrot.slane %v974_v42, 4  ;;  %9968 = vmatprep.mubr.msk.bf16.mxu1 %vm1108_vm3, %v8763_v6  ;;  %v16025_v16 = vsel %vm11451_vm7, 4294967295, %v16024_v16  ;;  %v8867_v7 = vrot.slane %v10712_v53, 9  ;;  %v11472_v6 = vld [vmem:[%s11005_s7 + $0x18] sm:$0xf] }
  0x96   : > { %v8748_v14 = vcombine.low %v628_v46, %v638_v18  ;;  %v984_v24 = vor.u32 %v983_v8, %v979_v5  ;;  %16026 = vst [vmem:[#allocation12_spill] sm:$0xff] %v16025_v16  ;;  %v2082_v41 = vrot.slane %v10713_v0, 5  ;;  %v2085_v49 = vrot.slane %v10714_v31, 5 }
  0x97   : > { %v980_v22 = vsel %vm11032_vm4, %v975_v60, %v979_v5  ;;  %v2088_v58 = vrot.slane %v10715_v39, 5  ;;  %v11461_v50 = vsel %vm1205_vm0, %v11184_v2, 0  ;;  %v4492_v0 = vsel %vm1205_vm0, %v11194_v12, 0  ;;  %v11469_v5 = vld [vmem:[%s11005_s7 + $0x14] sm:$0xf] }
  0x98   : > { %9937 = vmatmul.mubr.msk.bf16.gmra.mxu0 %vm1108_vm3, %v8748_v14  ;;  %v985_v1 = vrot.slane %v984_v24, 4  ;;  %v2083_v53 = vsel %vm11451_vm7, %v8867_v7, %v2082_v41  ;;  %v2084_v35 = vrot.slane %v2082_v41, 4  ;;  %v2087_v21 = vrot.slane %v2085_v49, 4  ;;  %v11483_v60 = vld [vmem:[%s11005_s7 + $0x1c] sm:$0xf] }
  0x99   : > { %v2090_v42 = vrot.slane %v2088_v58, 4  ;;  %v8868_v46 = vrot.slane %v11469_v5, 9  ;;  %v2095_v12 = vrot.slane %v11472_v6, 5  ;;  %v2098_v14 = vrot.slane %v11483_v60, 5 }
  0x9a   : > { %v990_v8 = vsel %vm11032_vm4, %v985_v1, %v989_v51  ;;  %v2086_v18 = vsel %vm11451_vm7, %v2084_v35, %v2085_v49  ;;  %v2089_v41 = vsel %vm11451_vm7, %v2087_v21, %v2088_v58  ;;  %v16027_v31 = vrot.slane %v11037_v47, 5  ;;  %v11495_v35 = vld [vmem:[%s11005_s7 + $0x20] sm:$0xf] }
  0x9b   : > { %v8764_v24 = vcombine.low %v980_v22, %v990_v8  ;;  %v8888_v7 = vcombine.low %v2083_v53, %v2086_v18  ;;  %v2096_v39 = vsel %vm11451_vm7, %v8868_v46, %v2095_v12  ;;  %v2097_v1 = vrot.slane %v2095_v12, 4  ;;  %v10720_v53 = vld [vmem:[%s11005_s7 + $0x24] sm:$0x1]  ;;  %v11507_v46 = vld [vmem:[%s11005_s7 + $0x2c] sm:$0xf] }
  0x9c   : > { %v2092_v51 = vsel %vm11451_vm7, %v2090_v42, %v16027_v31  ;;  %v2100_v58 = vrot.slane %v2098_v14, 4  ;;  %v2101_v47 = vrot.slane %v11495_v35, 5  ;;  %v2104_v21 = vrot.slane %v10720_v53, 5  ;;  %v11504_v42 = vld [vmem:[%s11005_s7 + $0x28] sm:$0xf]  ;;  %v10613_v31 = vld [vmem:[%s15815_s1 + $0x58] sm:$0xff]  }
  0x9d   : > { %v8889_v49 = vcombine.low %v2089_v41, %v2092_v51  ;;  %9969 = vmatmul.mubr.msk.bf16.gmra.mxu1 %vm1108_vm3, %v8764_v24  ;;  %10048 = vmatprep.mubr.msk.bf16.mxu0 %vm1108_vm3, %v8888_v7  ;;  %v2099_v18 = vsel %vm11451_vm7, %v2097_v1, %v2098_v14  ;;  %v8869_v12 = vrot.slane %v11504_v42, 9  ;;  %v2108_v24 = vrot.slane %v11507_v46, 5  ;;  %v11517_v7 = vld [vmem:[%s11005_s7 + $0x30] sm:$0xf]  ;;  %v11526_v8 = vld [vmem:[%s11005_s7 + $0x34] sm:$0xf] }
  0x9e   : > { %9978 = vmatprep.mubr.msk.bf16.mxu1 %vm1108_vm3, %v8800_v23  ;;  %v2111_v41 = vrot.slane %v11517_v7, 5  ;;  %v8890_v51 = vcombine.low %v2096_v39, %v2099_v18  ;;  %v2102_v23 = vsel %vm11451_vm7, %v2100_v58, %v2101_v47  ;;  %v2103_v53 = vrot.slane %v2101_v47, 4  ;;  %v10725_v58 = vld [vmem:[%s11005_s7 + $0x38] sm:$0x1] }
  0x9f   : > { %v2109_v1 = vsel %vm11451_vm7, %v8869_v12, %v2108_v24  ;;  %v2110_v22 = vrot.slane %v2108_v24, 4  ;;  %v2114_v34 = vrot.slane %v11526_v8, 5  ;;  %v2117_v47 = vrot.slane %v10725_v58, 5 }
  0xa0   : > { %10049 = vmatmul.mubr.msk.bf16.vlgmr.msra.gmra.mxu0 %vm1108_vm3, %v8889_v49  ;;  %v2113_v2 = vrot.slane %v2111_v41, 4  ;;  %v2105_v39 = vsel %vm11451_vm7, %v2103_v53, %v2104_v21  ;;  %v8806_v18 = vcombine.low %v11124_v36, %v11133_v54  ;;  %v8870_v49 = vrot.slane %v11124_v36, 9  ;;  %v11751_v36 = vld [vmem:[%s11005_s7 + $0xac] sm:$0xf] }
  0xa1   : > { %10183 = vmatpush3.bf16.msra.mxu0 %v4492_v0  ;;  %10052 = vmatprep.mubr.msk.bf16.mxu0 %vm1108_vm3, %v8890_v51  ;;  %v8891_v14 = vcombine.low %v2102_v23, %v2105_v39  ;;  %v2112_v12 = vsel %vm11451_vm7, %v2110_v22, %v2111_v41  ;;  %v2116_v0 = vrot.slane %v2114_v34, 4  ;;  %v2121_v21 = vrot.slane %v11133_v54, 5  ;;  %v10612_v23 = vld [vmem:[%s15815_s1 + $0x44] sm:$0xff]   ;;  %v10626_v22 = vld [vmem:[%s15815_s1 + $0x50] sm:$0xff]   ;;  %16033 = vst [vmem:[#allocation13_spill] sm:$0xff] %v11751_v36 }
  0xa2   : > { %v11545_v24 = vsel %vm11451_vm7, %v2113_v2, %v2114_v34  ;;  %10184 = vmatprep.subr.bf16.mxu0 %v10613_v31  ;;  %v8892_v51 = vcombine.low %v2109_v1, %v2112_v12  ;;  %v2124_v53 = vrot.slane %v11138_v59, 5  ;;  %v2127_v2 = vrot.slane %v11156_v27, 5  ;;  %v10730_v54 = vld [vmem:[%s11005_s7 + $0xb0] sm:$0x1] }
  0xa3   : > { %v11559_v34 = vsel %vm11451_vm7, %v2116_v0, %v2117_v47  ;;  %v2130_v41 = vrot.slane %v11159_v37, 5  ;;  %v16028_v39 = vcombine.low %v11016_v10, %v11019_v11  ;;  %v11573_v58 = vsel %vm11451_vm7, %v8870_v49, %v2121_v21 }
  0xa4   : > { %v8893_v12 = vcombine.low %v11545_v24, %v11559_v34  ;;  %v2123_v47 = vrot.slane %v2121_v21, 4  ;;  %v2126_v0 = vrot.slane %v2124_v53, 4  ;;  %v16029_v37 = vcombine.low %v11469_v5, %v11472_v6  ;;  %v10624_v6 = vld [vmem:[%s15815_s1 + $0x3c] sm:$0xff]   ;;  %v11598_v21 = vld [vmem:[%s15815_s1 + $0x88] ss:$0 sps:$4 sm:$0x11]  }
  0xa5   : > { %9979 = vmatmul.mubr.msk.bf16.vlgmr.msra.gmra.mxu1 %vm1108_vm3, %v16028_v39  ;;  %10185 = vmatpush3.bf16.msra.mxu0 %v10613_v31  ;;  %v2129_v10 = vrot.slane %v2127_v2, 4  ;;  %v8871_v11 = vrot.slane %v11173_v55, 9  ;;  %v2134_v39 = vrot.slane %v11178_v62, 5  ;;  %v2137_v24 = vrot.slane %v11189_v9, 5 }
  0xa6   : > { %10113 = vmatpush3.bf16.msra.mxu1 %v11461_v50  ;;  %9982 = vmatprep.mubr.msk.bf16.mxu1 %vm1108_vm3, %v16029_v37  ;;  %v2125_v49 = vsel %vm11451_vm7, %v2123_v47, %v2124_v53  ;;  %v11587_v31 = vsel %vm11451_vm7, %v2126_v0, %v2127_v2  ;;  %v2140_v5 = vrot.slane %v11214_v40, 5 }
  0xa7   : > { %10114 = vmatprep.subr.bf16.mxu1 %v10612_v23  ;;  %10186 = vmatprep.subr.bf16.mxu0 %v10626_v22  ;;  %v8894_v53 = vcombine.low %v11573_v58, %v2125_v49  ;;  %v11604_v34 = vsel %vm11451_vm7, %v2129_v10, %v2130_v41  ;;  %v11608_v2 = vsel %vm11451_vm7, %v8871_v11, %v2134_v39  ;;  %v2136_v47 = vrot.slane %v2134_v39, 4 }
  0xa8   : > { %10053 = vmatmul.mubr.msk.bf16.gmra.mxu0 %vm1108_vm3, %v8891_v14  ;;  %v8895_v0 = vcombine.low %v11587_v31, %v11604_v34  ;;  %v2139_v37 = vrot.slane %v2137_v24, 4  ;;  %v2142_v50 = vrot.slane %v2140_v5, 4  ;;  %v2143_v14 = vrot.slane %v11222_v56, 5  ;;  %v11802_v31 = vld [vmem:[%s11005_s7 + $0xbc] sm:$0xf] }
  0xa9   : > { %10056 = vmatprep.mubr.msk.bf16.mxu0 %vm1108_vm3, %v8892_v51  ;;  %10187 = vmatpush3.bf16.msra.mxu0 %v10626_v22  ;;  %v11616_v58 = vsel %vm11451_vm7, %v2136_v47, %v2137_v24  ;;  %v8872_v10 = vrot.slane %v11235_v20, 9  ;;  %v2147_v11 = vrot.slane %v11242_v38, 5  ;;  %v2150_v39 = vrot.slane %v11245_v44, 5  ;;  %16036 = vst [vmem:[#allocation16_spill] sm:$0xff] %v11802_v31 }
  0xaa   : > { %10115 = vmatpush3.bf16.msra.mxu1 %v10612_v23  ;;  %10545 = vmatprep.subr.msk.bf16.mxu0 %vm1205_vm0, %v11598_v21  ;;  %v8896_v51 = vcombine.low %v11608_v2, %v11616_v58  ;;  %v11628_v56 = vsel %vm11451_vm7, %v2139_v37, %v2140_v5  ;;  %v11632_v22 = vsel %vm11451_vm7, %v2142_v50, %v2143_v14  ;;  %v11638_v23 = vld [vmem:[%s15815_s1 + $0x74] ss:$0 sps:$4 sm:$0x11]   ;;  %v2153_v14 = vrot.slane %v11276_v25, 5 }
  0xab   : > { %10116 = vmatprep.subr.bf16.mxu1 %v10624_v6  ;;  %v11644_v49 = vsel %vm11451_vm7, %v8872_v10, %v2147_v11  ;;  %v2149_v5 = vrot.slane %v2147_v11, 4  ;;  %v16030_v47 = vcombine.low %v11483_v60, %v11495_v35  ;;  %v2152_v37 = vrot.slane %v2150_v39, 4 }
  0xac   : > { %v2156_v41 = vrot.slane %v11284_v32, 5  ;;  %v16031_v10 = vcombine.low %v11504_v42, %v11507_v46  ;;  %v8873_v60 = vrot.slane %v11304_v15, 9  ;;  %v2160_v35 = vrot.slane %v11310_v28, 5 }
  0xad   : > { %9983 = vmatmul.mubr.msk.bf16.gmra.mxu1 %vm1108_vm3, %v16030_v47  ;;  %v11662_v11 = vsel %vm11451_vm7, %v2149_v5, %v2150_v39  ;;  %v2163_v47 = vrot.slane %v11317_v33, 5  ;;  %v11671_v24 = vsel %vm11451_vm7, %v2152_v37, %v2153_v14  ;;  %v2155_v42 = vrot.slane %v2153_v14, 4 }
  0xae   : > { %9986 = vmatprep.mubr.msk.bf16.mxu1 %vm1108_vm3, %v16031_v10  ;;  %10117 = vmatpush3.bf16.msra.mxu1 %v10624_v6  ;;  %v11680_v39 = vsel %vm11451_vm7, %v8873_v60, %v2160_v35  ;;  %v2162_v6 = vrot.slane %v2160_v35, 4  ;;  %v2166_v10 = vrot.slane %v11345_v26, 5  ;;  %v2169_v14 = vrot.slane %v11351_v48, 5  ;;  %v11718_v48 = vld [vmem:[%s11005_s7 + $0xa4] sm:$0xf] }
  0xaf   : > { %10544 = vmatprep.subr.msk.bf16.mxu1 %vm1205_vm0, %v11638_v23  ;;  %v2165_v5 = vrot.slane %v2163_v47, 4  ;;  %v11686_v37 = vsel %vm11451_vm7, %v2155_v42, %v2156_v41  ;;  %v8874_v60 = vrot.slane %v11374_v43, 9  ;;  %v2173_v42 = vrot.slane %v11379_v57, 5 }
  0xb0   : > { %10057 = vmatmul.mubr.msk.bf16.gmra.mxu0 %vm1108_vm3, %v8893_v12  ;;  %v11696_v46 = vsel %vm11451_vm7, %v2162_v6, %v2163_v47  ;;  %v2168_v41 = vrot.slane %v2166_v10, 4  ;;  %v2176_v12 = vrot.slane %v11385_v17, 5  ;;  %v2179_v6 = vrot.slane %v11413_v4, 5 }
  0xb1   : > { %10060 = vmatprep.mubr.msk.bf16.mxu0 %vm1108_vm3, %v8894_v53  ;;  %v11700_v53 = vsel %vm11451_vm7, %v2165_v5, %v2166_v10  ;;  %v2182_v5 = vrot.slane %v11418_v30, 5  ;;  %v11715_v10 = vld [vmem:[%s11005_s7 + $0xa0] sm:$0xf]  ;;  %v16032_v50 = vcombine.low %v11517_v7, %v11526_v8  ;;  %v2175_v30 = vrot.slane %v2173_v42, 4  ;;  %v11739_v7 = vld [vmem:[%s11005_s7 + $0xa8] sm:$0xf] }
  0xb2   : > { %v11710_v47 = vsel %vm11451_vm7, %v2168_v41, %v2169_v14  ;;  %v11730_v41 = vsel %vm11451_vm7, %v8874_v60, %v2173_v42  ;;  %v2178_v32 = vrot.slane %v2176_v12, 4  ;;  %v2181_v35 = vrot.slane %v2179_v6, 4 }
  0xb3   : > { %v8875_v1 = vrot.slane %v11715_v10, 9  ;;  %v2186_v8 = vrot.slane %v11718_v48, 5  ;;  %v11744_v60 = vsel %vm11451_vm7, %v2175_v30, %v2176_v12  ;;  %v2202_v2 = vrot.slane %v11802_v31, 5  ;;  %v10735_v12 = vld [vmem:[%s11005_s7 + $0xc4] sm:$0x1] }
  0xb4   : > { %v11748_v42 = vsel %vm11451_vm7, %v2178_v32, %v2179_v6  ;;  %v11764_v32 = vsel %vm11451_vm7, %v2181_v35, %v2182_v5  ;;  %v2195_v35 = vrot.slane %v10730_v54, 5 }
  0xb5   : > { %9987 = vmatmul.mubr.msk.bf16.gmra.mxu1 %vm1108_vm3, %v16032_v50  ;;  %v2189_v50 = vrot.slane %v11739_v7, 5  ;;  %v11768_v6 = vsel %vm11451_vm7, %v8875_v1, %v2186_v8  ;;  %v2188_v30 = vrot.slane %v2186_v8, 4  ;;  %v11782_v1 = vld [vmem:[%s11005_s7 + $0xb4] sm:$0xf]  ;;  %v11785_v8 = vld [vmem:[%s11005_s7 + $0xb8] sm:$0xf] }
  0xb6   : > { %9990 = vmatprep.mubr.msk.bf16.mxu1 %vm1108_vm3, %v8806_v18  ;;  %v2192_v18 = vrot.slane %v11751_v36, 5  ;;  %16034 = vst [vmem:[#allocation14_spill] sm:$0xff] %v11782_v1  ;;  %16035 = vst [vmem:[#allocation15_spill] sm:$0xff] %v11785_v8  ;;  %v8876_v58 = vrot.slane %v11782_v1, 9  ;;  %v2208_v1 = vrot.slane %v10735_v12, 5 }
  0xb7   : > { %v2191_v34 = vrot.slane %v2189_v50, 4  ;;  %v11779_v5 = vsel %vm11451_vm7, %v2188_v30, %v2189_v50  ;;  %v11826_v36 = vld [vmem:[%s11005_s7 + $0xcc] sm:$0xf] }
  0xb8   : > { %10061 = vmatmul.mubr.msk.bf16.gmra.mxu0 %vm1108_vm3, %v8895_v0  ;;  %v2194_v0 = vrot.slane %v2192_v18, 4  ;;  %16040 = vst [vmem:[#allocation19_spill] sm:$0xff] %v11826_v36  ;;  %v2212_v12 = vrot.slane %v11826_v36, 5 }
  0xb9   : > { %10064 = vmatprep.mubr.msk.bf16.mxu0 %vm1108_vm3, %v8896_v51  ;;  %v2199_v51 = vrot.slane %v11785_v8, 5  ;;  %v11795_v50 = vsel %vm11451_vm7, %v2191_v34, %v2192_v18  ;;  %v11812_v8 = vld [vmem:[%s11005_s7 + $0xc0] sm:$0xf]  ;;  %v16038_v34 = vcombine.low %v11138_v59, %v11156_v27  ;;  %v16041_v18 = vcombine.low %v11173_v55, %v11178_v62 }
  0xba   : > { %v11799_v30 = vsel %vm11451_vm7, %v2194_v0, %v2195_v35  ;;  %16037 = vst [vmem:[#allocation17_spill] sm:$0xff] %v11812_v8  ;;  %v2204_v0 = vrot.slane %v2202_v2, 4  ;;  %v2205_v35 = vrot.slane %v11812_v8, 5  ;;  %v2214_v55 = vrot.slane %v2212_v12, 4 }
  0xbb   : > { %v11809_v14 = vsel %vm11451_vm7, %v8876_v58, %v2199_v51  ;;  %v2201_v54 = vrot.slane %v2199_v51, 4  ;;  %v11823_v58 = vld [vmem:[%s11005_s7 + $0xc8] sm:$0xf]  ;;  %v16044_v51 = vcombine.low %v11628_v56, %v11632_v22  ;;  %v10740_v22 = vld [vmem:[%s11005_s7 + $0xd8] sm:$0x1] }
  0xbc   : > { %16039 = vst [vmem:[#allocation18_spill] sm:$0xff] %v11823_v58  ;;  %v8877_v27 = vrot.slane %v11823_v58, 9  ;;  %v11848_v62 = vsel %vm11451_vm7, %v2204_v0, %v2205_v35 }
  0xbd   : > { %9991 = vmatmul.mubr.msk.bf16.gmra.mxu1 %vm1108_vm3, %v16038_v34  ;;  %v11836_v59 = vsel %vm11451_vm7, %v2201_v54, %v2202_v2  ;;  %v11841_v34 = vld [vmem:[%s11005_s7 + $0xd0] sm:$0xf]  ;;  %v2207_v2 = vrot.slane %v2205_v35, 4  ;;  %v11851_v54 = vld [vmem:[%s11005_s7 + $0xd4] sm:$0xf]  ;;  %v16045_v35 = vcombine.low %v11644_v49, %v11662_v11 }
  0xbe   : > { %9994 = vmatprep.mubr.msk.bf16.mxu1 %vm1108_vm3, %v16041_v18  ;;  %16042 = vst [vmem:[#allocation20_spill] sm:$0xff] %v11841_v34  ;;  %v2215_v8 = vrot.slane %v11841_v34, 5  ;;  %16043 = vst [vmem:[#allocation21_spill] sm:$0xff] %v11851_v54  ;;  %v11861_v36 = vsel %vm11451_vm7, %v8877_v27, %v2212_v12  ;;  %v2218_v0 = vrot.slane %v11851_v54, 5  ;;  %v11874_v18 = vld [vmem:[%s11005_s7 + $0xdc] sm:$0xf] }
  0xbf   : > { %v11870_v56 = vsel %vm11451_vm7, %v2207_v2, %v2208_v1  ;;  %16046 = vst [vmem:[#allocation22_spill] sm:$0xff] %v11874_v18  ;;  %v11877_v27 = vld [vmem:[%s11005_s7 + $0xe0] sm:$0xf]  ;;  %v8878_v49 = vrot.slane %v11874_v18, 9  ;;  %v11896_v54 = vld [vmem:[%s11005_s7 + $0xe4] sm:$0xf] }
  0xc0   : > { %10065 = vmatmul.mubr.msk.bf16.gmra.mxu0 %vm1108_vm3, %v16044_v51  ;;  %v2217_v58 = vrot.slane %v2215_v8, 4  ;;  %v2221_v51 = vrot.slane %v10740_v22, 5  ;;  %16047 = vst [vmem:[#allocation23_spill] sm:$0xff] %v11877_v27  ;;  %v11886_v1 = vsel %vm11451_vm7, %v2214_v55, %v2215_v8  ;;  %v2225_v12 = vrot.slane %v11877_v27, 5  ;;  %16049 = vst [vmem:[#allocation25_spill] sm:$0xff] %v11896_v54 }
  0xc1   : > { %10068 = vmatprep.mubr.msk.bf16.mxu0 %vm1108_vm3, %v16045_v35  ;;  %16048 = vst [vmem:[#allocation24_spill] sm:$0xff] %v11886_v1  ;;  %v2220_v35 = vrot.slane %v2218_v0, 4  ;;  %v2228_v18 = vrot.slane %v11896_v54, 5  ;;  %v11900_v34 = vld [vmem:[%s11005_s7 + $0xe8] sm:$0xf]  ;;  %v16051_v8 = vcombine.low %v11189_v9, %v11214_v40  ;;  %v16052_v54 = vcombine.low %v11235_v20, %v11242_v38 }
  0xc2   : > { %v11890_v2 = vsel %vm11451_vm7, %v2217_v58, %v2218_v0  ;;  %16050 = vst [vmem:[#allocation26_spill] sm:$0xff] %v11900_v34  ;;  %v2231_v58 = vrot.slane %v11900_v34, 5  ;;  %v10745_v0 = vld [vmem:[%s11005_s7 + $0xec] sm:$0x1]  ;;  %v11911_v11 = vld [vmem:[%s11005_s7 + $0xf0] sm:$0xf]  ;;  %v16055_v38 = vcombine.low %v11680_v39, %v11696_v46 }
  0xc3   : > { %v11906_v55 = vsel %vm11451_vm7, %v2220_v35, %v2221_v51  ;;  %v2234_v22 = vrot.slane %v10745_v0, 5  ;;  %v11914_v27 = vld [vmem:[%s11005_s7 + $0xf4] sm:$0xf]  ;;  %v11926_v35 = vsel %vm11451_vm7, %v8878_v49, %v2225_v12  ;;  %v2227_v0 = vrot.slane %v2225_v12, 4  ;;  %v11935_v40 = vld [vmem:[%s11005_s7 + $0xf8] sm:$0xf] }
  0xc4   : > { %v2230_v34 = vrot.slane %v2228_v18, 4  ;;  %v2233_v31 = vrot.slane %v2231_v58, 4  ;;  %v8879_v1 = vrot.slane %v11911_v11, 9  ;;  %v2238_v9 = vrot.slane %v11914_v27, 5  ;;  %v11947_v20 = vld [vmem:[%s11005_s7 + $0xfc] sm:$0xf] }
  0xc5   : > { %9995 = vmatmul.mubr.msk.bf16.gmra.mxu1 %vm1108_vm3, %v16051_v8  ;;  %v2241_v8 = vrot.slane %v11935_v40, 5  ;;  %v11940_v49 = vsel %vm11451_vm7, %v2227_v0, %v2228_v18  ;;  %16053 = vst [vmem:[#allocation27_spill] sm:$0xff] %v11947_v20  ;;  %v16054_v51 = vcombine.low %v11671_v24, %v11686_v37  ;;  %v10750_v18 = vld [vmem:[%s11005_s7 + $0x100] sm:$0x1]  ;;  %v2251_v46 = vrot.slane %v11263_v13, 5 }
  0xc6   : > { %9998 = vmatprep.mubr.msk.bf16.mxu1 %vm1108_vm3, %v16052_v54  ;;  %v11944_v12 = vsel %vm11451_vm7, %v2230_v34, %v2231_v58  ;;  %v2244_v54 = vrot.slane %v11947_v20, 5  ;;  %v11960_v0 = vsel %vm11451_vm7, %v2233_v31, %v2234_v22  ;;  %v11964_v34 = vsel %vm11451_vm7, %v8879_v1, %v2238_v9 }
  0xc7   : > { %v2240_v58 = vrot.slane %v2238_v9, 4  ;;  %v2243_v37 = vrot.slane %v2241_v8, 4  ;;  %v2247_v20 = vrot.slane %v10750_v18, 5  ;;  %v8880_v22 = vrot.slane %v11248_v45, 9  ;;  %v16057_v18 = vld [vmem:[#allocation3_spill] sm:$0xff] }
  0xc8   : > { %10069 = vmatmul.mubr.msk.bf16.gmra.mxu0 %vm1108_vm3, %v16054_v51  ;;  %v2246_v51 = vrot.slane %v2244_v54, 4  ;;  %v2253_v1 = vrot.slane %v2251_v46, 4 }
  0xc9   : > { %10072 = vmatprep.mubr.msk.bf16.mxu0 %vm1108_vm3, %v16055_v38  ;;  %v11975_v31 = vsel %vm11451_vm7, %v2240_v58, %v2241_v8  ;;  %v11985_v9 = vsel %vm11451_vm7, %v2243_v37, %v2244_v54  ;;  %v2254_v8 = vrot.slane %v11270_v19, 5  ;;  %v11996_v58 = vsel %vm11451_vm7, %v8880_v22, %v2251_v46 }
  0xca   : > { %v11989_v38 = vsel %vm11451_vm7, %v2246_v51, %v2247_v20  ;;  %v16056_v54 = vcombine.low %v11245_v44, %v11276_v25  ;;  %v2257_v37 = vrot.slane %v11290_v52, 5  ;;  %v2260_v51 = vrot.slane %v11297_v3, 5 }
  0xcb   : > { %v2256_v20 = vrot.slane %v2254_v8, 4  ;;  %v16058_v22 = vcombine.low %v11304_v15, %v11310_v28  ;;  %v12014_v46 = vsel %vm11451_vm7, %v2253_v1, %v2254_v8  ;;  %v8881_v44 = vrot.slane %v16057_v18, 9  ;;  %v16060_v28 = vld [vmem:[#allocation6_spill] sm:$0xff]  ;;  %v12068_v18 = vld [vmem:[%s11005_s7 + $0x18] sm:$0xf] }
  0xcc   : > { %v2264_v25 = vrot.slane %v11331_v63, 5  ;;  %v2259_v15 = vrot.slane %v2257_v37, 4  ;;  %v16061_v1 = vcombine.low %v11700_v53, %v11710_v47  ;;  %v16063_v47 = vld [vmem:[#allocation7_spill] sm:$0xff] }
  0xcd   : > { %9999 = vmatmul.mubr.msk.bf16.gmra.mxu1 %vm1108_vm3, %v16056_v54  ;;  %v16059_v54 = vld [vmem:[#allocation5_spill] sm:$0xff]  ;;  %v12023_v24 = vsel %vm11451_vm7, %v2256_v20, %v2257_v37  ;;  %v2270_v20 = vrot.slane %v16060_v28, 5  ;;  %v16062_v37 = vcombine.low %v11730_v41, %v11744_v60  ;;  %v12065_v28 = vld [vmem:[%s11005_s7 + $0x14] sm:$0xf] }
  0xce   : > { %10002 = vmatprep.mubr.msk.bf16.mxu1 %vm1108_vm3, %v16058_v22  ;;  %v2267_v39 = vrot.slane %v16059_v54, 5  ;;  %v12033_v8 = vsel %vm11451_vm7, %v8881_v44, %v2264_v25  ;;  %v2266_v63 = vrot.slane %v2264_v25, 4  ;;  %v12042_v53 = vsel %vm11451_vm7, %v2259_v15, %v2260_v51  ;;  %v16064_v22 = vld [vmem:[#allocation9_spill] sm:$0xff]  ;;  %v16065_v44 = vld [vmem:[#allocation8_spill] sm:$0xff]  ;;  %16067 = vst [vmem:[#allocation7_spill] sm:$0xff] %v12065_v28 }
  0xcf   : > { %v8882_v25 = vrot.slane %v16065_v44, 9  ;;  %v2272_v51 = vrot.slane %v2270_v20, 4  ;;  %16068 = vst [vmem:[#allocation9_spill] sm:$0xff] %v12068_v18  ;;  %v12079_v15 = vld [vmem:[%s11005_s7 + $0x1c] sm:$0xf]  ;;  %v16069_v44 = vcombine.low %v11317_v33, %v11345_v26  ;;  %v3575_v33 = vshrl.u32 %v12065_v28, 16 }
  0xd0   : > { %10073 = vmatmul.mubr.msk.bf16.gmra.mxu0 %vm1108_vm3, %v16061_v1  ;;  %v2269_v3 = vrot.slane %v2267_v39, 4  ;;  %v2273_v1 = vrot.slane %v16063_v47, 5  ;;  %v12052_v41 = vsel %vm11451_vm7, %v2266_v63, %v2267_v39  ;;  %v16066_v47 = vld [vmem:[#allocation10_spill] sm:$0xff]  ;;  %v2283_v39 = vrot.slane %v11428_v29, 5 }
  0xd1   : > { %10076 = vmatprep.mubr.msk.bf16.mxu0 %vm1108_vm3, %v16062_v37  ;;  %v2277_v37 = vrot.slane %v16064_v22, 5  ;;  %v2280_v54 = vrot.slane %v16066_v47, 5  ;;  %v3578_v26 = vshll.u32 %v12065_v28, 16 }
  0xd2   : > { %v12056_v60 = vsel %vm11451_vm7, %v2269_v3, %v2270_v20  ;;  %v12072_v63 = vsel %vm11451_vm7, %v2272_v51, %v2273_v1  ;;  %v2286_v3 = vrot.slane %v11433_v61, 5  ;;  %v16070_v20 = vcombine.low %v11374_v43, %v11379_v57 }
  0xd3   : > { %v12089_v1 = vsel %vm11451_vm7, %v8882_v25, %v2277_v37  ;;  %v2279_v51 = vrot.slane %v2277_v37, 4  ;;  %v2282_v61 = vrot.slane %v2280_v54, 4  ;;  %v2285_v29 = vrot.slane %v2283_v39, 4  ;;  %v12109_v37 = vld [vmem:[%s11005_s7 + $0x20] sm:$0xf] }
  0xd4   : > { %v3584_v43 = vshll.u32 %v12068_v18, 16  ;;  %v3594_v57 = vshll.u32 %v12079_v15, 16 }
  0xd5   : > { %10003 = vmatmul.mubr.msk.bf16.gmra.mxu1 %vm1108_vm3, %v16069_v44  ;;  %v3588_v44 = vshrl.u32 %v12068_v18, 16  ;;  %v12100_v47 = vsel %vm11451_vm7, %v2279_v51, %v2280_v54  ;;  %v12104_v25 = vsel %vm11451_vm7, %v2282_v61, %v2283_v39  ;;  %v12119_v54 = vsel %vm11451_vm7, %v2285_v29, %v2286_v3  ;;  %v12122_v61 = vld [vmem:[%s11005_s7 + $0x24] sm:$0x1] }
  0xd6   : > { %10006 = vmatprep.mubr.msk.bf16.mxu1 %vm1108_vm3, %v16070_v20  ;;  %v16071_v20 = vcombine.low %v11748_v42, %v11764_v32  ;;  %v3577_v39 = vrot.slane %v3575_v33, 4  ;;  %v3580_v51 = vrot.slane %v3578_v26, 5  ;;  %16072 = vst [vmem:[#allocation28_spill] sm:$0xff] %v12122_v61  ;;  %v16073_v18 = vcombine.low %v11768_v6, %v11779_v5  ;;  %v12138_v42 = vld [vmem:[%s11005_s7 + $0x28] sm:$0xf] }
  0xd7   : > { %v3586_v32 = vrot.slane %v3584_v43, 5  ;;  %v3596_v28 = vrot.slane %v3594_v57, 5  ;;  %v3598_v29 = vshrl.u32 %v12079_v15, 16  ;;  %v3608_v33 = vshrl.u32 %v12109_v37, 16  ;;  %16074 = vst [vmem:[#allocation29_spill] sm:$0xff] %v12138_v42 }
  0xd8   : > { %10077 = vmatmul.mubr.msk.bf16.gmra.mxu0 %vm1108_vm3, %v16071_v20  ;;  %v3590_v20 = vrot.slane %v3588_v44, 4  ;;  %v3581_v16 = vor.u32 %v3580_v51, %v3577_v39  ;;  %v3604_v6 = vshll.u32 %v12109_v37, 16  ;;  %v3614_v5 = vshll.u32 %v12122_v61, 16  ;;  %v12145_v51 = vld [vmem:[%s11005_s7 + $0x2c] sm:$0xf] }
  0xd9   : > { %10080 = vmatprep.mubr.msk.bf16.mxu0 %vm1108_vm3, %v16073_v18  ;;  %v3600_v43 = vrot.slane %v3598_v29, 4  ;;  %v3610_v57 = vrot.slane %v3608_v33, 4  ;;  %v12142_v39 = vsel %vm1205_vm0, %v11638_v23, 0  ;;  %v16077_v29 = vcombine.low %v11715_v10, %v11718_v48  ;;  %v12172_v10 = vld [vmem:[%s11005_s7 + $0x34] sm:$0xf] }
  0xda   : > { %v3591_v26 = vor.u32 %v3590_v20, %v3586_v32  ;;  %v3582_v44 = vrot.slane %v3581_v16, 4  ;;  %16075 = vst [vmem:[#allocation30_spill] sm:$0xff] %v12142_v39  ;;  %v16076_v20 = vcombine.low %v11385_v17, %v11413_v4  ;;  %v3606_v18 = vrot.slane %v3604_v6, 5  ;;  %16079 = vst [vmem:[#allocation31_spill] sm:$0xff] %v12172_v10 }
  0xdb   : > { %v3616_v61 = vrot.slane %v3614_v5, 5  ;;  %v12153_v16 = vsel %vm1205_vm0, %v11598_v21, 0  ;;  %v3601_v39 = vor.u32 %v3600_v43, %v3596_v28  ;;  %v3619_v4 = vshrl.u32 %v12138_v42, 16 }
  0xdc   : > { %v3592_v3 = vrot.slane %v3591_v26, 4  ;;  %v3587_v33 = vsel %vm11032_vm4, %v3582_v44, %v3586_v32  ;;  %v12165_v26 = vld [vmem:[%s11005_s7 + $0x30] sm:$0xf]  ;;  %v3611_v6 = vor.u32 %v3610_v57, %v3606_v18  ;;  %v3622_v5 = vshll.u32 %v12138_v42, 16 }
  0xdd   : > { %10007 = vmatmul.mubr.msk.bf16.gmra.mxu1 %vm1108_vm3, %v16076_v20  ;;  %v3632_v48 = vshrl.u32 %v12145_v51, 16  ;;  %v16080_v32 = vcombine.low %v11795_v50, %v11799_v30  ;;  %v3602_v44 = vrot.slane %v3601_v39, 4  ;;  %v3621_v20 = vrot.slane %v3619_v4, 4  ;;  %v12192_v4 = vld [vmem:[%s11005_s7 + $0x38] sm:$0x1] }
  0xde   : > { %10010 = vmatprep.mubr.msk.bf16.mxu1 %vm1108_vm3, %v16077_v29  ;;  %v3597_v21 = vsel %vm11032_vm4, %v3592_v3, %v3596_v28  ;;  %v3628_v29 = vshll.u32 %v12145_v51, 16  ;;  %v16081_v28 = vcombine.low %v11809_v14, %v11836_v59  ;;  %v3612_v3 = vrot.slane %v3611_v6, 4  ;;  %16082 = vst [vmem:[#allocation32_spill] sm:$0xff] %v12192_v4 }
  0xdf   : > { %v12178_v43 = vcombine.low %v3587_v33, %v3597_v21  ;;  %v3624_v57 = vrot.slane %v3622_v5, 5  ;;  %v3634_v17 = vrot.slane %v3632_v48, 4  ;;  %v3638_v42 = vshll.u32 %v12165_v26, 16 }
  0xe0   : > { %10081 = vmatmul.mubr.msk.bf16.gmra.mxu0 %vm1108_vm3, %v16080_v32  ;;  %v3607_v50 = vsel %vm11032_vm4, %v3602_v44, %v3606_v18  ;;  %v3630_v30 = vrot.slane %v3628_v29, 5  ;;  %v3652_v33 = vshrl.u32 %v12172_v10, 16  ;;  %v3617_v14 = vsel %vm11032_vm4, %v3612_v3, %v3616_v61  ;;  %v12202_v44 = vld [vmem:[%s11005_s7 + $0x3c] sm:$0xf] }
  0xe1   : > { %10084 = vmatprep.mubr.msk.bf16.mxu0 %vm1108_vm3, %v16081_v28  ;;  %v3625_v59 = vor.u32 %v3624_v57, %v3621_v20  ;;  %v3640_v21 = vrot.slane %v3638_v42, 5  ;;  %v12197_v5 = vcombine.low %v3607_v50, %v3617_v14  ;;  %v3642_v18 = vshrl.u32 %v12165_v26, 16  ;;  %16083 = vst [vmem:[#allocation33_spill] sm:$0xff] %v12202_v44  ;;  %v16084_v29 = vld [vmem:[#allocation13_spill] sm:$0xff]  ;;  %v12211_v57 = vld [vmem:[%s11005_s7 + $0x40] sm:$0xf] }
  0xe2   : > { %v3635_v48 = vor.u32 %v3634_v17, %v3630_v30  ;;  %v3648_v32 = vshll.u32 %v12172_v10, 16  ;;  %v16085_v28 = vcombine.low %v11739_v7, %v16084_v29  ;;  %v3654_v20 = vrot.slane %v3652_v33, 4  ;;  %v16086_v17 = vld [vmem:[#allocation14_spill] sm:$0xff]  ;;  %v16087_v50 = vld [vmem:[#allocation15_spill] sm:$0xff] }
  0xe3   : > { %v3626_v61 = vrot.slane %v3625_v59, 4  ;;  %v3658_v42 = vshll.u32 %v12192_v4, 16  ;;  %v16088_v14 = vcombine.low %v16086_v17, %v16087_v50  ;;  %v3644_v39 = vrot.slane %v3642_v18, 4  ;;  %v12224_v4 = vld [vmem:[%s11005_s7 + $0x44] sm:$0xf] }
  0xe4   : > { %v3636_v6 = vrot.slane %v3635_v48, 4  ;;  %v3650_v7 = vrot.slane %v3648_v32, 5  ;;  %v3666_v3 = vshll.u32 %v12202_v44, 16  ;;  %v16089_v17 = vcombine.low %v11848_v62, %v11870_v56 }
  0xe5   : > { %10011 = vmatmul.mubr.msk.bf16.gmra.mxu1 %vm1108_vm3, %v16085_v28  ;;  %v3631_v33 = vsel %vm11032_vm4, %v3626_v61, %v3630_v30  ;;  %v3660_v59 = vrot.slane %v3658_v42, 5  ;;  %v3663_v28 = vshrl.u32 %v12202_v44, 16  ;;  %v3645_v18 = vor.u32 %v3644_v39, %v3640_v21  ;;  %v12234_v30 = vld [vmem:[%s11005_s7 + $0x48] sm:$0xf]  ;;  %v16090_v61 = vld [vmem:[#allocation24_spill] sm:$0xff] }
  0xe6   : > { %10014 = vmatprep.mubr.msk.bf16.mxu1 %vm1108_vm3, %v16088_v14  ;;  %v3641_v48 = vsel %vm11032_vm4, %v3636_v6, %v3640_v21  ;;  %v3655_v32 = vor.u32 %v3654_v20, %v3650_v7  ;;  %v3676_v50 = vshrl.u32 %v12211_v57, 16  ;;  %v16091_v42 = vcombine.low %v11861_v36, %v16090_v61  ;;  %v16095_v61 = vld [vmem:[#allocation17_spill] sm:$0xff] }
  0xe7   : > { %v12240_v14 = vcombine.low %v3631_v33, %v3641_v48  ;;  %v3665_v62 = vrot.slane %v3663_v28, 4  ;;  %v3668_v56 = vrot.slane %v3666_v3, 5  ;;  %v3646_v39 = vrot.slane %v3645_v18, 4  ;;  %v12250_v48 = vld [vmem:[%s11005_s7 + $0x4c] sm:$0x1] }
  0xe8   : > { %10085 = vmatmul.mubr.msk.bf16.gmra.mxu0 %vm1108_vm3, %v16089_v17  ;;  %v3672_v17 = vshll.u32 %v12211_v57, 16  ;;  %v3656_v21 = vrot.slane %v3655_v32, 4  ;;  %v3678_v6 = vrot.slane %v3676_v50, 4  ;;  %v3682_v20 = vshll.u32 %v12224_v4, 16  ;;  %16093 = vst [vmem:[#allocation14_spill] sm:$0xff] %v12250_v48  ;;  %v16094_v50 = vld [vmem:[#allocation16_spill] sm:$0xff] }
  0xe9   : > { %10088 = vmatprep.mubr.msk.bf16.mxu0 %vm1108_vm3, %v16091_v42  ;;  %v3669_v44 = vor.u32 %v3668_v56, %v3665_v62  ;;  %v3696_v33 = vshrl.u32 %v12234_v30, 16  ;;  %v3651_v3 = vsel %vm11032_vm4, %v3646_v39, %v3650_v7  ;;  %v16096_v42 = vcombine.low %v16094_v50, %v16095_v61 }
  0xea   : > { %v12243_v29 = vpop.f32.mrf.mxu0  ;;  %v3674_v10 = vrot.slane %v3672_v17, 5  ;;  %v3661_v28 = vsel %vm11032_vm4, %v3656_v21, %v3660_v59  ;;  %v3684_v18 = vrot.slane %v3682_v20, 5  ;;  %v3686_v39 = vshrl.u32 %v12224_v4, 16  ;;  %v12269_v59 = vld [vmem:[%s11005_s7 + $0x50] sm:$0xf]  ;;  %v16100_v21 = vld [vmem:[#allocation18_spill] sm:$0xff] }
  0xeb   : > { %16092 = vst [vmem:[#allocation13_spill] sm:$0xff] %v12243_v29  ;;  %v12265_v17 = vcombine.low %v3651_v3, %v3661_v28  ;;  %v3670_v36 = vrot.slane %v3669_v44, 4  ;;  %16099 = vst [vmem:[#allocation16_spill] sm:$0xff] %v12269_v59  ;;  %v16101_v20 = vld [vmem:[#allocation19_spill] sm:$0xff]  ;;  %v3692_v50 = vshll.u32 %v12234_v30, 16  ;;  %v3698_v61 = vrot.slane %v3696_v33, 4 }
  0xec   : > { %v12261_v62 = vpop.f32.mrf.mxu1  ;;  %v12263_v56 = vpop.f32.mrf.mxu0  ;;  %v3679_v7 = vor.u32 %v3678_v6, %v3674_v10  ;;  %v16102_v32 = vcombine.low %v16100_v21, %v16101_v20  ;;  %v12279_v28 = vld [vmem:[%s11005_s7 + $0x54] sm:$0xf]  ;;  %v3707_v3 = vshrl.u32 %v12269_v59, 16 }
  0xed   : > { %10015 = vmatmul.mubr.msk.bf16.gmra.mxu1 %vm1108_vm3, %v16096_v42  ;;  %16097 = vst [vmem:[#allocation15_spill] sm:$0xff] %v12261_v62  ;;  %16098 = vst [vmem:[#allocation24_spill] sm:$0xff] %v12263_v56  ;;  %v3702_v42 = vshll.u32 %v12250_v48, 16  ;;  %v3675_v44 = vsel %vm11032_vm4, %v3670_v36, %v3674_v10  ;;  %v3688_v62 = vrot.slane %v3686_v39, 4  ;;  %v3694_v33 = vrot.slane %v3692_v50, 5 }
  0xee   : > { %10018 = vmatprep.mubr.msk.bf16.mxu1 %vm1108_vm3, %v16102_v32  ;;  %16103 = vst [vmem:[#allocation17_spill] sm:$0xff] %v12279_v28  ;;  %v3680_v6 = vrot.slane %v3679_v7, 4  ;;  %v16104_v32 = vcombine.low %v11890_v2, %v11906_v55  ;;  %v3710_v48 = vshll.u32 %v12269_v59, 16  ;;  %v12292_v56 = vld [vmem:[%s11005_s7 + $0x58] sm:$0xf]  ;;  %v16105_v10 = vcombine.low %v11926_v35, %v11940_v49  ;;  %v12298_v36 = vpop.f32.mrf.mxu1  ;;  %v12300_v7 = vpop.f32.mrf.mxu0 }
  0xef   : > { %v3704_v20 = vrot.slane %v3702_v42, 5  ;;  %16106 = vst [vmem:[#allocation18_spill] sm:$0xff] %v12298_v36  ;;  %16107 = vst [vmem:[#allocation19_spill] sm:$0xff] %v12300_v7  ;;  %v3689_v55 = vor.u32 %v3688_v62, %v3684_v18  ;;  %v3720_v39 = vshrl.u32 %v12279_v28, 16  ;;  %v3716_v50 = vshll.u32 %v12279_v28, 16 }
  0xf0   : > { %10089 = vmatmul.mubr.msk.bf16.gmra.mxu0 %vm1108_vm3, %v16104_v32  ;;  %v3685_v2 = vsel %vm11032_vm4, %v3680_v6, %v3684_v18  ;;  %v12307_v42 = vld [vmem:[%s11005_s7 + $0x5c] sm:$0xf]  ;;  %v3699_v35 = vor.u32 %v3698_v61, %v3694_v33  ;;  %v3709_v49 = vrot.slane %v3707_v3, 4  ;;  %v3726_v7 = vshll.u32 %v12292_v56, 16  ;;  %v12316_v28 = vld [vmem:[%s11005_s7 + $0x60] sm:$0x1]  ;;  %v12324_v3 = vpop.f32.mrf.mxu0 }
  0xf1   : > { %10092 = vmatprep.mubr.msk.bf16.mxu0 %vm1108_vm3, %v16105_v10  ;;  %v12309_v32 = vcombine.low %v3675_v44, %v3685_v2  ;;  %v3712_v10 = vrot.slane %v3710_v48, 5  ;;  %v3690_v21 = vrot.slane %v3689_v55, 4  ;;  %v3718_v36 = vrot.slane %v3716_v50, 5  ;;  %16108 = vst [vmem:[#allocation34_spill] sm:$0xff] %v12316_v28  ;;  %v16109_v44 = vld [vmem:[#allocation20_spill] sm:$0xff]  ;;  %v16110_v2 = vld [vmem:[#allocation21_spill] sm:$0xff]  ;;  %v12322_v48 = vpop.f32.mrf.mxu1 }
  0xf2   : > { %v3722_v29 = vrot.slane %v3720_v39, 4  ;;  %v3700_v59 = vrot.slane %v3699_v35, 4  ;;  %v3740_v62 = vshrl.u32 %v12307_v42, 16  ;;  %v16111_v61 = vcombine.low %v16109_v44, %v16110_v2  ;;  %16112 = vst [vmem:[#allocation20_spill] sm:$0xff] %v12322_v48  ;;  %16113 = vst [vmem:[#allocation21_spill] sm:$0xff] %v12324_v3 }
  0xf3   : > { %v3713_v6 = vor.u32 %v3712_v10, %v3709_v49  ;;  %v3695_v55 = vsel %vm11032_vm4, %v3690_v21, %v3694_v33  ;;  %v3728_v50 = vrot.slane %v3726_v7, 5  ;;  %v16114_v49 = vld [vmem:[#allocation22_spill] sm:$0xff]  ;;  %v16115_v10 = vld [vmem:[#allocation23_spill] sm:$0xff]  ;;  %v3736_v48 = vshll.u32 %v12307_v42, 16 }
  0xf4   : > { %v3723_v39 = vor.u32 %v3722_v29, %v3718_v36  ;;  %v16116_v18 = vcombine.low %v16114_v49, %v16115_v10  ;;  %v3705_v44 = vsel %vm11032_vm4, %v3700_v59, %v3704_v20  ;;  %v12338_v3 = vld [vmem:[%s11005_s7 + $0x64] sm:$0xf]  ;;  %v3742_v33 = vrot.slane %v3740_v62, 4  ;;  %v12344_v49 = vld [vmem:[%s11005_s7 + $0x68] sm:$0xf] }
  0xf5   : > { %10019 = vmatmul.mubr.msk.bf16.gmra.mxu1 %vm1108_vm3, %v16111_v61  ;;  %v3714_v2 = vrot.slane %v3713_v6, 4  ;;  %v3730_v61 = vshrl.u32 %v12292_v56, 16  ;;  %v12340_v29 = vcombine.low %v3695_v55, %v3705_v44  ;;  %v3746_v7 = vshll.u32 %v12316_v28, 16  ;;  %16117 = vst [vmem:[#allocation22_spill] sm:$0xff] %v12344_v49  ;;  %v12354_v55 = vld [vmem:[%s11005_s7 + $0x6c] sm:$0xf] }
  0xf6   : > { %10022 = vmatprep.mubr.msk.bf16.mxu1 %vm1108_vm3, %v16116_v18  ;;  %v3724_v21 = vrot.slane %v3723_v39, 4  ;;  %v16118_v18 = vcombine.low %v11944_v12, %v11960_v0  ;;  %v3738_v6 = vrot.slane %v3736_v48, 5  ;;  %v16119_v62 = vcombine.low %v11964_v34, %v11975_v31  ;;  %v12360_v39 = vpop.f32.mrf.mxu1 }
  0xf7   : > { %v3719_v59 = vsel %vm11032_vm4, %v3714_v2, %v3718_v36  ;;  %v3732_v20 = vrot.slane %v3730_v61, 4  ;;  %16120 = vst [vmem:[#allocation23_spill] sm:$0xff] %v12360_v39  ;;  %v3748_v0 = vrot.slane %v3746_v7, 5  ;;  %v3751_v48 = vshrl.u32 %v12338_v3, 16 }
  0xf8   : > { %10093 = vmatmul.mubr.msk.bf16.gmra.mxu0 %vm1108_vm3, %v16118_v18  ;;  %v12362_v44 = vpop.f32.mrf.mxu0  ;;  %v3729_v12 = vsel %vm11032_vm4, %v3724_v21, %v3728_v50  ;;  %v3743_v34 = vor.u32 %v3742_v33, %v3738_v6  ;;  %v3754_v31 = vshll.u32 %v12338_v3, 16  ;;  %v3764_v18 = vshrl.u32 %v12344_v49, 16  ;;  %v16123_v33 = vld [vmem:[#allocation26_spill] sm:$0xff] }
  0xf9   : > { %10096 = vmatprep.mubr.msk.bf16.mxu0 %vm1108_vm3, %v16119_v62  ;;  %16121 = vst [vmem:[#allocation35_spill] sm:$0xff] %v12362_v44  ;;  %v12369_v2 = vcombine.low %v3719_v59, %v3729_v12  ;;  %v3733_v61 = vor.u32 %v3732_v20, %v3728_v50  ;;  %v3753_v62 = vrot.slane %v3751_v48, 4  ;;  %v3760_v10 = vshll.u32 %v12344_v49, 16  ;;  %v12377_v59 = vld [vmem:[%s11005_s7 + $0x70] sm:$0xf]  ;;  %v16122_v50 = vld [vmem:[#allocation25_spill] sm:$0xff] }
  0xfa   : > { %v3770_v21 = vshll.u32 %v12354_v55, 16  ;;  %v3744_v35 = vrot.slane %v3743_v34, 4  ;;  %v3756_v39 = vrot.slane %v3754_v31, 5  ;;  %v3774_v36 = vshrl.u32 %v12354_v55, 16  ;;  %v12385_v48 = vpop.f32.mrf.mxu0  ;;  %v8981_v31 = vld [vmem:[%s11005_s7 + $0x74] sm:$0x1] }
  0xfb   : > { %v3734_v7 = vrot.slane %v3733_v61, 4  ;;  %v16124_v20 = vcombine.low %v16122_v50, %v16123_v33  ;;  %v12383_v12 = vpop.f32.mrf.mxu1  ;;  %16126 = vst [vmem:[#allocation26_spill] sm:$0xff] %v12385_v48  ;;  %v3762_v28 = vrot.slane %v3760_v10, 5  ;;  %v3766_v44 = vrot.slane %v3764_v18, 4  ;;  %v12399_v10 = vld [vmem:[%s11005_s7 + $0x78] sm:$0xf] }
  0xfc   : > { %16125 = vst [vmem:[#allocation25_spill] sm:$0xff] %v12383_v12  ;;  %v3772_v61 = vrot.slane %v3770_v21, 5  ;;  %v16127_v49 = vcombine.low %v11911_v11, %v11914_v27  ;;  %v3749_v33 = vsel %vm11032_vm4, %v3744_v35, %v3748_v0  ;;  %v3776_v12 = vrot.slane %v3774_v36, 4  ;;  %v12406_v27 = vld [vmem:[%s11005_s7 + $0x7c] sm:$0xf]  ;;  %v12420_v36 = vpop.f32.mrf.mxu0 }
  0xfd   : > { %10023 = vmatmul.mubr.msk.bf16.gmra.mxu1 %vm1108_vm3, %v16124_v20  ;;  %v3739_v50 = vsel %vm11032_vm4, %v3734_v7, %v3738_v6  ;;  %v3757_v20 = vor.u32 %v3756_v39, %v3753_v62  ;;  %v3767_v21 = vor.u32 %v3766_v44, %v3762_v28  ;;  %v3784_v34 = vshrl.u32 %v12377_v59, 16  ;;  %v12418_v0 = vpop.f32.mrf.mxu1  ;;  %16131 = vst [vmem:[#allocation37_spill] sm:$0xff] %v12420_v36 }
  0xfe   : > { %10026 = vmatprep.mubr.msk.bf16.mxu1 %vm1108_vm3, %v16127_v49  ;;  %v12401_v18 = vcombine.low %v3739_v50, %v3749_v33  ;;  %v3780_v48 = vshll.u32 %v12377_v59, 16  ;;  %v16128_v11 = vcombine.low %v11985_v9, %v11989_v38  ;;  %v3777_v49 = vor.u32 %v3776_v12, %v3772_v61  ;;  %16130 = vst [vmem:[#allocation36_spill] sm:$0xff] %v12418_v0  ;;  %v12462_v0 = vld [vmem:[%s11005_s7 + $0x8c] sm:$0xf] }
  0xff   : > { %v3758_v35 = vrot.slane %v3757_v20, 4  ;;  %v3790_v6 = vshll.u32 %v8981_v31, 16  ;;  %v16129_v44 = vcombine.low %v11996_v58, %v12014_v46  ;;  %v3768_v9 = vrot.slane %v3767_v21, 4  ;;  %v12427_v58 = vld [vmem:[%s11005_s7 + $0x80] sm:$0xf] }
 0x100   : > { %10097 = vmatmul.mubr.msk.bf16.gmra.mxu0 %vm1108_vm3, %v16128_v11  ;;  %v3782_v38 = vrot.slane %v3780_v48, 5  ;;  %v3786_v62 = vrot.slane %v3784_v34, 4  ;;  %v3795_v7 = vshrl.u32 %v12399_v10, 16  ;;  %v3778_v31 = vrot.slane %v3777_v49, 4  ;;  %v12433_v48 = vld [vmem:[%s11005_s7 + $0x84] sm:$0xf] }
 0x101   : > { %10100 = vmatprep.mubr.msk.bf16.mxu0 %vm1108_vm3, %v16129_v44  ;;  %v3763_v12 = vsel %vm11032_vm4, %v3758_v35, %v3762_v28  ;;  %v3792_v50 = vrot.slane %v3790_v6, 5  ;;  %v3798_v33 = vshll.u32 %v12399_v10, 16  ;;  %v3773_v46 = vsel %vm11032_vm4, %v3768_v9, %v3772_v61  ;;  %v16132_v6 = vld [vmem:[#allocation27_spill] sm:$0xff]  ;;  %v12444_v61 = vpop.f32.mrf.mxu1  ;;  %v12446_v9 = vpop.f32.mrf.mxu0 }
 0x102   : > { %v3787_v20 = vor.u32 %v3786_v62, %v3782_v38  ;;  %v3808_v11 = vshrl.u32 %v12406_v27, 16  ;;  %v3797_v21 = vrot.slane %v3795_v7, 4  ;;  %v12435_v34 = vcombine.low %v3763_v12, %v3773_v46  ;;  %16134 = vst [vmem:[#allocation27_spill] sm:$0xff] %v12444_v61  ;;  %16135 = vst [vmem:[#allocation38_spill] sm:$0xff] %v12446_v9  ;;  %v16168_v9 = vld [vmem:[#allocation9_spill] sm:$0xff] }
 0x103   : > { %v3783_v28 = vsel %vm11032_vm4, %v3778_v31, %v3782_v38  ;;  %v3800_v35 = vrot.slane %v3798_v33, 5  ;;  %v3804_v49 = vshll.u32 %v12406_v27, 16  ;;  %v16133_v44 = vcombine.low %v11935_v40, %v16132_v6  ;;  %v16145_v33 = vld [vmem:[#allocation4_spill] sm:$0xff] }
 0x104   : > { %v3788_v62 = vrot.slane %v3787_v20, 4  ;;  %v3810_v7 = vrot.slane %v3808_v11, 4  ;;  %v3814_v12 = vshll.u32 %v12427_v58, 16  ;;  %v3818_v46 = vshrl.u32 %v12427_v58, 16 }
 0x105   : > { %10027 = vmatmul.mubr.msk.bf16.gmra.mxu1 %vm1108_vm3, %v16133_v44  ;;  %v16136_v38 = vcombine.low %v11248_v45, %v11263_v13  ;;  %v3801_v40 = vor.u32 %v3800_v35, %v3797_v21  ;;  %v3806_v31 = vrot.slane %v3804_v49, 5  ;;  %v3828_v6 = vshrl.u32 %v12433_v48, 16  ;;  %v8986_v44 = vld [vmem:[%s11005_s7 + $0x88] sm:$0x1] }
 0x106   : > { %v3793_v20 = vsel %vm11032_vm4, %v3788_v62, %v3792_v50  ;;  %v3816_v11 = vrot.slane %v3814_v12, 5  ;;  %v3820_v39 = vrot.slane %v3818_v46, 4  ;;  %v3824_v61 = vshll.u32 %v12433_v48, 16  ;;  %v12477_v62 = vpop.f32.mrf.mxu1 }
 0x107   : > { %10030 = vmatprep.mubr.msk.bf16.mxu1 %vm1108_vm3, %v16136_v38  ;;  %v16137_v45 = vcombine.low %v12023_v24, %v12042_v53  ;;  %v12468_v13 = vcombine.low %v3783_v28, %v3793_v20  ;;  %v3802_v21 = vrot.slane %v3801_v40, 4  ;;  %v3811_v35 = vor.u32 %v3810_v7, %v3806_v31  ;;  %v12471_v38 = vld [vmem:[%s11005_s7 + $0x90] sm:$0xf]  ;;  %16139 = vst [vmem:[#allocation39_spill] sm:$0xff] %v12477_v62 }
 0x108   : > { %v3830_v49 = vrot.slane %v3828_v6, 4  ;;  %v16138_v50 = vcombine.low %v12033_v8, %v12052_v41  ;;  %v12479_v12 = vpop.f32.mrf.mxu0  ;;  %v3821_v24 = vor.u32 %v3820_v39, %v3816_v11  ;;  %v3826_v53 = vrot.slane %v3824_v61, 5  ;;  %v12489_v39 = vld [vmem:[%s11005_s7 + $0x94] sm:$0xf] }
 0x109   : > { %10101 = vmatmul.mubr.msk.bf16.gmra.mxu0 %vm1108_vm3, %v16137_v45  ;;  %16140 = vst [vmem:[#allocation40_spill] sm:$0xff] %v12479_v12  ;;  %v3834_v28 = vshll.u32 %v8986_v44, 16  ;;  %v3807_v46 = vsel %vm11032_vm4, %v3802_v21, %v3806_v31  ;;  %v3812_v40 = vrot.slane %v3811_v35, 4  ;;  %v3839_v8 = vshrl.u32 %v12462_v0, 16  ;;  %v12495_v21 = vld [vmem:[%s11005_s7 + $0x98] sm:$0xf] }
 0x10a   : > { %10104 = vmatprep.mubr.msk.bf16.mxu0 %vm1108_vm3, %v16138_v50  ;;  %v3842_v41 = vshll.u32 %v12462_v0, 16  ;;  %v3822_v6 = vrot.slane %v3821_v24, 4  ;;  %v3831_v20 = vor.u32 %v3830_v49, %v3826_v53  ;;  %v3852_v50 = vshrl.u32 %v12471_v38, 16  ;;  %v12503_v24 = vpop.f32.mrf.mxu0  ;;  %v8991_v12 = vld [vmem:[%s11005_s7 + $0x9c] sm:$0x1] }
 0x10b   : > { %v3836_v45 = vrot.slane %v3834_v28, 5  ;;  %v3817_v61 = vsel %vm11032_vm4, %v3812_v40, %v3816_v11  ;;  %v3841_v44 = vrot.slane %v3839_v8, 4  ;;  %v3848_v31 = vshll.u32 %v12471_v38, 16  ;;  %16143 = vst [vmem:[#allocation42_spill] sm:$0xff] %v12503_v24 }
 0x10c   : > { %v3844_v7 = vrot.slane %v3842_v41, 5  ;;  %v16141_v35 = vcombine.low %v11270_v19, %v11290_v52  ;;  %v12505_v28 = vcombine.low %v3807_v46, %v3817_v61  ;;  %v3827_v11 = vsel %vm11032_vm4, %v3822_v6, %v3826_v53  ;;  %v16144_v41 = vld [vmem:[#allocation3_spill] sm:$0xff] }
 0x10d   : > { %v12501_v49 = vpop.f32.mrf.mxu1  ;;  %v3832_v40 = vrot.slane %v3831_v20, 4  ;;  %v3854_v8 = vrot.slane %v3852_v50, 4  ;;  %v16146_v62 = vcombine.low %v16144_v41, %v16145_v33  ;;  %v3850_v52 = vrot.slane %v3848_v31, 5  ;;  %v12523_v20 = vld [vmem:[%s11005_s7 + $0xa0] sm:$0xf] }
 0x10e   : > { %10031 = vmatmul.mubr.msk.bf16.gmra.mxu1 %vm1108_vm3, %v16141_v35  ;;  %16142 = vst [vmem:[#allocation41_spill] sm:$0xff] %v12501_v49  ;;  %v3845_v19 = vor.u32 %v3844_v7, %v3841_v44  ;;  %v3858_v35 = vshll.u32 %v12489_v39, 16  ;;  %v3862_v49 = vshrl.u32 %v12489_v39, 16  ;;  %v3872_v6 = vshrl.u32 %v12495_v21, 16 }
 0x10f   : > { %10034 = vmatprep.mubr.msk.bf16.mxu1 %vm1108_vm3, %v16146_v62  ;;  %v3837_v46 = vsel %vm11032_vm4, %v3832_v40, %v3836_v45  ;;  %v3868_v33 = vshll.u32 %v12495_v21, 16  ;;  %v16147_v62 = vcombine.low %v12056_v60, %v12072_v63  ;;  %v3855_v61 = vor.u32 %v3854_v8, %v3850_v52  ;;  %v12535_v31 = vpop.f32.mrf.mxu1  ;;  %v12537_v40 = vpop.f32.mrf.mxu0 }
 0x110   : > { %v12529_v7 = vcombine.low %v3827_v11, %v3837_v46  ;;  %v3846_v50 = vrot.slane %v3845_v19, 4  ;;  %v3860_v45 = vrot.slane %v3858_v35, 5  ;;  %v16148_v44 = vcombine.low %v12089_v1, %v12100_v47  ;;  %16149 = vst [vmem:[#allocation3_spill] sm:$0xff] %v12535_v31  ;;  %16150 = vst [vmem:[#allocation4_spill] sm:$0xff] %v12537_v40  ;;  %v12566_v40 = vld [vmem:[%s11005_s7 + $0xac] sm:$0xf] }
 0x111   : > { %10105 = vmatmul.mubr.msk.bf16.gmra.mxu0 %vm1108_vm3, %v16147_v62  ;;  %v3864_v41 = vrot.slane %v3862_v49, 4  ;;  %v3870_v53 = vrot.slane %v3868_v33, 5  ;;  %v3874_v60 = vrot.slane %v3872_v6, 4  ;;  %v3878_v63 = vshll.u32 %v8991_v12, 16  ;;  %v12540_v62 = vld [vmem:[%s11005_s7 + $0xa4] sm:$0xf] }
 0x112   : > { %10108 = vmatprep.mubr.msk.bf16.mxu0 %vm1108_vm3, %v16148_v44  ;;  %v3851_v11 = vsel %vm11032_vm4, %v3846_v50, %v3850_v52  ;;  %v3856_v8 = vrot.slane %v3855_v61, 4  ;;  %v3883_v1 = vshrl.u32 %v12523_v20, 16  ;;  %v3886_v49 = vshll.u32 %v12523_v20, 16  ;;  %v12549_v33 = vld [vmem:[%s11005_s7 + $0xa8] sm:$0xf]  ;;  %v16151_v61 = vld [vmem:[#allocation5_spill] sm:$0xff] }
 0x113   : > { %v3865_v19 = vor.u32 %v3864_v41, %v3860_v45  ;;  %v3875_v35 = vor.u32 %v3874_v60, %v3870_v53  ;;  %v3880_v46 = vrot.slane %v3878_v63, 5  ;;  %v3896_v6 = vshrl.u32 %v12540_v62, 16  ;;  %v16152_v44 = vld [vmem:[#allocation6_spill] sm:$0xff]  ;;  %v12559_v41 = vpop.f32.mrf.mxu1  ;;  %v12561_v60 = vpop.f32.mrf.mxu0 }
 0x114   : > { %v3861_v12 = vsel %vm11032_vm4, %v3856_v8, %v3860_v45  ;;  %v3885_v52 = vrot.slane %v3883_v1, 4  ;;  %v3892_v50 = vshll.u32 %v12540_v62, 16  ;;  %v16153_v47 = vcombine.low %v16151_v61, %v16152_v44  ;;  %16154 = vst [vmem:[#allocation5_spill] sm:$0xff] %v12559_v41  ;;  %16155 = vst [vmem:[#allocation6_spill] sm:$0xff] %v12561_v60  ;;  %v16156_v1 = vld [vmem:[#allocation8_spill] sm:$0xff] }
 0x115   : > { %v3866_v63 = vrot.slane %v3865_v19, 4  ;;  %v12563_v31 = vcombine.low %v3851_v11, %v3861_v12  ;;  %v3876_v45 = vrot.slane %v3875_v35, 4  ;;  %v3888_v8 = vrot.slane %v3886_v49, 5  ;;  %v8996_v60 = vld [vmem:[%s11005_s7 + $0xb0] sm:$0x1] }
 0x116   : > { %10035 = vmatmul.mubr.msk.bf16.gmra.mxu1 %vm1108_vm3, %v16153_v47  ;;  %v16157_v24 = vcombine.low %v16156_v1, %v16064_v22  ;;  %v3894_v61 = vrot.slane %v3892_v50, 5  ;;  %v3898_v44 = vrot.slane %v3896_v6, 4  ;;  %v3902_v47 = vshll.u32 %v12549_v33, 16  ;;  %v12582_v49 = vld [vmem:[%s11005_s7 + $0xb4] sm:$0xf] }
 0x117   : > { %v3906_v41 = vshrl.u32 %v12549_v33, 16  ;;  %v3871_v11 = vsel %vm11032_vm4, %v3866_v63, %v3870_v53  ;;  %v3881_v19 = vsel %vm11032_vm4, %v3876_v45, %v3880_v46  ;;  %v3889_v35 = vor.u32 %v3888_v8, %v3885_v52  ;;  %v12592_v46 = vpop.f32.mrf.mxu1  ;;  %v12599_v8 = vld [vmem:[%s11005_s7 + $0xb8] sm:$0xf] }
 0x118   : > { %10038 = vmatprep.mubr.msk.bf16.mxu1 %vm1108_vm3, %v16157_v24  ;;  %v16158_v24 = vcombine.low %v12104_v25, %v12119_v54  ;;  %v12588_v12 = vcombine.low %v3871_v11, %v3881_v19  ;;  %v3899_v6 = vor.u32 %v3898_v44, %v3894_v61  ;;  %v3904_v50 = vrot.slane %v3902_v47, 5  ;;  %16159 = vst [vmem:[#allocation8_spill] sm:$0xff] %v12592_v46  ;;  %v12594_v52 = vpop.f32.mrf.mxu0  ;;  %v16162_v46 = vld [vmem:[#allocation11_spill] sm:$0xff] }
 0x119   : > { %v3908_v53 = vrot.slane %v3906_v41, 4  ;;  %16160 = vst [vmem:[#allocation43_spill] sm:$0xff] %v12594_v52  ;;  %v3890_v63 = vrot.slane %v3889_v35, 4  ;;  %v3916_v45 = vshrl.u32 %v12566_v40, 16  ;;  %v3912_v25 = vshll.u32 %v12566_v40, 16  ;;  %v16161_v41 = vld [vmem:[#allocation10_spill] sm:$0xff] }
 0x11a   : > { %10109 = vmatmul.mubr.msk.bf16.gmra.mxu0 %vm1108_vm3, %v16158_v24  ;;  %v3922_v54 = vshll.u32 %v8996_v60, 16  ;;  %v3900_v1 = vrot.slane %v3899_v6, 4  ;;  %v12607_v24 = vld [vmem:[%s11005_s7 + $0xbc] sm:$0xf]  ;;  %v3930_v6 = vshll.u32 %v12582_v49, 16  ;;  %v16163_v52 = vcombine.low %v16161_v41, %v16162_v46  ;;  %v10651_v46 = vld [vmem:[%s15815_s1 + $0x80] sm:$0xff]  }
 0x11b   : > { %10188 = vmatprep.mubr.msk.bf16.mxu0 %vm1108_vm3, %v12178_v43  ;;  %v3909_v44 = vor.u32 %v3908_v53, %v3904_v50  ;;  %v3927_v43 = vshrl.u32 %v12582_v49, 16  ;;  %v3895_v47 = vsel %vm11032_vm4, %v3890_v63, %v3894_v61  ;;  %v3914_v11 = vrot.slane %v3912_v25, 5  ;;  %v12619_v63 = vpop.f32.mrf.mxu0 }
 0x11c   : > { %v3918_v19 = vrot.slane %v3916_v45, 4  ;;  %v3924_v35 = vrot.slane %v3922_v54, 5  ;;  %v3905_v60 = vsel %vm11032_vm4, %v3900_v1, %v3904_v50  ;;  %v3940_v53 = vshrl.u32 %v12599_v8, 16  ;;  %v12617_v61 = vpop.f32.mrf.mxu1  ;;  %16165 = vst [vmem:[#allocation11_spill] sm:$0xff] %v12619_v63  ;;  %v12625_v1 = vld [vmem:[%s11005_s7 + $0xc0] sm:$0xf] }
 0x11d   : > { %v3910_v22 = vrot.slane %v3909_v44, 4  ;;  %16164 = vst [vmem:[#allocation10_spill] sm:$0xff] %v12617_v61  ;;  %v12621_v45 = vcombine.low %v3895_v47, %v3905_v60  ;;  %v3929_v54 = vrot.slane %v3927_v43, 4  ;;  %v3936_v50 = vshll.u32 %v12599_v8, 16  ;;  %16166 = vst [vmem:[#allocation44_spill] sm:$0xff] %v12625_v1  ;;  %v16167_v44 = vld [vmem:[#allocation7_spill] sm:$0xff] }
 0x11e   : > { %10039 = vmatmul.mubr.msk.bf16.gmra.mxu1 %vm1108_vm3, %v16163_v52  ;;  %v3919_v25 = vor.u32 %v3918_v19, %v3914_v11  ;;  %v16169_v36 = vcombine.low %v16167_v44, %v16168_v9  ;;  %v3932_v41 = vrot.slane %v3930_v6, 5  ;;  %v3942_v47 = vrot.slane %v3940_v53, 4  ;;  %v9001_v19 = vld [vmem:[%s11005_s7 + $0xc4] sm:$0x1]  ;;  %v12648_v6 = vpop.f32.mrf.mxu1  ;;  %v12650_v53 = vpop.f32.mrf.mxu0 }
 0x11f   : > { %v3915_v52 = vsel %vm11032_vm4, %v3910_v22, %v3914_v11  ;;  %v3946_v43 = vshll.u32 %v12607_v24, 16  ;;  %v3938_v61 = vrot.slane %v3936_v50, 5  ;;  %v3950_v63 = vshrl.u32 %v12607_v24, 16  ;;  %16170 = vst [vmem:[#allocation7_spill] sm:$0xff] %v12648_v6  ;;  %16171 = vst [vmem:[#allocation9_spill] sm:$0xff] %v12650_v53  ;;  %v10650_v6 = vld [vmem:[%s15815_s1 + $0x6c] sm:$0xff]  }
 0x120   : > { %10118 = vmatprep.mubr.msk.bf16.mxu1 %vm1108_vm3, %v16169_v36  ;;  %v3920_v60 = vrot.slane %v3919_v25, 4  ;;  %v3933_v9 = vor.u32 %v3932_v41, %v3929_v54  ;;  %v3960_v22 = vshrl.u32 %v12625_v1, 16  ;;  %v3956_v11 = vshll.u32 %v12625_v1, 16  ;;  %v12655_v41 = vld [vmem:[%s11005_s7 + $0xc8] sm:$0xf] }
 0x121   : > { %v3948_v44 = vrot.slane %v3946_v43, 5  ;;  %v3952_v54 = vrot.slane %v3950_v63, 4  ;;  %v3966_v50 = vshll.u32 %v9001_v19, 16  ;;  %16172 = vst [vmem:[#allocation45_spill] sm:$0xff] %v12655_v41  ;;  %v16178_v63 = vld [vmem:[#allocation30_spill] sm:$0xff] }
 0x122   : > { %10189 = vmatmul.mubr.msk.bf16.vlgmr.msra.gmra.mxu0 %vm1108_vm3, %v12197_v5  ;;  %v3925_v25 = vsel %vm11032_vm4, %v3920_v60, %v3924_v35  ;;  %v3943_v5 = vor.u32 %v3942_v47, %v3938_v61  ;;  %v3958_v36 = vrot.slane %v3956_v11, 5  ;;  %v3962_v1 = vrot.slane %v3960_v22, 4  ;;  %v12675_v11 = vld [vmem:[%s11005_s7 + $0xd0] sm:$0xf] }
 0x123   : > { %10323 = vmatpush3.bf16.msra.mxu0 %v12153_v16  ;;  %10192 = vmatprep.mubr.msk.bf16.mxu0 %vm1108_vm3, %v12240_v14  ;;  %v12657_v43 = vcombine.low %v3915_v52, %v3925_v25  ;;  %v3934_v16 = vrot.slane %v3933_v9, 4  ;;  %v12660_v14 = vld [vmem:[%s11005_s7 + $0xcc] sm:$0xf]  ;;  %v3953_v35 = vor.u32 %v3952_v54, %v3948_v44  ;;  %v3968_v47 = vrot.slane %v3966_v50, 5  ;;  %v10664_v52 = vld [vmem:[%s15815_s1 + $0x78] sm:$0xff]   ;;  %16174 = vst [vmem:[#allocation47_spill] sm:$0xff] %v12675_v11  ;;  %v12683_v54 = vpop.f32.mrf.mxu0 }
 0x124   : > { %10324 = vmatprep.subr.bf16.mxu0 %v10651_v46  ;;  %16173 = vst [vmem:[#allocation46_spill] sm:$0xff] %v12660_v14  ;;  %v3944_v53 = vrot.slane %v3943_v5, 4  ;;  %v3963_v60 = vor.u32 %v3962_v1, %v3958_v36  ;;  %v3971_v9 = vshrl.u32 %v12655_v41, 16  ;;  %v3974_v22 = vshll.u32 %v12655_v41, 16  ;;  %v12681_v5 = vpop.f32.mrf.mxu1  ;;  %16177 = vst [vmem:[#allocation49_spill] sm:$0xff] %v12683_v54  ;;  %v16179_v41 = vld [vmem:[#allocation29_spill] sm:$0xff] }
 0x125   : > { %v3939_v19 = vsel %vm11032_vm4, %v3934_v16, %v3938_v61  ;;  %v16175_v25 = vcombine.low %v12079_v15, %v12109_v37  ;;  %16176 = vst [vmem:[#allocation48_spill] sm:$0xff] %v12681_v5  ;;  %v3954_v1 = vrot.slane %v3953_v35, 4  ;;  %v3984_v50 = vshrl.u32 %v12660_v14, 16 }
 0x126   : > { %v3949_v61 = vsel %vm11032_vm4, %v3944_v53, %v3948_v44  ;;  %v3980_v16 = vshll.u32 %v12660_v14, 16  ;;  %v16180_v15 = vcombine.low %v16179_v41, %v12145_v51  ;;  %v3976_v5 = vrot.slane %v3974_v22, 5  ;;  %v12697_v44 = vld [vmem:[%s11005_s7 + $0xd4] sm:$0xf]  ;;  %v9006_v14 = vld [vmem:[%s11005_s7 + $0xd8] sm:$0x1] }
 0x127   : > { %10119 = vmatmul.mubr.msk.bf16.vlgmr.msra.gmra.mxu1 %vm1108_vm3, %v16175_v25  ;;  %10325 = vmatpush3.bf16.msra.mxu0 %v10651_v46  ;;  %v12694_v37 = vcombine.low %v3939_v19, %v3949_v61  ;;  %v3964_v25 = vrot.slane %v3963_v60, 4  ;;  %v3973_v46 = vrot.slane %v3971_v9, 4  ;;  %16181 = vst [vmem:[#allocation30_spill] sm:$0xff] %v12697_v44  ;;  %v3959_v53 = vsel %vm11032_vm4, %v3954_v1, %v3958_v36  ;;  %v10662_v51 = vld [vmem:[%s15815_s1 + $0x64] sm:$0xff]   ;;  %v12714_v9 = vld [vmem:[%s11005_s7 + $0xdc] sm:$0xf] }
 0x128   : > { %10253 = vmatpush3.bf16.msra.mxu1 %v16178_v63  ;;  %10122 = vmatprep.mubr.msk.bf16.mxu1 %vm1108_vm3, %v16180_v15  ;;  %v3982_v35 = vrot.slane %v3980_v16, 5  ;;  %v3986_v54 = vrot.slane %v3984_v50, 4  ;;  %v3990_v63 = vshll.u32 %v12675_v11, 16  ;;  %v3994_v60 = vshrl.u32 %v12675_v11, 16  ;;  %16182 = vst [vmem:[#allocation29_spill] sm:$0xff] %v12714_v9 }
 0x129   : > { %10254 = vmatprep.subr.bf16.mxu1 %v10650_v6  ;;  %10326 = vmatprep.subr.bf16.mxu0 %v10664_v52  ;;  %v3969_v41 = vsel %vm11032_vm4, %v3964_v25, %v3968_v47  ;;  %v3977_v19 = vor.u32 %v3976_v5, %v3973_v46  ;;  %v12719_v22 = vld [vmem:[%s15815_s1 + $0xb0] ss:$0 sps:$4 sm:$0x11]   ;;  %v12725_v47 = vpop.f32.mrf.mxu0  ;;  %v4004_v50 = vshrl.u32 %v12697_v44, 16  ;;  %v4000_v25 = vshll.u32 %v12697_v44, 16 }
 0x12a   : > { %10193 = vmatmul.mubr.msk.bf16.gmra.mxu0 %vm1108_vm3, %v12265_v17  ;;  %v12723_v17 = vpop.f32.mrf.mxu1  ;;  %16184 = vst [vmem:[#allocation51_spill] sm:$0xff] %v12725_v47  ;;  %v12727_v5 = vcombine.low %v3959_v53, %v3969_v41  ;;  %v3987_v61 = vor.u32 %v3986_v54, %v3982_v35  ;;  %v3992_v1 = vrot.slane %v3990_v63, 5  ;;  %v3996_v15 = vrot.slane %v3994_v60, 4  ;;  %v12732_v36 = vld [vmem:[%s11005_s7 + $0xe0] sm:$0xf] }
 0x12b   : > { %10196 = vmatprep.mubr.msk.bf16.mxu0 %vm1108_vm3, %v12309_v32  ;;  %16183 = vst [vmem:[#allocation50_spill] sm:$0xff] %v12723_v17  ;;  %10327 = vmatpush3.bf16.msra.mxu0 %v10664_v52  ;;  %v3978_v16 = vrot.slane %v3977_v19, 4  ;;  %v4010_v46 = vshll.u32 %v9006_v14, 16  ;;  %v4006_v53 = vrot.slane %v4004_v50, 4  ;;  %v4015_v63 = vshrl.u32 %v12714_v9, 16  ;;  %v12755_v17 = vpop.f32.mrf.mxu0 }
 0x12c   : > { %10255 = vmatpush3.bf16.msra.mxu1 %v10650_v6  ;;  %10547 = vmatprep.subr.msk.bf16.mxu0 %vm1205_vm0, %v12719_v22  ;;  %v3988_v32 = vrot.slane %v3987_v61, 4  ;;  %v12742_v6 = vld [vmem:[%s15815_s1 + $0x9c] ss:$0 sps:$4 sm:$0x11]   ;;  %v3997_v52 = vor.u32 %v3996_v15, %v3992_v1  ;;  %v4002_v41 = vrot.slane %v4000_v25, 5  ;;  %v16185_v61 = vld [vmem:[#allocation31_spill] sm:$0xff]  ;;  %v12753_v54 = vpop.f32.mrf.mxu1 }
 0x12d   : > { %10256 = vmatprep.subr.bf16.mxu1 %v10662_v51  ;;  %v3983_v14 = vsel %vm11032_vm4, %v3978_v16, %v3982_v35  ;;  %v4012_v19 = vrot.slane %v4010_v46, 5  ;;  %v12747_v60 = vld [vmem:[%s11005_s7 + $0xe4] sm:$0xf]  ;;  %v16186_v50 = vcombine.low %v12165_v26, %v16185_v61  ;;  %16187 = vst [vmem:[#allocation31_spill] sm:$0xff] %v12753_v54  ;;  %16188 = vst [vmem:[#allocation52_spill] sm:$0xff] %v12755_v17  ;;  %v4018_v35 = vshll.u32 %v12714_v9, 16 }
 0x12e   : > { %v3993_v47 = vsel %vm11032_vm4, %v3988_v32, %v3992_v1  ;;  %v4028_v16 = vshrl.u32 %v12732_v36, 16  ;;  %v4017_v15 = vrot.slane %v4015_v63, 4  ;;  %v16189_v25 = vld [vmem:[#allocation33_spill] sm:$0xff]  ;;  %v3998_v26 = vrot.slane %v3997_v52, 4  ;;  %v12769_v44 = vld [vmem:[%s11005_s7 + $0xe8] sm:$0xf]  ;;  %v12786_v52 = vpop.f32.mrf.mxu0 }
 0x12f   : > { %10123 = vmatmul.mubr.msk.bf16.gmra.mxu1 %vm1108_vm3, %v16186_v50  ;;  %v16190_v46 = vcombine.low %v16189_v25, %v12211_v57  ;;  %v12765_v50 = vcombine.low %v3983_v14, %v3993_v47  ;;  %v4007_v54 = vor.u32 %v4006_v53, %v4002_v41  ;;  %v4024_v17 = vshll.u32 %v12732_v36, 16  ;;  %16191 = vst [vmem:[#allocation33_spill] sm:$0xff] %v12769_v44  ;;  %v9011_v11 = vld [vmem:[%s11005_s7 + $0xec] sm:$0x1]  ;;  %v12784_v14 = vpop.f32.mrf.mxu1 }
 0x130   : > { %10257 = vmatpush3.bf16.msra.mxu1 %v10662_v51  ;;  %v4020_v1 = vrot.slane %v4018_v35, 5  ;;  %v4030_v32 = vrot.slane %v4028_v16, 4  ;;  %v4034_v9 = vshll.u32 %v12747_v60, 16  ;;  %v4038_v63 = vshrl.u32 %v12747_v60, 16  ;;  %16192 = vst [vmem:[#allocation53_spill] sm:$0xff] %v12784_v14  ;;  %16193 = vst [vmem:[#allocation54_spill] sm:$0xff] %v12786_v52 }
 0x131   : > { %10126 = vmatprep.mubr.msk.bf16.mxu1 %vm1108_vm3, %v16190_v46  ;;  %10546 = vmatprep.subr.msk.bf16.mxu1 %vm1205_vm0, %v12742_v6  ;;  %v4003_v57 = vsel %vm11032_vm4, %v3998_v26, %v4002_v41  ;;  %v4008_v47 = vrot.slane %v4007_v54, 4  ;;  %v4026_v53 = vrot.slane %v4024_v17, 5  ;;  %v4048_v25 = vshrl.u32 %v12769_v44, 16  ;;  %v12793_v26 = vld [vmem:[%s11005_s7 + $0xf0] sm:$0xf] }
 0x132   : > { %10197 = vmatmul.mubr.msk.bf16.gmra.mxu0 %vm1108_vm3, %v12340_v29  ;;  %v4021_v35 = vor.u32 %v4020_v1, %v4017_v15  ;;  %v4036_v16 = vrot.slane %v4034_v9, 5  ;;  %v4040_v29 = vrot.slane %v4038_v63, 4  ;;  %v4044_v41 = vshll.u32 %v12769_v44, 16  ;;  %16194 = vst [vmem:[#allocation55_spill] sm:$0xff] %v12793_v26  ;;  %v12798_v15 = vld [vmem:[%s11005_s7 + $0xf4] sm:$0xf] }
 0x133   : > { %10200 = vmatprep.mubr.msk.bf16.mxu0 %vm1108_vm3, %v12369_v2  ;;  %v4013_v54 = vsel %vm11032_vm4, %v4008_v47, %v4012_v19  ;;  %v4031_v17 = vor.u32 %v4030_v32, %v4026_v53  ;;  %v4054_v46 = vshll.u32 %v9011_v11, 16  ;;  %v4050_v52 = vrot.slane %v4048_v25, 4  ;;  %16195 = vst [vmem:[#allocation56_spill] sm:$0xff] %v12798_v15  ;;  %v12806_v32 = vpop.f32.mrf.mxu1 }
 0x134   : > { %v12795_v2 = vcombine.low %v4003_v57, %v4013_v54  ;;  %v4022_v51 = vrot.slane %v4021_v35, 4  ;;  %v4041_v14 = vor.u32 %v4040_v29, %v4036_v16  ;;  %v4046_v1 = vrot.slane %v4044_v41, 5  ;;  %16197 = vst [vmem:[#allocation57_spill] sm:$0xff] %v12806_v32  ;;  %v12808_v57 = vpop.f32.mrf.mxu0  ;;  %v12815_v54 = vld [vmem:[%s11005_s7 + $0xf8] sm:$0xf] }
 0x135   : > { %v4032_v9 = vrot.slane %v4031_v17, 4  ;;  %v4056_v63 = vrot.slane %v4054_v46, 5  ;;  %v16196_v11 = vcombine.low %v12224_v4, %v12234_v30  ;;  %16198 = vst [vmem:[#allocation58_spill] sm:$0xff] %v12808_v57  ;;  %v4059_v29 = vshrl.u32 %v12793_v26, 16  ;;  %16199 = vst [vmem:[#allocation59_spill] sm:$0xff] %v12815_v54  ;;  %v16200_v17 = vld [vmem:[#allocation16_spill] sm:$0xff] }
 0x136   : > { %v4027_v47 = vsel %vm11032_vm4, %v4022_v51, %v4026_v53  ;;  %v4042_v35 = vrot.slane %v4041_v14, 4  ;;  %v4062_v25 = vshll.u32 %v12793_v26, 16  ;;  %v16201_v41 = vld [vmem:[#allocation17_spill] sm:$0xff]  ;;  %v4072_v19 = vshrl.u32 %v12798_v15, 16 }
 0x137   : > { %10127 = vmatmul.mubr.msk.bf16.gmra.mxu1 %vm1108_vm3, %v16196_v11  ;;  %v16202_v46 = vcombine.low %v16200_v17, %v16201_v41  ;;  %v4037_v4 = vsel %vm11032_vm4, %v4032_v9, %v4036_v16  ;;  %v4051_v11 = vor.u32 %v4050_v52, %v4046_v1  ;;  %v4068_v53 = vshll.u32 %v12798_v15, 16  ;;  %v12826_v51 = vld [vmem:[%s11005_s7 + $0xfc] sm:$0xf]  ;;  %v12855_v15 = vld [vmem:[%s11005_s7 + $0x108] sm:$0xf] }
 0x138   : > { %v12828_v14 = vcombine.low %v4027_v47, %v4037_v4  ;;  %v4047_v32 = vsel %vm11032_vm4, %v4042_v35, %v4046_v1  ;;  %v4061_v57 = vrot.slane %v4059_v29, 4  ;;  %v4064_v17 = vrot.slane %v4062_v25, 5  ;;  %v12837_v47 = vpop.f32.mrf.mxu1  ;;  %v9016_v25 = vld [vmem:[%s11005_s7 + $0x100] sm:$0x1] }
 0x139   : > { %10130 = vmatprep.mubr.msk.bf16.mxu1 %vm1108_vm3, %v16202_v46  ;;  %v4052_v41 = vrot.slane %v4051_v11, 4  ;;  %v4070_v52 = vrot.slane %v4068_v53, 5  ;;  %v4074_v16 = vrot.slane %v4072_v19, 4  ;;  %v4078_v9 = vshll.u32 %v12815_v54, 16  ;;  %16203 = vst [vmem:[#allocation16_spill] sm:$0xff] %v12837_v47  ;;  %v12839_v46 = vpop.f32.mrf.mxu0 }
 0x13a   : > { %10201 = vmatmul.mubr.msk.bf16.gmra.mxu0 %vm1108_vm3, %v12401_v18  ;;  %16204 = vst [vmem:[#allocation17_spill] sm:$0xff] %v12839_v46  ;;  %v4065_v1 = vor.u32 %v4064_v17, %v4061_v57  ;;  %v4082_v35 = vshrl.u32 %v12815_v54, 16  ;;  %v4092_v29 = vshrl.u32 %v12826_v51, 16  ;;  %v12850_v53 = vld [vmem:[%s11005_s7 + $0x104] sm:$0xf]  ;;  %v4098_v44 = vshll.u32 %v9016_v25, 16 }
 0x13b   : > { %10204 = vmatprep.mubr.msk.bf16.mxu0 %vm1108_vm3, %v12435_v34  ;;  %v4057_v19 = vsel %vm11032_vm4, %v4052_v41, %v4056_v63  ;;  %v4075_v4 = vor.u32 %v4074_v16, %v4070_v52  ;;  %v4080_v11 = vrot.slane %v4078_v9, 5  ;;  %v4088_v34 = vshll.u32 %v12826_v51, 16  ;;  %v12857_v18 = vpop.f32.mrf.mxu0  ;;  %v16208_v25 = vld [vmem:[#allocation22_spill] sm:$0xff] }
 0x13c   : > { %v12852_v47 = vcombine.low %v4047_v32, %v4057_v19  ;;  %v4066_v57 = vrot.slane %v4065_v1, 4  ;;  %v4084_v17 = vrot.slane %v4082_v35, 4  ;;  %v4094_v46 = vrot.slane %v4092_v29, 4  ;;  %16205 = vst [vmem:[#allocation60_spill] sm:$0xff] %v12857_v18  ;;  %v12865_v32 = vpop.f32.mrf.mxu1  ;;  %v12872_v29 = vld [vmem:[%s11005_s7 + $0x10c] sm:$0xf] }
 0x13d   : > { %v4076_v54 = vrot.slane %v4075_v4, 4  ;;  %v4090_v26 = vrot.slane %v4088_v34, 5  ;;  %v16206_v41 = vcombine.low %v12292_v56, %v12307_v42  ;;  %16207 = vst [vmem:[#allocation61_spill] sm:$0xff] %v12865_v32  ;;  %v4103_v1 = vshrl.u32 %v12850_v53, 16  ;;  %v12884_v32 = vld [vmem:[%s11005_s7 + $0x110] sm:$0xf] }
 0x13e   : > { %v4071_v16 = vsel %vm11032_vm4, %v4066_v57, %v4070_v52  ;;  %v4085_v9 = vor.u32 %v4084_v17, %v4080_v11  ;;  %v4106_v35 = vshll.u32 %v12850_v53, 16  ;;  %v16209_v19 = vcombine.low %v12338_v3, %v16208_v25  ;;  %v12888_v3 = vpop.f32.mrf.mxu0 }
 0x13f   : > { %10131 = vmatmul.mubr.msk.bf16.gmra.mxu1 %vm1108_vm3, %v16206_v41  ;;  %v4081_v56 = vsel %vm11032_vm4, %v4076_v54, %v4080_v11  ;;  %v4095_v4 = vor.u32 %v4094_v46, %v4090_v26  ;;  %v4100_v34 = vrot.slane %v4098_v44, 5  ;;  %v4116_v41 = vshrl.u32 %v12855_v15, 16  ;;  %16210 = vst [vmem:[#allocation22_spill] sm:$0xff] %v12888_v3  ;;  %v12894_v11 = vpop.f32.mrf.mxu1 }
 0x140   : > { %10134 = vmatprep.mubr.msk.bf16.mxu1 %vm1108_vm3, %v16209_v19  ;;  %v4086_v52 = vrot.slane %v4085_v9, 4  ;;  %v12881_v57 = vcombine.low %v4071_v16, %v4081_v56  ;;  %v4105_v17 = vrot.slane %v4103_v1, 4  ;;  %v4108_v63 = vrot.slane %v4106_v35, 5  ;;  %16211 = vst [vmem:[#allocation62_spill] sm:$0xff] %v12894_v11  ;;  %v9021_v35 = vld [vmem:[%s11005_s7 + $0x114] sm:$0x1]  ;;  %v12914_v1 = vpop.f32.mrf.mxu0 }
 0x141   : > { %v4096_v25 = vrot.slane %v4095_v4, 4  ;;  %v4112_v54 = vshll.u32 %v12855_v15, 16  ;;  %v4118_v44 = vrot.slane %v4116_v41, 4  ;;  %v4122_v46 = vshll.u32 %v12872_v29, 16  ;;  %v12906_v41 = vld [vmem:[%s11005_s7 + $0x118] sm:$0xf] }
 0x142   : > { %10205 = vmatmul.mubr.msk.bf16.gmra.mxu0 %vm1108_vm3, %v12468_v13  ;;  %v4091_v16 = vsel %vm11032_vm4, %v4086_v52, %v4090_v26  ;;  %v4109_v9 = vor.u32 %v4108_v63, %v4105_v17  ;;  %v4126_v13 = vshrl.u32 %v12872_v29, 16  ;;  %v4132_v52 = vshll.u32 %v12884_v32, 16  ;;  %v12912_v17 = vld [vmem:[%s11005_s7 + $0x11c] sm:$0xf]  ;;  %16212 = vst [vmem:[#allocation63_spill] sm:$0xff] %v12914_v1 }
 0x143   : > { %10208 = vmatprep.mubr.msk.bf16.mxu0 %vm1108_vm3, %v12505_v28  ;;  %v4101_v19 = vsel %vm11032_vm4, %v4096_v25, %v4100_v34  ;;  %v4114_v56 = vrot.slane %v4112_v54, 5  ;;  %v4124_v4 = vrot.slane %v4122_v46, 5  ;;  %v4136_v28 = vshrl.u32 %v12884_v32, 16  ;;  %v12922_v46 = vpop.f32.mrf.mxu1 }
 0x144   : > { %v12908_v11 = vcombine.low %v4091_v16, %v4101_v19  ;;  %v4110_v26 = vrot.slane %v4109_v9, 4  ;;  %v4128_v63 = vrot.slane %v4126_v13, 4  ;;  %v4142_v34 = vshll.u32 %v9021_v35, 16  ;;  %16214 = vst [vmem:[#allocation64_spill] sm:$0xff] %v12922_v46 }
 0x145   : > { %v4119_v3 = vor.u32 %v4118_v44, %v4114_v56  ;;  %v4138_v18 = vrot.slane %v4136_v28, 4  ;;  %v16213_v54 = vcombine.low %v12354_v55, %v12377_v59  ;;  %v4134_v13 = vrot.slane %v4132_v52, 5  ;;  %v12928_v44 = vld [vmem:[%s11005_s7 + $0x120] sm:$0xf] }
 0x146   : > { %v4115_v16 = vsel %vm11032_vm4, %v4110_v26, %v4114_v56  ;;  %v4129_v9 = vor.u32 %v4128_v63, %v4124_v4  ;;  %v4147_v19 = vshrl.u32 %v12906_v41, 16  ;;  %v16215_v35 = vcombine.low %v12399_v10, %v12406_v27 }
 0x147   : > { %10135 = vmatmul.mubr.msk.bf16.gmra.mxu1 %vm1108_vm3, %v16213_v54  ;;  %v4120_v55 = vrot.slane %v4119_v3, 4  ;;  %v4144_v59 = vrot.slane %v4142_v34, 5  ;;  %v4150_v28 = vshll.u32 %v12906_v41, 16  ;;  %v4160_v54 = vshrl.u32 %v12912_v17, 16 }
 0x148   : > { %10138 = vmatprep.mubr.msk.bf16.mxu1 %vm1108_vm3, %v16215_v35  ;;  %v4130_v25 = vrot.slane %v4129_v9, 4  ;;  %v4139_v56 = vor.u32 %v4138_v18, %v4134_v13  ;;  %v4149_v26 = vrot.slane %v4147_v19, 4  ;;  %v4156_v63 = vshll.u32 %v12912_v17, 16  ;;  %v12939_v52 = vpop.f32.mrf.mxu0  ;;  %v12945_v35 = vld [vmem:[%s11005_s7 + $0x124] sm:$0xf]  ;;  %v12947_v18 = vpop.f32.mrf.mxu1 }
 0x149   : > { %16216 = vst [vmem:[#allocation65_spill] sm:$0xff] %v12939_v52  ;;  %v4125_v10 = vsel %vm11032_vm4, %v4120_v55, %v4124_v4  ;;  %v4152_v27 = vrot.slane %v4150_v28, 5  ;;  %v4162_v3 = vrot.slane %v4160_v54, 4  ;;  %v4166_v34 = vshll.u32 %v12928_v44, 16  ;;  %16217 = vst [vmem:[#allocation66_spill] sm:$0xff] %v12947_v18 }
 0x14a   : > { %10209 = vmatmul.mubr.msk.bf16.gmra.mxu0 %vm1108_vm3, %v12529_v7  ;;  %v12951_v9 = vcombine.low %v4115_v16, %v4125_v10  ;;  %v4135_v7 = vsel %vm11032_vm4, %v4130_v25, %v4134_v13  ;;  %v4140_v19 = vrot.slane %v4139_v56, 4  ;;  %v4158_v46 = vrot.slane %v4156_v63, 5  ;;  %v9026_v4 = vld [vmem:[%s11005_s7 + $0x128] sm:$0x1]  ;;  %v12964_v25 = vld [vmem:[%s11005_s7 + $0x12c] sm:$0xf]  ;;  %v12966_v13 = vpop.f32.mrf.mxu0 }
 0x14b   : > { %10212 = vmatprep.mubr.msk.bf16.mxu0 %vm1108_vm3, %v12563_v31  ;;  %v4153_v55 = vor.u32 %v4152_v27, %v4149_v26  ;;  %v4168_v28 = vrot.slane %v4166_v34, 5  ;;  %v4170_v54 = vshrl.u32 %v12928_v44, 16  ;;  %v4180_v16 = vshrl.u32 %v12945_v35, 16  ;;  %16218 = vst [vmem:[#allocation67_spill] sm:$0xff] %v12966_v13  ;;  %v12971_v34 = vld [vmem:[%s11005_s7 + $0x130] sm:$0xf] }
 0x14c   : > { %v4145_v18 = vsel %vm11032_vm4, %v4140_v19, %v4144_v59  ;;  %v4163_v31 = vor.u32 %v4162_v3, %v4158_v46  ;;  %v4176_v10 = vshll.u32 %v12945_v35, 16  ;;  %v4186_v27 = vshll.u32 %v9026_v4, 16  ;;  %v12977_v3 = vpop.f32.mrf.mxu1  ;;  %v13028_v13 = vld [vmem:[%s11005_s7 + $0x144] sm:$0xf] }
 0x14d   : > { %v12968_v56 = vcombine.low %v4135_v7, %v4145_v18  ;;  %v4154_v26 = vrot.slane %v4153_v55, 4  ;;  %v4172_v63 = vrot.slane %v4170_v54, 4  ;;  %v16219_v59 = vcombine.low %v12427_v58, %v12433_v48  ;;  %16220 = vst [vmem:[#allocation68_spill] sm:$0xff] %v12977_v3  ;;  %v12989_v54 = vld [vmem:[%s11005_s7 + $0x134] sm:$0xf] }
 0x14e   : > { %v4164_v19 = vrot.slane %v4163_v31, 4  ;;  %v4178_v52 = vrot.slane %v4176_v10, 5  ;;  %v4182_v1 = vrot.slane %v4180_v16, 4  ;;  %v16221_v7 = vcombine.low %v12462_v0, %v12471_v38  ;;  %v12997_v38 = vpop.f32.mrf.mxu0  ;;  %v9031_v18 = vld [vmem:[%s11005_s7 + $0x13c] sm:$0x1] }
 0x14f   : > { %10139 = vmatmul.mubr.msk.bf16.gmra.mxu1 %vm1108_vm3, %v16219_v59  ;;  %v4159_v4 = vsel %vm11032_vm4, %v4154_v26, %v4158_v46  ;;  %v4173_v58 = vor.u32 %v4172_v63, %v4168_v28  ;;  %v4188_v48 = vrot.slane %v4186_v27, 5  ;;  %v4191_v55 = vshrl.u32 %v12964_v25, 16  ;;  %16222 = vst [vmem:[#allocation69_spill] sm:$0xff] %v12997_v38  ;;  %v13003_v59 = vld [vmem:[%s11005_s7 + $0x138] sm:$0xf] }
 0x150   : > { %10142 = vmatprep.mubr.msk.bf16.mxu1 %vm1108_vm3, %v16221_v7  ;;  %v4169_v31 = vsel %vm11032_vm4, %v4164_v19, %v4168_v28  ;;  %v4183_v16 = vor.u32 %v4182_v1, %v4178_v52  ;;  %v4194_v10 = vshll.u32 %v12964_v25, 16  ;;  %v4204_v0 = vshrl.u32 %v12971_v34, 16  ;;  %v13005_v1 = vpop.f32.mrf.mxu1  ;;  %v13022_v3 = vpop.f32.mrf.mxu0 }
 0x151   : > { %v4174_v46 = vrot.slane %v4173_v58, 4  ;;  %v12999_v26 = vcombine.low %v4159_v4, %v4169_v31  ;;  %v4193_v63 = vrot.slane %v4191_v55, 4  ;;  %v4200_v27 = vshll.u32 %v12971_v34, 16  ;;  %16223 = vst [vmem:[#allocation70_spill] sm:$0xff] %v13005_v1 }
 0x152   : > { %10213 = vmatmul.mubr.msk.bf16.gmra.mxu0 %vm1108_vm3, %v12588_v12  ;;  %v4184_v28 = vrot.slane %v4183_v16, 4  ;;  %v4196_v19 = vrot.slane %v4194_v10, 5  ;;  %v4206_v12 = vrot.slane %v4204_v0, 4  ;;  %v4210_v7 = vshll.u32 %v12989_v54, 16  ;;  %v13020_v0 = vld [vmem:[%s11005_s7 + $0x140] sm:$0xf] }
 0x153   : > { %10216 = vmatprep.mubr.msk.bf16.mxu0 %vm1108_vm3, %v12621_v45  ;;  %v4179_v4 = vsel %vm11032_vm4, %v4174_v46, %v4178_v52  ;;  %v4202_v58 = vrot.slane %v4200_v27, 5  ;;  %v4214_v55 = vshrl.u32 %v12989_v54, 16  ;;  %v4224_v10 = vshrl.u32 %v13003_v59, 16 }
 0x154   : > { %v4189_v1 = vsel %vm11032_vm4, %v4184_v28, %v4188_v48  ;;  %v4197_v45 = vor.u32 %v4196_v19, %v4193_v63  ;;  %v4212_v16 = vrot.slane %v4210_v7, 5  ;;  %v4220_v27 = vshll.u32 %v13003_v59, 16  ;;  %v13034_v48 = vpop.f32.mrf.mxu1 }
 0x155   : > { %v13024_v38 = vcombine.low %v4179_v4, %v4189_v1  ;;  %v4207_v52 = vor.u32 %v4206_v12, %v4202_v58  ;;  %v4216_v46 = vrot.slane %v4214_v55, 4  ;;  %v16224_v31 = vcombine.low %v12489_v39, %v12495_v21  ;;  %16225 = vst [vmem:[#allocation71_spill] sm:$0xff] %v13034_v48 }
 0x156   : > { %v4198_v63 = vrot.slane %v4197_v45, 4  ;;  %v4226_v28 = vrot.slane %v4224_v10, 4  ;;  %v4230_v19 = vshll.u32 %v9031_v18, 16  ;;  %v16226_v12 = vcombine.low %v12523_v20, %v12540_v62  ;;  %v13048_v10 = vld [vmem:[%s11005_s7 + $0x148] sm:$0xf] }
 0x157   : > { %10143 = vmatmul.mubr.msk.bf16.gmra.mxu1 %vm1108_vm3, %v16224_v31  ;;  %v4208_v7 = vrot.slane %v4207_v52, 4  ;;  %v4217_v4 = vor.u32 %v4216_v46, %v4212_v16  ;;  %v4222_v39 = vrot.slane %v4220_v27, 5  ;;  %v4235_v21 = vshrl.u32 %v13020_v0, 16  ;;  %v13057_v27 = vld [vmem:[%s11005_s7 + $0x14c] sm:$0xf] }
 0x158   : > { %10146 = vmatprep.mubr.msk.bf16.mxu1 %vm1108_vm3, %v16226_v12  ;;  %v4203_v55 = vsel %vm11032_vm4, %v4198_v63, %v4202_v58  ;;  %v4232_v31 = vrot.slane %v4230_v19, 5  ;;  %v4238_v18 = vshll.u32 %v13020_v0, 16  ;;  %v4248_v45 = vshrl.u32 %v13028_v13, 16  ;;  %v13050_v1 = vpop.f32.mrf.mxu0  ;;  %v13059_v58 = vpop.f32.mrf.mxu1 }
 0x159   : > { %16227 = vst [vmem:[#allocation72_spill] sm:$0xff] %v13050_v1  ;;  %v4213_v20 = vsel %vm11032_vm4, %v4208_v7, %v4212_v16  ;;  %v4218_v62 = vrot.slane %v4217_v4, 4  ;;  %v4227_v52 = vor.u32 %v4226_v28, %v4222_v39  ;;  %v4237_v46 = vrot.slane %v4235_v21, 4  ;;  %16228 = vst [vmem:[#allocation73_spill] sm:$0xff] %v13059_v58  ;;  %v13129_v1 = vld [vmem:[%s11005_s7 + $0x34] sm:$0xf] }
 0x15a   : > { %10217 = vmatmul.mubr.msk.bf16.gmra.mxu0 %vm1108_vm3, %v12657_v43  ;;  %v13063_v63 = vcombine.low %v4203_v55, %v4213_v20  ;;  %v4240_v19 = vrot.slane %v4238_v18, 5  ;;  %v4244_v12 = vshll.u32 %v13028_v13, 16  ;;  %v4250_v43 = vrot.slane %v4248_v45, 4  ;;  %v13066_v48 = vpop.f32.mrf.mxu0  ;;  %v9036_v18 = vld [vmem:[%s11005_s7 + $0x150] sm:$0x1] }
 0x15b   : > { %10220 = vmatprep.mubr.msk.bf16.mxu0 %vm1108_vm3, %v12694_v37  ;;  %16229 = vst [vmem:[#allocation74_spill] sm:$0xff] %v13066_v48  ;;  %v4223_v16 = vsel %vm11032_vm4, %v4218_v62, %v4222_v39  ;;  %v4228_v28 = vrot.slane %v4227_v52, 4  ;;  %v4254_v7 = vshll.u32 %v13048_v10, 16  ;;  %v4258_v4 = vshrl.u32 %v13048_v10, 16 }
 0x15c   : > { %v4241_v21 = vor.u32 %v4240_v19, %v4237_v46  ;;  %v4246_v58 = vrot.slane %v4244_v12, 5  ;;  %v4268_v55 = vshrl.u32 %v13057_v27, 16  ;;  %v13076_v20 = vpop.f32.mrf.mxu0  ;;  %v4264_v52 = vshll.u32 %v13057_v27, 16 }
 0x15d   : > { %16230 = vst [vmem:[#allocation75_spill] sm:$0xff] %v13076_v20  ;;  %v4233_v45 = vsel %vm11032_vm4, %v4228_v28, %v4232_v31  ;;  %v4256_v39 = vrot.slane %v4254_v7, 5  ;;  %v4260_v62 = vrot.slane %v4258_v4, 4  ;;  %v13081_v48 = vpop.f32.mrf.mxu1  ;;  %v16232_v46 = vcombine.low %v12549_v33, %v12566_v40  ;;  %v10751_v33 = vld [vmem:[%s11005_s7 + $0x14] sm:$0xf] }
 0x15e   : > { %16231 = vst [vmem:[#allocation76_spill] sm:$0xff] %v13081_v48  ;;  %v13087_v19 = vcombine.low %v4223_v16, %v4233_v45  ;;  %v4242_v12 = vrot.slane %v4241_v21, 4  ;;  %v4251_v37 = vor.u32 %v4250_v43, %v4246_v58  ;;  %v4270_v20 = vrot.slane %v4268_v55, 4  ;;  %v13089_v31 = vpop.f32.mrf.mxu0  ;;  %v10752_v55 = vld [vmem:[%s11005_s7 + $0x18] sm:$0xf] }
 0x15f   : > { %10147 = vmatmul.mubr.msk.bf16.gmra.mxu1 %vm1108_vm3, %v16232_v46  ;;  %16233 = vst [vmem:[#allocation77_spill] sm:$0xff] %v13089_v31  ;;  %v16234_v28 = vcombine.low %v12582_v49, %v12599_v8  ;;  %v4261_v7 = vor.u32 %v4260_v62, %v4256_v39  ;;  %v4266_v4 = vrot.slane %v4264_v52, 5  ;;  %v4274_v40 = vshll.u32 %v9036_v18, 16  ;;  %v13096_v16 = vpop.f32.mrf.mxu1  ;;  %v10753_v48 = vld [vmem:[%s11005_s7 + $0x1c] sm:$0xf] }
 0x160   : > { %v9181_v46 = vrot.slane %v10751_v33, 9  ;;  %16235 = vst [vmem:[#allocation78_spill] sm:$0xff] %v13096_v16  ;;  %v4247_v43 = vsel %vm11032_vm4, %v4242_v12, %v4246_v58  ;;  %v4252_v21 = vrot.slane %v4251_v37, 4  ;;  %v4865_v45 = vrot.slane %v10752_v55, 5  ;;  %v13103_v49 = vld [vmem:[%s11005_s7 + $0x28] sm:$0xf]  ;;  %v10050_v8 = vpop.f32.mrf.mxu0 }
 0x161   : > { %10150 = vmatprep.mubr.msk.bf16.mxu1 %vm1108_vm3, %v16234_v28  ;;  %v4868_v31 = vrot.slane %v10753_v48, 5  ;;  %v4262_v18 = vrot.slane %v4261_v7, 4  ;;  %v4271_v62 = vor.u32 %v4270_v20, %v4266_v4  ;;  %v4276_v52 = vrot.slane %v4274_v40, 5  ;;  %v10754_v28 = vld [vmem:[%s11005_s7 + $0x20] sm:$0xf]  ;;  %v13111_v58 = vpop.f32.mrf.mxu1 }
 0x162   : > { %10221 = vmatmul.mubr.msk.bf16.gmra.mxu0 %vm1108_vm3, %v12727_v5  ;;  %v4871_v33 = vrot.slane %v10754_v28, 5  ;;  %v13109_v16 = vld [vmem:[%s11005_s7 + $0x2c] sm:$0xf]  ;;  %16236 = vst [vmem:[#allocation79_spill] sm:$0xff] %v13111_v58  ;;  %v4257_v48 = vsel %vm11032_vm4, %v4252_v21, %v4256_v39  ;;  %v13119_v5 = vsel %vm11451_vm7, %v9181_v46, %v4865_v45  ;;  %v4867_v20 = vrot.slane %v4865_v45, 4  ;;  %v2538_v7 = vpop.f32.mrf.mxu0 }
 0x163   : > { %10224 = vmatprep.mubr.msk.bf16.mxu0 %vm1108_vm3, %v12765_v50  ;;  %16238 = vst [vmem:[#allocation12_spill] sm:$0xff] %v13119_v5  ;;  %v4870_v12 = vrot.slane %v4868_v31, 4  ;;  %v13121_v40 = vcombine.low %v4247_v43, %v4257_v48  ;;  %v4267_v55 = vsel %vm11032_vm4, %v4262_v18, %v4266_v4  ;;  %v4272_v28 = vrot.slane %v4271_v62, 4  ;;  %v13126_v50 = vld [vmem:[%s11005_s7 + $0x30] sm:$0xf]  ;;  %v13131_v39 = vpop.f32.mrf.mxu1  ;;  %v16251_v5 = vld [vmem:[#allocation46_spill] sm:$0xff] }
 0x164   : > { %v4873_v58 = vrot.slane %v4871_v33, 4  ;;  %16239 = vst [vmem:[#allocation80_spill] sm:$0xff] %v13131_v39  ;;  %v13135_v46 = vsel %vm11451_vm7, %v4867_v20, %v4868_v31  ;;  %v10051_v45 = vpop.f32.mrf.mxu0  ;;  %v16242_v62 = vld [vmem:[#allocation28_spill] sm:$0xff]  ;;  %v13156_v20 = vld [vmem:[%s11005_s7 + $0x3c] sm:$0xf] }
 0x165   : > { %16240 = vst [vmem:[#allocation81_spill] sm:$0xff] %v13135_v46  ;;  %v13139_v43 = vsel %vm11451_vm7, %v4870_v12, %v4871_v33  ;;  %v4277_v18 = vsel %vm11032_vm4, %v4272_v28, %v4276_v52  ;;  %v16243_v48 = vrot.slane %v16242_v62, 5  ;;  %16245 = vst [vmem:[#allocation83_spill] sm:$0xff] %v13156_v20  ;;  %v13159_v12 = vld [vmem:[%s11005_s7 + $0x40] sm:$0xf]  ;;  %v9980_v21 = vpop.f32.mrf.mxu1  ;;  %v16247_v52 = vld [vmem:[#allocation44_spill] sm:$0xff] }
 0x166   : > { %16241 = vst [vmem:[#allocation82_spill] sm:$0xff] %v13139_v43  ;;  %16246 = vst [vmem:[#allocation84_spill] sm:$0xff] %v13159_v12  ;;  %v16248_v28 = vcombine.low %v12607_v24, %v16247_v52  ;;  %v16249_v31 = vld [vmem:[#allocation13_spill] sm:$0xff]  ;;  %v2541_v23 = vpop.f32.mrf.mxu0  ;;  %v10755_v52 = vld [vmem:[%s11005_s7 + $0x28] sm:$0xf] }
 0x167   : > { %v13150_v39 = vsel %vm11451_vm7, %v4873_v58, %v16243_v48  ;;  %v13165_v58 = vcombine.low %v4267_v55, %v4277_v18  ;;  %v1815_v4 = vadd.f32 %v9980_v21, %v16249_v31  ;;  %v16250_v46 = vld [vmem:[#allocation45_spill] sm:$0xff]  ;;  %v13179_v55 = vsel %vm1205_vm0, %v12742_v6, 0  ;;  %v13187_v48 = vld [vmem:[%s11005_s7 + $0x44] sm:$0xf]  ;;  %v1806_v62 = vpop.f32.mrf.mxu1  ;;  %v10756_v21 = vld [vmem:[%s11005_s7 + $0x2c] sm:$0xf] }
 0x168   : > { %16244 = vst [vmem:[#allocation28_spill] sm:$0xff] %v13150_v39  ;;  %10151 = vmatmul.mubr.msk.bf16.gmra.mxu1 %vm1108_vm3, %v16248_v28  ;;  %v16252_v24 = vcombine.low %v16250_v46, %v16251_v5  ;;  %16253 = vst [vmem:[#allocation44_spill] sm:$0xff] %v13179_v55  ;;  %v13183_v18 = vsel %vm1205_vm0, %v12719_v22, 0  ;;  %v9182_v28 = vrot.slane %v10755_v52, 9  ;;  %v4878_v31 = vrot.slane %v10756_v21, 5  ;;  %v16257_v22 = vld [vmem:[#allocation24_spill] sm:$0xff]  ;;  %v10054_v52 = vpop.f32.mrf.mxu0 }
 0x169   : > { %16254 = vst [vmem:[#allocation13_spill] sm:$0xff] %v13187_v48  ;;  %v10757_v33 = vld [vmem:[%s11005_s7 + $0x30] sm:$0xf]  ;;  %v13195_v6 = vld [vmem:[%s11005_s7 + $0x48] sm:$0xf]  ;;  %v1807_v55 = vadd.f32 %v1806_v62, %v16257_v22  ;;  %v9981_v43 = vpop.f32.mrf.mxu1  ;;  %v16258_v22 = vrot.slane %v16185_v61, 5 }
 0x16a   : > { %10154 = vmatprep.mubr.msk.bf16.mxu1 %vm1108_vm3, %v16252_v24  ;;  %v4881_v39 = vrot.slane %v10757_v33, 5  ;;  %16255 = vst [vmem:[#allocation45_spill] sm:$0xff] %v13195_v6  ;;  %v13197_v24 = vadd.f32 %v10050_v8, %v1815_v4  ;;  %10225 = vmatmul.mubr.msk.bf16.gmra.mxu0 %vm1108_vm3, %v12795_v2  ;;  %v13208_v8 = vsel %vm11451_vm7, %v9182_v28, %v4878_v31  ;;  %v4880_v4 = vrot.slane %v4878_v31, 4  ;;  %v16260_v2 = vld [vmem:[#allocation19_spill] sm:$0xff]  ;;  %v13219_v12 = vld [vmem:[%s11005_s7 + $0x50] sm:$0xf] }
 0x16b   : > { %10228 = vmatprep.mubr.msk.bf16.mxu0 %vm1108_vm3, %v12828_v14  ;;  %v4886_v46 = vrot.slane %v16258_v22, 4  ;;  %v13212_v5 = vadd.f32 %v2538_v7, %v1807_v55  ;;  %v1818_v21 = vadd.f32 %v9981_v43, %v16260_v2  ;;  %v13222_v28 = vld [vmem:[%s11005_s7 + $0x54] sm:$0xf]  ;;  %v1809_v31 = vpop.f32.mrf.mxu1  ;;  %v16262_v43 = vmov %v16258_v22  ;;  %v10758_v33 = vld [vmem:[%s11005_s7 + $0x3c] sm:$0xf]  ;;  %v16270_v20 = vld [vmem:[#allocation47_spill] sm:$0xff] }
 0x16c   : > { %16256 = vst [vmem:[#allocation46_spill] sm:$0xff] %v13197_v24  ;;  %v4883_v62 = vrot.slane %v4881_v39, 4  ;;  %v2554_v24 = vpop.f32.mrf.mxu0  ;;  %v13226_v7 = vsel %vm11451_vm7, %v4880_v4, %v4881_v39  ;;  %v16264_v22 = vld [vmem:[#allocation32_spill] sm:$0xff]  ;;  %v16268_v48 = vld [vmem:[#allocation21_spill] sm:$0xff] }
 0x16d   : > { %16259 = vst [vmem:[#allocation24_spill] sm:$0xff] %v13212_v5  ;;  %16261 = vst [vmem:[#allocation19_spill] sm:$0xff] %v13226_v7  ;;  %v16265_v2 = vrot.slane %v16264_v22, 5  ;;  %v9183_v5 = vrot.slane %v10758_v33, 9  ;;  %v13241_v6 = vadd.f32 %v10051_v45, %v1818_v21  ;;  %v1810_v39 = vadd.f32 %v1809_v31, %v16268_v48  ;;  %v9984_v22 = vpop.f32.mrf.mxu1  ;;  %v10759_v33 = vld [vmem:[%s11005_s7 + $0x40] sm:$0xf] }
 0x16e   : > { %v13232_v55 = vsel %vm11451_vm7, %v4883_v62, %v16262_v43  ;;  %v10055_v4 = vpop.f32.mrf.mxu0  ;;  %v13249_v43 = vld [vmem:[%s11005_s7 + $0x58] sm:$0xf]  ;;  %v4891_v45 = vrot.slane %v10759_v33, 5  ;;  %v10760_v21 = vld [vmem:[%s11005_s7 + $0x44] sm:$0xf] }
 0x16f   : > { %16263 = vst [vmem:[#allocation85_spill] sm:$0xff] %v13232_v55  ;;  %v13238_v14 = vsel %vm11451_vm7, %v4886_v46, %v16265_v2  ;;  %16267 = vst [vmem:[#allocation86_spill] sm:$0xff] %v13241_v6  ;;  %v16271_v46 = vld [vmem:[#allocation30_spill] sm:$0xff]  ;;  %v4894_v6 = vrot.slane %v10760_v21, 5  ;;  %v13261_v61 = vld [vmem:[%s11005_s7 + $0x5c] sm:$0xf]  ;;  %v13263_v62 = vadd.f32 %v2541_v23, %v1810_v39  ;;  %v1822_v21 = vpop.f32.mrf.mxu1 }
 0x170   : > { %16266 = vst [vmem:[#allocation32_spill] sm:$0xff] %v13238_v14  ;;  %16269 = vst [vmem:[#allocation21_spill] sm:$0xff] %v13249_v43  ;;  %v16272_v2 = vcombine.low %v16270_v20, %v16271_v46  ;;  %v16275_v14 = vld [vmem:[#allocation35_spill] sm:$0xff]  ;;  %v2557_v7 = vpop.f32.mrf.mxu0  ;;  %v16276_v20 = vld [vmem:[#allocation29_spill] sm:$0xff]  ;;  %v13274_v31 = vsel %vm11451_vm7, %v9183_v5, %v4891_v45  ;;  %v4893_v23 = vrot.slane %v4891_v45, 4  ;;  %v16278_v39 = vrot.slane %v12234_v30, 5 }
 0x171   : > { %16273 = vst [vmem:[#allocation47_spill] sm:$0xff] %v13261_v61  ;;  %16274 = vst [vmem:[#allocation30_spill] sm:$0xff] %v13263_v62  ;;  %v1831_v55 = vadd.f32 %v9984_v22, %v16275_v14  ;;  %v16277_v46 = vcombine.low %v16276_v20, %v12732_v36  ;;  %v4896_v14 = vrot.slane %v4894_v6, 4  ;;  %v16280_v36 = vld [vmem:[#allocation26_spill] sm:$0xff]  ;;  %v10761_v33 = vld [vmem:[%s11005_s7 + $0x50] sm:$0xf] }
 0x172   : > { %10155 = vmatmul.mubr.msk.bf16.gmra.mxu1 %vm1108_vm3, %v16272_v2  ;;  %v4899_v22 = vrot.slane %v16278_v39, 4  ;;  %v1823_v20 = vadd.f32 %v1822_v21, %v16280_v36  ;;  %10229 = vmatmul.mubr.msk.bf16.gmra.mxu0 %vm1108_vm3, %v12852_v47  ;;  %v13287_v45 = vld [vmem:[%s11005_s7 + $0x64] sm:$0xf]  ;;  %v13290_v2 = vld [vmem:[%s11005_s7 + $0x68] sm:$0xf]  ;;  %v9985_v39 = vpop.f32.mrf.mxu1  ;;  %v16283_v47 = vrot.slane %v12234_v30, 5 }
 0x173   : > { %10158 = vmatprep.mubr.msk.bf16.mxu1 %vm1108_vm3, %v16277_v46  ;;  %v13278_v48 = vadd.f32 %v10054_v52, %v1831_v55  ;;  %v10058_v46 = vpop.f32.mrf.mxu0  ;;  %16281 = vst [vmem:[#allocation29_spill] sm:$0xff] %v13287_v45  ;;  %16282 = vst [vmem:[#allocation26_spill] sm:$0xff] %v13290_v2  ;;  %10232 = vmatprep.mubr.msk.bf16.mxu0 %vm1108_vm3, %v12881_v57  ;;  %v13296_v52 = vsel %vm11451_vm7, %v4893_v23, %v4894_v6  ;;  %v16285_v21 = vld [vmem:[#allocation14_spill] sm:$0xff]  ;;  %v16289_v62 = vld [vmem:[#allocation37_spill] sm:$0xff] }
 0x174   : > { %v13302_v55 = vsel %vm11451_vm7, %v4896_v14, %v16283_v47  ;;  %v16286_v36 = vrot.slane %v16285_v21, 5  ;;  %v13311_v57 = vadd.f32 %v2554_v24, %v1823_v20  ;;  %v1834_v6 = vadd.f32 %v9985_v39, %v16289_v62  ;;  %v13319_v47 = vld [vmem:[%s11005_s7 + $0x6c] sm:$0xf]  ;;  %v1825_v21 = vpop.f32.mrf.mxu1  ;;  %v10762_v61 = vld [vmem:[%s11005_s7 + $0x54] sm:$0xf]  ;;  %v16293_v39 = vld [vmem:[#allocation38_spill] sm:$0xff] }
 0x175   : > { %16279 = vst [vmem:[#allocation35_spill] sm:$0xff] %v13278_v48  ;;  %16284 = vst [vmem:[#allocation87_spill] sm:$0xff] %v13302_v55  ;;  %v9184_v48 = vrot.slane %v10761_v33, 9  ;;  %v2570_v23 = vpop.f32.mrf.mxu0  ;;  %v13327_v62 = vld [vmem:[%s11005_s7 + $0x70] sm:$0xf]  ;;  %v1826_v30 = vadd.f32 %v1825_v21, %v16293_v39  ;;  %v16296_v21 = vrot.slane %v12307_v42, 5 }
 0x176   : > { %v13308_v5 = vsel %vm11451_vm7, %v4899_v22, %v16286_v36  ;;  %16288 = vst [vmem:[#allocation88_spill] sm:$0xff] %v13311_v57  ;;  %16290 = vst [vmem:[#allocation37_spill] sm:$0xff] %v13319_v47  ;;  %v4904_v22 = vrot.slane %v10762_v61, 5  ;;  %v10763_v36 = vld [vmem:[%s11005_s7 + $0x58] sm:$0xf]  ;;  %v13329_v20 = vadd.f32 %v10055_v4, %v1834_v6  ;;  %v16298_v57 = vld [vmem:[#allocation40_spill] sm:$0xff] }
 0x177   : > { %16287 = vst [vmem:[#allocation14_spill] sm:$0xff] %v13308_v5  ;;  %v4907_v43 = vrot.slane %v10763_v36, 5  ;;  %16291 = vst [vmem:[#allocation89_spill] sm:$0xff] %v13327_v62  ;;  %v10059_v14 = vpop.f32.mrf.mxu0  ;;  %v9988_v5 = vpop.f32.mrf.mxu1  ;;  %v16294_v36 = vld [vmem:[#allocation33_spill] sm:$0xff]  ;;  %v4912_v39 = vrot.slane %v16296_v21, 4  ;;  %v13344_v24 = vadd.f32 %v2557_v7, %v1826_v30  ;;  %v16299_v2 = vld [vmem:[#allocation55_spill] sm:$0xff] }
 0x178   : > { %16292 = vst [vmem:[#allocation90_spill] sm:$0xff] %v13329_v20  ;;  %v16295_v55 = vcombine.low %v12747_v60, %v16294_v36  ;;  %v13340_v33 = vsel %vm11451_vm7, %v9184_v48, %v4904_v22  ;;  %v4906_v4 = vrot.slane %v4904_v22, 4  ;;  %v1847_v61 = vadd.f32 %v9988_v5, %v16298_v57  ;;  %v16300_v45 = vld [vmem:[#allocation56_spill] sm:$0xff]  ;;  %v13355_v22 = vld [vmem:[%s11005_s7 + $0x78] sm:$0xf]  ;;  %v16305_v57 = vld [vmem:[#allocation34_spill] sm:$0xff] }
 0x179   : > { %v4909_v6 = vrot.slane %v4907_v43, 4  ;;  %16297 = vst [vmem:[#allocation38_spill] sm:$0xff] %v13344_v24  ;;  %v2573_v20 = vpop.f32.mrf.mxu0  ;;  %v16301_v60 = vcombine.low %v16299_v2, %v16300_v45  ;;  %v13358_v36 = vld [vmem:[%s11005_s7 + $0x7c] sm:$0xf]  ;;  %v1838_v7 = vpop.f32.mrf.mxu1  ;;  %v16303_v2 = vmov %v16296_v21  ;;  %v16306_v30 = vrot.slane %v16305_v57, 5 }
 0x17a   : > { %10159 = vmatmul.mubr.msk.bf16.gmra.mxu1 %vm1108_vm3, %v16295_v55  ;;  %16302 = vst [vmem:[#allocation33_spill] sm:$0xff] %v13358_v36  ;;  %v13362_v5 = vsel %vm11451_vm7, %v4906_v4, %v4907_v43  ;;  %v13377_v48 = vadd.f32 %v10058_v46, %v1847_v61  ;;  %v16309_v43 = vld [vmem:[#allocation42_spill] sm:$0xff]  ;;  %10233 = vmatmul.mubr.msk.bf16.gmra.mxu0 %vm1108_vm3, %v12908_v11  ;;  %v10765_v46 = vld [vmem:[%s11005_s7 + $0x68] sm:$0xf]  ;;  %v13419_v36 = vld [vmem:[%s11005_s7 + $0x90] sm:$0xf] }
 0x17b   : > { %10162 = vmatprep.mubr.msk.bf16.mxu1 %vm1108_vm3, %v16301_v60  ;;  %v13368_v45 = vsel %vm11451_vm7, %v4909_v6, %v16303_v2  ;;  %v13374_v21 = vsel %vm11451_vm7, %v4912_v39, %v16306_v30  ;;  %v10764_v60 = vld [vmem:[%s11005_s7 + $0x64] sm:$0xf]  ;;  %v1839_v4 = vadd.f32 %v1838_v7, %v16309_v43  ;;  %v10062_v24 = vpop.f32.mrf.mxu0  ;;  %v13387_v2 = vld [vmem:[%s11005_s7 + $0x80] sm:$0xf]  ;;  %v9989_v39 = vpop.f32.mrf.mxu1  ;;  %10236 = vmatprep.mubr.msk.bf16.mxu0 %vm1108_vm3, %v12951_v9  ;;  %v4917_v61 = vrot.slane %v10765_v46, 5  ;;  %v16312_v6 = vld [vmem:[#allocation4_spill] sm:$0xff] }
 0x17c   : > { %16304 = vst [vmem:[#allocation40_spill] sm:$0xff] %v13368_v45  ;;  %16307 = vst [vmem:[#allocation55_spill] sm:$0xff] %v13374_v21  ;;  %v9185_v55 = vrot.slane %v10764_v60, 9  ;;  %v10766_v7 = vld [vmem:[%s11005_s7 + $0x6c] sm:$0xf]  ;;  %v1850_v42 = vadd.f32 %v9989_v39, %v16312_v6 }
 0x17d   : > { %16308 = vst [vmem:[#allocation56_spill] sm:$0xff] %v13377_v48  ;;  %16310 = vst [vmem:[#allocation34_spill] sm:$0xff] %v13387_v2  ;;  %v4920_v57 = vrot.slane %v10766_v7, 5  ;;  %v13397_v60 = vld [vmem:[%s11005_s7 + $0x84] sm:$0xf]  ;;  %v13399_v43 = vadd.f32 %v2570_v23, %v1839_v4  ;;  %v2586_v48 = vpop.f32.mrf.mxu0  ;;  %v1841_v7 = vpop.f32.mrf.mxu1  ;;  %v4919_v30 = vrot.slane %v4917_v61, 4 }
 0x17e   : > { %v13406_v11 = vsel %vm11451_vm7, %v9185_v55, %v4917_v61  ;;  %v10767_v45 = vld [vmem:[%s11005_s7 + $0x70] sm:$0xf]  ;;  %v13409_v23 = vadd.f32 %v10059_v14, %v1850_v42  ;;  %v16314_v4 = vld [vmem:[#allocation6_spill] sm:$0xff]  ;;  %v13416_v9 = vld [vmem:[%s11005_s7 + $0x8c] sm:$0xf]  ;;  %16316 = vst [vmem:[#allocation91_spill] sm:$0xff] %v13419_v36 }
 0x17f   : > { %16311 = vst [vmem:[#allocation42_spill] sm:$0xff] %v13399_v43  ;;  %v4922_v21 = vrot.slane %v4920_v57, 4  ;;  %v4923_v62 = vrot.slane %v10767_v45, 5  ;;  %v1842_v6 = vadd.f32 %v1841_v7, %v16314_v4  ;;  %v10063_v39 = vpop.f32.mrf.mxu0  ;;  %v10768_v43 = vld [vmem:[%s11005_s7 + $0x74] sm:$0x1]  ;;  %16315 = vst [vmem:[#allocation6_spill] sm:$0xff] %v13416_v9  ;;  %v9992_v55 = vpop.f32.mrf.mxu1  ;;  %v13427_v14 = vsel %vm11451_vm7, %v4919_v30, %v4920_v57 }
 0x180   : > { %16313 = vst [vmem:[#allocation4_spill] sm:$0xff] %v13409_v23  ;;  %v4926_v47 = vrot.slane %v10768_v43, 5  ;;  %v16317_v61 = vld [vmem:[#allocation59_spill] sm:$0xff]  ;;  %v10769_v30 = vld [vmem:[%s11005_s7 + $0x78] sm:$0xf] }
 0x181   : > { %v16318_v45 = vcombine.low %v16317_v61, %v12826_v51  ;;  %v13431_v42 = vsel %vm11451_vm7, %v4922_v21, %v4923_v62  ;;  %v4925_v43 = vrot.slane %v4923_v62, 4  ;;  %v13434_v4 = vadd.f32 %v2573_v20, %v1842_v6  ;;  %v16320_v46 = vld [vmem:[#allocation43_spill] sm:$0xff]  ;;  %v2589_v2 = vpop.f32.mrf.mxu0  ;;  %v1854_v62 = vpop.f32.mrf.mxu1  ;;  %v10770_v6 = vld [vmem:[%s11005_s7 + $0x7c] sm:$0xf] }
 0x182   : > { %v1863_v23 = vadd.f32 %v9992_v55, %v16320_v46  ;;  %v16321_v51 = vcombine.low %v12850_v53, %v12855_v15  ;;  %v9186_v21 = vrot.slane %v10769_v30, 9  ;;  %v4930_v46 = vrot.slane %v10770_v6, 5  ;;  %v10771_v55 = vld [vmem:[%s11005_s7 + $0x80] sm:$0xf]  ;;  %10237 = vmatmul.mubr.msk.bf16.gmra.mxu0 %vm1108_vm3, %v12968_v56  ;;  %v13461_v30 = vld [vmem:[%s11005_s7 + $0x94] sm:$0xf] }
 0x183   : > { %10163 = vmatmul.mubr.msk.bf16.gmra.mxu1 %vm1108_vm3, %v16318_v45  ;;  %16319 = vst [vmem:[#allocation59_spill] sm:$0xff] %v13434_v4  ;;  %v13446_v20 = vsel %vm11451_vm7, %v4925_v43, %v4926_v47  ;;  %v4933_v61 = vrot.slane %v10771_v55, 5  ;;  %v16324_v45 = vld [vmem:[#allocation11_spill] sm:$0xff]  ;;  %v10066_v7 = vpop.f32.mrf.mxu0  ;;  %v13464_v6 = vld [vmem:[%s11005_s7 + $0x98] sm:$0xf]  ;;  %v9993_v55 = vpop.f32.mrf.mxu1  ;;  %10240 = vmatprep.mubr.msk.bf16.mxu0 %vm1108_vm3, %v12999_v26 }
 0x184   : > { %10166 = vmatprep.mubr.msk.bf16.mxu1 %vm1108_vm3, %v16321_v51  ;;  %16322 = vst [vmem:[#allocation43_spill] sm:$0xff] %v13446_v20  ;;  %v13452_v53 = vadd.f32 %v10062_v24, %v1863_v23  ;;  %v1855_v51 = vadd.f32 %v1854_v62, %v16324_v45  ;;  %16325 = vst [vmem:[#allocation11_spill] sm:$0xff] %v13461_v30  ;;  %v13470_v24 = vsel %vm11451_vm7, %v9186_v21, %v4930_v46  ;;  %v16329_v43 = vld [vmem:[#allocation9_spill] sm:$0xff]  ;;  %v16337_v30 = vld [vmem:[#allocation51_spill] sm:$0xff] }
 0x185   : > { %16326 = vst [vmem:[#allocation93_spill] sm:$0xff] %v13464_v6  ;;  %16327 = vst [vmem:[#allocation94_spill] sm:$0xff] %v13470_v24  ;;  %v4932_v56 = vrot.slane %v4930_v46, 4  ;;  %v4935_v23 = vrot.slane %v4933_v61, 4  ;;  %v1866_v47 = vadd.f32 %v9993_v55, %v16329_v43  ;;  %v2602_v15 = vpop.f32.mrf.mxu0  ;;  %v1857_v26 = vpop.f32.mrf.mxu1  ;;  %v10773_v46 = vld [vmem:[%s11005_s7 + $0x88] sm:$0x1]  ;;  %v16338_v24 = vcombine.low %v12906_v41, %v12912_v17 }
 0x186   : > { %16323 = vst [vmem:[#allocation92_spill] sm:$0xff] %v13452_v53  ;;  %v13473_v45 = vadd.f32 %v2586_v48, %v1855_v51  ;;  %v10772_v53 = vld [vmem:[%s11005_s7 + $0x84] sm:$0xf]  ;;  %v4939_v20 = vrot.slane %v10773_v46, 5  ;;  %v13487_v43 = vld [vmem:[%s11005_s7 + $0xa0] sm:$0xf]  ;;  %v16335_v51 = vcombine.low %v12872_v29, %v12884_v32 }
 0x187   : > { %v4936_v4 = vrot.slane %v10772_v53, 5  ;;  %v13480_v21 = vsel %vm11451_vm7, %v4932_v56, %v4933_v61  ;;  %16331 = vst [vmem:[#allocation96_spill] sm:$0xff] %v13487_v43  ;;  %v13490_v55 = vld [vmem:[%s11005_s7 + $0xa4] sm:$0xf]  ;;  %v13492_v53 = vadd.f32 %v10063_v39, %v1866_v47  ;;  %v16334_v57 = vld [vmem:[#allocation49_spill] sm:$0xff]  ;;  %v9996_v46 = vpop.f32.mrf.mxu1 }
 0x188   : > { %16328 = vst [vmem:[#allocation95_spill] sm:$0xff] %v13473_v45  ;;  %16330 = vst [vmem:[#allocation9_spill] sm:$0xff] %v13480_v21  ;;  %v1858_v62 = vadd.f32 %v1857_v26, %v16334_v57  ;;  %v10067_v45 = vpop.f32.mrf.mxu0  ;;  %v10774_v6 = vld [vmem:[%s11005_s7 + $0x8c] sm:$0xf]  ;;  %v10775_v47 = vld [vmem:[%s11005_s7 + $0x90] sm:$0xf] }
 0x189   : > { %16332 = vst [vmem:[#allocation97_spill] sm:$0xff] %v13490_v55  ;;  %16333 = vst [vmem:[#allocation98_spill] sm:$0xff] %v13492_v53  ;;  %v13499_v56 = vsel %vm11451_vm7, %v4935_v23, %v4936_v4  ;;  %v4938_v48 = vrot.slane %v4936_v4, 4  ;;  %v9187_v39 = vrot.slane %v10774_v6, 9  ;;  %v4943_v57 = vrot.slane %v10775_v47, 5  ;;  %v1870_v4 = vpop.f32.mrf.mxu1  ;;  %v16345_v29 = vld [vmem:[#allocation54_spill] sm:$0xff] }
 0x18a   : > { %v10776_v26 = vld [vmem:[%s11005_s7 + $0x94] sm:$0xf]  ;;  %v13508_v61 = vadd.f32 %v2589_v2, %v1858_v62  ;;  %v1879_v23 = vadd.f32 %v9996_v46, %v16337_v30  ;;  %v2605_v21 = vpop.f32.mrf.mxu0  ;;  %v13527_v17 = vld [vmem:[%s11005_s7 + $0xa8] sm:$0xf]  ;;  %10241 = vmatmul.mubr.msk.bf16.gmra.mxu0 %vm1108_vm3, %v13024_v38  ;;  %v16347_v32 = vld [vmem:[#allocation58_spill] sm:$0xff] }
 0x18b   : > { %10167 = vmatmul.mubr.msk.bf16.gmra.mxu1 %vm1108_vm3, %v16335_v51  ;;  %v4946_v53 = vrot.slane %v10776_v26, 5  ;;  %v13520_v6 = vsel %vm11451_vm7, %v4938_v48, %v4939_v20  ;;  %v13524_v2 = vsel %vm11451_vm7, %v9187_v39, %v4943_v57  ;;  %v4945_v30 = vrot.slane %v4943_v57, 4  ;;  %16340 = vst [vmem:[#allocation99_spill] sm:$0xff] %v13527_v17  ;;  %v16342_v51 = vld [vmem:[#allocation52_spill] sm:$0xff]  ;;  %v9997_v39 = vpop.f32.mrf.mxu1  ;;  %10244 = vmatprep.mubr.msk.bf16.mxu0 %vm1108_vm3, %v13063_v63  ;;  %v10777_v26 = vld [vmem:[%s11005_s7 + $0x98] sm:$0xf] }
 0x18c   : > { %16336 = vst [vmem:[#allocation49_spill] sm:$0xff] %v13508_v61  ;;  %10170 = vmatprep.mubr.msk.bf16.mxu1 %vm1108_vm3, %v16338_v24  ;;  %16339 = vst [vmem:[#allocation51_spill] sm:$0xff] %v13524_v2  ;;  %v13530_v24 = vld [vmem:[%s11005_s7 + $0xac] sm:$0xf]  ;;  %v13532_v62 = vadd.f32 %v10066_v7, %v1879_v23  ;;  %v1871_v46 = vadd.f32 %v1870_v4, %v16342_v51  ;;  %v10070_v47 = vpop.f32.mrf.mxu0  ;;  %v4949_v38 = vrot.slane %v10777_v26, 5 }
 0x18d   : > { %v4948_v41 = vrot.slane %v4946_v53, 4  ;;  %v13544_v7 = vsel %vm11451_vm7, %v4945_v30, %v4946_v53  ;;  %v10778_v23 = vld [vmem:[%s11005_s7 + $0x9c] sm:$0x1]  ;;  %v1882_v48 = vadd.f32 %v9997_v39, %v16345_v29  ;;  %v13557_v30 = vld [vmem:[%s11005_s7 + $0xb4] sm:$0xf]  ;;  %v1873_v26 = vpop.f32.mrf.mxu1 }
 0x18e   : > { %16341 = vst [vmem:[#allocation100_spill] sm:$0xff] %v13532_v62  ;;  %16343 = vst [vmem:[#allocation52_spill] sm:$0xff] %v13544_v7  ;;  %v4952_v4 = vrot.slane %v10778_v23, 5  ;;  %v13549_v51 = vadd.f32 %v2602_v15, %v1871_v46  ;;  %v2618_v20 = vpop.f32.mrf.mxu0  ;;  %v13560_v57 = vld [vmem:[%s11005_s7 + $0xb8] sm:$0xf]  ;;  %v4951_v46 = vrot.slane %v4949_v38, 4  ;;  %v1874_v53 = vadd.f32 %v1873_v26, %v16347_v32 }
 0x18f   : > { %v13564_v15 = vsel %vm11451_vm7, %v4948_v41, %v4949_v38  ;;  %v10779_v39 = vld [vmem:[%s11005_s7 + $0xa0] sm:$0xf]  ;;  %v13568_v63 = vadd.f32 %v10067_v45, %v1882_v48  ;;  %v10780_v62 = vld [vmem:[%s11005_s7 + $0xa4] sm:$0xf]  ;;  %v10781_v17 = vld [vmem:[%s11005_s7 + $0xa8] sm:$0xf]  ;;  %v10000_v2 = vpop.f32.mrf.mxu1  ;;  %v16348_v41 = vcombine.low %v12928_v44, %v12945_v35 }
 0x190   : > { %16344 = vst [vmem:[#allocation101_spill] sm:$0xff] %v13549_v51  ;;  %v9188_v23 = vrot.slane %v10779_v39, 9  ;;  %v10071_v51 = vpop.f32.mrf.mxu0  ;;  %v4956_v61 = vrot.slane %v10780_v62, 5  ;;  %v4959_v7 = vrot.slane %v10781_v17, 5  ;;  %v13579_v38 = vsel %vm11451_vm7, %v4951_v46, %v4952_v4  ;;  %v13586_v48 = vld [vmem:[%s11005_s7 + $0xbc] sm:$0xf] }
 0x191   : > { %16346 = vst [vmem:[#allocation54_spill] sm:$0xff] %v13568_v63  ;;  %v13589_v17 = vld [vmem:[%s11005_s7 + $0xc0] sm:$0xf]  ;;  %v13591_v26 = vadd.f32 %v2605_v21, %v1874_v53  ;;  %v16351_v44 = vld [vmem:[#allocation17_spill] sm:$0xff]  ;;  %v16352_v4 = vcombine.low %v12964_v25, %v12971_v34  ;;  %v1886_v21 = vpop.f32.mrf.mxu1  ;;  %v16354_v25 = vld [vmem:[#allocation60_spill] sm:$0xff] }
 0x192   : > { %16349 = vst [vmem:[#allocation58_spill] sm:$0xff] %v13589_v17  ;;  %v1895_v35 = vadd.f32 %v10000_v2, %v16351_v44  ;;  %v2621_v39 = vpop.f32.mrf.mxu0  ;;  %v4958_v53 = vrot.slane %v4956_v61, 4  ;;  %v4961_v62 = vrot.slane %v4959_v7, 4  ;;  %v10782_v44 = vld [vmem:[%s11005_s7 + $0xac] sm:$0xf]  ;;  %v1887_v34 = vadd.f32 %v1886_v21, %v16354_v25  ;;  %10245 = vmatmul.mubr.msk.bf16.gmra.mxu0 %vm1108_vm3, %v13087_v19  ;;  %v16357_v25 = vld [vmem:[#allocation22_spill] sm:$0xff] }
 0x193   : > { %10171 = vmatmul.mubr.msk.bf16.gmra.mxu1 %vm1108_vm3, %v16348_v41  ;;  %16350 = vst [vmem:[#allocation102_spill] sm:$0xff] %v13591_v26  ;;  %v13602_v41 = vsel %vm11451_vm7, %v9188_v23, %v4956_v61  ;;  %v4962_v32 = vrot.slane %v10782_v44, 5  ;;  %v10783_v46 = vld [vmem:[%s11005_s7 + $0xb0] sm:$0x1]  ;;  %v13615_v61 = vld [vmem:[%s11005_s7 + $0xc8] sm:$0xf]  ;;  %v10001_v44 = vpop.f32.mrf.mxu1  ;;  %10248 = vmatprep.mubr.msk.bf16.mxu0 %vm1108_vm3, %v13121_v40 }
 0x194   : > { %10174 = vmatprep.mubr.msk.bf16.mxu1 %vm1108_vm3, %v16352_v4  ;;  %v13606_v29 = vadd.f32 %v10070_v47, %v1895_v35  ;;  %v10074_v4 = vpop.f32.mrf.mxu0  ;;  %v4965_v45 = vrot.slane %v10783_v46, 5  ;;  %v13618_v2 = vld [vmem:[%s11005_s7 + $0xcc] sm:$0xf]  ;;  %v13624_v47 = vsel %vm11451_vm7, %v4958_v53, %v4959_v7  ;;  %v13631_v21 = vadd.f32 %v2618_v20, %v1887_v34  ;;  %v10784_v26 = vld [vmem:[%s11005_s7 + $0xb4] sm:$0xf] }
 0x195   : > { %16355 = vst [vmem:[#allocation60_spill] sm:$0xff] %v13618_v2  ;;  %v13628_v19 = vsel %vm11451_vm7, %v4961_v62, %v4962_v32  ;;  %v4964_v35 = vrot.slane %v4962_v32, 4  ;;  %v1898_v23 = vadd.f32 %v10001_v44, %v16357_v25  ;;  %v9189_v7 = vrot.slane %v10784_v26, 9  ;;  %v1889_v53 = vpop.f32.mrf.mxu1  ;;  %v10785_v32 = vld [vmem:[%s11005_s7 + $0xb8] sm:$0xf]  ;;  %v16360_v25 = vld [vmem:[#allocation63_spill] sm:$0xff] }
 0x196   : > { %16353 = vst [vmem:[#allocation17_spill] sm:$0xff] %v13606_v29  ;;  %16356 = vst [vmem:[#allocation103_spill] sm:$0xff] %v13631_v21  ;;  %v2634_v29 = vpop.f32.mrf.mxu0  ;;  %v4969_v63 = vrot.slane %v10785_v32, 5  ;;  %v10786_v46 = vld [vmem:[%s11005_s7 + $0xbc] sm:$0xf]  ;;  %v1890_v21 = vadd.f32 %v1889_v53, %v16360_v25  ;;  %v16363_v32 = vcombine.low %v12989_v54, %v13003_v59  ;;  %v16366_v54 = vcombine.low %v13020_v0, %v13028_v13 }
 0x197   : > { %v13639_v62 = vsel %vm11451_vm7, %v4964_v35, %v4965_v45  ;;  %v4972_v20 = vrot.slane %v10786_v46, 5  ;;  %v13645_v44 = vadd.f32 %v10071_v51, %v1898_v23  ;;  %v13652_v45 = vld [vmem:[%s11005_s7 + $0xd0] sm:$0xf]  ;;  %v13655_v35 = vld [vmem:[%s11005_s7 + $0xd4] sm:$0xf]  ;;  %v10004_v46 = vpop.f32.mrf.mxu1  ;;  %v16365_v26 = vld [vmem:[#allocation65_spill] sm:$0xff]  ;;  %v16373_v25 = vcombine.low %v13103_v49, %v13109_v16 }
 0x198   : > { %16358 = vst [vmem:[#allocation22_spill] sm:$0xff] %v13639_v62  ;;  %v10075_v40 = vpop.f32.mrf.mxu0  ;;  %16361 = vst [vmem:[#allocation63_spill] sm:$0xff] %v13652_v45  ;;  %v13663_v51 = vsel %vm11451_vm7, %v9189_v7, %v4969_v63  ;;  %v4971_v23 = vrot.slane %v4969_v63, 4  ;;  %v13666_v17 = vadd.f32 %v2621_v39, %v1890_v21  ;;  %v1911_v34 = vadd.f32 %v10004_v46, %v16365_v26  ;;  %v10787_v7 = vld [vmem:[%s11005_s7 + $0xc0] sm:$0xf] }
 0x199   : > { %16359 = vst [vmem:[#allocation104_spill] sm:$0xff] %v13645_v44  ;;  %16362 = vst [vmem:[#allocation105_spill] sm:$0xff] %v13655_v35  ;;  %v4974_v53 = vrot.slane %v4972_v20, 4  ;;  %v1902_v63 = vpop.f32.mrf.mxu1  ;;  %v10788_v39 = vld [vmem:[%s11005_s7 + $0xc4] sm:$0x1] }
 0x19a   : > { %16364 = vst [vmem:[#allocation106_spill] sm:$0xff] %v13666_v17  ;;  %v2637_v44 = vpop.f32.mrf.mxu0  ;;  %v13677_v62 = vsel %vm11451_vm7, %v4971_v23, %v4972_v20  ;;  %v4978_v21 = vrot.slane %v10788_v39, 5  ;;  %v13684_v0 = vld [vmem:[%s11005_s7 + $0xdc] sm:$0xf]  ;;  %v13687_v46 = vld [vmem:[%s11005_s7 + $0xe0] sm:$0xf]  ;;  %10249 = vmatmul.mubr.msk.bf16.gmra.mxu0 %vm1108_vm3, %v13165_v58 }
 0x19b   : > { %10175 = vmatmul.mubr.msk.bf16.gmra.mxu1 %vm1108_vm3, %v16363_v32  ;;  %v4975_v32 = vrot.slane %v10787_v7, 5  ;;  %16367 = vst [vmem:[#allocation65_spill] sm:$0xff] %v13677_v62  ;;  %16368 = vst [vmem:[#allocation107_spill] sm:$0xff] %v13684_v0  ;;  %v16371_v7 = vld [vmem:[#allocation67_spill] sm:$0xff]  ;;  %v10005_v13 = vpop.f32.mrf.mxu1  ;;  %10328 = vmatprep.mubr.msk.bf16.mxu0 %vm1108_vm3, %v16373_v25  ;;  %v10791_v26 = vld [vmem:[%s11005_s7 + $0xd0] sm:$0xf] }
 0x19c   : > { %10178 = vmatprep.mubr.msk.bf16.mxu1 %vm1108_vm3, %v16366_v54  ;;  %16369 = vst [vmem:[#allocation108_spill] sm:$0xff] %v13687_v46  ;;  %v13689_v54 = vadd.f32 %v10074_v4, %v1911_v34  ;;  %v1903_v59 = vadd.f32 %v1902_v63, %v16371_v7  ;;  %v10078_v20 = vpop.f32.mrf.mxu0  ;;  %v10789_v34 = vld [vmem:[%s11005_s7 + $0xc8] sm:$0xf]  ;;  %v10790_v7 = vld [vmem:[%s11005_s7 + $0xcc] sm:$0xf]  ;;  %v16375_v17 = vld [vmem:[#allocation69_spill] sm:$0xff] }
 0x19d   : > { %v13698_v39 = vsel %vm11451_vm7, %v4974_v53, %v4975_v32  ;;  %v4977_v4 = vrot.slane %v4975_v32, 4  ;;  %v9190_v63 = vrot.slane %v10789_v34, 9  ;;  %v4982_v58 = vrot.slane %v10790_v7, 5  ;;  %v1905_v25 = vpop.f32.mrf.mxu1  ;;  %v16407_v46 = vld [vmem:[#allocation28_spill] sm:$0xff] }
 0x19e   : > { %16370 = vst [vmem:[#allocation109_spill] sm:$0xff] %v13689_v54  ;;  %16372 = vst [vmem:[#allocation67_spill] sm:$0xff] %v13698_v39  ;;  %v4985_v54 = vrot.slane %v10791_v26, 5  ;;  %v13707_v23 = vadd.f32 %v2634_v29, %v1903_v59  ;;  %v1914_v53 = vadd.f32 %v10005_v13, %v16375_v17  ;;  %v2650_v35 = vpop.f32.mrf.mxu0  ;;  %v13722_v17 = vld [vmem:[%s11005_s7 + $0xe4] sm:$0xf]  ;;  %v1906_v7 = vadd.f32 %v1905_v25, %v13022_v3 }
 0x19f   : > { %v13715_v32 = vsel %vm11451_vm7, %v4977_v4, %v4978_v21  ;;  %v13719_v34 = vsel %vm11451_vm7, %v9190_v63, %v4982_v58  ;;  %v4984_v29 = vrot.slane %v4982_v58, 4  ;;  %16378 = vst [vmem:[#allocation112_spill] sm:$0xff] %v13722_v17  ;;  %v13725_v26 = vld [vmem:[%s11005_s7 + $0xe8] sm:$0xf]  ;;  %v10008_v63 = vpop.f32.mrf.mxu1  ;;  %v16381_v58 = vcombine.low %v13048_v10, %v13057_v27  ;;  %v10793_v21 = vld [vmem:[%s11005_s7 + $0xd8] sm:$0x1] }
 0x1a0   : > { %16374 = vst [vmem:[#allocation110_spill] sm:$0xff] %v13707_v23  ;;  %16376 = vst [vmem:[#allocation69_spill] sm:$0xff] %v13715_v32  ;;  %v4987_v59 = vrot.slane %v4985_v54, 4  ;;  %v13727_v13 = vadd.f32 %v10075_v40, %v1914_v53  ;;  %v10079_v62 = vpop.f32.mrf.mxu0  ;;  %v10792_v53 = vld [vmem:[%s11005_s7 + $0xd4] sm:$0xf]  ;;  %v4991_v45 = vrot.slane %v10793_v21, 5  ;;  %v13744_v4 = vadd.f32 %v2637_v44, %v1906_v7 }
 0x1a1   : > { %16377 = vst [vmem:[#allocation111_spill] sm:$0xff] %v13719_v34  ;;  %16379 = vst [vmem:[#allocation113_spill] sm:$0xff] %v13725_v26  ;;  %v13739_v40 = vsel %vm11451_vm7, %v4984_v29, %v4985_v54  ;;  %v4988_v25 = vrot.slane %v10792_v53, 5  ;;  %v16385_v10 = vld [vmem:[#allocation12_spill] sm:$0xff]  ;;  %v16386_v27 = vld [vmem:[#allocation81_spill] sm:$0xff]  ;;  %v1918_v21 = vpop.f32.mrf.mxu1 }
 0x1a2   : > { %16380 = vst [vmem:[#allocation114_spill] sm:$0xff] %v13727_v13  ;;  %16382 = vst [vmem:[#allocation115_spill] sm:$0xff] %v13739_v40  ;;  %v16384_v13 = vld [vmem:[#allocation72_spill] sm:$0xff]  ;;  %v2653_v32 = vpop.f32.mrf.mxu0  ;;  %v16387_v39 = vcombine.low %v16385_v10, %v16386_v27  ;;  %v10689_v54 = vld [vmem:[%s15815_s1 + $0xa8] sm:$0xff]  }
 0x1a3   : > { %10179 = vmatmul.mubr.msk.bf16.gmra.mxu1 %vm1108_vm3, %v16381_v58  ;;  %16383 = vst [vmem:[#allocation116_spill] sm:$0xff] %v13744_v4  ;;  %v1927_v23 = vadd.f32 %v10008_v63, %v16384_v13  ;;  %v13759_v7 = vld [vmem:[%s11005_s7 + $0xf0] sm:$0xf]  ;;  %v13762_v13 = vld [vmem:[%s11005_s7 + $0xf4] sm:$0xf]  ;;  %v4990_v63 = vrot.slane %v4988_v25, 4  ;;  %v16393_v4 = vcombine.low %v13126_v50, %v13129_v1  ;;  %v10009_v34 = vpop.f32.mrf.mxu1 }
 0x1a4   : > { %10258 = vmatprep.mubr.msk.bf16.mxu1 %vm1108_vm3, %v16387_v39  ;;  %16388 = vst [vmem:[#allocation72_spill] sm:$0xff] %v13759_v7  ;;  %16389 = vst [vmem:[#allocation12_spill] sm:$0xff] %v13762_v13  ;;  %v13766_v39 = vsel %vm11451_vm7, %v4987_v59, %v4988_v25  ;;  %v10794_v53 = vld [vmem:[%s11005_s7 + $0xdc] sm:$0xf]  ;;  %v16392_v3 = vld [vmem:[#allocation74_spill] sm:$0xff]  ;;  %v10082_v29 = vpop.f32.mrf.mxu0 }
 0x1a5   : > { %16390 = vst [vmem:[#allocation81_spill] sm:$0xff] %v13766_v39  ;;  %v9191_v10 = vrot.slane %v10794_v53, 9  ;;  %v13770_v27 = vadd.f32 %v10078_v20, %v1927_v23  ;;  %v1919_v44 = vadd.f32 %v1918_v21, %v16392_v3  ;;  %10329 = vmatmul.mubr.msk.bf16.vlgmr.msra.gmra.mxu0 %vm1108_vm3, %v16393_v4  ;;  %v10795_v17 = vld [vmem:[%s11005_s7 + $0xe0] sm:$0xf]  ;;  %v10796_v40 = vld [vmem:[%s11005_s7 + $0xe4] sm:$0xf]  ;;  %v13786_v23 = vsel %vm11451_vm7, %v4990_v63, %v4991_v45 }
 0x1a6   : > { %v4995_v59 = vrot.slane %v10795_v17, 5  ;;  %v4998_v25 = vrot.slane %v10796_v40, 5  ;;  %10463 = vmatpush3.bf16.msra.mxu0 %v13183_v18  ;;  %v16394_v53 = vld [vmem:[#allocation83_spill] sm:$0xff]  ;;  %v16395_v58 = vld [vmem:[#allocation84_spill] sm:$0xff]  ;;  %16397 = vst [vmem:[#allocation74_spill] sm:$0xff] %v13786_v23  ;;  %v1921_v17 = vpop.f32.mrf.mxu1  ;;  %v10702_v45 = vld [vmem:[%s15815_s1 + $0xa0] sm:$0xff]  }
 0x1a7   : > { %16391 = vst [vmem:[#allocation117_spill] sm:$0xff] %v13770_v27  ;;  %v16396_v20 = vcombine.low %v16394_v53, %v16395_v58  ;;  %v13793_v4 = vld [vmem:[%s11005_s7 + $0xf8] sm:$0xf]  ;;  %v13796_v18 = vld [vmem:[%s11005_s7 + $0xfc] sm:$0xf]  ;;  %v13798_v40 = vadd.f32 %v2650_v35, %v1919_v44  ;;  %v16401_v3 = vld [vmem:[#allocation75_spill] sm:$0xff]  ;;  %10464 = vmatprep.subr.bf16.mxu0 %v10689_v54 }
 0x1a8   : > { %16398 = vst [vmem:[#allocation83_spill] sm:$0xff] %v13793_v4  ;;  %16399 = vst [vmem:[#allocation84_spill] sm:$0xff] %v13796_v18  ;;  %v1930_v21 = vadd.f32 %v10009_v34, %v16401_v3  ;;  %v13805_v63 = vsel %vm11451_vm7, %v9191_v10, %v4995_v59  ;;  %v10688_v35 = vld [vmem:[%s15815_s1 + $0x94] sm:$0xff]   ;;  %v4997_v44 = vrot.slane %v4995_v59, 4  ;;  %v5000_v50 = vrot.slane %v4998_v25, 4  ;;  %v16406_v13 = vld [vmem:[#allocation82_spill] sm:$0xff] }
 0x1a9   : > { %10332 = vmatprep.mubr.msk.bf16.mxu0 %vm1108_vm3, %v16396_v20  ;;  %16400 = vst [vmem:[#allocation118_spill] sm:$0xff] %v13798_v40  ;;  %v2666_v20 = vpop.f32.mrf.mxu0  ;;  %v10797_v3 = vld [vmem:[%s11005_s7 + $0xe8] sm:$0xf]  ;;  %v16403_v10 = vld [vmem:[#allocation77_spill] sm:$0xff]  ;;  %v10798_v39 = vld [vmem:[%s11005_s7 + $0xec] sm:$0x1]  ;;  %v16408_v0 = vcombine.low %v16406_v13, %v16407_v46 }
 0x1aa   : > { %v5001_v1 = vrot.slane %v10797_v3, 5  ;;  %v13815_v40 = vadd.f32 %v10079_v62, %v1930_v21  ;;  %v1922_v27 = vadd.f32 %v1921_v17, %v16403_v10  ;;  %v5004_v7 = vrot.slane %v10798_v39, 5  ;;  %v13822_v59 = vld [vmem:[%s11005_s7 + $0x104] sm:$0xf]  ;;  %v13825_v34 = vld [vmem:[%s11005_s7 + $0x108] sm:$0xf]  ;;  %v10012_v3 = vpop.f32.mrf.mxu1  ;;  %10465 = vmatpush3.bf16.msra.mxu0 %v10689_v54 }
 0x1ab   : > { %v10083_v23 = vpop.f32.mrf.mxu0  ;;  %16404 = vst [vmem:[#allocation77_spill] sm:$0xff] %v13822_v59  ;;  %16405 = vst [vmem:[#allocation119_spill] sm:$0xff] %v13825_v34  ;;  %10259 = vmatmul.mubr.msk.bf16.vlgmr.msra.gmra.mxu1 %vm1108_vm3, %v16408_v0  ;;  %v13833_v62 = vsel %vm11451_vm7, %v4997_v44, %v4998_v25  ;;  %v16412_v26 = vld [vmem:[#allocation15_spill] sm:$0xff]  ;;  %v16413_v13 = vld [vmem:[#allocation44_spill] sm:$0xff]  ;;  %10466 = vmatprep.subr.bf16.mxu0 %v10702_v45  ;;  %v16439_v34 = vcombine.low %v13274_v31, %v13296_v52 }
 0x1ac   : > { %16402 = vst [vmem:[#allocation75_spill] sm:$0xff] %v13815_v40  ;;  %16409 = vst [vmem:[#allocation82_spill] sm:$0xff] %v13833_v62  ;;  %v13837_v39 = vsel %vm11451_vm7, %v5000_v50, %v5001_v1  ;;  %v5003_v17 = vrot.slane %v5001_v1, 4  ;;  %v13840_v10 = vadd.f32 %v2653_v32, %v1922_v27  ;;  %v1943_v46 = vadd.f32 %v10012_v3, %v16412_v26  ;;  %v16414_v54 = vld [vmem:[#allocation19_spill] sm:$0xff]  ;;  %v10799_v44 = vld [vmem:[%s11005_s7 + $0xf0] sm:$0xf]  ;;  %v1934_v40 = vpop.f32.mrf.mxu1 }
 0x1ad   : > { %16410 = vst [vmem:[#allocation28_spill] sm:$0xff] %v13837_v39  ;;  %10393 = vmatpush3.bf16.msra.mxu1 %v16413_v13  ;;  %v2669_v0 = vpop.f32.mrf.mxu0  ;;  %v16415_v25 = vcombine.low %v13208_v8, %v16414_v54  ;;  %v9192_v1 = vrot.slane %v10799_v44, 9  ;;  %v10700_v26 = vld [vmem:[%s15815_s1 + $0x8c] sm:$0xff]   ;;  %v10800_v8 = vld [vmem:[%s11005_s7 + $0xf4] sm:$0xf]  ;;  %v16418_v44 = vld [vmem:[#allocation18_spill] sm:$0xff] }
 0x1ae   : > { %16411 = vst [vmem:[#allocation120_spill] sm:$0xff] %v13840_v10  ;;  %10394 = vmatprep.subr.bf16.mxu1 %v10688_v35  ;;  %v13853_v32 = vsel %vm11451_vm7, %v5003_v17, %v5004_v7  ;;  %v5008_v27 = vrot.slane %v10800_v8, 5  ;;  %v10801_v3 = vld [vmem:[%s11005_s7 + $0xf8] sm:$0xf]  ;;  %v1935_v21 = vadd.f32 %v1934_v40, %v16418_v44  ;;  %v13876_v54 = vld [vmem:[%s11005_s7 + $0x110] sm:$0xf]  ;;  %v16424_v40 = vcombine.low %v13219_v12, %v13222_v28 }
 0x1af   : > { %10262 = vmatprep.mubr.msk.bf16.mxu1 %vm1108_vm3, %v16415_v25  ;;  %16416 = vst [vmem:[#allocation15_spill] sm:$0xff] %v13853_v32  ;;  %v5011_v13 = vrot.slane %v10801_v3, 5  ;;  %v13862_v25 = vadd.f32 %v10082_v29, %v1943_v46  ;;  %v10086_v50 = vpop.f32.mrf.mxu0  ;;  %v16419_v10 = vld [vmem:[#allocation13_spill] sm:$0xff]  ;;  %v13873_v3 = vld [vmem:[%s11005_s7 + $0x10c] sm:$0xf]  ;;  %16423 = vst [vmem:[#allocation18_spill] sm:$0xff] %v13876_v54  ;;  %v10013_v29 = vpop.f32.mrf.mxu1  ;;  %10467 = vmatpush3.bf16.msra.mxu0 %v10702_v45 }
 0x1b0   : > { %v16420_v7 = vld [vmem:[#allocation45_spill] sm:$0xff]  ;;  %16422 = vst [vmem:[#allocation19_spill] sm:$0xff] %v13873_v3  ;;  %v5010_v46 = vrot.slane %v5008_v27, 4  ;;  %v13887_v8 = vadd.f32 %v2666_v20, %v1935_v21  ;;  %v16427_v18 = vld [vmem:[#allocation20_spill] sm:$0xff]  ;;  %v10804_v3 = vld [vmem:[%s11005_s7 + $0x104] sm:$0xf] }
 0x1b1   : > { %16417 = vst [vmem:[#allocation44_spill] sm:$0xff] %v13862_v25  ;;  %v16421_v17 = vcombine.low %v16419_v10, %v16420_v7  ;;  %v13884_v10 = vsel %vm11451_vm7, %v9192_v1, %v5008_v27  ;;  %v5013_v44 = vrot.slane %v5011_v13, 4  ;;  %v1946_v25 = vadd.f32 %v10013_v29, %v16427_v18  ;;  %v2682_v32 = vpop.f32.mrf.mxu0  ;;  %10395 = vmatpush3.bf16.msra.mxu1 %v10688_v35  ;;  %v10802_v39 = vld [vmem:[%s11005_s7 + $0xfc] sm:$0xf]  ;;  %v1937_v62 = vpop.f32.mrf.mxu1  ;;  %v10803_v27 = vld [vmem:[%s11005_s7 + $0x100] sm:$0x1] }
 0x1b2   : > { %16425 = vst [vmem:[#allocation13_spill] sm:$0xff] %v13884_v10  ;;  %16426 = vst [vmem:[#allocation45_spill] sm:$0xff] %v13887_v8  ;;  %v5014_v4 = vrot.slane %v10802_v39, 5  ;;  %10396 = vmatprep.subr.bf16.mxu1 %v10700_v26  ;;  %v13894_v1 = vsel %vm11451_vm7, %v5010_v46, %v5011_v13  ;;  %v5017_v45 = vrot.slane %v10803_v27, 5  ;;  %v13901_v35 = vld [vmem:[%s11005_s7 + $0x118] sm:$0xf] }
 0x1b3   : > { %10333 = vmatmul.mubr.msk.bf16.gmra.mxu0 %vm1108_vm3, %v16421_v17  ;;  %16428 = vst [vmem:[#allocation20_spill] sm:$0xff] %v13894_v1  ;;  %16429 = vst [vmem:[#allocation121_spill] sm:$0xff] %v13901_v35  ;;  %v13904_v21 = vld [vmem:[%s11005_s7 + $0x11c] sm:$0xf]  ;;  %v13906_v39 = vadd.f32 %v10083_v23, %v1946_v25  ;;  %v16432_v29 = vld [vmem:[#allocation23_spill] sm:$0xff]  ;;  %v10087_v17 = vpop.f32.mrf.mxu0  ;;  %v10016_v27 = vpop.f32.mrf.mxu1  ;;  %v9193_v23 = vrot.slane %v10804_v3, 9 }
 0x1b4   : > { %10336 = vmatprep.mubr.msk.bf16.mxu0 %vm1108_vm3, %v16424_v40  ;;  %16430 = vst [vmem:[#allocation122_spill] sm:$0xff] %v13904_v21  ;;  %v1938_v40 = vadd.f32 %v1937_v62, %v16432_v29  ;;  %v13913_v46 = vsel %vm11451_vm7, %v5013_v44, %v5014_v4  ;;  %v16434_v20 = vld [vmem:[#allocation85_spill] sm:$0xff]  ;;  %v16435_v8 = vld [vmem:[#allocation32_spill] sm:$0xff]  ;;  %v5016_v54 = vrot.slane %v5014_v4, 4  ;;  %v10805_v25 = vld [vmem:[%s11005_s7 + $0x108] sm:$0xf] }
 0x1b5   : > { %16431 = vst [vmem:[#allocation123_spill] sm:$0xff] %v13906_v39  ;;  %16433 = vst [vmem:[#allocation23_spill] sm:$0xff] %v13913_v46  ;;  %v16436_v18 = vcombine.low %v16434_v20, %v16435_v8  ;;  %v5021_v62 = vrot.slane %v10805_v25, 5  ;;  %v10806_v29 = vld [vmem:[%s11005_s7 + $0x10c] sm:$0xf]  ;;  %v16438_v1 = vld [vmem:[#allocation25_spill] sm:$0xff]  ;;  %v2685_v10 = vpop.f32.mrf.mxu0  ;;  %10397 = vmatpush3.bf16.msra.mxu1 %v10700_v26  ;;  %v1950_v3 = vpop.f32.mrf.mxu1 }
 0x1b6   : > { %v5024_v39 = vrot.slane %v10806_v29, 5  ;;  %v13922_v13 = vadd.f32 %v2669_v0, %v1938_v40  ;;  %v1959_v44 = vadd.f32 %v10016_v27, %v16438_v1  ;;  %v13934_v20 = vsel %vm11451_vm7, %v5016_v54, %v5017_v45  ;;  %v13941_v52 = vld [vmem:[%s11005_s7 + $0x120] sm:$0xf]  ;;  %v16445_v1 = vld [vmem:[#allocation36_spill] sm:$0xff]  ;;  %v16446_v25 = vld [vmem:[#allocation21_spill] sm:$0xff] }
 0x1b7   : > { %10263 = vmatmul.mubr.msk.bf16.gmra.mxu1 %vm1108_vm3, %v16436_v18  ;;  %16440 = vst [vmem:[#allocation32_spill] sm:$0xff] %v13934_v20  ;;  %v13938_v0 = vsel %vm11451_vm7, %v9193_v23, %v5021_v62  ;;  %v5023_v40 = vrot.slane %v5021_v62, 4  ;;  %16442 = vst [vmem:[#allocation124_spill] sm:$0xff] %v13941_v52  ;;  %v1951_v18 = vadd.f32 %v1950_v3, %v16445_v1  ;;  %v10090_v27 = vpop.f32.mrf.mxu0  ;;  %v16447_v54 = vld [vmem:[#allocation47_spill] sm:$0xff]  ;;  %v10017_v29 = vpop.f32.mrf.mxu1  ;;  %v16449_v8 = vld [vmem:[#allocation29_spill] sm:$0xff] }
 0x1b8   : > { %16437 = vst [vmem:[#allocation85_spill] sm:$0xff] %v13922_v13  ;;  %10266 = vmatprep.mubr.msk.bf16.mxu1 %vm1108_vm3, %v16439_v34  ;;  %16441 = vst [vmem:[#allocation25_spill] sm:$0xff] %v13938_v0  ;;  %v5026_v31 = vrot.slane %v5024_v39, 4  ;;  %v13944_v34 = vld [vmem:[%s11005_s7 + $0x124] sm:$0xf]  ;;  %v13946_v26 = vadd.f32 %v10086_v50, %v1959_v44  ;;  %v16448_v45 = vcombine.low %v16446_v25, %v16447_v54  ;;  %v16454_v62 = vld [vmem:[#allocation27_spill] sm:$0xff] }
 0x1b9   : > { %16443 = vst [vmem:[#allocation125_spill] sm:$0xff] %v13944_v34  ;;  %v16450_v4 = vld [vmem:[#allocation26_spill] sm:$0xff]  ;;  %v13962_v44 = vsel %vm11451_vm7, %v5023_v40, %v5024_v39  ;;  %v10807_v1 = vld [vmem:[%s11005_s7 + $0x110] sm:$0xf]  ;;  %v1962_v13 = vadd.f32 %v10017_v29, %v16454_v62  ;;  %v2698_v20 = vpop.f32.mrf.mxu0  ;;  %v13975_v40 = vld [vmem:[%s11005_s7 + $0x12c] sm:$0xf] }
 0x1ba   : > { %16444 = vst [vmem:[#allocation126_spill] sm:$0xff] %v13946_v26  ;;  %v16451_v50 = vcombine.low %v16449_v8, %v16450_v4  ;;  %16452 = vst [vmem:[#allocation36_spill] sm:$0xff] %v13962_v44  ;;  %v5027_v25 = vrot.slane %v10807_v1, 5  ;;  %v13967_v26 = vadd.f32 %v2682_v32, %v1951_v18  ;;  %v13978_v3 = vld [vmem:[%s11005_s7 + $0x130] sm:$0xf]  ;;  %v1953_v1 = vpop.f32.mrf.mxu1  ;;  %v16460_v4 = vld [vmem:[#allocation87_spill] sm:$0xff] }
 0x1bb   : > { %10337 = vmatmul.mubr.msk.bf16.gmra.mxu0 %vm1108_vm3, %v16448_v45  ;;  %v10808_v45 = vld [vmem:[%s11005_s7 + $0x114] sm:$0x1]  ;;  %16455 = vst [vmem:[#allocation47_spill] sm:$0xff] %v13975_v40  ;;  %16456 = vst [vmem:[#allocation29_spill] sm:$0xff] %v13978_v3  ;;  %v10809_v29 = vld [vmem:[%s11005_s7 + $0x118] sm:$0xf]  ;;  %v10091_v52 = vpop.f32.mrf.mxu0 }
 0x1bc   : > { %10340 = vmatprep.mubr.msk.bf16.mxu0 %vm1108_vm3, %v16451_v50  ;;  %v5030_v23 = vrot.slane %v10808_v45, 5  ;;  %16453 = vst [vmem:[#allocation21_spill] sm:$0xff] %v13967_v26  ;;  %v13982_v32 = vsel %vm11451_vm7, %v5026_v31, %v5027_v25  ;;  %v5029_v18 = vrot.slane %v5027_v25, 4  ;;  %v9194_v45 = vrot.slane %v10809_v29, 9  ;;  %v16459_v26 = vld [vmem:[#allocation39_spill] sm:$0xff]  ;;  %v10020_v35 = vpop.f32.mrf.mxu1  ;;  %v16461_v31 = vld [vmem:[#allocation14_spill] sm:$0xff] }
 0x1bd   : > { %16457 = vst [vmem:[#allocation27_spill] sm:$0xff] %v13982_v32  ;;  %v13986_v50 = vadd.f32 %v10087_v17, %v1962_v13  ;;  %v1954_v39 = vadd.f32 %v1953_v1, %v16459_v26  ;;  %v10810_v44 = vld [vmem:[%s11005_s7 + $0x11c] sm:$0xf]  ;;  %v10811_v46 = vld [vmem:[%s11005_s7 + $0x120] sm:$0xf]  ;;  %v16462_v59 = vcombine.low %v16460_v4, %v16461_v31  ;;  %v2701_v29 = vpop.f32.mrf.mxu0 }
 0x1be   : > { %v5034_v0 = vrot.slane %v10810_v44, 5  ;;  %v5037_v21 = vrot.slane %v10811_v46, 5  ;;  %v13997_v25 = vsel %vm11451_vm7, %v5029_v18, %v5030_v23  ;;  %v14004_v44 = vld [vmem:[%s11005_s7 + $0x134] sm:$0xf]  ;;  %v14007_v46 = vld [vmem:[%s11005_s7 + $0x138] sm:$0xf]  ;;  %v16468_v23 = vcombine.low %v13340_v33, %v13362_v5 }
 0x1bf   : > { %16458 = vst [vmem:[#allocation127_spill] sm:$0xff] %v13986_v50  ;;  %10267 = vmatmul.mubr.msk.bf16.gmra.mxu1 %vm1108_vm3, %v16462_v59  ;;  %16463 = vst [vmem:[#allocation39_spill] sm:$0xff] %v13997_v25  ;;  %v14009_v1 = vadd.f32 %v2685_v10, %v1954_v39  ;;  %v16467_v4 = vld [vmem:[#allocation41_spill] sm:$0xff]  ;;  %v1966_v10 = vpop.f32.mrf.mxu1  ;;  %v16470_v33 = vld [vmem:[#allocation3_spill] sm:$0xff] }
 0x1c0   : > { %16464 = vst [vmem:[#allocation87_spill] sm:$0xff] %v14004_v44  ;;  %16465 = vst [vmem:[#allocation14_spill] sm:$0xff] %v14007_v46  ;;  %v1975_v59 = vadd.f32 %v10020_v35, %v16467_v4  ;;  %10270 = vmatprep.mubr.msk.bf16.mxu1 %vm1108_vm3, %v16468_v23  ;;  %v14020_v31 = vsel %vm11451_vm7, %v9194_v45, %v5034_v0  ;;  %v5036_v39 = vrot.slane %v5034_v0, 4  ;;  %v5039_v26 = vrot.slane %v5037_v21, 4  ;;  %v10812_v4 = vld [vmem:[%s11005_s7 + $0x124] sm:$0xf]  ;;  %v10094_v23 = vpop.f32.mrf.mxu0 }
 0x1c1   : > { %16466 = vst [vmem:[#allocation128_spill] sm:$0xff] %v14009_v1  ;;  %v5040_v13 = vrot.slane %v10812_v4, 5  ;;  %v1967_v5 = vadd.f32 %v1966_v10, %v16470_v33  ;;  %v16471_v17 = vld [vmem:[#allocation37_spill] sm:$0xff]  ;;  %v10813_v45 = vld [vmem:[%s11005_s7 + $0x128] sm:$0x1] }
 0x1c2   : > { %v14024_v62 = vadd.f32 %v10090_v27, %v1975_v59  ;;  %v16472_v1 = vld [vmem:[#allocation89_spill] sm:$0xff]  ;;  %v5043_v50 = vrot.slane %v10813_v45, 5  ;;  %v14035_v25 = vld [vmem:[%s11005_s7 + $0x140] sm:$0xf]  ;;  %v14038_v4 = vld [vmem:[%s11005_s7 + $0x144] sm:$0xf]  ;;  %v10021_v27 = vpop.f32.mrf.mxu1  ;;  %v2714_v44 = vpop.f32.mrf.mxu0 }
 0x1c3   : > { %v16473_v18 = vcombine.low %v16471_v17, %v16472_v1  ;;  %16474 = vst [vmem:[#allocation3_spill] sm:$0xff] %v14035_v25  ;;  %16475 = vst [vmem:[#allocation37_spill] sm:$0xff] %v14038_v4  ;;  %v16476_v59 = vld [vmem:[#allocation33_spill] sm:$0xff]  ;;  %v14046_v17 = vsel %vm11451_vm7, %v5036_v39, %v5037_v21  ;;  %v5042_v33 = vrot.slane %v5040_v13, 4  ;;  %v14053_v35 = vadd.f32 %v2698_v20, %v1967_v5  ;;  %v10814_v32 = vld [vmem:[%s11005_s7 + $0x12c] sm:$0xf] }
 0x1c4   : > { %16469 = vst [vmem:[#allocation41_spill] sm:$0xff] %v14024_v62  ;;  %v16477_v10 = vcombine.low %v13355_v22, %v16476_v59  ;;  %16478 = vst [vmem:[#allocation89_spill] sm:$0xff] %v14046_v17  ;;  %v16481_v0 = vld [vmem:[#allocation5_spill] sm:$0xff]  ;;  %v9195_v21 = vrot.slane %v10814_v32, 9  ;;  %v1969_v39 = vpop.f32.mrf.mxu1  ;;  %v10816_v45 = vld [vmem:[%s11005_s7 + $0x134] sm:$0xf] }
 0x1c5   : > { %10341 = vmatmul.mubr.msk.bf16.gmra.mxu0 %vm1108_vm3, %v16473_v18  ;;  %v14050_v18 = vsel %vm11451_vm7, %v5039_v26, %v5040_v13  ;;  %16480 = vst [vmem:[#allocation129_spill] sm:$0xff] %v14053_v35  ;;  %v1978_v62 = vadd.f32 %v10021_v27, %v16481_v0  ;;  %v14061_v26 = vsel %vm11451_vm7, %v5042_v33, %v5043_v50  ;;  %v10815_v13 = vld [vmem:[%s11005_s7 + $0x130] sm:$0xf]  ;;  %v5050_v20 = vrot.slane %v10816_v45, 5  ;;  %v14074_v50 = vld [vmem:[%s11005_s7 + $0x148] sm:$0xf] }
 0x1c6   : > { %10344 = vmatprep.mubr.msk.bf16.mxu0 %vm1108_vm3, %v16477_v10  ;;  %16479 = vst [vmem:[#allocation33_spill] sm:$0xff] %v14050_v18  ;;  %16482 = vst [vmem:[#allocation5_spill] sm:$0xff] %v14061_v26  ;;  %v5047_v3 = vrot.slane %v10815_v13, 5  ;;  %v16484_v27 = vld [vmem:[#allocation8_spill] sm:$0xff]  ;;  %v10095_v10 = vpop.f32.mrf.mxu0  ;;  %v14077_v33 = vld [vmem:[%s11005_s7 + $0x14c] sm:$0xf]  ;;  %v10024_v45 = vpop.f32.mrf.mxu1 }
 0x1c7   : > { %v14067_v0 = vadd.f32 %v10091_v52, %v1978_v62  ;;  %v1970_v35 = vadd.f32 %v1969_v39, %v16484_v27  ;;  %16485 = vst [vmem:[#allocation8_spill] sm:$0xff] %v14074_v50  ;;  %16486 = vst [vmem:[#allocation131_spill] sm:$0xff] %v14077_v33  ;;  %v16487_v13 = vld [vmem:[#allocation40_spill] sm:$0xff]  ;;  %v16488_v17 = vld [vmem:[#allocation55_spill] sm:$0xff]  ;;  %v5052_v39 = vrot.slane %v5050_v20, 4 }
 0x1c8   : > { %v16489_v5 = vcombine.low %v16487_v13, %v16488_v17  ;;  %v14085_v52 = vsel %vm11451_vm7, %v9195_v21, %v5047_v3  ;;  %v5049_v62 = vrot.slane %v5047_v3, 4  ;;  %v16492_v32 = vld [vmem:[#allocation10_spill] sm:$0xff]  ;;  %v2717_v26 = vpop.f32.mrf.mxu0  ;;  %v16493_v17 = vcombine.low %v13406_v11, %v13427_v14  ;;  %v10817_v21 = vld [vmem:[%s11005_s7 + $0x138] sm:$0xf]  ;;  %v1982_v3 = vpop.f32.mrf.mxu1  ;;  %v14106_v14 = vld [vmem:[%s11005_s7 + $0x154] sm:$0xf] }
 0x1c9   : > { %16483 = vst [vmem:[#allocation130_spill] sm:$0xff] %v14067_v0  ;;  %16490 = vst [vmem:[#allocation40_spill] sm:$0xff] %v14085_v52  ;;  %v14088_v46 = vadd.f32 %v2701_v29, %v1970_v35  ;;  %v1991_v0 = vadd.f32 %v10024_v45, %v16492_v32  ;;  %v5053_v13 = vrot.slane %v10817_v21, 5  ;;  %v10818_v29 = vld [vmem:[%s11005_s7 + $0x13c] sm:$0x1]  ;;  %v16498_v21 = vld [vmem:[#allocation7_spill] sm:$0xff] }
 0x1ca   : > { %10271 = vmatmul.mubr.msk.bf16.gmra.mxu1 %vm1108_vm3, %v16489_v5  ;;  %v14099_v18 = vsel %vm11451_vm7, %v5049_v62, %v5050_v20  ;;  %v5056_v35 = vrot.slane %v10818_v29, 5  ;;  %16495 = vst [vmem:[#allocation132_spill] sm:$0xff] %v14106_v14  ;;  %v14109_v45 = vld [vmem:[%s11005_s7 + $0x158] sm:$0xf]  ;;  %v1983_v5 = vadd.f32 %v1982_v3, %v16498_v21  ;;  %v10098_v20 = vpop.f32.mrf.mxu0  ;;  %v16499_v62 = vld [vmem:[#allocation34_spill] sm:$0xff]  ;;  %v10025_v32 = vpop.f32.mrf.mxu1  ;;  %v16504_v33 = vld [vmem:[#allocation48_spill] sm:$0xff] }
 0x1cb   : > { %16491 = vst [vmem:[#allocation55_spill] sm:$0xff] %v14088_v46  ;;  %10274 = vmatprep.mubr.msk.bf16.mxu1 %vm1108_vm3, %v16493_v17  ;;  %16494 = vst [vmem:[#allocation10_spill] sm:$0xff] %v14099_v18  ;;  %v14111_v17 = vadd.f32 %v10094_v23, %v1991_v0  ;;  %v16500_v27 = vcombine.low %v16499_v62, %v13397_v60  ;;  %v14122_v11 = vsel %vm11451_vm7, %v5052_v39, %v5053_v13  ;;  %v10819_v3 = vld [vmem:[%s11005_s7 + $0x140] sm:$0xf]  ;;  %v10820_v62 = vld [vmem:[%s11005_s7 + $0x144] sm:$0xf] }
 0x1cc   : > { %16496 = vst [vmem:[#allocation133_spill] sm:$0xff] %v14109_v45  ;;  %16501 = vst [vmem:[#allocation7_spill] sm:$0xff] %v14122_v11  ;;  %v16502_v23 = vcombine.low %v13416_v9, %v13419_v36  ;;  %v5055_v0 = vrot.slane %v5053_v13, 4  ;;  %v9196_v21 = vrot.slane %v10819_v3, 9  ;;  %v14131_v29 = vadd.f32 %v2714_v44, %v1983_v5  ;;  %v2730_v50 = vpop.f32.mrf.mxu0  ;;  %v16516_v11 = vld [vmem:[#allocation94_spill] sm:$0xff]  ;;  %v16533_v45 = vld [vmem:[#allocation16_spill] sm:$0xff] }
 0x1cd   : > { %16497 = vst [vmem:[#allocation134_spill] sm:$0xff] %v14111_v17  ;;  %10345 = vmatmul.mubr.msk.bf16.gmra.mxu0 %vm1108_vm3, %v16500_v27  ;;  %v5060_v27 = vrot.slane %v10820_v62, 5  ;;  %v10821_v17 = vld [vmem:[%s11005_s7 + $0x148] sm:$0xf]  ;;  %v1994_v39 = vadd.f32 %v10025_v32, %v16504_v33  ;;  %v14146_v33 = vld [vmem:[%s11005_s7 + $0x15c] sm:$0xf] }
 0x1ce   : > { %10348 = vmatprep.mubr.msk.bf16.mxu0 %vm1108_vm3, %v16502_v23  ;;  %v5063_v46 = vrot.slane %v10821_v17, 5  ;;  %16503 = vst [vmem:[#allocation34_spill] sm:$0xff] %v14131_v29  ;;  %v1985_v23 = vpop.f32.mrf.mxu1  ;;  %v14139_v13 = vsel %vm11451_vm7, %v5055_v0, %v5056_v35  ;;  %16507 = vst [vmem:[#allocation136_spill] sm:$0xff] %v14146_v33  ;;  %v14149_v32 = vld [vmem:[%s11005_s7 + $0x160] sm:$0xf]  ;;  %v10099_v18 = vpop.f32.mrf.mxu0  ;;  %v16515_v35 = vld [vmem:[#allocation31_spill] sm:$0xff] }
 0x1cf   : > { %16505 = vst [vmem:[#allocation48_spill] sm:$0xff] %v14139_v13  ;;  %v14143_v3 = vsel %vm11451_vm7, %v9196_v21, %v5060_v27  ;;  %v5062_v44 = vrot.slane %v5060_v27, 4  ;;  %16508 = vst [vmem:[#allocation137_spill] sm:$0xff] %v14149_v32  ;;  %v14151_v17 = vadd.f32 %v10095_v10, %v1994_v39  ;;  %v16510_v62 = vld [vmem:[#allocation50_spill] sm:$0xff]  ;;  %v16511_v21 = vld [vmem:[#allocation43_spill] sm:$0xff] }
 0x1d0   : > { %16506 = vst [vmem:[#allocation135_spill] sm:$0xff] %v14143_v3  ;;  %v5065_v5 = vrot.slane %v5063_v46, 4  ;;  %v1986_v36 = vadd.f32 %v1985_v23, %v16510_v62  ;;  %v10028_v29 = vpop.f32.mrf.mxu1  ;;  %v16512_v52 = vcombine.low %v13431_v42, %v16511_v21  ;;  %v10822_v39 = vld [vmem:[%s11005_s7 + $0x14c] sm:$0xf]  ;;  %v10823_v62 = vld [vmem:[%s11005_s7 + $0x150] sm:$0x1]  ;;  %v2733_v13 = vpop.f32.mrf.mxu0 }
 0x1d1   : > { %16509 = vst [vmem:[#allocation138_spill] sm:$0xff] %v14151_v17  ;;  %v14163_v27 = vsel %vm11451_vm7, %v5062_v44, %v5063_v46  ;;  %v5066_v23 = vrot.slane %v10822_v39, 5  ;;  %v5069_v17 = vrot.slane %v10823_v62, 5  ;;  %v2007_v0 = vadd.f32 %v10028_v29, %v16515_v35  ;;  %v16517_v42 = vld [vmem:[#allocation9_spill] sm:$0xff]  ;;  %v16523_v10 = vld [vmem:[#allocation11_spill] sm:$0xff] }
 0x1d2   : > { %10275 = vmatmul.mubr.msk.bf16.gmra.mxu1 %vm1108_vm3, %v16512_v52  ;;  %16513 = vst [vmem:[#allocation50_spill] sm:$0xff] %v14163_v27  ;;  %v14168_v9 = vadd.f32 %v2717_v26, %v1986_v36  ;;  %v16518_v21 = vcombine.low %v16516_v11, %v16517_v42  ;;  %v1998_v44 = vpop.f32.mrf.mxu1  ;;  %v16520_v35 = vshrl.u32 %v13103_v49, 16  ;;  %v16522_v62 = vld [vmem:[#allocation53_spill] sm:$0xff] }
 0x1d3   : > { %v14181_v36 = vsel %vm11451_vm7, %v5065_v5, %v5066_v23  ;;  %v5068_v26 = vrot.slane %v5066_v23, 4  ;;  %v14186_v39 = vadd.f32 %v10098_v20, %v2007_v0  ;;  %v1999_v42 = vadd.f32 %v1998_v44, %v16522_v62  ;;  %v16524_v46 = vld [vmem:[#allocation93_spill] sm:$0xff]  ;;  %v14196_v23 = vld [vmem:[%s11005_s7 + $0x2c] sm:$0xf] }
 0x1d4   : > { %16514 = vst [vmem:[#allocation43_spill] sm:$0xff] %v14168_v9  ;;  %10278 = vmatprep.mubr.msk.bf16.mxu1 %vm1108_vm3, %v16518_v21  ;;  %16519 = vst [vmem:[#allocation31_spill] sm:$0xff] %v14181_v36  ;;  %v6360_v11 = vrot.slane %v16520_v35, 4  ;;  %v10102_v21 = vpop.f32.mrf.mxu0  ;;  %v16525_v52 = vcombine.low %v16523_v10, %v16524_v46  ;;  %v16526_v5 = vshll.u32 %v13103_v49, 16  ;;  %v6367_v29 = vshll.u32 %v14196_v23, 16  ;;  %v10029_v32 = vpop.f32.mrf.mxu1 }
 0x1d5   : > { %16521 = vst [vmem:[#allocation94_spill] sm:$0xff] %v14186_v39  ;;  %v16527_v20 = vcombine.low %v13487_v43, %v13490_v55  ;;  %v14205_v0 = vsel %vm11451_vm7, %v5068_v26, %v5069_v17  ;;  %v16529_v10 = vshrl.u32 %v13109_v16, 16  ;;  %v14210_v49 = vld [vmem:[%s11005_s7 + $0x30] sm:$0xf]  ;;  %v14214_v62 = vadd.f32 %v2730_v50, %v1999_v42  ;;  %v14220_v43 = vld [vmem:[%s11005_s7 + $0x38] sm:$0x1] }
 0x1d6   : > { %10349 = vmatmul.mubr.msk.bf16.gmra.mxu0 %vm1108_vm3, %v16525_v52  ;;  %v6363_v9 = vrot.slane %v16526_v5, 5  ;;  %16528 = vst [vmem:[#allocation9_spill] sm:$0xff] %v14205_v0  ;;  %v6377_v44 = vshll.u32 %v14210_v49, 16  ;;  %v6381_v35 = vshrl.u32 %v14210_v49, 16  ;;  %v16531_v5 = vld [vmem:[#allocation57_spill] sm:$0xff]  ;;  %v2746_v55 = vpop.f32.mrf.mxu0  ;;  %v2001_v26 = vpop.f32.mrf.mxu1  ;;  %v6369_v16 = vrot.slane %v6367_v29, 5 }
 0x1d7   : > { %10352 = vmatprep.mubr.msk.bf16.mxu0 %vm1108_vm3, %v16527_v20  ;;  %v6373_v52 = vrot.slane %v16529_v10, 4  ;;  %16530 = vst [vmem:[#allocation53_spill] sm:$0xff] %v14214_v62  ;;  %v2010_v39 = vadd.f32 %v10029_v32, %v16531_v5  ;;  %v10826_v46 = vld [vmem:[%s11005_s7 + $0x34] sm:$0xf]  ;;  %v2002_v50 = vadd.f32 %v2001_v26, %v16533_v45  ;;  %v16534_v20 = vcombine.low %v13499_v56, %v13520_v6  ;;  %v16537_v26 = vld [vmem:[#allocation51_spill] sm:$0xff] }
 0x1d8   : > { %v6364_v17 = vor.u32 %v6363_v9, %v6360_v11  ;;  %v6379_v10 = vrot.slane %v6377_v44, 5  ;;  %v6383_v33 = vrot.slane %v6381_v35, 4  ;;  %v6387_v27 = vshll.u32 %v10826_v46, 16  ;;  %v10103_v42 = vpop.f32.mrf.mxu0  ;;  %v10032_v5 = vpop.f32.mrf.mxu1  ;;  %v10827_v36 = vld [vmem:[%s11005_s7 + $0x28] sm:$0xf] }
 0x1d9   : > { %v14223_v3 = vadd.f32 %v10099_v18, %v2010_v39  ;;  %v6391_v32 = vshrl.u32 %v10826_v46, 16  ;;  %v6374_v9 = vor.u32 %v6373_v52, %v6369_v16  ;;  %v6397_v44 = vshll.u32 %v14220_v43, 16  ;;  %v16536_v18 = vld [vmem:[#allocation61_spill] sm:$0xff] }
 0x1da   : > { %v6365_v62 = vrot.slane %v6364_v17, 4  ;;  %10279 = vmatmul.mubr.msk.bf16.gmra.mxu1 %vm1108_vm3, %v16534_v20  ;;  %v6384_v29 = vor.u32 %v6383_v33, %v6379_v10  ;;  %v6389_v11 = vrot.slane %v6387_v27, 5  ;;  %v14231_v35 = vadd.f32 %v2733_v13, %v2002_v50  ;;  %v2749_v45 = vpop.f32.mrf.mxu0  ;;  %v16538_v17 = vld [vmem:[#allocation52_spill] sm:$0xff]  ;;  %v2014_v20 = vpop.f32.mrf.mxu1  ;;  %v16542_v50 = vld [vmem:[#allocation62_spill] sm:$0xff] }
 0x1db   : > { %16532 = vst [vmem:[#allocation11_spill] sm:$0xff] %v14223_v3  ;;  %v2023_v39 = vadd.f32 %v10032_v5, %v16536_v18  ;;  %v16539_v3 = vcombine.low %v16537_v26, %v16538_v17  ;;  %v6393_v6 = vrot.slane %v6391_v32, 4  ;;  %v6375_v52 = vrot.slane %v6374_v9, 4 }
 0x1dc   : > { %16535 = vst [vmem:[#allocation57_spill] sm:$0xff] %v14231_v35  ;;  %v6370_v56 = vsel %vm11032_vm4, %v6365_v62, %v6369_v16  ;;  %v6385_v33 = vrot.slane %v6384_v29, 4  ;;  %v6399_v27 = vrot.slane %v6397_v44, 5  ;;  %v9495_v14 = vrot.slane %v10827_v36, 9  ;;  %v10106_v18 = vpop.f32.mrf.mxu0  ;;  %v16543_v35 = vld [vmem:[#allocation99_spill] sm:$0xff]  ;;  %v10033_v16 = vpop.f32.mrf.mxu1 }
 0x1dd   : > { %10282 = vmatprep.mubr.msk.bf16.mxu1 %vm1108_vm3, %v16539_v3  ;;  %v14241_v13 = vadd.f32 %v10102_v21, %v2023_v39  ;;  %v2015_v5 = vadd.f32 %v2014_v20, %v16542_v50  ;;  %v16544_v26 = vcombine.low %v16543_v35, %v13530_v24  ;;  %v6394_v3 = vor.u32 %v6393_v6, %v6389_v11  ;;  %v16547_v35 = vld [vmem:[#allocation64_spill] sm:$0xff] }
 0x1de   : > { %v7648_v62 = vrot.slane %v14196_v23, 5  ;;  %v16545_v32 = vcombine.low %v13557_v30, %v13560_v57  ;;  %v6380_v36 = vsel %vm11032_vm4, %v6375_v52, %v6379_v10  ;;  %v6390_v21 = vsel %vm11032_vm4, %v6385_v33, %v6389_v11  ;;  %v2762_v23 = vpop.f32.mrf.mxu0  ;;  %v2017_v20 = vpop.f32.mrf.mxu1 }
 0x1df   : > { %16541 = vst [vmem:[#allocation16_spill] sm:$0xff] %v14241_v13  ;;  %10353 = vmatmul.mubr.msk.bf16.gmra.mxu0 %vm1108_vm3, %v16544_v26  ;;  %v7651_v9 = vrot.slane %v14210_v49, 5  ;;  %v7654_v29 = vrot.slane %v10826_v46, 5  ;;  %v14258_v44 = vadd.f32 %v2746_v55, %v2015_v5  ;;  %v2026_v39 = vadd.f32 %v10033_v16, %v16547_v35  ;;  %v16549_v49 = vld [vmem:[#allocation66_spill] sm:$0xff] }
 0x1e0   : > { %10356 = vmatprep.mubr.msk.bf16.mxu0 %vm1108_vm3, %v16545_v32  ;;  %v6395_v17 = vrot.slane %v6394_v3, 4  ;;  %v14261_v6 = vcombine.low %v6370_v56, %v6380_v36  ;;  %v14265_v50 = vsel %vm11451_vm7, %v9495_v14, %v7648_v62  ;;  %v7650_v10 = vrot.slane %v7648_v62, 4  ;;  %v10107_v55 = vpop.f32.mrf.mxu0  ;;  %v10036_v56 = vpop.f32.mrf.mxu1  ;;  %v16553_v32 = vld [vmem:[#allocation68_spill] sm:$0xff]  ;;  %v9285_v13 = vld [vmem:[%s11005_s7 + $0x60] sm:$0x1] }
 0x1e1   : > { %16546 = vst [vmem:[#allocation61_spill] sm:$0xff] %v14258_v44  ;;  %v7653_v52 = vrot.slane %v7651_v9, 4  ;;  %v7656_v26 = vrot.slane %v7654_v29, 4  ;;  %v14267_v11 = vadd.f32 %v10103_v42, %v2026_v39  ;;  %v2018_v46 = vadd.f32 %v2017_v20, %v16549_v49 }
 0x1e2   : > { %v6400_v33 = vsel %vm11032_vm4, %v6395_v17, %v6399_v27  ;;  %v7657_v5 = vrot.slane %v14220_v43, 5  ;;  %v16550_v3 = vcombine.low %v13564_v15, %v13579_v38  ;;  %v14281_v42 = vsel %vm11451_vm7, %v7650_v10, %v7651_v9  ;;  %v2765_v38 = vpop.f32.mrf.mxu0  ;;  %v10828_v17 = vld [vmem:[%s11005_s7 + $0x40] sm:$0xf] }
 0x1e3   : > { %16548 = vst [vmem:[#allocation51_spill] sm:$0xff] %v14267_v11  ;;  %v14277_v14 = vcombine.low %v6390_v21, %v6400_v33  ;;  %v14285_v62 = vsel %vm11451_vm7, %v7653_v52, %v7654_v29  ;;  %v16551_v27 = vshrl.u32 %v16394_v53, 16  ;;  %v14289_v16 = vadd.f32 %v2749_v45, %v2018_v46  ;;  %v2030_v29 = vpop.f32.mrf.mxu1  ;;  %v16558_v52 = vld [vmem:[#allocation70_spill] sm:$0xff]  ;;  %v16589_v11 = vld [vmem:[#allocation69_spill] sm:$0xff] }
 0x1e4   : > { %10283 = vmatmul.mubr.msk.bf16.gmra.mxu1 %vm1108_vm3, %v16550_v3  ;;  %v2039_v15 = vadd.f32 %v10036_v56, %v16553_v32  ;;  %v16554_v36 = vcombine.low %v13602_v41, %v13624_v47  ;;  %v14298_v21 = vsel %vm11451_vm7, %v7656_v26, %v7657_v5  ;;  %v16555_v35 = vshll.u32 %v16394_v53, 16  ;;  %v10110_v49 = vpop.f32.mrf.mxu0  ;;  %v16559_v46 = vld [vmem:[#allocation58_spill] sm:$0xff]  ;;  %v10830_v32 = vld [vmem:[%s11005_s7 + $0x3c] sm:$0xf] }
 0x1e5   : > { %v6404_v43 = vrot.slane %v16551_v27, 4  ;;  %16552 = vst [vmem:[#allocation52_spill] sm:$0xff] %v14289_v16  ;;  %v6411_v20 = vshll.u32 %v10828_v17, 16  ;;  %v16556_v41 = vshrl.u32 %v16395_v58, 16  ;;  %v2031_v26 = vadd.f32 %v2030_v29, %v16558_v52  ;;  %v10829_v5 = vld [vmem:[%s11005_s7 + $0x44] sm:$0xf]  ;;  %v10037_v3 = vpop.f32.mrf.mxu1 }
 0x1e6   : > { %10286 = vmatprep.mubr.msk.bf16.mxu1 %vm1108_vm3, %v16554_v36  ;;  %v6407_v39 = vrot.slane %v16555_v35, 5  ;;  %v14309_v10 = vadd.f32 %v10106_v18, %v2039_v15  ;;  %v16560_v33 = vcombine.low %v13586_v48, %v16559_v46  ;;  %v6421_v56 = vshll.u32 %v10829_v5, 16  ;;  %v16563_v35 = vld [vmem:[#allocation71_spill] sm:$0xff] }
 0x1e7   : > { %v6417_v47 = vrot.slane %v16556_v41, 4  ;;  %v6425_v53 = vshrl.u32 %v10829_v5, 16  ;;  %v16561_v27 = vcombine.low %v13615_v61, %v13618_v2  ;;  %v6413_v18 = vrot.slane %v6411_v20, 5  ;;  %v2778_v41 = vpop.f32.mrf.mxu0  ;;  %v2033_v45 = vpop.f32.mrf.mxu1 }
 0x1e8   : > { %16557 = vst [vmem:[#allocation2_spill] sm:$0xff] %v14309_v10  ;;  %10357 = vmatmul.mubr.msk.bf16.gmra.mxu0 %vm1108_vm3, %v16560_v33  ;;  %v6408_v58 = vor.u32 %v6407_v39, %v6404_v43  ;;  %v9496_v15 = vrot.slane %v10830_v32, 9  ;;  %v7661_v36 = vrot.slane %v10828_v17, 5  ;;  %v14322_v29 = vadd.f32 %v2762_v23, %v2031_v26  ;;  %v16565_v17 = vld [vmem:[#allocation73_spill] sm:$0xff] }
 0x1e9   : > { %10360 = vmatprep.mubr.msk.bf16.mxu0 %vm1108_vm3, %v16561_v27  ;;  %v2042_v48 = vadd.f32 %v10037_v3, %v16563_v35  ;;  %v6423_v52 = vrot.slane %v6421_v56, 5  ;;  %v6427_v33 = vrot.slane %v6425_v53, 4  ;;  %v6418_v10 = vor.u32 %v6417_v47, %v6413_v18  ;;  %v10111_v20 = vpop.f32.mrf.mxu0  ;;  %v10040_v32 = vpop.f32.mrf.mxu1  ;;  %v16566_v56 = vld [vmem:[#allocation22_spill] sm:$0xff]  ;;  %v10831_v35 = vld [vmem:[%s11005_s7 + $0x48] sm:$0xf] }
 0x1ea   : > { %16562 = vst [vmem:[#allocation62_spill] sm:$0xff] %v14322_v29  ;;  %v6409_v9 = vrot.slane %v6408_v58, 4  ;;  %v14327_v27 = vsel %vm11451_vm7, %v9496_v15, %v7661_v36  ;;  %v7663_v43 = vrot.slane %v7661_v36, 4  ;;  %v2034_v23 = vadd.f32 %v2033_v45, %v16565_v17  ;;  %v9280_v15 = vld [vmem:[%s11005_s7 + $0x4c] sm:$0x1] }
 0x1eb   : > { %v14329_v39 = vadd.f32 %v10107_v55, %v2042_v48  ;;  %v6428_v26 = vor.u32 %v6427_v33, %v6423_v52  ;;  %v7664_v3 = vrot.slane %v10829_v5, 5  ;;  %v16567_v53 = vcombine.low %v13628_v19, %v16566_v56  ;;  %v16570_v33 = vld [vmem:[#allocation76_spill] sm:$0xff]  ;;  %v2781_v17 = vpop.f32.mrf.mxu0 }
 0x1ec   : > { %v6414_v47 = vsel %vm11032_vm4, %v6409_v9, %v6413_v18  ;;  %v6419_v58 = vrot.slane %v6418_v10, 4  ;;  %v6431_v36 = vshll.u32 %v10831_v35, 16  ;;  %v16568_v55 = vshrl.u32 %v16420_v7, 16  ;;  %v2046_v10 = vpop.f32.mrf.mxu1 }
 0x1ed   : > { %16564 = vst [vmem:[#allocation99_spill] sm:$0xff] %v14329_v39  ;;  %10287 = vmatmul.mubr.msk.bf16.gmra.mxu1 %vm1108_vm3, %v16567_v53  ;;  %v14342_v45 = vadd.f32 %v2765_v38, %v2034_v23  ;;  %v2055_v5 = vadd.f32 %v10040_v32, %v16570_v33  ;;  %v16571_v39 = vld [vmem:[#allocation65_spill] sm:$0xff]  ;;  %v6429_v56 = vrot.slane %v6428_v26, 4  ;;  %v14351_v9 = vsel %vm11451_vm7, %v7663_v43, %v7664_v3  ;;  %v16574_v53 = vld [vmem:[#allocation78_spill] sm:$0xff] }
 0x1ee   : > { %v6437_v48 = vrot.slane %v16568_v55, 4  ;;  %v16572_v19 = vcombine.low %v13663_v51, %v16571_v39  ;;  %v6424_v7 = vsel %vm11032_vm4, %v6419_v58, %v6423_v52  ;;  %v7666_v18 = vrot.slane %v7664_v3, 4  ;;  %v10190_v39 = vpop.f32.mrf.mxu0  ;;  %v16575_v55 = vld [vmem:[#allocation63_spill] sm:$0xff]  ;;  %v16576_v26 = vld [vmem:[#allocation105_spill] sm:$0xff]  ;;  %v16579_v3 = vld [vmem:[#allocation108_spill] sm:$0xff] }
 0x1ef   : > { %16569 = vst [vmem:[#allocation64_spill] sm:$0xff] %v14342_v45  ;;  %v6433_v23 = vrot.slane %v6431_v36, 5  ;;  %v14357_v32 = vadd.f32 %v10110_v49, %v2055_v5  ;;  %v2047_v51 = vadd.f32 %v2046_v10, %v16574_v53  ;;  %v16577_v33 = vcombine.low %v16575_v55, %v16576_v26  ;;  %v10041_v45 = vpop.f32.mrf.mxu1  ;;  %v16578_v52 = vld [vmem:[#allocation107_spill] sm:$0xff] }
 0x1f0   : > { %10290 = vmatprep.mubr.msk.bf16.mxu1 %vm1108_vm3, %v16572_v19  ;;  %v14364_v43 = vcombine.low %v6414_v47, %v6424_v7  ;;  %v6441_v19 = vshll.u32 %v9280_v15, 16  ;;  %v16580_v58 = vcombine.low %v16578_v52, %v16579_v3  ;;  %v7667_v5 = vrot.slane %v10831_v35, 5  ;;  %v16582_v55 = vld [vmem:[#allocation79_spill] sm:$0xff]  ;;  %v4528_v47 = vpop.f32.mrf.mxu0  ;;  %v10835_v3 = vld [vmem:[%s11005_s7 + $0x5c] sm:$0xf] }
 0x1f1   : > { %16573 = vst [vmem:[#allocation66_spill] sm:$0xff] %v14357_v32  ;;  %10361 = vmatmul.mubr.msk.bf16.gmra.mxu0 %vm1108_vm3, %v16577_v33  ;;  %v6434_v49 = vsel %vm11032_vm4, %v6429_v56, %v6433_v23  ;;  %v6438_v36 = vor.u32 %v6437_v48, %v6433_v23  ;;  %v7670_v10 = vrot.slane %v9280_v15, 5  ;;  %v14372_v53 = vadd.f32 %v2778_v41, %v2047_v51  ;;  %v2049_v29 = vpop.f32.mrf.mxu1  ;;  %v16586_v56 = vld [vmem:[#allocation80_spill] sm:$0xff] }
 0x1f2   : > { %10364 = vmatprep.mubr.msk.bf16.mxu0 %vm1108_vm3, %v16580_v58  ;;  %v2058_v33 = vadd.f32 %v10041_v45, %v16582_v55  ;;  %v6443_v7 = vrot.slane %v6441_v19, 5  ;;  %v16583_v38 = vshrl.u32 %v13219_v12, 16  ;;  %v14379_v58 = vsel %vm11451_vm7, %v7666_v18, %v7667_v5  ;;  %v10191_v23 = vpop.f32.mrf.mxu0  ;;  %v10832_v51 = vld [vmem:[%s11005_s7 + $0x54] sm:$0xf]  ;;  %v10833_v18 = vld [vmem:[%s11005_s7 + $0x58] sm:$0xf] }
 0x1f3   : > { %16581 = vst [vmem:[#allocation68_spill] sm:$0xff] %v14372_v53  ;;  %v6439_v16 = vrot.slane %v6438_v36, 4  ;;  %v7669_v48 = vrot.slane %v7667_v5, 4  ;;  %v16584_v35 = vshll.u32 %v13219_v12, 16  ;;  %v2050_v45 = vadd.f32 %v2049_v29, %v16586_v56  ;;  %v10120_v53 = vpop.f32.mrf.mxu1  ;;  %v16588_v36 = vld [vmem:[#allocation67_spill] sm:$0xff] }
 0x1f4   : > { %v6448_v32 = vrot.slane %v16583_v38, 4  ;;  %v14383_v41 = vadd.f32 %v10111_v20, %v2058_v33  ;;  %v6455_v19 = vshll.u32 %v10832_v51, 16  ;;  %v16587_v38 = vshrl.u32 %v13222_v28, 16  ;;  %v16592_v28 = vld [vmem:[#allocation46_spill] sm:$0xff]  ;;  %v4531_v56 = vpop.f32.mrf.mxu0 }
 0x1f5   : > { %v6451_v15 = vrot.slane %v16584_v35, 5  ;;  %v16590_v44 = vcombine.low %v16588_v36, %v16589_v11  ;;  %v6444_v12 = vsel %vm11032_vm4, %v6439_v16, %v6443_v7  ;;  %v14397_v20 = vsel %vm11451_vm7, %v7669_v48, %v7670_v10  ;;  %v16594_v11 = vld [vmem:[#allocation115_spill] sm:$0xff]  ;;  %v3255_v10 = vpop.f32.mrf.mxu1  ;;  %v16601_v16 = vld [vmem:[#allocation72_spill] sm:$0xff] }
 0x1f6   : > { %16585 = vst [vmem:[#allocation70_spill] sm:$0xff] %v14383_v41  ;;  %v6461_v55 = vrot.slane %v16587_v38, 4  ;;  %v6465_v5 = vshll.u32 %v10833_v18, 16  ;;  %v14400_v33 = vadd.f32 %v2781_v17, %v2050_v45  ;;  %v3512_v35 = vadd.f32 %v10120_v53, %v16592_v28  ;;  %v16593_v38 = vld [vmem:[#allocation111_spill] sm:$0xff]  ;;  %v16597_v45 = vld [vmem:[#allocation24_spill] sm:$0xff]  ;;  %v10194_v28 = vpop.f32.mrf.mxu0  ;;  %v16599_v41 = vld [vmem:[#allocation113_spill] sm:$0xff] }
 0x1f7   : > { %10291 = vmatmul.mubr.msk.bf16.gmra.mxu1 %vm1108_vm3, %v16590_v44  ;;  %v6452_v29 = vor.u32 %v6451_v15, %v6448_v32  ;;  %v16595_v36 = vcombine.low %v16593_v38, %v16594_v11  ;;  %v14407_v44 = vcombine.low %v6434_v49, %v6444_v12  ;;  %v6457_v7 = vrot.slane %v6455_v19, 5  ;;  %v10834_v49 = vld [vmem:[%s11005_s7 + $0x50] sm:$0xf] }
 0x1f8   : > { %16591 = vst [vmem:[#allocation58_spill] sm:$0xff] %v14400_v33  ;;  %v6467_v48 = vrot.slane %v6465_v5, 5  ;;  %v6469_v15 = vshrl.u32 %v10833_v18, 16  ;;  %v14411_v17 = vadd.f32 %v10190_v39, %v3512_v35  ;;  %v3510_v53 = vadd.f32 %v3255_v10, %v16597_v45  ;;  %v16598_v33 = vld [vmem:[#allocation112_spill] sm:$0xff]  ;;  %v16605_v45 = vld [vmem:[#allocation86_spill] sm:$0xff] }
 0x1f9   : > { %10294 = vmatprep.mubr.msk.bf16.mxu1 %vm1108_vm3, %v16595_v36  ;;  %v6453_v32 = vrot.slane %v6452_v29, 4  ;;  %v16600_v38 = vcombine.low %v16598_v33, %v16599_v41  ;;  %v9497_v12 = vrot.slane %v10834_v49, 9  ;;  %v7674_v11 = vrot.slane %v10832_v51, 5  ;;  %v10121_v36 = vpop.f32.mrf.mxu1  ;;  %v16602_v29 = vld [vmem:[#allocation12_spill] sm:$0xff]  ;;  %v4544_v49 = vpop.f32.mrf.mxu0 }
 0x1fa   : > { %16596 = vst [vmem:[#allocation71_spill] sm:$0xff] %v14411_v17  ;;  %v16603_v19 = vcombine.low %v16601_v16, %v16602_v29  ;;  %v6462_v5 = vor.u32 %v6461_v55, %v6457_v7  ;;  %v6471_v35 = vrot.slane %v6469_v15, 4  ;;  %v7677_v10 = vrot.slane %v10833_v18, 5  ;;  %v16607_v18 = vld [vmem:[#allocation30_spill] sm:$0xff] }
 0x1fb   : > { %10365 = vmatmul.mubr.msk.bf16.gmra.mxu0 %vm1108_vm3, %v16600_v38  ;;  %v6458_v39 = vsel %vm11032_vm4, %v6453_v32, %v6457_v7  ;;  %v14425_v33 = vadd.f32 %v4528_v47, %v3510_v53  ;;  %v3513_v38 = vadd.f32 %v10121_v36, %v16605_v45  ;;  %v14430_v51 = vsel %vm11451_vm7, %v9497_v12, %v7674_v11  ;;  %v3258_v29 = vpop.f32.mrf.mxu1  ;;  %v10195_v7 = vpop.f32.mrf.mxu0  ;;  %v16609_v36 = vld [vmem:[#allocation81_spill] sm:$0xff] }
 0x1fc   : > { %10368 = vmatprep.mubr.msk.bf16.mxu0 %vm1108_vm3, %v16603_v19  ;;  %v7676_v17 = vrot.slane %v7674_v11, 4  ;;  %v6463_v16 = vrot.slane %v6462_v5, 4  ;;  %v6472_v41 = vor.u32 %v6471_v35, %v6467_v48  ;;  %v7679_v19 = vrot.slane %v7677_v10, 4  ;;  %v16610_v5 = vld [vmem:[#allocation74_spill] sm:$0xff] }
 0x1fd   : > { %16604 = vst [vmem:[#allocation73_spill] sm:$0xff] %v14425_v33  ;;  %v6475_v32 = vshll.u32 %v10835_v3, 16  ;;  %v14434_v55 = vadd.f32 %v10191_v23, %v3513_v38  ;;  %v3511_v47 = vadd.f32 %v3258_v29, %v16607_v18  ;;  %v16608_v53 = vshrl.u32 %v16447_v54, 16  ;;  %v10124_v11 = vpop.f32.mrf.mxu1  ;;  %v4547_v54 = vpop.f32.mrf.mxu0  ;;  %v16618_v29 = vld [vmem:[#allocation83_spill] sm:$0xff]  ;;  %v16628_v33 = vld [vmem:[#allocation26_spill] sm:$0xff] }
 0x1fe   : > { %v14439_v15 = vsel %vm11451_vm7, %v7676_v17, %v7677_v10  ;;  %v16611_v35 = vcombine.low %v16609_v36, %v16610_v5  ;;  %v6468_v23 = vsel %vm11032_vm4, %v6463_v16, %v6467_v48  ;;  %v6473_v45 = vrot.slane %v6472_v41, 4  ;;  %v16613_v17 = vld [vmem:[#allocation35_spill] sm:$0xff] }
 0x1ff   : > { %16606 = vst [vmem:[#allocation22_spill] sm:$0xff] %v14434_v55  ;;  %v6481_v12 = vrot.slane %v16608_v53, 4  ;;  %v6477_v38 = vrot.slane %v6475_v32, 5  ;;  %v14451_v18 = vadd.f32 %v4531_v56, %v3511_v47  ;;  %v3516_v10 = vadd.f32 %v10124_v11, %v16613_v17  ;;  %v16614_v53 = vld [vmem:[#allocation82_spill] sm:$0xff]  ;;  %v16617_v47 = vld [vmem:[#allocation88_spill] sm:$0xff]  ;;  %v10198_v17 = vpop.f32.mrf.mxu0 }
 0x200   : > { %10295 = vmatmul.mubr.msk.bf16.gmra.mxu1 %vm1108_vm3, %v16611_v35  ;;  %v16615_v55 = vcombine.low %v13805_v63, %v16614_v53  ;;  %v14458_v36 = vcombine.low %v6458_v39, %v6468_v23  ;;  %v6485_v5 = vshll.u32 %v9285_v13, 16  ;;  %v3271_v35 = vpop.f32.mrf.mxu1  ;;  %v7680_v48 = vrot.slane %v10835_v3, 5  ;;  %v16619_v63 = vld [vmem:[#allocation84_spill] sm:$0xff] }
 0x201   : > { %16612 = vst [vmem:[#allocation76_spill] sm:$0xff] %v14451_v18  ;;  %v6478_v41 = vsel %vm11032_vm4, %v6473_v45, %v6477_v38  ;;  %v6482_v16 = vor.u32 %v6481_v12, %v6477_v38  ;;  %v7683_v32 = vrot.slane %v9285_v13, 5  ;;  %v14462_v56 = vadd.f32 %v10194_v28, %v3516_v10  ;;  %v16622_v45 = vld [vmem:[#allocation77_spill] sm:$0xff]  ;;  %v16623_v12 = vld [vmem:[#allocation119_spill] sm:$0xff] }
 0x202   : > { %10298 = vmatprep.mubr.msk.bf16.mxu1 %vm1108_vm3, %v16615_v55  ;;  %v3514_v11 = vadd.f32 %v3271_v35, %v16617_v47  ;;  %v16620_v53 = vcombine.low %v16618_v29, %v16619_v63  ;;  %v6487_v39 = vrot.slane %v6485_v5, 5  ;;  %v16621_v55 = vshrl.u32 %v16449_v8, 16  ;;  %v10125_v18 = vpop.f32.mrf.mxu1  ;;  %v16627_v35 = vld [vmem:[#allocation90_spill] sm:$0xff] }
 0x203   : > { %16616 = vst [vmem:[#allocation65_spill] sm:$0xff] %v14462_v56  ;;  %v16624_v3 = vcombine.low %v16622_v45, %v16623_v12  ;;  %v6483_v13 = vrot.slane %v6482_v16, 4  ;;  %v14477_v28 = vsel %vm11451_vm7, %v7679_v19, %v7680_v48  ;;  %v7682_v38 = vrot.slane %v7680_v48, 4  ;;  %v10837_v48 = vld [vmem:[%s11005_s7 + $0x6c] sm:$0xf] }
 0x204   : > { %10369 = vmatmul.mubr.msk.bf16.gmra.mxu0 %vm1108_vm3, %v16620_v53  ;;  %v6492_v23 = vrot.slane %v16621_v55, 4  ;;  %v16625_v29 = vshll.u32 %v16449_v8, 16  ;;  %v14481_v5 = vadd.f32 %v4544_v49, %v3514_v11  ;;  %v3517_v47 = vadd.f32 %v10125_v18, %v16627_v35  ;;  %v4560_v53 = vpop.f32.mrf.mxu0  ;;  %v10836_v55 = vld [vmem:[%s11005_s7 + $0x68] sm:$0xf]  ;;  %v16631_v18 = vld [vmem:[#allocation38_spill] sm:$0xff] }
 0x205   : > { %10372 = vmatprep.mubr.msk.bf16.mxu0 %vm1108_vm3, %v16624_v3  ;;  %v6499_v56 = vshll.u32 %v10836_v55, 16  ;;  %v16629_v12 = vshrl.u32 %v16628_v33, 16  ;;  %v3274_v3 = vpop.f32.mrf.mxu1  ;;  %v6488_v16 = vsel %vm11032_vm4, %v6483_v13, %v6487_v39  ;;  %v14491_v19 = vsel %vm11451_vm7, %v7682_v38, %v7683_v32  ;;  %v16632_v39 = vld [vmem:[#allocation28_spill] sm:$0xff]  ;;  %v16633_v13 = vld [vmem:[#allocation15_spill] sm:$0xff]  ;;  %v10838_v33 = vld [vmem:[%s11005_s7 + $0x64] sm:$0xf] }
 0x206   : > { %v6495_v10 = vrot.slane %v16625_v29, 5  ;;  %16626 = vst [vmem:[#allocation78_spill] sm:$0xff] %v14481_v5  ;;  %v6509_v49 = vshll.u32 %v10837_v48, 16  ;;  %v14494_v11 = vadd.f32 %v10195_v7, %v3517_v47  ;;  %v3515_v29 = vadd.f32 %v3274_v3, %v16631_v18  ;;  %v10199_v35 = vpop.f32.mrf.mxu0  ;;  %v16636_v47 = vld [vmem:[#allocation56_spill] sm:$0xff] }
 0x207   : > { %v6505_v45 = vrot.slane %v16629_v12, 4  ;;  %v14497_v5 = vcombine.low %v6478_v41, %v6488_v16  ;;  %v10128_v12 = vpop.f32.mrf.mxu1  ;;  %v16634_v63 = vcombine.low %v16632_v39, %v16633_v13  ;;  %v16637_v41 = vld [vmem:[#allocation13_spill] sm:$0xff]  ;;  %v16638_v16 = vld [vmem:[#allocation20_spill] sm:$0xff]  ;;  %v9498_v52 = vrot.slane %v10838_v33, 9 }
 0x208   : > { %v6496_v8 = vor.u32 %v6495_v10, %v6492_v23  ;;  %16630 = vst [vmem:[#allocation63_spill] sm:$0xff] %v14494_v11  ;;  %v6501_v23 = vrot.slane %v6499_v56, 5  ;;  %v6511_v38 = vrot.slane %v6509_v49, 5  ;;  %v6513_v10 = vshrl.u32 %v10837_v48, 16  ;;  %v4563_v18 = vpop.f32.mrf.mxu0 }
 0x209   : > { %10299 = vmatmul.mubr.msk.bf16.gmra.mxu1 %vm1108_vm3, %v16634_v63  ;;  %v14505_v7 = vadd.f32 %v4547_v54, %v3515_v29  ;;  %v3520_v3 = vadd.f32 %v10128_v12, %v16636_v47  ;;  %v16639_v11 = vcombine.low %v16637_v41, %v16638_v16  ;;  %v7687_v26 = vrot.slane %v10836_v55, 5  ;;  %v3287_v39 = vpop.f32.mrf.mxu1  ;;  %v16641_v29 = vld [vmem:[#allocation42_spill] sm:$0xff]  ;;  %v16642_v47 = vld [vmem:[#allocation19_spill] sm:$0xff]  ;;  %v16645_v16 = vld [vmem:[#allocation121_spill] sm:$0xff] }
 0x20a   : > { %v6497_v32 = vrot.slane %v6496_v8, 4  ;;  %v6506_v63 = vor.u32 %v6505_v45, %v6501_v23  ;;  %v6515_v54 = vrot.slane %v6513_v10, 4  ;;  %v7690_v8 = vrot.slane %v10837_v48, 5  ;;  %v10202_v13 = vpop.f32.mrf.mxu0  ;;  %v16643_v41 = vld [vmem:[#allocation18_spill] sm:$0xff] }
 0x20b   : > { %16635 = vst [vmem:[#allocation79_spill] sm:$0xff] %v14505_v7  ;;  %10302 = vmatprep.mubr.msk.bf16.mxu1 %vm1108_vm3, %v16639_v11  ;;  %v14515_v49 = vadd.f32 %v10198_v17, %v3520_v3  ;;  %v3518_v12 = vadd.f32 %v3287_v39, %v16641_v29  ;;  %v16644_v11 = vcombine.low %v16642_v47, %v16643_v41  ;;  %v7689_v33 = vrot.slane %v7687_v26, 4  ;;  %v16646_v45 = vld [vmem:[#allocation122_spill] sm:$0xff]  ;;  %v9290_v3 = vld [vmem:[%s11005_s7 + $0x74] sm:$0x1] }
 0x20c   : > { %v6502_v56 = vsel %vm11032_vm4, %v6497_v32, %v6501_v23  ;;  %v14524_v55 = vsel %vm11451_vm7, %v9498_v52, %v7687_v26  ;;  %v10129_v32 = vpop.f32.mrf.mxu1  ;;  %v16647_v23 = vcombine.low %v16645_v16, %v16646_v45  ;;  %v6507_v17 = vrot.slane %v6506_v63, 4  ;;  %v10839_v39 = vld [vmem:[%s11005_s7 + $0x70] sm:$0xf]  ;;  %v4576_v7 = vpop.f32.mrf.mxu0 }
 0x20d   : > { %16640 = vst [vmem:[#allocation80_spill] sm:$0xff] %v14515_v49  ;;  %10373 = vmatmul.mubr.msk.bf16.gmra.mxu0 %vm1108_vm3, %v16644_v11  ;;  %v6516_v48 = vor.u32 %v6515_v54, %v6511_v38  ;;  %v7692_v10 = vrot.slane %v7690_v8, 4  ;;  %v6519_v29 = vshll.u32 %v10839_v39, 16  ;;  %v14532_v47 = vadd.f32 %v4560_v53, %v3518_v12  ;;  %v16649_v11 = vld [vmem:[#allocation4_spill] sm:$0xff] }
 0x20e   : > { %10376 = vmatprep.mubr.msk.bf16.mxu0 %vm1108_vm3, %v16647_v23  ;;  %v3521_v49 = vadd.f32 %v10129_v32, %v16649_v11  ;;  %v14537_v26 = vsel %vm11451_vm7, %v7689_v33, %v7690_v8  ;;  %v16650_v52 = vshrl.u32 %v16472_v1, 16  ;;  %v3290_v16 = vpop.f32.mrf.mxu1  ;;  %v6512_v63 = vsel %vm11032_vm4, %v6507_v17, %v6511_v38  ;;  %v16652_v32 = vld [vmem:[#allocation59_spill] sm:$0xff] }
 0x20f   : > { %16648 = vst [vmem:[#allocation67_spill] sm:$0xff] %v14532_v47  ;;  %v6517_v54 = vrot.slane %v6516_v48, 4  ;;  %v6521_v53 = vrot.slane %v6519_v29, 5  ;;  %v3519_v11 = vadd.f32 %v3290_v16, %v16652_v32  ;;  %v10203_v47 = vpop.f32.mrf.mxu0  ;;  %v14548_v41 = vcombine.low %v6502_v56, %v6512_v63  ;;  %v16653_v1 = vld [vmem:[#allocation23_spill] sm:$0xff]  ;;  %v16658_v63 = vld [vmem:[#allocation25_spill] sm:$0xff]  ;;  %v16659_v32 = vld [vmem:[#allocation36_spill] sm:$0xff] }
 0x210   : > { %v6525_v45 = vrot.slane %v16650_v52, 4  ;;  %v14545_v12 = vadd.f32 %v10199_v35, %v3521_v49  ;;  %v6529_v8 = vshll.u32 %v9290_v3, 16  ;;  %v10132_v33 = vpop.f32.mrf.mxu1  ;;  %v16654_v52 = vld [vmem:[#allocation32_spill] sm:$0xff]  ;;  %v7693_v48 = vrot.slane %v10839_v39, 5 }
 0x211   : > { %v16655_v2 = vcombine.low %v16653_v1, %v16654_v52  ;;  %v6522_v38 = vsel %vm11032_vm4, %v6517_v54, %v6521_v53  ;;  %v7696_v29 = vrot.slane %v9290_v3, 5  ;;  %v14556_v35 = vadd.f32 %v4563_v18, %v3519_v11  ;;  %v16657_v49 = vld [vmem:[#allocation92_spill] sm:$0xff]  ;;  %v4579_v56 = vpop.f32.mrf.mxu0  ;;  %v16664_v11 = vld [vmem:[#allocation95_spill] sm:$0xff] }
 0x212   : > { %16651 = vst [vmem:[#allocation69_spill] sm:$0xff] %v14545_v12  ;;  %v6526_v17 = vor.u32 %v6525_v45, %v6521_v53  ;;  %v3524_v16 = vadd.f32 %v10132_v33, %v16657_v49  ;;  %v16660_v23 = vcombine.low %v16658_v63, %v16659_v32  ;;  %v6531_v1 = vrot.slane %v6529_v8, 5  ;;  %v3303_v12 = vpop.f32.mrf.mxu1  ;;  %v16665_v8 = vld [vmem:[#allocation124_spill] sm:$0xff] }
 0x213   : > { %10303 = vmatmul.mubr.msk.bf16.gmra.mxu1 %vm1108_vm3, %v16655_v2  ;;  %16656 = vst [vmem:[#allocation46_spill] sm:$0xff] %v14556_v35  ;;  %v16661_v2 = vshrl.u32 %v13355_v22, 16  ;;  %v14567_v45 = vsel %vm11451_vm7, %v7692_v10, %v7693_v48  ;;  %v7695_v18 = vrot.slane %v7693_v48, 4  ;;  %v16662_v3 = vshll.u32 %v13355_v22, 16  ;;  %v16668_v48 = vld [vmem:[#allocation29_spill] sm:$0xff] }
 0x214   : > { %10306 = vmatprep.mubr.msk.bf16.mxu1 %vm1108_vm3, %v16660_v23  ;;  %v6527_v54 = vrot.slane %v6526_v17, 4  ;;  %v14571_v53 = vadd.f32 %v10202_v13, %v3524_v16  ;;  %v3522_v33 = vadd.f32 %v3303_v12, %v16664_v11  ;;  %v10206_v23 = vpop.f32.mrf.mxu0  ;;  %v16666_v49 = vcombine.low %v16665_v8, %v13944_v34  ;;  %v10840_v17 = vld [vmem:[%s11005_s7 + $0x7c] sm:$0xf] }
 0x215   : > { %v6536_v52 = vrot.slane %v16661_v2, 4  ;;  %v6539_v39 = vrot.slane %v16662_v3, 5  ;;  %v6543_v63 = vshll.u32 %v10840_v17, 16  ;;  %v16667_v32 = vshrl.u32 %v16476_v59, 16  ;;  %v10133_v2 = vpop.f32.mrf.mxu1  ;;  %v10841_v3 = vld [vmem:[%s11005_s7 + $0x80] sm:$0xf] }
 0x216   : > { %16663 = vst [vmem:[#allocation111_spill] sm:$0xff] %v14571_v53  ;;  %10377 = vmatmul.mubr.msk.bf16.gmra.mxu0 %vm1108_vm3, %v16666_v49  ;;  %v16669_v22 = vcombine.low %v13975_v40, %v16668_v48  ;;  %v6532_v13 = vsel %vm11032_vm4, %v6527_v54, %v6531_v1  ;;  %v14589_v12 = vsel %vm11451_vm7, %v7695_v18, %v7696_v29  ;;  %v6553_v11 = vshll.u32 %v10841_v3, 16  ;;  %v16671_v59 = vld [vmem:[#allocation98_spill] sm:$0xff] }
 0x217   : > { %v6549_v10 = vrot.slane %v16667_v32, 4  ;;  %v6540_v16 = vor.u32 %v6539_v39, %v6536_v52  ;;  %v14592_v8 = vadd.f32 %v4576_v7, %v3522_v33  ;;  %v3525_v49 = vadd.f32 %v10133_v2, %v16671_v59  ;;  %v4592_v32 = vpop.f32.mrf.mxu0  ;;  %v3306_v48 = vpop.f32.mrf.mxu1  ;;  %v16673_v52 = vld [vmem:[#allocation49_spill] sm:$0xff]  ;;  %v16674_v59 = vld [vmem:[#allocation27_spill] sm:$0xff] }
 0x218   : > { %10380 = vmatprep.mubr.msk.bf16.mxu0 %vm1108_vm3, %v16669_v22  ;;  %v14595_v53 = vcombine.low %v6522_v38, %v6532_v13  ;;  %v6545_v54 = vrot.slane %v6543_v63, 5  ;;  %v6555_v40 = vrot.slane %v6553_v11, 5  ;;  %v6557_v29 = vshrl.u32 %v10841_v3, 16  ;;  %v10842_v7 = vld [vmem:[%s11005_s7 + $0x78] sm:$0xf]  ;;  %v16675_v38 = vld [vmem:[#allocation39_spill] sm:$0xff] }
 0x219   : > { %16670 = vst [vmem:[#allocation115_spill] sm:$0xff] %v14592_v8  ;;  %v6541_v1 = vrot.slane %v6540_v16, 4  ;;  %v14599_v18 = vadd.f32 %v10203_v47, %v3525_v49  ;;  %v3523_v39 = vadd.f32 %v3306_v48, %v16673_v52  ;;  %v10207_v35 = vpop.f32.mrf.mxu0  ;;  %v9499_v33 = vrot.slane %v10842_v7, 9  ;;  %v10136_v2 = vpop.f32.mrf.mxu1  ;;  %v16678_v48 = vld [vmem:[#allocation100_spill] sm:$0xff] }
 0x21a   : > { %v7700_v8 = vrot.slane %v10840_v17, 5  ;;  %v16676_v13 = vcombine.low %v16674_v59, %v16675_v38  ;;  %v6550_v16 = vor.u32 %v6549_v10, %v6545_v54  ;;  %v6559_v47 = vrot.slane %v6557_v29, 4  ;;  %v16679_v17 = vld [vmem:[#allocation89_spill] sm:$0xff] }
 0x21b   : > { %16672 = vst [vmem:[#allocation24_spill] sm:$0xff] %v14599_v18  ;;  %v6546_v63 = vsel %vm11032_vm4, %v6541_v1, %v6545_v54  ;;  %v7703_v11 = vrot.slane %v10841_v3, 5  ;;  %v14609_v49 = vadd.f32 %v4579_v56, %v3523_v39  ;;  %v3528_v52 = vadd.f32 %v10136_v2, %v16678_v48  ;;  %v4595_v7 = vpop.f32.mrf.mxu0  ;;  %v9295_v3 = vld [vmem:[%s11005_s7 + $0x88] sm:$0x1]  ;;  %v10843_v56 = vld [vmem:[%s11005_s7 + $0x84] sm:$0xf] }
 0x21c   : > { %10307 = vmatmul.mubr.msk.bf16.gmra.mxu1 %vm1108_vm3, %v16676_v13  ;;  %v16680_v22 = vcombine.low %v14020_v31, %v16679_v17  ;;  %v14618_v59 = vsel %vm11451_vm7, %v9499_v33, %v7700_v8  ;;  %v7702_v38 = vrot.slane %v7700_v8, 4  ;;  %v3319_v13 = vpop.f32.mrf.mxu1  ;;  %v6551_v1 = vrot.slane %v6550_v16, 4  ;;  %v16682_v2 = vld [vmem:[#allocation101_spill] sm:$0xff]  ;;  %v16683_v31 = vld [vmem:[#allocation87_spill] sm:$0xff]  ;;  %v16684_v17 = vld [vmem:[#allocation14_spill] sm:$0xff] }
 0x21d   : > { %16677 = vst [vmem:[#allocation112_spill] sm:$0xff] %v14609_v49  ;;  %v6560_v10 = vor.u32 %v6559_v47, %v6555_v40  ;;  %v7705_v54 = vrot.slane %v7703_v11, 4  ;;  %v6563_v29 = vshll.u32 %v10843_v56, 16  ;;  %v14622_v39 = vadd.f32 %v10206_v23, %v3528_v52  ;;  %v10210_v49 = vpop.f32.mrf.mxu0 }
 0x21e   : > { %10310 = vmatprep.mubr.msk.bf16.mxu1 %vm1108_vm3, %v16680_v22  ;;  %v3526_v48 = vadd.f32 %v3319_v13, %v16682_v2  ;;  %v16685_v22 = vcombine.low %v16683_v31, %v16684_v17  ;;  %v14631_v8 = vsel %vm11451_vm7, %v7702_v38, %v7703_v11  ;;  %v16686_v33 = vshrl.u32 %v13397_v60, 16  ;;  %v10137_v47 = vpop.f32.mrf.mxu1  ;;  %v16689_v11 = vld [vmem:[#allocation54_spill] sm:$0xff] }
 0x21f   : > { %16681 = vst [vmem:[#allocation86_spill] sm:$0xff] %v14622_v39  ;;  %v16687_v23 = vcombine.low %v14035_v25, %v14038_v4  ;;  %v6556_v52 = vsel %vm11032_vm4, %v6551_v1, %v6555_v40  ;;  %v6561_v13 = vrot.slane %v6560_v10, 4  ;;  %v6565_v31 = vrot.slane %v6563_v29, 5  ;;  %v4608_v60 = vpop.f32.mrf.mxu0  ;;  %v16692_v10 = vld [vmem:[#allocation102_spill] sm:$0xff] }
 0x220   : > { %10381 = vmatmul.mubr.msk.bf16.gmra.mxu0 %vm1108_vm3, %v16685_v22  ;;  %v6569_v16 = vrot.slane %v16686_v33, 4  ;;  %v14643_v22 = vadd.f32 %v4592_v32, %v3526_v48  ;;  %v3529_v38 = vadd.f32 %v10137_v47, %v16689_v11  ;;  %v14646_v33 = vcombine.low %v6546_v63, %v6556_v52  ;;  %v3322_v39 = vpop.f32.mrf.mxu1  ;;  %v16693_v2 = vld [vmem:[#allocation6_spill] sm:$0xff]  ;;  %v16695_v52 = vld [vmem:[#allocation33_spill] sm:$0xff] }
 0x221   : > { %10384 = vmatprep.mubr.msk.bf16.mxu0 %vm1108_vm3, %v16687_v23  ;;  %v6573_v17 = vshll.u32 %v9295_v3, 16  ;;  %v6566_v23 = vsel %vm11032_vm4, %v6561_v13, %v6565_v31  ;;  %v7706_v25 = vrot.slane %v10843_v56, 5  ;;  %v7709_v40 = vrot.slane %v9295_v3, 5  ;;  %v10211_v32 = vpop.f32.mrf.mxu0  ;;  %v16701_v13 = vld [vmem:[#allocation17_spill] sm:$0xff] }
 0x222   : > { %16688 = vst [vmem:[#allocation30_spill] sm:$0xff] %v14643_v22  ;;  %16690 = vst [vmem:[#allocation81_spill] sm:$0xff] %v14646_v33  ;;  %v6570_v4 = vor.u32 %v6569_v16, %v6565_v31  ;;  %v14650_v1 = vadd.f32 %v10207_v35, %v3529_v38  ;;  %v3527_v29 = vadd.f32 %v3322_v39, %v16692_v10  ;;  %v16694_v47 = vshrl.u32 %v16693_v2, 16  ;;  %v10140_v63 = vpop.f32.mrf.mxu1  ;;  %v16696_v22 = vld [vmem:[#allocation5_spill] sm:$0xff]  ;;  %v16702_v10 = vld [vmem:[#allocation40_spill] sm:$0xff] }
 0x223   : > { %v6575_v48 = vrot.slane %v6573_v17, 5  ;;  %v16697_v18 = vcombine.low %v16695_v52, %v16696_v22  ;;  %v14661_v3 = vsel %vm11451_vm7, %v7705_v54, %v7706_v25  ;;  %v7708_v35 = vrot.slane %v7706_v25, 4  ;;  %v4611_v38 = vpop.f32.mrf.mxu0  ;;  %v16705_v52 = vld [vmem:[#allocation91_spill] sm:$0xff] }
 0x224   : > { %16691 = vst [vmem:[#allocation74_spill] sm:$0xff] %v14650_v1  ;;  %v6580_v11 = vrot.slane %v16694_v47, 4  ;;  %v6571_v16 = vrot.slane %v6570_v4, 4  ;;  %16698 = vst [vmem:[#allocation35_spill] sm:$0xff] %v14661_v3  ;;  %v16699_v56 = vshll.u32 %v16693_v2, 16  ;;  %v14665_v17 = vadd.f32 %v4595_v7, %v3527_v29  ;;  %v16703_v47 = vld [vmem:[#allocation10_spill] sm:$0xff]  ;;  %v3335_v34 = vpop.f32.mrf.mxu1 }
 0x225   : > { %10311 = vmatmul.mubr.msk.bf16.gmra.mxu1 %vm1108_vm3, %v16697_v18  ;;  %v3532_v31 = vadd.f32 %v10140_v63, %v16701_v13  ;;  %v16704_v22 = vcombine.low %v16702_v10, %v16703_v47  ;;  %v10844_v18 = vld [vmem:[%s11005_s7 + $0x90] sm:$0xf]  ;;  %v16706_v1 = vshrl.u32 %v16705_v52, 16  ;;  %v14679_v7 = vsel %vm11451_vm7, %v7708_v35, %v7709_v40  ;;  %v10845_v29 = vld [vmem:[%s11005_s7 + $0x94] sm:$0xf]  ;;  %v16709_v13 = vld [vmem:[#allocation103_spill] sm:$0xff]  ;;  %v10214_v47 = vpop.f32.mrf.mxu0 }
 0x226   : > { %v6583_v39 = vrot.slane %v16699_v56, 5  ;;  %16700 = vst [vmem:[#allocation82_spill] sm:$0xff] %v14665_v17  ;;  %v6587_v4 = vshll.u32 %v10844_v18, 16  ;;  %v6576_v25 = vsel %vm11032_vm4, %v6571_v16, %v6575_v48  ;;  %16707 = vst [vmem:[#allocation88_spill] sm:$0xff] %v14679_v7  ;;  %v6597_v63 = vshll.u32 %v10845_v29, 16  ;;  %v16711_v52 = vld [vmem:[#allocation131_spill] sm:$0xff]  ;;  %v10141_v48 = vpop.f32.mrf.mxu1 }
 0x227   : > { %10314 = vmatprep.mubr.msk.bf16.mxu1 %vm1108_vm3, %v16704_v22  ;;  %v6593_v54 = vrot.slane %v16706_v1, 4  ;;  %v14682_v56 = vadd.f32 %v10210_v49, %v3532_v31  ;;  %v3530_v10 = vadd.f32 %v3335_v34, %v16709_v13  ;;  %v16710_v22 = vld [vmem:[#allocation8_spill] sm:$0xff]  ;;  %v14689_v17 = vcombine.low %v6566_v23, %v6576_v25  ;;  %v16715_v16 = vld [vmem:[#allocation133_spill] sm:$0xff]  ;;  %v10846_v23 = vld [vmem:[%s11005_s7 + $0x8c] sm:$0xf] }
 0x228   : > { %v6584_v2 = vor.u32 %v6583_v39, %v6580_v11  ;;  %v16712_v1 = vcombine.low %v16710_v22, %v16711_v52  ;;  %v16714_v11 = vld [vmem:[#allocation132_spill] sm:$0xff]  ;;  %v6589_v39 = vrot.slane %v6587_v4, 5  ;;  %v6599_v34 = vrot.slane %v6597_v63, 5  ;;  %v3338_v40 = vpop.f32.mrf.mxu1  ;;  %v16720_v63 = vld [vmem:[#allocation106_spill] sm:$0xff] }
 0x229   : > { %16708 = vst [vmem:[#allocation83_spill] sm:$0xff] %v14682_v56  ;;  %16713 = vst [vmem:[#allocation90_spill] sm:$0xff] %v14689_v17  ;;  %v16716_v35 = vcombine.low %v16714_v11, %v16715_v16  ;;  %v6601_v31 = vshrl.u32 %v10845_v29, 16  ;;  %v14697_v13 = vadd.f32 %v4608_v60, %v3530_v10  ;;  %v16718_v22 = vld [vmem:[#allocation104_spill] sm:$0xff]  ;;  %v9500_v25 = vrot.slane %v10846_v23, 9  ;;  %v16721_v23 = vld [vmem:[#allocation7_spill] sm:$0xff] }
 0x22a   : > { %10385 = vmatmul.mubr.msk.bf16.gmra.mxu0 %vm1108_vm3, %v16712_v1  ;;  %v6585_v49 = vrot.slane %v6584_v2, 4  ;;  %v3533_v52 = vadd.f32 %v10141_v48, %v16718_v22  ;;  %v4624_v1 = vpop.f32.mrf.mxu0  ;;  %v7713_v56 = vrot.slane %v10844_v18, 5  ;;  %v6594_v11 = vor.u32 %v6593_v54, %v6589_v39  ;;  %v10144_v18 = vpop.f32.mrf.mxu1  ;;  %v16727_v7 = vld [vmem:[#allocation50_spill] sm:$0xff]  ;;  %v16733_v3 = vld [vmem:[#allocation136_spill] sm:$0xff] }
 0x22b   : > { %10388 = vmatprep.mubr.msk.bf16.mxu0 %vm1108_vm3, %v16716_v35  ;;  %16717 = vst [vmem:[#allocation26_spill] sm:$0xff] %v14697_v13  ;;  %v6603_v35 = vrot.slane %v6601_v31, 4  ;;  %v7716_v2 = vrot.slane %v10845_v29, 5  ;;  %v3531_v60 = vadd.f32 %v3338_v40, %v16720_v63  ;;  %v16722_v13 = vld [vmem:[#allocation48_spill] sm:$0xff]  ;;  %v9300_v29 = vld [vmem:[%s11005_s7 + $0x9c] sm:$0x1] }
 0x22c   : > { %v6590_v16 = vsel %vm11032_vm4, %v6585_v49, %v6589_v39  ;;  %v14703_v4 = vadd.f32 %v10211_v32, %v3533_v52  ;;  %v10215_v10 = vpop.f32.mrf.mxu0  ;;  %v14708_v48 = vsel %vm11451_vm7, %v9500_v25, %v7713_v56  ;;  %v7715_v22 = vrot.slane %v7713_v56, 4  ;;  %v10847_v32 = vld [vmem:[%s11005_s7 + $0x98] sm:$0xf]  ;;  %v16726_v25 = vld [vmem:[#allocation135_spill] sm:$0xff] }
 0x22d   : > { %v16723_v17 = vcombine.low %v16721_v23, %v16722_v13  ;;  %v6595_v49 = vrot.slane %v6594_v11, 4  ;;  %v6604_v54 = vor.u32 %v6603_v35, %v6599_v34  ;;  %v7718_v39 = vrot.slane %v7716_v2, 4  ;;  %v16725_v40 = vld [vmem:[#allocation109_spill] sm:$0xff]  ;;  %v3351_v23 = vpop.f32.mrf.mxu1 }
 0x22e   : > { %16719 = vst [vmem:[#allocation38_spill] sm:$0xff] %v14703_v4  ;;  %v6607_v52 = vshll.u32 %v10847_v32, 16  ;;  %v14716_v31 = vadd.f32 %v4611_v38, %v3531_v60  ;;  %v3536_v63 = vadd.f32 %v10144_v18, %v16725_v40  ;;  %v4627_v4 = vpop.f32.mrf.mxu0  ;;  %v16728_v56 = vcombine.low %v16726_v25, %v16727_v7  ;;  %v16732_v7 = vld [vmem:[#allocation110_spill] sm:$0xff] }
 0x22f   : > { %10315 = vmatmul.mubr.msk.bf16.gmra.mxu1 %vm1108_vm3, %v16723_v17  ;;  %v14725_v13 = vsel %vm11451_vm7, %v7715_v22, %v7716_v2  ;;  %v16729_v17 = vld [vmem:[#allocation93_spill] sm:$0xff]  ;;  %v6600_v38 = vsel %vm11032_vm4, %v6595_v49, %v6599_v34  ;;  %v6605_v60 = vrot.slane %v6604_v54, 4  ;;  %v3534_v25 = vadd.f32 %v3351_v23, %v16732_v7  ;;  %v10145_v33 = vpop.f32.mrf.mxu1  ;;  %v16740_v7 = vld [vmem:[#allocation96_spill] sm:$0xff] }
 0x230   : > { %16724 = vst [vmem:[#allocation28_spill] sm:$0xff] %v14716_v31  ;;  %10318 = vmatprep.mubr.msk.bf16.mxu1 %vm1108_vm3, %v16728_v56  ;;  %v16730_v11 = vshrl.u32 %v16729_v17, 16  ;;  %v6609_v40 = vrot.slane %v6607_v52, 5  ;;  %v14733_v31 = vadd.f32 %v10214_v47, %v3536_v63  ;;  %v10218_v56 = vpop.f32.mrf.mxu0  ;;  %v16734_v2 = vld [vmem:[#allocation137_spill] sm:$0xff]  ;;  %v14740_v17 = vcombine.low %v6590_v16, %v6600_v38 }
 0x231   : > { %v16735_v22 = vcombine.low %v16733_v3, %v16734_v2  ;;  %v16737_v34 = vcombine.low %v14265_v50, %v14281_v42  ;;  %v7719_v54 = vrot.slane %v10847_v32, 5  ;;  %v7722_v52 = vrot.slane %v9300_v29, 5  ;;  %v16739_v3 = vld [vmem:[#allocation114_spill] sm:$0xff]  ;;  %v3354_v2 = vpop.f32.mrf.mxu1 }
 0x232   : > { %v6613_v35 = vrot.slane %v16730_v11, 4  ;;  %16731 = vst [vmem:[#allocation15_spill] sm:$0xff] %v14733_v31  ;;  %16736 = vst [vmem:[#allocation56_spill] sm:$0xff] %v14740_v17  ;;  %v6617_v11 = vshll.u32 %v9300_v29, 16  ;;  %v6610_v47 = vsel %vm11032_vm4, %v6605_v60, %v6609_v40  ;;  %v14748_v63 = vadd.f32 %v4624_v1, %v3534_v25  ;;  %v4640_v16 = vpop.f32.mrf.mxu0  ;;  %v16743_v60 = vld [vmem:[#allocation116_spill] sm:$0xff]  ;;  %v16747_v31 = vld [vmem:[#allocation9_spill] sm:$0xff] }
 0x233   : > { %10389 = vmatmul.mubr.msk.bf16.gmra.mxu0 %vm1108_vm3, %v16735_v22  ;;  %v3537_v23 = vadd.f32 %v10145_v33, %v16739_v3  ;;  %v16741_v22 = vshrl.u32 %v16740_v7, 16  ;;  %v14755_v42 = vsel %vm11451_vm7, %v7718_v39, %v7719_v54  ;;  %v16742_v32 = vshll.u32 %v16740_v7, 16  ;;  %v10848_v25 = vld [vmem:[%s11005_s7 + $0xa4] sm:$0xf] }
 0x234   : > { %10468 = vmatprep.mubr.msk.bf16.mxu0 %vm1108_vm3, %v16737_v34  ;;  %v6614_v49 = vor.u32 %v6613_v35, %v6609_v40  ;;  %16738 = vst [vmem:[#allocation13_spill] sm:$0xff] %v14748_v63  ;;  %v6619_v38 = vrot.slane %v6617_v11, 5  ;;  %v7721_v35 = vrot.slane %v7719_v54, 4  ;;  %v3535_v33 = vadd.f32 %v3354_v2, %v16743_v60  ;;  %v10219_v40 = vpop.f32.mrf.mxu0  ;;  %v16744_v34 = vld [vmem:[#allocation97_spill] sm:$0xff]  ;;  %v10148_v63 = vpop.f32.mrf.mxu1  ;;  %v10849_v54 = vld [vmem:[%s11005_s7 + $0xa8] sm:$0xf] }
 0x235   : > { %v6624_v18 = vrot.slane %v16741_v22, 4  ;;  %v6627_v29 = vrot.slane %v16742_v32, 5  ;;  %v14759_v1 = vadd.f32 %v10215_v10, %v3537_v23  ;;  %v6631_v11 = vshll.u32 %v10848_v25, 16  ;;  %v16749_v32 = vld [vmem:[#allocation117_spill] sm:$0xff] }
 0x236   : > { %v6615_v50 = vrot.slane %v6614_v49, 4  ;;  %v16745_v3 = vshrl.u32 %v16744_v34, 16  ;;  %v16746_v49 = vld [vmem:[#allocation31_spill] sm:$0xff]  ;;  %v14773_v10 = vsel %vm11451_vm7, %v7721_v35, %v7722_v52  ;;  %v6641_v23 = vshll.u32 %v10849_v54, 16  ;;  %v4643_v34 = vpop.f32.mrf.mxu0 }
 0x237   : > { %v16748_v17 = vcombine.low %v16746_v49, %v16747_v31  ;;  %v6628_v2 = vor.u32 %v6627_v29, %v6624_v18  ;;  %v14776_v7 = vadd.f32 %v4627_v4, %v3535_v33  ;;  %v3540_v60 = vadd.f32 %v10148_v63, %v16749_v32  ;;  %v16750_v4 = vld [vmem:[#allocation118_spill] sm:$0xff] }
 0x238   : > { %v6637_v22 = vrot.slane %v16745_v3, 4  ;;  %v6620_v39 = vsel %vm11032_vm4, %v6615_v50, %v6619_v38  ;;  %v3367_v38 = vpop.f32.mrf.mxu1  ;;  %v6633_v50 = vrot.slane %v6631_v11, 5  ;;  %v6643_v18 = vrot.slane %v6641_v23, 5  ;;  %v10222_v3 = vpop.f32.mrf.mxu0 }
 0x239   : > { %10319 = vmatmul.mubr.msk.bf16.gmra.mxu1 %vm1108_vm3, %v16748_v17  ;;  %v14781_v31 = vcombine.low %v6610_v47, %v6620_v39  ;;  %v6629_v52 = vrot.slane %v6628_v2, 4  ;;  %v6645_v35 = vshrl.u32 %v10849_v54, 16  ;;  %v14785_v29 = vadd.f32 %v10218_v56, %v3540_v60  ;;  %v10851_v17 = vld [vmem:[%s11005_s7 + $0xac] sm:$0xf] }
 0x23a   : > { %10398 = vmatprep.mubr.msk.bf16.mxu1 %vm1108_vm3, %v14261_v6  ;;  %v3538_v33 = vadd.f32 %v3367_v38, %v16750_v4  ;;  %v16751_v63 = vcombine.low %v14285_v62, %v14298_v21  ;;  %v10850_v6 = vld [vmem:[%s11005_s7 + $0xa0] sm:$0xf]  ;;  %v7726_v49 = vrot.slane %v10848_v25, 5  ;;  %v10149_v39 = vpop.f32.mrf.mxu1  ;;  %v16752_v11 = vcombine.low %v14327_v27, %v14351_v9  ;;  %v16753_v21 = vld [vmem:[#allocation75_spill] sm:$0xff]  ;;  %v4656_v38 = vpop.f32.mrf.mxu0 }
 0x23b   : > { %v9501_v47 = vrot.slane %v10850_v6, 9  ;;  %v6634_v56 = vsel %vm11032_vm4, %v6629_v52, %v6633_v50  ;;  %v6638_v2 = vor.u32 %v6637_v22, %v6633_v50  ;;  %v6647_v23 = vrot.slane %v6645_v35, 4 }
 0x23c   : > { %10469 = vmatmul.mubr.msk.bf16.vlgmr.msra.gmra.mxu0 %vm1108_vm3, %v16751_v63  ;;  %v7729_v32 = vrot.slane %v10849_v54, 5  ;;  %v14799_v62 = vadd.f32 %v4640_v16, %v3538_v33  ;;  %v3541_v60 = vadd.f32 %v10149_v39, %v16753_v21  ;;  %v7728_v4 = vrot.slane %v7726_v49, 4  ;;  %v3370_v27 = vpop.f32.mrf.mxu1  ;;  %v16754_v54 = vld [vmem:[#allocation120_spill] sm:$0xff]  ;;  %v10223_v50 = vpop.f32.mrf.mxu0 }
 0x23d   : > { %10472 = vmatprep.mubr.msk.bf16.mxu0 %vm1108_vm3, %v16752_v11  ;;  %v14804_v25 = vsel %vm11451_vm7, %v9501_v47, %v7726_v49  ;;  %v6639_v9 = vrot.slane %v6638_v2, 4  ;;  %v6648_v63 = vor.u32 %v6647_v23, %v6643_v18  ;;  %v9305_v11 = vld [vmem:[%s11005_s7 + $0xb0] sm:$0x1]  ;;  %v6651_v52 = vshll.u32 %v10851_v17, 16 }
 0x23e   : > { %v7731_v6 = vrot.slane %v7729_v32, 4  ;;  %v14808_v22 = vadd.f32 %v10219_v40, %v3541_v60  ;;  %v3539_v16 = vadd.f32 %v3370_v27, %v16754_v54  ;;  %v14813_v35 = vsel %vm11451_vm7, %v7728_v4, %v7729_v32  ;;  %v10152_v49 = vpop.f32.mrf.mxu1  ;;  %v16756_v60 = vld [vmem:[#allocation44_spill] sm:$0xff]  ;;  %v4659_v4 = vpop.f32.mrf.mxu0 }
 0x23f   : > { %v16755_v33 = vshrl.u32 %v13530_v24, 16  ;;  %v6644_v39 = vsel %vm11032_vm4, %v6639_v9, %v6643_v18  ;;  %v6649_v2 = vrot.slane %v6648_v63, 4  ;;  %v6653_v23 = vrot.slane %v6651_v52, 5 }
 0x240   : > { %v14823_v21 = vadd.f32 %v4643_v34, %v3539_v16  ;;  %v3544_v32 = vadd.f32 %v10152_v49, %v16756_v60  ;;  %v14828_v24 = vcombine.low %v6634_v56, %v6644_v39  ;;  %v6661_v27 = vshll.u32 %v9305_v11, 16  ;;  %v16757_v34 = vld [vmem:[#allocation45_spill] sm:$0xff] }
 0x241   : > { %v6657_v47 = vrot.slane %v16755_v33, 4  ;;  %10399 = vmatmul.mubr.msk.bf16.vlgmr.msra.gmra.mxu1 %vm1108_vm3, %v14277_v14  ;;  %v3383_v14 = vpop.f32.mrf.mxu1  ;;  %v6654_v18 = vsel %vm11032_vm4, %v6649_v2, %v6653_v23  ;;  %v7732_v63 = vrot.slane %v10851_v17, 5  ;;  %v7735_v54 = vrot.slane %v9305_v11, 5  ;;  %v10226_v33 = vpop.f32.mrf.mxu0 }
 0x242   : > { %10402 = vmatprep.mubr.msk.bf16.mxu1 %vm1108_vm3, %v14364_v43  ;;  %v14832_v52 = vadd.f32 %v10222_v3, %v3544_v32  ;;  %v3542_v16 = vadd.f32 %v3383_v14, %v16757_v34  ;;  %v16758_v49 = vcombine.low %v14379_v58, %v14397_v20  ;;  %v6663_v43 = vrot.slane %v6661_v27, 5  ;;  %v10852_v14 = vld [vmem:[%s11005_s7 + $0xb8] sm:$0xf] }
 0x243   : > { %v6658_v9 = vor.u32 %v6657_v47, %v6653_v23  ;;  %v16759_v56 = vshrl.u32 %v13557_v30, 16  ;;  %v10153_v60 = vpop.f32.mrf.mxu1  ;;  %v16760_v17 = vcombine.low %v14430_v51, %v14439_v15  ;;  %v14847_v11 = vsel %vm11451_vm7, %v7731_v6, %v7732_v63  ;;  %v16762_v23 = vld [vmem:[#allocation123_spill] sm:$0xff]  ;;  %v4672_v27 = vpop.f32.mrf.mxu0 }
 0x244   : > { %10473 = vmatmul.mubr.msk.bf16.gmra.mxu0 %vm1108_vm3, %v16758_v49  ;;  %v7734_v47 = vrot.slane %v7732_v63, 4  ;;  %v16761_v58 = vshll.u32 %v13557_v30, 16  ;;  %v14851_v2 = vadd.f32 %v4656_v38, %v3542_v16  ;;  %v3545_v32 = vadd.f32 %v10153_v60, %v16762_v23  ;;  %v10853_v63 = vld [vmem:[%s11005_s7 + $0xbc] sm:$0xf] }
 0x245   : > { %v6668_v39 = vrot.slane %v16759_v56, 4  ;;  %10476 = vmatprep.mubr.msk.bf16.mxu0 %vm1108_vm3, %v16760_v17  ;;  %v6659_v3 = vrot.slane %v6658_v9, 4  ;;  %v6675_v34 = vshll.u32 %v10852_v14, 16  ;;  %v16763_v51 = vshrl.u32 %v13560_v57, 16  ;;  %v3386_v49 = vpop.f32.mrf.mxu1  ;;  %v16764_v56 = vld [vmem:[#allocation85_spill] sm:$0xff]  ;;  %v10227_v17 = vpop.f32.mrf.mxu0 }
 0x246   : > { %v6671_v20 = vrot.slane %v16761_v58, 5  ;;  %v14861_v6 = vsel %vm11451_vm7, %v7734_v47, %v7735_v54  ;;  %v6685_v38 = vshll.u32 %v10853_v63, 16  ;;  %v14864_v16 = vadd.f32 %v10223_v50, %v3545_v32  ;;  %v16765_v50 = vld [vmem:[#allocation126_spill] sm:$0xff] }
 0x247   : > { %v6681_v15 = vrot.slane %v16763_v51, 4  ;;  %v6664_v9 = vsel %vm11032_vm4, %v6659_v3, %v6663_v43  ;;  %v3543_v60 = vadd.f32 %v3386_v49, %v16764_v56  ;;  %v10156_v23 = vpop.f32.mrf.mxu1  ;;  %v6677_v43 = vrot.slane %v6675_v34, 5  ;;  %v4675_v32 = vpop.f32.mrf.mxu0  ;;  %v16766_v56 = vld [vmem:[#allocation21_spill] sm:$0xff] }
 0x248   : > { %v6672_v30 = vor.u32 %v6671_v20, %v6668_v39  ;;  %v14867_v58 = vcombine.low %v6654_v18, %v6664_v9  ;;  %v6687_v39 = vrot.slane %v6685_v38, 5  ;;  %v6689_v3 = vshrl.u32 %v10853_v63, 16  ;;  %v10854_v18 = vld [vmem:[%s11005_s7 + $0xb4] sm:$0xf] }
 0x249   : > { %10403 = vmatmul.mubr.msk.bf16.gmra.mxu1 %vm1108_vm3, %v14407_v44  ;;  %v14873_v47 = vadd.f32 %v4659_v4, %v3543_v60  ;;  %v3548_v20 = vadd.f32 %v10156_v23, %v16765_v50  ;;  %v9502_v51 = vrot.slane %v10854_v18, 9  ;;  %v7739_v49 = vrot.slane %v10852_v14, 5  ;;  %v3399_v9 = vpop.f32.mrf.mxu1  ;;  %v10230_v23 = vpop.f32.mrf.mxu0 }
 0x24a   : > { %v6673_v54 = vrot.slane %v6672_v30, 4  ;;  %10406 = vmatprep.mubr.msk.bf16.mxu1 %vm1108_vm3, %v14458_v36  ;;  %v6682_v34 = vor.u32 %v6681_v15, %v6677_v43  ;;  %v6691_v30 = vrot.slane %v6689_v3, 4  ;;  %v7742_v38 = vrot.slane %v10853_v63, 5  ;;  %v9310_v3 = vld [vmem:[%s11005_s7 + $0xc4] sm:$0x1] }
 0x24b   : > { %v14881_v4 = vadd.f32 %v10226_v33, %v3548_v20  ;;  %v3546_v60 = vadd.f32 %v3399_v9, %v16766_v56  ;;  %v16767_v36 = vcombine.low %v14477_v28, %v14491_v19  ;;  %v14890_v14 = vsel %vm11451_vm7, %v9502_v51, %v7739_v49  ;;  %v10855_v20 = vld [vmem:[%s11005_s7 + $0xc0] sm:$0xf]  ;;  %v16769_v19 = vld [vmem:[#allocation127_spill] sm:$0xff]  ;;  %v4688_v56 = vpop.f32.mrf.mxu0 }
 0x24c   : > { %v6678_v44 = vsel %vm11032_vm4, %v6673_v54, %v6677_v43  ;;  %v7741_v50 = vrot.slane %v7739_v49, 4  ;;  %v10157_v54 = vpop.f32.mrf.mxu1  ;;  %v16768_v15 = vcombine.low %v14524_v55, %v14537_v26  ;;  %v6683_v33 = vrot.slane %v6682_v34, 4 }
 0x24d   : > { %10477 = vmatmul.mubr.msk.bf16.gmra.mxu0 %vm1108_vm3, %v16767_v36  ;;  %v6692_v63 = vor.u32 %v6691_v30, %v6687_v39  ;;  %v7744_v43 = vrot.slane %v7742_v38, 4  ;;  %v6695_v18 = vshll.u32 %v10855_v20, 16  ;;  %v14898_v28 = vadd.f32 %v4672_v27, %v3546_v60 }
 0x24e   : > { %10480 = vmatprep.mubr.msk.bf16.mxu0 %vm1108_vm3, %v16768_v15  ;;  %v3549_v9 = vadd.f32 %v10157_v54, %v16769_v19  ;;  %v14903_v51 = vsel %vm11451_vm7, %v7741_v50, %v7742_v38  ;;  %v16770_v49 = vshrl.u32 %v16559_v46, 16  ;;  %v3402_v26 = vpop.f32.mrf.mxu1  ;;  %v6688_v34 = vsel %vm11032_vm4, %v6683_v33, %v6687_v39  ;;  %v16771_v54 = vld [vmem:[#allocation128_spill] sm:$0xff]  ;;  %v10231_v19 = vpop.f32.mrf.mxu0 }
 0x24f   : > { %v6693_v30 = vrot.slane %v6692_v63, 4  ;;  %v6697_v27 = vrot.slane %v6695_v18, 5  ;;  %v3547_v15 = vadd.f32 %v3402_v26, %v16771_v54  ;;  %v14914_v57 = vcombine.low %v6678_v44, %v6688_v34 }
 0x250   : > { %v6701_v55 = vrot.slane %v16770_v49, 4  ;;  %v14911_v60 = vadd.f32 %v10227_v17, %v3549_v9  ;;  %v6705_v38 = vshll.u32 %v9310_v3, 16  ;;  %v10160_v50 = vpop.f32.mrf.mxu1  ;;  %v7745_v33 = vrot.slane %v10855_v20, 5  ;;  %v16772_v17 = vld [vmem:[#allocation41_spill] sm:$0xff]  ;;  %v4691_v49 = vpop.f32.mrf.mxu0 }
 0x251   : > { %10407 = vmatmul.mubr.msk.bf16.gmra.mxu1 %vm1108_vm3, %v14497_v5  ;;  %v6698_v46 = vsel %vm11032_vm4, %v6693_v30, %v6697_v27  ;;  %v7748_v63 = vrot.slane %v9310_v3, 5  ;;  %v14920_v18 = vadd.f32 %v4675_v32, %v3547_v15  ;;  %v3552_v9 = vadd.f32 %v10160_v50, %v16772_v17  ;;  %v10856_v50 = vld [vmem:[%s11005_s7 + $0xcc] sm:$0xf]  ;;  %v16777_v17 = vld [vmem:[#allocation60_spill] sm:$0xff] }
 0x252   : > { %v6702_v39 = vor.u32 %v6701_v55, %v6697_v27  ;;  %10410 = vmatprep.mubr.msk.bf16.mxu1 %vm1108_vm3, %v14548_v41  ;;  %v6707_v44 = vrot.slane %v6705_v38, 5  ;;  %v16773_v26 = vshrl.u32 %v13615_v61, 16  ;;  %v3415_v5 = vpop.f32.mrf.mxu1  ;;  %v14929_v20 = vsel %vm11451_vm7, %v7744_v43, %v7745_v33  ;;  %v16775_v27 = vld [vmem:[#allocation129_spill] sm:$0xff]  ;;  %v10234_v41 = vpop.f32.mrf.mxu0 }
 0x253   : > { %v7747_v3 = vrot.slane %v7745_v33, 4  ;;  %v16774_v32 = vshll.u32 %v13615_v61, 16  ;;  %v14933_v30 = vadd.f32 %v10230_v23, %v3552_v9  ;;  %v3550_v15 = vadd.f32 %v3415_v5, %v16775_v27 }
 0x254   : > { %v6712_v34 = vrot.slane %v16773_v26, 4  ;;  %v6703_v54 = vrot.slane %v6702_v39, 4  ;;  %v16776_v38 = vcombine.low %v14567_v45, %v14589_v12  ;;  %v6719_v39 = vshll.u32 %v10856_v50, 16  ;;  %v10161_v36 = vpop.f32.mrf.mxu1  ;;  %v10857_v12 = vld [vmem:[%s11005_s7 + $0xd0] sm:$0xf] }
 0x255   : > { %v6715_v55 = vrot.slane %v16774_v32, 5  ;;  %v16778_v26 = vshrl.u32 %v16777_v17, 16  ;;  %v16779_v61 = vcombine.low %v14618_v59, %v14631_v8  ;;  %v14951_v33 = vsel %vm11451_vm7, %v7747_v3, %v7748_v63  ;;  %v16781_v32 = vld [vmem:[#allocation130_spill] sm:$0xff] }
 0x256   : > { %10481 = vmatmul.mubr.msk.bf16.gmra.mxu0 %vm1108_vm3, %v16776_v38  ;;  %v6708_v23 = vsel %vm11032_vm4, %v6703_v54, %v6707_v44  ;;  %v6729_v9 = vshll.u32 %v10857_v12, 16  ;;  %v14954_v5 = vadd.f32 %v4688_v56, %v3550_v15  ;;  %v3553_v27 = vadd.f32 %v10161_v36, %v16781_v32  ;;  %v4704_v38 = vpop.f32.mrf.mxu0  ;;  %v3418_v8 = vpop.f32.mrf.mxu1  ;;  %v10858_v56 = vld [vmem:[%s11005_s7 + $0xc8] sm:$0xf] }
 0x257   : > { %v6725_v43 = vrot.slane %v16778_v26, 4  ;;  %10484 = vmatprep.mubr.msk.bf16.mxu0 %vm1108_vm3, %v16779_v61  ;;  %v6716_v45 = vor.u32 %v6715_v55, %v6712_v34  ;;  %v14957_v17 = vcombine.low %v6698_v46, %v6708_v23  ;;  %v6721_v54 = vrot.slane %v6719_v39, 5  ;;  %v16783_v34 = vld [vmem:[#allocation55_spill] sm:$0xff] }
 0x258   : > { %16780 = vst [vmem:[#allocation20_spill] sm:$0xff] %v14954_v5  ;;  %v6731_v26 = vrot.slane %v6729_v9, 5  ;;  %v6733_v63 = vshrl.u32 %v10857_v12, 16  ;;  %v14961_v3 = vadd.f32 %v10231_v19, %v3553_v27  ;;  %v3551_v55 = vadd.f32 %v3418_v8, %v16783_v34  ;;  %v10235_v61 = vpop.f32.mrf.mxu0  ;;  %v10164_v36 = vpop.f32.mrf.mxu1  ;;  %v16785_v9 = vld [vmem:[#allocation134_spill] sm:$0xff]  ;;  %v16786_v8 = vld [vmem:[#allocation81_spill] sm:$0xff] }
 0x259   : > { %v6717_v44 = vrot.slane %v6716_v45, 4  ;;  %v9503_v15 = vrot.slane %v10858_v56, 9  ;;  %v7752_v40 = vrot.slane %v10856_v50, 5  ;;  %10411 = vmatmul.mubr.msk.bf16.gmra.mxu1 %vm1108_vm3, %v14595_v53  ;;  %v6726_v39 = vor.u32 %v6725_v43, %v6721_v54  ;;  %v9315_v43 = vld [vmem:[%s11005_s7 + $0xd8] sm:$0x1] }
 0x25a   : > { %16782 = vst [vmem:[#allocation42_spill] sm:$0xff] %v14961_v3  ;;  %v6735_v23 = vrot.slane %v6733_v63, 4  ;;  %v7755_v45 = vrot.slane %v10857_v12, 5  ;;  %v14969_v19 = vadd.f32 %v4691_v49, %v3551_v55  ;;  %v3556_v32 = vadd.f32 %v10164_v36, %v16785_v9  ;;  %v4707_v27 = vpop.f32.mrf.mxu0  ;;  %10414 = vmatprep.mubr.msk.bf16.mxu1 %vm1108_vm3, %v16786_v8  ;;  %v3431_v34 = vpop.f32.mrf.mxu1  ;;  %v16788_v63 = vld [vmem:[#allocation34_spill] sm:$0xff]  ;;  %v16789_v9 = vld [vmem:[#allocation35_spill] sm:$0xff] }
 0x25b   : > { %v6722_v46 = vsel %vm11032_vm4, %v6717_v44, %v6721_v54  ;;  %v14976_v50 = vsel %vm11451_vm7, %v9503_v15, %v7752_v40  ;;  %v7754_v53 = vrot.slane %v7752_v40, 4  ;;  %v6727_v56 = vrot.slane %v6726_v39, 4  ;;  %v10859_v54 = vld [vmem:[%s11005_s7 + $0xd4] sm:$0xf]  ;;  %v16792_v15 = vld [vmem:[#allocation105_spill] sm:$0xff] }
 0x25c   : > { %16784 = vst [vmem:[#allocation19_spill] sm:$0xff] %v14969_v19  ;;  %v6736_v59 = vor.u32 %v6735_v23, %v6731_v26  ;;  %v7757_v44 = vrot.slane %v7755_v45, 4  ;;  %v6739_v12 = vshll.u32 %v10859_v54, 16  ;;  %v14980_v49 = vadd.f32 %v10234_v41, %v3556_v32  ;;  %v10238_v36 = vpop.f32.mrf.mxu0  ;;  %v16790_v19 = vld [vmem:[#allocation88_spill] sm:$0xff]  ;;  %v10165_v3 = vpop.f32.mrf.mxu1 }
 0x25d   : > { %v3554_v55 = vadd.f32 %v3431_v34, %v16788_v63  ;;  %v16791_v8 = vcombine.low %v16789_v9, %v16790_v19  ;;  %v14989_v40 = vsel %vm11451_vm7, %v7754_v53, %v7755_v45  ;;  %v16793_v39 = vshrl.u32 %v16792_v15, 16  ;;  %v16796_v45 = vld [vmem:[#allocation138_spill] sm:$0xff]  ;;  %v16799_v19 = vld [vmem:[#allocation107_spill] sm:$0xff] }
 0x25e   : > { %16787 = vst [vmem:[#allocation4_spill] sm:$0xff] %v14980_v49  ;;  %v16794_v41 = vcombine.low %v14708_v48, %v14725_v13  ;;  %v6732_v32 = vsel %vm11032_vm4, %v6727_v56, %v6731_v26  ;;  %v6737_v34 = vrot.slane %v6736_v59, 4  ;;  %v6741_v63 = vrot.slane %v6739_v12, 5  ;;  %v3434_v49 = vpop.f32.mrf.mxu1  ;;  %v16798_v56 = vld [vmem:[#allocation43_spill] sm:$0xff] }
 0x25f   : > { %10485 = vmatmul.mubr.msk.bf16.gmra.mxu0 %vm1108_vm3, %v16791_v8  ;;  %v6745_v23 = vrot.slane %v16793_v39, 4  ;;  %v15001_v9 = vadd.f32 %v4704_v38, %v3554_v55  ;;  %v3557_v53 = vadd.f32 %v10165_v3, %v16796_v45  ;;  %v4720_v8 = vpop.f32.mrf.mxu0  ;;  %v15004_v15 = vcombine.low %v6722_v46, %v6732_v32  ;;  %v16801_v32 = vld [vmem:[#allocation90_spill] sm:$0xff] }
 0x260   : > { %10488 = vmatprep.mubr.msk.bf16.mxu0 %vm1108_vm3, %v16794_v41  ;;  %v6749_v39 = vshll.u32 %v9315_v43, 16  ;;  %v6742_v48 = vsel %vm11032_vm4, %v6737_v34, %v6741_v63  ;;  %v7758_v41 = vrot.slane %v10859_v54, 5  ;;  %v7761_v26 = vrot.slane %v9315_v43, 5  ;;  %v10168_v46 = vpop.f32.mrf.mxu1  ;;  %v16803_v34 = vld [vmem:[#allocation94_spill] sm:$0xff] }
 0x261   : > { %16795 = vst [vmem:[#allocation59_spill] sm:$0xff] %v15001_v9  ;;  %v6746_v13 = vor.u32 %v6745_v23, %v6741_v63  ;;  %v15008_v59 = vadd.f32 %v10235_v61, %v3557_v53  ;;  %v3555_v12 = vadd.f32 %v3434_v49, %v16798_v56  ;;  %v10239_v38 = vpop.f32.mrf.mxu0  ;;  %v16800_v3 = vshrl.u32 %v16799_v19, 16  ;;  %10415 = vmatmul.mubr.msk.bf16.gmra.mxu1 %vm1108_vm3, %v16801_v32  ;;  %v10860_v56 = vld [vmem:[%s11005_s7 + $0xe0] sm:$0xf]  ;;  %v16805_v32 = vld [vmem:[#allocation108_spill] sm:$0xff] }
 0x262   : > { %v6751_v55 = vrot.slane %v6749_v39, 5  ;;  %v15017_v54 = vsel %vm11451_vm7, %v7757_v44, %v7758_v41  ;;  %v7760_v43 = vrot.slane %v7758_v41, 4  ;;  %v16802_v61 = vshll.u32 %v16799_v19, 16  ;;  %v16804_v39 = vld [vmem:[#allocation56_spill] sm:$0xff]  ;;  %v3447_v5 = vpop.f32.mrf.mxu1  ;;  %v10861_v41 = vld [vmem:[%s11005_s7 + $0xe4] sm:$0xf] }
 0x263   : > { %16797 = vst [vmem:[#allocation23_spill] sm:$0xff] %v15008_v59  ;;  %v6756_v45 = vrot.slane %v16800_v3, 4  ;;  %v6747_v9 = vrot.slane %v6746_v13, 4  ;;  %v15021_v49 = vadd.f32 %v4707_v27, %v3555_v12  ;;  %v3560_v63 = vadd.f32 %v10168_v46, %v16803_v34  ;;  %v4723_v53 = vpop.f32.mrf.mxu0  ;;  %10418 = vmatprep.mubr.msk.bf16.mxu1 %vm1108_vm3, %v16804_v39 }
 0x264   : > { %v6759_v23 = vrot.slane %v16802_v61, 5  ;;  %v6763_v3 = vshll.u32 %v10860_v56, 16  ;;  %v16806_v13 = vshrl.u32 %v16805_v32, 16  ;;  %v15033_v19 = vsel %vm11451_vm7, %v7760_v43, %v7761_v26  ;;  %v16807_v61 = vld [vmem:[#allocation53_spill] sm:$0xff]  ;;  %v10169_v26 = vpop.f32.mrf.mxu1 }
 0x265   : > { %v6752_v44 = vsel %vm11032_vm4, %v6747_v9, %v6751_v55  ;;  %v6773_v12 = vshll.u32 %v10861_v41, 16  ;;  %v15036_v46 = vadd.f32 %v10238_v36, %v3560_v63  ;;  %v3558_v34 = vadd.f32 %v3447_v5, %v16807_v61  ;;  %v10242_v39 = vpop.f32.mrf.mxu0 }
 0x266   : > { %v6769_v59 = vrot.slane %v16806_v13, 4  ;;  %v6760_v27 = vor.u32 %v6759_v23, %v6756_v45  ;;  %v16808_v32 = vcombine.low %v14755_v42, %v14773_v10  ;;  %v15043_v13 = vcombine.low %v6742_v48, %v6752_v44  ;;  %v16810_v42 = vld [vmem:[#allocation11_spill] sm:$0xff]  ;;  %v10862_v48 = vld [vmem:[%s11005_s7 + $0xdc] sm:$0xf] }
 0x267   : > { %v16809_v55 = vcombine.low %v14804_v25, %v14813_v35  ;;  %v6765_v45 = vrot.slane %v6763_v3, 5  ;;  %v6775_v5 = vrot.slane %v6773_v12, 5  ;;  %v6777_v43 = vshrl.u32 %v10861_v41, 16  ;;  %v4736_v63 = vpop.f32.mrf.mxu0  ;;  %v16812_v12 = vld [vmem:[#allocation57_spill] sm:$0xff] }
 0x268   : > { %10489 = vmatmul.mubr.msk.bf16.gmra.mxu0 %vm1108_vm3, %v16808_v32  ;;  %v6761_v36 = vrot.slane %v6760_v27, 4  ;;  %v15051_v23 = vadd.f32 %v4720_v8, %v3558_v34  ;;  %v3561_v10 = vadd.f32 %v10169_v26, %v16810_v42  ;;  %v9504_v44 = vrot.slane %v10862_v48, 9  ;;  %v3450_v32 = vpop.f32.mrf.mxu1 }
 0x269   : > { %10492 = vmatprep.mubr.msk.bf16.mxu0 %vm1108_vm3, %v16809_v55  ;;  %v7765_v61 = vrot.slane %v10860_v56, 5  ;;  %v6770_v35 = vor.u32 %v6769_v59, %v6765_v45  ;;  %v6779_v55 = vrot.slane %v6777_v43, 4  ;;  %v7768_v27 = vrot.slane %v10861_v41, 5  ;;  %v10243_v34 = vpop.f32.mrf.mxu0  ;;  %10419 = vmatmul.mubr.msk.bf16.gmra.mxu1 %vm1108_vm3, %v14781_v31  ;;  %v9320_v59 = vld [vmem:[%s11005_s7 + $0xec] sm:$0x1]  ;;  %v16814_v43 = vld [vmem:[#allocation16_spill] sm:$0xff] }
 0x26a   : > { %v6766_v25 = vsel %vm11032_vm4, %v6761_v36, %v6765_v45  ;;  %v15057_v3 = vadd.f32 %v10239_v38, %v3561_v10  ;;  %v3559_v8 = vadd.f32 %v3450_v32, %v16812_v12  ;;  %v10172_v56 = vpop.f32.mrf.mxu1  ;;  %v10863_v45 = vld [vmem:[%s11005_s7 + $0xe8] sm:$0xf]  ;;  %10422 = vmatprep.mubr.msk.bf16.mxu1 %vm1108_vm3, %v14828_v24 }
 0x26b   : > { %v15062_v26 = vsel %vm11451_vm7, %v9504_v44, %v7765_v61  ;;  %v7767_v42 = vrot.slane %v7765_v61, 4  ;;  %v6771_v48 = vrot.slane %v6770_v35, 4  ;;  %v6780_v9 = vor.u32 %v6779_v55, %v6775_v5  ;;  %v4739_v32 = vpop.f32.mrf.mxu0  ;;  %v16815_v61 = vld [vmem:[#allocation113_spill] sm:$0xff] }
 0x26c   : > { %16811 = vst [vmem:[#allocation32_spill] sm:$0xff] %v15057_v3  ;;  %v7770_v36 = vrot.slane %v7768_v27, 4  ;;  %v6783_v41 = vshll.u32 %v10863_v45, 16  ;;  %v15068_v38 = vadd.f32 %v4723_v53, %v3559_v8  ;;  %v3564_v10 = vadd.f32 %v10172_v56, %v16814_v43  ;;  %v3463_v55 = vpop.f32.mrf.mxu1  ;;  %v16817_v43 = vld [vmem:[#allocation61_spill] sm:$0xff] }
 0x26d   : > { %v15075_v44 = vsel %vm11451_vm7, %v7767_v42, %v7768_v27  ;;  %v16816_v31 = vshrl.u32 %v16815_v61, 16  ;;  %v6776_v12 = vsel %vm11032_vm4, %v6771_v48, %v6775_v5  ;;  %v6781_v3 = vrot.slane %v6780_v9, 4 }
 0x26e   : > { %16813 = vst [vmem:[#allocation92_spill] sm:$0xff] %v15068_v38  ;;  %v6785_v8 = vrot.slane %v6783_v41, 5  ;;  %v15083_v56 = vadd.f32 %v10242_v39, %v3564_v10  ;;  %v3562_v24 = vadd.f32 %v3463_v55, %v16817_v43  ;;  %v10246_v38 = vpop.f32.mrf.mxu0  ;;  %v16818_v27 = vcombine.low %v14847_v11, %v14861_v6  ;;  %v16821_v11 = vld [vmem:[#allocation51_spill] sm:$0xff] }
 0x26f   : > { %v6789_v35 = vrot.slane %v16816_v31, 4  ;;  %v15090_v42 = vcombine.low %v6766_v25, %v6776_v12  ;;  %v6793_v61 = vshll.u32 %v9320_v59, 16  ;;  %v10173_v31 = vpop.f32.mrf.mxu1  ;;  %v16819_v9 = vcombine.low %v14890_v14, %v14903_v51  ;;  %v16822_v12 = vld [vmem:[#allocation72_spill] sm:$0xff] }
 0x270   : > { %10493 = vmatmul.mubr.msk.bf16.gmra.mxu0 %vm1108_vm3, %v16818_v27  ;;  %v6786_v39 = vsel %vm11032_vm4, %v6781_v3, %v6785_v8  ;;  %v7771_v48 = vrot.slane %v10863_v45, 5  ;;  %v7774_v41 = vrot.slane %v9320_v59, 5  ;;  %v15098_v10 = vadd.f32 %v4736_v63, %v3562_v24  ;;  %v4752_v25 = vpop.f32.mrf.mxu0 }
 0x271   : > { %10496 = vmatprep.mubr.msk.bf16.mxu0 %vm1108_vm3, %v16819_v9  ;;  %v6790_v5 = vor.u32 %v6789_v35, %v6785_v8  ;;  %v3565_v6 = vadd.f32 %v10173_v31, %v16821_v11  ;;  %v6795_v55 = vrot.slane %v6793_v61, 5  ;;  %v16823_v43 = vshrl.u32 %v16822_v12, 16  ;;  %v3466_v53 = vpop.f32.mrf.mxu1  ;;  %v16825_v35 = vld [vmem:[#allocation52_spill] sm:$0xff]  ;;  %10423 = vmatmul.mubr.msk.bf16.gmra.mxu1 %vm1108_vm3, %v14867_v58 }
 0x272   : > { %16820 = vst [vmem:[#allocation25_spill] sm:$0xff] %v15098_v10  ;;  %v15105_v51 = vsel %vm11451_vm7, %v7770_v36, %v7771_v48  ;;  %v7773_v3 = vrot.slane %v7771_v48, 4  ;;  %v16824_v45 = vshll.u32 %v16822_v12, 16  ;;  %v3563_v8 = vadd.f32 %v3466_v53, %v16825_v35  ;;  %v10247_v24 = vpop.f32.mrf.mxu0  ;;  %v10864_v61 = vld [vmem:[%s11005_s7 + $0xf4] sm:$0xf]  ;;  %v16828_v12 = vld [vmem:[#allocation2_spill] sm:$0xff]  ;;  %10426 = vmatprep.mubr.msk.bf16.mxu1 %vm1108_vm3, %v14914_v57 }
 0x273   : > { %v6800_v27 = vrot.slane %v16823_v43, 4  ;;  %v6791_v14 = vrot.slane %v6790_v5, 4  ;;  %v15109_v63 = vadd.f32 %v10243_v34, %v3565_v6  ;;  %v6807_v31 = vshll.u32 %v10864_v61, 16  ;;  %v16826_v9 = vld [vmem:[#allocation12_spill] sm:$0xff]  ;;  %v10176_v10 = vpop.f32.mrf.mxu1  ;;  %v10865_v48 = vld [vmem:[%s11005_s7 + $0xf8] sm:$0xf] }
 0x274   : > { %v6803_v59 = vrot.slane %v16824_v45, 5  ;;  %v16827_v11 = vshrl.u32 %v16826_v9, 16  ;;  %v15121_v5 = vsel %vm11451_vm7, %v7773_v3, %v7774_v41  ;;  %v6817_v53 = vshll.u32 %v10865_v48, 16  ;;  %v4755_v35 = vpop.f32.mrf.mxu0  ;;  %v10866_v57 = vld [vmem:[%s11005_s7 + $0xf0] sm:$0xf] }
 0x275   : > { %v6796_v36 = vsel %vm11032_vm4, %v6791_v14, %v6795_v55  ;;  %v15124_v6 = vadd.f32 %v4739_v32, %v3563_v8  ;;  %v3568_v45 = vadd.f32 %v10176_v10, %v16828_v12  ;;  %v3479_v14 = vpop.f32.mrf.mxu1  ;;  %v6809_v3 = vrot.slane %v6807_v31, 5  ;;  %v16830_v32 = vld [vmem:[#allocation62_spill] sm:$0xff] }
 0x276   : > { %v6813_v43 = vrot.slane %v16827_v11, 4  ;;  %v6804_v34 = vor.u32 %v6803_v59, %v6800_v27  ;;  %v15129_v58 = vcombine.low %v6786_v39, %v6796_v36  ;;  %v6819_v27 = vrot.slane %v6817_v53, 5  ;;  %v10250_v11 = vpop.f32.mrf.mxu0  ;;  %v9325_v55 = vld [vmem:[%s11005_s7 + $0x100] sm:$0x1] }
 0x277   : > { %v6821_v59 = vshrl.u32 %v10865_v48, 16  ;;  %v15133_v9 = vadd.f32 %v10246_v38, %v3568_v45  ;;  %v3566_v8 = vadd.f32 %v3479_v14, %v16830_v32  ;;  %v16831_v10 = vcombine.low %v14929_v20, %v14951_v33  ;;  %v10177_v12 = vpop.f32.mrf.mxu1  ;;  %v16833_v33 = vld [vmem:[#allocation99_spill] sm:$0xff] }
 0x278   : > { %v6805_v41 = vrot.slane %v6804_v34, 4  ;;  %v9505_v39 = vrot.slane %v10866_v57, 9  ;;  %v7778_v36 = vrot.slane %v10864_v61, 5  ;;  %v16832_v31 = vcombine.low %v14976_v50, %v14989_v40  ;;  %v4768_v32 = vpop.f32.mrf.mxu0 }
 0x279   : > { %16829 = vst [vmem:[#allocation36_spill] sm:$0xff] %v15133_v9  ;;  %10497 = vmatmul.mubr.msk.bf16.gmra.mxu0 %vm1108_vm3, %v16831_v10  ;;  %v6814_v34 = vor.u32 %v6813_v43, %v6809_v3  ;;  %v6823_v53 = vrot.slane %v6821_v59, 4  ;;  %v7781_v45 = vrot.slane %v10865_v48, 5  ;;  %v15147_v20 = vadd.f32 %v4752_v25, %v3566_v8  ;;  %v3482_v50 = vpop.f32.mrf.mxu1  ;;  %v10867_v9 = vld [vmem:[%s11005_s7 + $0xfc] sm:$0xf]  ;;  %v16834_v48 = vld [vmem:[#allocation64_spill] sm:$0xff]  ;;  %10427 = vmatmul.mubr.msk.bf16.gmra.mxu1 %vm1108_vm3, %v14957_v17 }
 0x27a   : > { %10500 = vmatprep.mubr.msk.bf16.mxu0 %vm1108_vm3, %v16832_v31  ;;  %v6810_v38 = vsel %vm11032_vm4, %v6805_v41, %v6809_v3  ;;  %v3569_v14 = vadd.f32 %v10177_v12, %v16833_v33  ;;  %v15152_v61 = vsel %vm11451_vm7, %v9505_v39, %v7778_v36  ;;  %v7780_v10 = vrot.slane %v7778_v36, 4  ;;  %v10251_v3 = vpop.f32.mrf.mxu0  ;;  %v16835_v8 = vld [vmem:[#allocation84_spill] sm:$0xff]  ;;  %10430 = vmatprep.mubr.msk.bf16.mxu1 %vm1108_vm3, %v15004_v15 }
 0x27b   : > { %v6815_v40 = vrot.slane %v6814_v34, 4  ;;  %v6824_v57 = vor.u32 %v6823_v53, %v6819_v27  ;;  %v7783_v31 = vrot.slane %v7781_v45, 4  ;;  %v6827_v41 = vshll.u32 %v10867_v9, 16  ;;  %v10180_v36 = vpop.f32.mrf.mxu1 }
 0x27c   : > { %v15156_v43 = vadd.f32 %v10247_v24, %v3569_v14  ;;  %v3567_v25 = vadd.f32 %v3482_v50, %v16834_v48  ;;  %v15161_v59 = vsel %vm11451_vm7, %v7780_v10, %v7781_v45  ;;  %v16836_v39 = vshrl.u32 %v16835_v8, 16  ;;  %v16838_v50 = vld [vmem:[#allocation66_spill] sm:$0xff]  ;;  %v4771_v10 = vpop.f32.mrf.mxu0 }
 0x27d   : > { %v6820_v34 = vsel %vm11032_vm4, %v6815_v40, %v6819_v27  ;;  %v6825_v53 = vrot.slane %v6824_v57, 4  ;;  %v6829_v33 = vrot.slane %v6827_v41, 5  ;;  %v3572_v45 = vadd.f32 %v10180_v36, %v16838_v50  ;;  %v3495_v17 = vpop.f32.mrf.mxu1 }
 0x27e   : > { %v6833_v12 = vrot.slane %v16836_v39, 4  ;;  %v15171_v14 = vadd.f32 %v4755_v35, %v3567_v25  ;;  %v15176_v48 = vcombine.low %v6810_v38, %v6820_v34  ;;  %v6837_v8 = vshll.u32 %v9325_v55, 16  ;;  %v16839_v35 = vld [vmem:[#allocation68_spill] sm:$0xff]  ;;  %v10330_v36 = vpop.f32.mrf.mxu0  ;;  %v16841_v38 = vld [vmem:[#allocation77_spill] sm:$0xff] }
 0x27f   : > { %v6830_v27 = vsel %vm11032_vm4, %v6825_v53, %v6829_v33  ;;  %v7784_v57 = vrot.slane %v10867_v9, 5  ;;  %v7787_v39 = vrot.slane %v9325_v55, 5  ;;  %v15180_v41 = vadd.f32 %v10250_v11, %v3572_v45 }
 0x280   : > { %16837 = vst [vmem:[#allocation95_spill] sm:$0xff] %v15171_v14  ;;  %v6834_v40 = vor.u32 %v6833_v12, %v6829_v33  ;;  %v3570_v25 = vadd.f32 %v3495_v17, %v16839_v35  ;;  %v16840_v50 = vcombine.low %v15017_v54, %v15033_v19  ;;  %v6839_v15 = vrot.slane %v6837_v8, 5  ;;  %v10181_v14 = vpop.f32.mrf.mxu1  ;;  %v16845_v33 = vld [vmem:[#allocation70_spill] sm:$0xff]  ;;  %v6038_v8 = vpop.f32.mrf.mxu0  ;;  %v10868_v17 = vld [vmem:[%s11005_s7 + $0x108] sm:$0xf] }
 0x281   : > { %v16842_v34 = vshrl.u32 %v16841_v38, 16  ;;  %v16843_v9 = vcombine.low %v15062_v26, %v15075_v44  ;;  %v15195_v11 = vsel %vm11451_vm7, %v7783_v31, %v7784_v57  ;;  %v7786_v12 = vrot.slane %v7784_v57, 4  ;;  %v16846_v26 = vld [vmem:[#allocation119_spill] sm:$0xff]  ;;  %10431 = vmatmul.mubr.msk.bf16.gmra.mxu1 %vm1108_vm3, %v15043_v13 }
 0x282   : > { %10501 = vmatmul.mubr.msk.bf16.gmra.mxu0 %vm1108_vm3, %v16840_v50  ;;  %v6835_v55 = vrot.slane %v6834_v40, 4  ;;  %v16844_v54 = vshll.u32 %v16841_v38, 16  ;;  %v15199_v53 = vadd.f32 %v4768_v32, %v3570_v25  ;;  %v3573_v45 = vadd.f32 %v10181_v14, %v16845_v33  ;;  %v10869_v38 = vld [vmem:[%s11005_s7 + $0x10c] sm:$0xf]  ;;  %v16849_v14 = vld [vmem:[#allocation58_spill] sm:$0xff]  ;;  %10434 = vmatprep.mubr.msk.bf16.mxu1 %vm1108_vm3, %v15090_v42 }
 0x283   : > { %v6844_v24 = vrot.slane %v16842_v34, 4  ;;  %10504 = vmatprep.mubr.msk.bf16.mxu0 %vm1108_vm3, %v16843_v9  ;;  %v6851_v35 = vshll.u32 %v10868_v17, 16  ;;  %v16847_v44 = vshrl.u32 %v16846_v26, 16  ;;  %v3498_v34 = vpop.f32.mrf.mxu1  ;;  %v15209_v31 = vsel %vm11451_vm7, %v7786_v12, %v7787_v39 }
 0x284   : > { %v6847_v19 = vrot.slane %v16844_v54, 5  ;;  %v6840_v40 = vsel %vm11032_vm4, %v6835_v55, %v6839_v15  ;;  %v6861_v32 = vshll.u32 %v10869_v38, 16  ;;  %v15212_v25 = vadd.f32 %v10251_v3, %v3573_v45  ;;  %v10331_v54 = vpop.f32.mrf.mxu0  ;;  %v16851_v3 = vld [vmem:[#allocation71_spill] sm:$0xff] }
 0x285   : > { %v6857_v50 = vrot.slane %v16847_v44, 4  ;;  %v3571_v9 = vadd.f32 %v3498_v34, %v16849_v14  ;;  %v15215_v33 = vcombine.low %v6830_v27, %v6840_v40  ;;  %v10260_v44 = vpop.f32.mrf.mxu1  ;;  %v6853_v15 = vrot.slane %v6851_v35, 5  ;;  %v10870_v27 = vld [vmem:[%s11005_s7 + $0x104] sm:$0xf] }
 0x286   : > { %v6848_v57 = vor.u32 %v6847_v19, %v6844_v24  ;;  %16848 = vst [vmem:[#allocation124_spill] sm:$0xff] %v15212_v25  ;;  %v6863_v24 = vrot.slane %v6861_v32, 5  ;;  %v6865_v55 = vshrl.u32 %v10869_v38, 16  ;;  %v5578_v19 = vadd.f32 %v10260_v44, %v16851_v3  ;;  %v6041_v45 = vpop.f32.mrf.mxu0 }
 0x287   : > { %v15221_v12 = vadd.f32 %v4771_v10, %v3571_v9  ;;  %v9506_v34 = vrot.slane %v10870_v27, 9  ;;  %v7791_v40 = vrot.slane %v10868_v17, 5  ;;  %v5321_v14 = vpop.f32.mrf.mxu1  ;;  %v6858_v35 = vor.u32 %v6857_v50, %v6853_v15  ;;  %v16853_v9 = vld [vmem:[#allocation73_spill] sm:$0xff] }
 0x288   : > { %v6849_v39 = vrot.slane %v6848_v57, 4  ;;  %v6867_v57 = vrot.slane %v6865_v55, 4  ;;  %v7794_v32 = vrot.slane %v10869_v38, 5  ;;  %v15229_v10 = vadd.f32 %v10330_v36, %v5578_v19  ;;  %v10334_v3 = vpop.f32.mrf.mxu0  ;;  %v10871_v55 = vld [vmem:[%s11005_s7 + $0x110] sm:$0xf] }
 0x289   : > { %16850 = vst [vmem:[#allocation98_spill] sm:$0xff] %v15221_v12  ;;  %v5576_v44 = vadd.f32 %v5321_v14, %v16853_v9  ;;  %v16854_v42 = vcombine.low %v15105_v51, %v15121_v5  ;;  %v7792_v17 = vsel %vm11451_vm7, %v9506_v34, %v7791_v40  ;;  %v7793_v27 = vrot.slane %v7791_v40, 4  ;;  %v10261_v26 = vpop.f32.mrf.mxu1  ;;  %v16857_v51 = vld [vmem:[#allocation22_spill] sm:$0xff]  ;;  %10435 = vmatmul.mubr.msk.bf16.gmra.mxu1 %vm1108_vm3, %v15129_v58 }
 0x28a   : > { %v6854_v13 = vsel %vm11032_vm4, %v6849_v39, %v6853_v15  ;;  %16852 = vst [vmem:[#allocation49_spill] sm:$0xff] %v15229_v10  ;;  %v16855_v50 = vcombine.low %v15152_v61, %v15161_v59  ;;  %v6859_v36 = vrot.slane %v6858_v35, 4  ;;  %v6868_v38 = vor.u32 %v6867_v57, %v6863_v24  ;;  %v9330_v15 = vld [vmem:[%s11005_s7 + $0x114] sm:$0x1]  ;;  %v6054_v9 = vpop.f32.mrf.mxu0  ;;  %v16858_v40 = vld [vmem:[#allocation18_spill] sm:$0xff]  ;;  %10438 = vmatprep.mubr.msk.bf16.mxu1 %vm1108_vm3, %v15176_v48 }
 0x28b   : > { %10505 = vmatmul.mubr.msk.bf16.gmra.mxu0 %vm1108_vm3, %v16854_v42  ;;  %v7796_v39 = vrot.slane %v7794_v32, 4  ;;  %v6871_v19 = vshll.u32 %v10871_v55, 16  ;;  %v15244_v14 = vadd.f32 %v6038_v8, %v5576_v44  ;;  %v5579_v5 = vadd.f32 %v10261_v26, %v16857_v51  ;;  %v5324_v61 = vpop.f32.mrf.mxu1  ;;  %v16860_v8 = vld [vmem:[#allocation76_spill] sm:$0xff] }
 0x28c   : > { %10508 = vmatprep.mubr.msk.bf16.mxu0 %vm1108_vm3, %v16855_v50  ;;  %v7795_v34 = vsel %vm11451_vm7, %v7793_v27, %v7794_v32  ;;  %v16859_v42 = vshrl.u32 %v16858_v40, 16  ;;  %v6864_v59 = vsel %vm11032_vm4, %v6859_v36, %v6863_v24  ;;  %v6869_v35 = vrot.slane %v6868_v38, 4 }
 0x28d   : > { %16856 = vst [vmem:[#allocation27_spill] sm:$0xff] %v15244_v14  ;;  %v9538_v57 = vcombine.low %v7792_v17, %v7795_v34  ;;  %v6873_v50 = vrot.slane %v6871_v19, 5  ;;  %v15253_v12 = vadd.f32 %v10331_v54, %v5579_v5  ;;  %v5577_v44 = vadd.f32 %v5324_v61, %v16860_v8  ;;  %v10335_v14 = vpop.f32.mrf.mxu0  ;;  %v10264_v25 = vpop.f32.mrf.mxu1  ;;  %v16862_v54 = vld [vmem:[#allocation65_spill] sm:$0xff] }
 0x28e   : > { %v6877_v10 = vrot.slane %v16859_v42, 4  ;;  %v9450_v26 = vcombine.low %v6854_v13, %v6864_v59  ;;  %v6881_v51 = vshll.u32 %v9330_v15, 16  ;;  %v7797_v40 = vrot.slane %v10871_v55, 5  ;;  %v16863_v19 = vld [vmem:[#allocation121_spill] sm:$0xff] }
 0x28f   : > { %v6874_v32 = vsel %vm11032_vm4, %v6869_v35, %v6873_v50  ;;  %v7800_v24 = vrot.slane %v9330_v15, 5  ;;  %v15260_v17 = vadd.f32 %v6041_v45, %v5577_v44  ;;  %v5582_v36 = vadd.f32 %v10264_v25, %v16862_v54  ;;  %v6057_v38 = vpop.f32.mrf.mxu0  ;;  %v5337_v58 = vpop.f32.mrf.mxu1  ;;  %v16867_v25 = vld [vmem:[#allocation78_spill] sm:$0xff] }
 0x290   : > { %v6878_v27 = vor.u32 %v6877_v10, %v6873_v50  ;;  %v6883_v13 = vrot.slane %v6881_v51, 5  ;;  %v16864_v5 = vshrl.u32 %v16863_v19, 16  ;;  %v7798_v10 = vsel %vm11451_vm7, %v7796_v39, %v7797_v40  ;;  %v10872_v50 = vld [vmem:[%s11005_s7 + $0x11c] sm:$0xf]  ;;  %v16869_v44 = vld [vmem:[#allocation122_spill] sm:$0xff] }
 0x291   : > { %16861 = vst [vmem:[#allocation39_spill] sm:$0xff] %v15260_v17  ;;  %v7799_v15 = vrot.slane %v7797_v40, 4  ;;  %v16865_v45 = vshll.u32 %v16863_v19, 16  ;;  %v15271_v61 = vadd.f32 %v10334_v3, %v5582_v36  ;;  %v5580_v59 = vadd.f32 %v5337_v58, %v16867_v25  ;;  %v10338_v35 = vpop.f32.mrf.mxu0  ;;  %v10265_v39 = vpop.f32.mrf.mxu1  ;;  %v10873_v36 = vld [vmem:[%s11005_s7 + $0x120] sm:$0xf]  ;;  %v16871_v19 = vld [vmem:[#allocation63_spill] sm:$0xff]  ;;  %10439 = vmatmul.mubr.msk.bf16.gmra.mxu1 %vm1108_vm3, %v15215_v33 }
 0x292   : > { %v6888_v34 = vrot.slane %v16864_v5, 4  ;;  %v6879_v42 = vrot.slane %v6878_v27, 4  ;;  %v16868_v48 = vcombine.low %v15195_v11, %v15209_v31  ;;  %v6895_v8 = vshll.u32 %v10872_v50, 16  ;;  %10442 = vmatprep.mubr.msk.bf16.mxu1 %vm1108_vm3, %v9450_v26 }
 0x293   : > { %v6891_v55 = vrot.slane %v16865_v45, 5  ;;  %16866 = vst [vmem:[#allocation100_spill] sm:$0xff] %v15271_v61  ;;  %v16870_v51 = vshrl.u32 %v16869_v44, 16  ;;  %v7801_v40 = vsel %vm11451_vm7, %v7799_v15, %v7800_v24  ;;  %v6905_v11 = vshll.u32 %v10873_v36, 16  ;;  %v6070_v58 = vpop.f32.mrf.mxu0  ;;  %v10874_v15 = vld [vmem:[%s11005_s7 + $0x118] sm:$0xf] }
 0x294   : > { %10509 = vmatmul.mubr.msk.bf16.gmra.mxu0 %vm1108_vm3, %v16868_v48  ;;  %v6884_v3 = vsel %vm11032_vm4, %v6879_v42, %v6883_v13  ;;  %v15287_v31 = vadd.f32 %v6054_v9, %v5580_v59  ;;  %v5583_v5 = vadd.f32 %v10265_v39, %v16871_v19  ;;  %v9539_v25 = vcombine.low %v7798_v10, %v7801_v40  ;;  %v5340_v48 = vpop.f32.mrf.mxu1  ;;  %v16872_v42 = vld [vmem:[#allocation79_spill] sm:$0xff]  ;;  %v16873_v39 = vld [vmem:[#allocation80_spill] sm:$0xff] }
 0x295   : > { %v6901_v27 = vrot.slane %v16870_v51, 4  ;;  %10512 = vmatprep.mubr.msk.bf16.mxu0 %vm1108_vm3, %v9538_v57  ;;  %v6892_v54 = vor.u32 %v6891_v55, %v6888_v34  ;;  %v9451_v45 = vcombine.low %v6874_v32, %v6884_v3  ;;  %v6897_v57 = vrot.slane %v6895_v8, 5  ;;  %v10339_v34 = vpop.f32.mrf.mxu0 }
 0x296   : > { %v6907_v51 = vrot.slane %v6905_v11, 5  ;;  %v6909_v61 = vshrl.u32 %v10873_v36, 16  ;;  %v15290_v13 = vadd.f32 %v10335_v14, %v5583_v5  ;;  %v5581_v24 = vadd.f32 %v5340_v48, %v16872_v42  ;;  %v10268_v9 = vpop.f32.mrf.mxu1  ;;  %v9335_v48 = vld [vmem:[%s11005_s7 + $0x128] sm:$0x1]  ;;  %v16876_v42 = vld [vmem:[#allocation125_spill] sm:$0xff] }
 0x297   : > { %v6893_v44 = vrot.slane %v6892_v54, 4  ;;  %v9507_v55 = vrot.slane %v10874_v15, 9  ;;  %v7804_v17 = vrot.slane %v10872_v50, 5  ;;  %v6902_v10 = vor.u32 %v6901_v27, %v6897_v57  ;;  %v6073_v40 = vpop.f32.mrf.mxu0 }
 0x298   : > { %v6911_v59 = vrot.slane %v6909_v61, 4  ;;  %v7807_v8 = vrot.slane %v10873_v36, 5  ;;  %v15298_v14 = vadd.f32 %v6057_v38, %v5581_v24  ;;  %v5586_v3 = vadd.f32 %v10268_v9, %v16873_v39  ;;  %v5353_v11 = vpop.f32.mrf.mxu1  ;;  %v16875_v38 = vld [vmem:[#allocation67_spill] sm:$0xff]  ;;  %v16879_v39 = vld [vmem:[#allocation69_spill] sm:$0xff] }
 0x299   : > { %v6898_v32 = vsel %vm11032_vm4, %v6893_v44, %v6897_v57  ;;  %v7805_v50 = vsel %vm11451_vm7, %v9507_v55, %v7804_v17  ;;  %v7806_v54 = vrot.slane %v7804_v17, 4  ;;  %v6903_v33 = vrot.slane %v6902_v10, 4  ;;  %v10875_v44 = vld [vmem:[%s11005_s7 + $0x124] sm:$0xf]  ;;  %v10342_v57 = vpop.f32.mrf.mxu0  ;;  %10443 = vmatmul.mubr.msk.bf16.gmra.mxu1 %vm1108_vm3, %v9451_v45 }
 0x29a   : > { %v6912_v19 = vor.u32 %v6911_v59, %v6907_v51  ;;  %v7809_v5 = vrot.slane %v7807_v8, 4  ;;  %v6915_v27 = vshll.u32 %v10875_v44, 16  ;;  %v15306_v61 = vadd.f32 %v10338_v35, %v5586_v3  ;;  %v10269_v15 = vpop.f32.mrf.mxu1 }
 0x29b   : > { %v5584_v36 = vadd.f32 %v5353_v11, %v16875_v38  ;;  %v7808_v26 = vsel %vm11451_vm7, %v7806_v54, %v7807_v8  ;;  %v16877_v24 = vshrl.u32 %v16876_v42, 16  ;;  %v6908_v55 = vsel %vm11032_vm4, %v6903_v33, %v6907_v51  ;;  %v6086_v11 = vpop.f32.mrf.mxu0 }
 0x29c   : > { %16874 = vst [vmem:[#allocation89_spill] sm:$0xff] %v15306_v61  ;;  %10513 = vmatmul.mubr.msk.bf16.gmra.mxu0 %vm1108_vm3, %v9539_v25  ;;  %v6913_v9 = vrot.slane %v6912_v19, 4  ;;  %v9540_v10 = vcombine.low %v7805_v50, %v7808_v26  ;;  %v6917_v59 = vrot.slane %v6915_v27, 5  ;;  %v5587_v3 = vadd.f32 %v10269_v15, %v16879_v39  ;;  %v5356_v61 = vpop.f32.mrf.mxu1  ;;  %v16881_v50 = vld [vmem:[#allocation46_spill] sm:$0xff]  ;;  %v16882_v27 = vld [vmem:[#allocation47_spill] sm:$0xff] }
 0x29d   : > { %v6921_v17 = vrot.slane %v16877_v24, 4  ;;  %v15316_v35 = vadd.f32 %v6070_v58, %v5584_v36  ;;  %v9452_v38 = vcombine.low %v6898_v32, %v6908_v55  ;;  %v6925_v25 = vshll.u32 %v9335_v48, 16  ;;  %v10343_v33 = vpop.f32.mrf.mxu0 }
 0x29e   : > { %10516 = vmatprep.mubr.msk.bf16.mxu0 %vm1108_vm3, %v9540_v10  ;;  %v6918_v8 = vsel %vm11032_vm4, %v6913_v9, %v6917_v59  ;;  %v7810_v42 = vrot.slane %v10875_v44, 5  ;;  %v7813_v24 = vrot.slane %v9335_v48, 5  ;;  %v15322_v51 = vadd.f32 %v10339_v34, %v5587_v3  ;;  %v10272_v26 = vpop.f32.mrf.mxu1  ;;  %v16887_v3 = vld [vmem:[#allocation29_spill] sm:$0xff] }
 0x29f   : > { %16878 = vst [vmem:[#allocation101_spill] sm:$0xff] %v15316_v35  ;;  %v6922_v54 = vor.u32 %v6921_v17, %v6917_v59  ;;  %v5585_v58 = vadd.f32 %v5356_v61, %v16881_v50  ;;  %v6927_v19 = vrot.slane %v6925_v25, 5  ;;  %v16883_v36 = vshrl.u32 %v16882_v27, 16  ;;  %v16886_v61 = vld [vmem:[#allocation111_spill] sm:$0xff]  ;;  %v6089_v10 = vpop.f32.mrf.mxu0  ;;  %10446 = vmatprep.mubr.msk.bf16.mxu1 %vm1108_vm3, %v9452_v38  ;;  %v10876_v59 = vld [vmem:[%s11005_s7 + $0x130] sm:$0xf] }
 0x2a0   : > { %16880 = vst [vmem:[#allocation87_spill] sm:$0xff] %v15322_v51  ;;  %v7811_v17 = vsel %vm11451_vm7, %v7809_v5, %v7810_v42  ;;  %v7812_v44 = vrot.slane %v7810_v42, 4  ;;  %v16884_v48 = vshll.u32 %v16882_v27, 16  ;;  %v5590_v9 = vadd.f32 %v10272_v26, %v16886_v61 }
 0x2a1   : > { %v6932_v32 = vrot.slane %v16883_v36, 4  ;;  %v6923_v15 = vrot.slane %v6922_v54, 4  ;;  %v15332_v55 = vadd.f32 %v6073_v40, %v5585_v58  ;;  %v6939_v39 = vshll.u32 %v10876_v59, 16  ;;  %v5369_v54 = vpop.f32.mrf.mxu1  ;;  %v10877_v40 = vld [vmem:[%s11005_s7 + $0x134] sm:$0xf]  ;;  %v16890_v36 = vld [vmem:[#allocation115_spill] sm:$0xff]  ;;  %v10346_v26 = vpop.f32.mrf.mxu0 }
 0x2a2   : > { %v6935_v34 = vrot.slane %v16884_v48, 5  ;;  %v16888_v45 = vshrl.u32 %v16887_v3, 16  ;;  %v7814_v42 = vsel %vm11451_vm7, %v7812_v44, %v7813_v24  ;;  %v6949_v58 = vshll.u32 %v10877_v40, 16  ;;  %v10878_v44 = vld [vmem:[%s11005_s7 + $0x12c] sm:$0xf] }
 0x2a3   : > { %16885 = vst [vmem:[#allocation54_spill] sm:$0xff] %v15332_v55  ;;  %v6928_v5 = vsel %vm11032_vm4, %v6923_v15, %v6927_v19  ;;  %v15344_v27 = vadd.f32 %v10342_v57, %v5590_v9  ;;  %v5588_v38 = vadd.f32 %v5369_v54, %v16890_v36  ;;  %v9541_v61 = vcombine.low %v7811_v17, %v7814_v42  ;;  %v10273_v3 = vpop.f32.mrf.mxu1  ;;  %v16892_v15 = vld [vmem:[#allocation24_spill] sm:$0xff] }
 0x2a4   : > { %v6945_v25 = vrot.slane %v16888_v45, 4  ;;  %v6936_v50 = vor.u32 %v6935_v34, %v6932_v32  ;;  %v9453_v48 = vcombine.low %v6918_v8, %v6928_v5  ;;  %v6941_v55 = vrot.slane %v6939_v39, 5  ;;  %v6102_v32 = vpop.f32.mrf.mxu0 }
 0x2a5   : > { %16889 = vst [vmem:[#allocation102_spill] sm:$0xff] %v15344_v27  ;;  %v6951_v51 = vrot.slane %v6949_v58, 5  ;;  %v6953_v35 = vshrl.u32 %v10877_v40, 16  ;;  %v15347_v19 = vadd.f32 %v6086_v11, %v5588_v38  ;;  %v5591_v24 = vadd.f32 %v10273_v3, %v16892_v15  ;;  %10517 = vmatmul.mubr.msk.bf16.gmra.mxu0 %vm1108_vm3, %v9541_v61  ;;  %v5372_v9 = vpop.f32.mrf.mxu1  ;;  %v16894_v11 = vld [vmem:[#allocation112_spill] sm:$0xff]  ;;  %v9340_v15 = vld [vmem:[%s11005_s7 + $0x13c] sm:$0x1] }
 0x2a6   : > { %v6937_v45 = vrot.slane %v6936_v50, 4  ;;  %v9508_v57 = vrot.slane %v10878_v44, 9  ;;  %v7817_v34 = vrot.slane %v10876_v59, 5  ;;  %v6946_v17 = vor.u32 %v6945_v25, %v6941_v55  ;;  %v10347_v50 = vpop.f32.mrf.mxu0  ;;  %10447 = vmatmul.mubr.msk.bf16.gmra.mxu1 %vm1108_vm3, %v9453_v48  ;;  %v16897_v44 = vld [vmem:[#allocation14_spill] sm:$0xff] }
 0x2a7   : > { %16891 = vst [vmem:[#allocation6_spill] sm:$0xff] %v15347_v19  ;;  %v6955_v39 = vrot.slane %v6953_v35, 4  ;;  %v7820_v54 = vrot.slane %v10877_v40, 5  ;;  %v15354_v5 = vadd.f32 %v10343_v33, %v5591_v24  ;;  %v5589_v42 = vadd.f32 %v5372_v9, %v16894_v11  ;;  %v10276_v38 = vpop.f32.mrf.mxu1  ;;  %v16896_v33 = vld [vmem:[#allocation86_spill] sm:$0xff] }
 0x2a8   : > { %v6942_v8 = vsel %vm11032_vm4, %v6937_v45, %v6941_v55  ;;  %v7818_v58 = vsel %vm11451_vm7, %v9508_v57, %v7817_v34  ;;  %v7819_v36 = vrot.slane %v7817_v34, 4  ;;  %v6947_v59 = vrot.slane %v6946_v17, 4  ;;  %v10879_v45 = vld [vmem:[%s11005_s7 + $0x138] sm:$0xf]  ;;  %v6105_v40 = vpop.f32.mrf.mxu0 }
 0x2a9   : > { %16893 = vst [vmem:[#allocation33_spill] sm:$0xff] %v15354_v5  ;;  %v6956_v61 = vor.u32 %v6955_v39, %v6951_v51  ;;  %v7822_v3 = vrot.slane %v7820_v54, 4  ;;  %v6959_v55 = vshll.u32 %v10879_v45, 16  ;;  %v15362_v35 = vadd.f32 %v6089_v10, %v5589_v42  ;;  %v5385_v9 = vpop.f32.mrf.mxu1  ;;  %v16900_v10 = vld [vmem:[#allocation30_spill] sm:$0xff] }
 0x2aa   : > { %v5594_v25 = vadd.f32 %v10276_v38, %v16896_v33  ;;  %v7821_v24 = vsel %vm11451_vm7, %v7819_v36, %v7820_v54  ;;  %v16898_v57 = vshrl.u32 %v16897_v44, 16  ;;  %v6952_v48 = vsel %vm11032_vm4, %v6947_v59, %v6951_v51  ;;  %v10350_v38 = vpop.f32.mrf.mxu0 }
 0x2ab   : > { %16895 = vst [vmem:[#allocation5_spill] sm:$0xff] %v15362_v35  ;;  %v6957_v17 = vrot.slane %v6956_v61, 4  ;;  %v9542_v39 = vcombine.low %v7818_v58, %v7821_v24  ;;  %v6961_v11 = vrot.slane %v6959_v55, 5  ;;  %v5592_v42 = vadd.f32 %v5385_v9, %v16900_v10  ;;  %v10277_v19 = vpop.f32.mrf.mxu1  ;;  %v16902_v58 = vld [vmem:[#allocation74_spill] sm:$0xff]  ;;  %v16903_v55 = vld [vmem:[#allocation3_spill] sm:$0xff]  ;;  %v16908_v10 = vld [vmem:[#allocation37_spill] sm:$0xff] }
 0x2ac   : > { %v6965_v34 = vrot.slane %v16898_v57, 4  ;;  %v15371_v5 = vadd.f32 %v10346_v26, %v5594_v25  ;;  %v9454_v35 = vcombine.low %v6942_v8, %v6952_v48  ;;  %v6969_v33 = vshll.u32 %v9340_v15, 16  ;;  %v6118_v8 = vpop.f32.mrf.mxu0 }
 0x2ad   : > { %10520 = vmatprep.mubr.msk.bf16.mxu0 %vm1108_vm3, %v9542_v39  ;;  %v6962_v54 = vsel %vm11032_vm4, %v6957_v17, %v6961_v11  ;;  %v7823_v44 = vrot.slane %v10879_v45, 5  ;;  %v7826_v51 = vrot.slane %v9340_v15, 5  ;;  %v15377_v59 = vadd.f32 %v6102_v32, %v5592_v42  ;;  %v5388_v57 = vpop.f32.mrf.mxu1  ;;  %v10880_v39 = vld [vmem:[%s11005_s7 + $0x144] sm:$0xf] }
 0x2ae   : > { %16899 = vst [vmem:[#allocation17_spill] sm:$0xff] %v15371_v5  ;;  %v6966_v36 = vor.u32 %v6965_v34, %v6961_v11  ;;  %v5595_v26 = vadd.f32 %v10277_v19, %v16902_v58  ;;  %10450 = vmatprep.mubr.msk.bf16.mxu1 %vm1108_vm3, %v9454_v35  ;;  %v6971_v61 = vrot.slane %v6969_v33, 5  ;;  %v16904_v25 = vshrl.u32 %v16903_v55, 16  ;;  %v16907_v19 = vld [vmem:[#allocation82_spill] sm:$0xff]  ;;  %v10351_v35 = vpop.f32.mrf.mxu0 }
 0x2af   : > { %16901 = vst [vmem:[#allocation40_spill] sm:$0xff] %v15377_v59  ;;  %v7824_v34 = vsel %vm11451_vm7, %v7822_v3, %v7823_v44  ;;  %v7825_v45 = vrot.slane %v7823_v44, 4  ;;  %v16905_v15 = vshll.u32 %v16903_v55, 16  ;;  %v5593_v17 = vadd.f32 %v5388_v57, %v16907_v19  ;;  %v10280_v58 = vpop.f32.mrf.mxu1  ;;  %v10881_v55 = vld [vmem:[%s11005_s7 + $0x148] sm:$0xf] }
 0x2b0   : > { %v6976_v24 = vrot.slane %v16904_v25, 4  ;;  %v6967_v9 = vrot.slane %v6966_v36, 4  ;;  %v15387_v48 = vadd.f32 %v10347_v50, %v5595_v26  ;;  %v6983_v11 = vshll.u32 %v10880_v39, 16  ;;  %v16910_v25 = vld [vmem:[#allocation83_spill] sm:$0xff] }
 0x2b1   : > { %v6979_v32 = vrot.slane %v16905_v15, 5  ;;  %v16909_v42 = vshrl.u32 %v16908_v10, 16  ;;  %v7827_v3 = vsel %vm11451_vm7, %v7825_v45, %v7826_v51  ;;  %v6993_v50 = vshll.u32 %v10881_v55, 16  ;;  %v5401_v10 = vpop.f32.mrf.mxu1  ;;  %v16911_v51 = vld [vmem:[#allocation26_spill] sm:$0xff] }
 0x2b2   : > { %16906 = vst [vmem:[#allocation10_spill] sm:$0xff] %v15387_v48  ;;  %v6972_v36 = vsel %vm11032_vm4, %v6967_v9, %v6971_v61  ;;  %v15398_v26 = vadd.f32 %v6105_v40, %v5593_v17  ;;  %v5598_v57 = vadd.f32 %v10280_v58, %v16910_v25  ;;  %v9543_v19 = vcombine.low %v7824_v34, %v7827_v3  ;;  %v6121_v48 = vpop.f32.mrf.mxu0  ;;  %v10882_v40 = vld [vmem:[%s11005_s7 + $0x140] sm:$0xf] }
 0x2b3   : > { %v6989_v33 = vrot.slane %v16909_v42, 4  ;;  %v6980_v44 = vor.u32 %v6979_v32, %v6976_v24  ;;  %v9455_v15 = vcombine.low %v6962_v54, %v6972_v36  ;;  %v6985_v59 = vrot.slane %v6983_v11, 5  ;;  %v10281_v34 = vpop.f32.mrf.mxu1  ;;  %v16913_v36 = vld [vmem:[#allocation38_spill] sm:$0xff] }
 0x2b4   : > { %v6995_v5 = vrot.slane %v6993_v50, 5  ;;  %v6997_v27 = vshrl.u32 %v10881_v55, 16  ;;  %v15401_v61 = vadd.f32 %v10350_v38, %v5598_v57  ;;  %10521 = vmatmul.mubr.msk.bf16.gmra.mxu0 %vm1108_vm3, %v9543_v19  ;;  %v5596_v24 = vadd.f32 %v5401_v10, %v16911_v51  ;;  %v10354_v54 = vpop.f32.mrf.mxu0  ;;  %v9345_v10 = vld [vmem:[%s11005_s7 + $0x150] sm:$0x1]  ;;  %v10883_v51 = vld [vmem:[%s11005_s7 + $0x14c] sm:$0xf] }
 0x2b5   : > { %v6981_v42 = vrot.slane %v6980_v44, 4  ;;  %10451 = vmatmul.mubr.msk.bf16.gmra.mxu1 %vm1108_vm3, %v9455_v15  ;;  %v9509_v9 = vrot.slane %v10882_v40, 9  ;;  %v7830_v45 = vrot.slane %v10880_v39, 5  ;;  %v6990_v17 = vor.u32 %v6989_v33, %v6985_v59  ;;  %v5404_v39 = vpop.f32.mrf.mxu1  ;;  %v16916_v33 = vld [vmem:[#allocation131_spill] sm:$0xff] }
 0x2b6   : > { %v6999_v11 = vrot.slane %v6997_v27, 4  ;;  %v7833_v38 = vrot.slane %v10881_v55, 5  ;;  %v15409_v58 = vadd.f32 %v6118_v8, %v5596_v24  ;;  %v5599_v3 = vadd.f32 %v10281_v34, %v16913_v36  ;;  %v6134_v25 = vpop.f32.mrf.mxu0  ;;  %v16915_v27 = vld [vmem:[#allocation28_spill] sm:$0xff] }
 0x2b7   : > { %v6986_v32 = vsel %vm11032_vm4, %v6981_v42, %v6985_v59  ;;  %v7831_v44 = vsel %vm11451_vm7, %v9509_v9, %v7830_v45  ;;  %v7832_v50 = vrot.slane %v7830_v45, 4  ;;  %v6991_v57 = vrot.slane %v6990_v17, 4 }
 0x2b8   : > { %16912 = vst [vmem:[#allocation91_spill] sm:$0xff] %v15409_v58  ;;  %v7000_v15 = vor.u32 %v6999_v11, %v6995_v5  ;;  %v7835_v19 = vrot.slane %v7833_v38, 4  ;;  %v7003_v40 = vshll.u32 %v10883_v51, 16  ;;  %v15416_v42 = vadd.f32 %v10351_v35, %v5599_v3  ;;  %v10355_v9 = vpop.f32.mrf.mxu0  ;;  %v10284_v11 = vpop.f32.mrf.mxu1  ;;  %v16918_v3 = vld [vmem:[#allocation15_spill] sm:$0xff] }
 0x2b9   : > { %v5597_v59 = vadd.f32 %v5404_v39, %v16915_v27  ;;  %v7834_v8 = vsel %vm11451_vm7, %v7832_v50, %v7833_v38  ;;  %v16917_v55 = vshrl.u32 %v16916_v33, 16  ;;  %v6996_v45 = vsel %vm11032_vm4, %v6991_v57, %v6995_v5 }
 0x2ba   : > { %16914 = vst [vmem:[#allocation103_spill] sm:$0xff] %v15416_v42  ;;  %v7001_v34 = vrot.slane %v7000_v15, 4  ;;  %v9544_v17 = vcombine.low %v7831_v44, %v7834_v8  ;;  %v7005_v36 = vrot.slane %v7003_v40, 5  ;;  %v9456_v35 = vcombine.low %v6986_v32, %v6996_v45  ;;  %v6137_v27 = vpop.f32.mrf.mxu0  ;;  %v5417_v57 = vpop.f32.mrf.mxu1  ;;  %v16920_v32 = vld [vmem:[#allocation13_spill] sm:$0xff]  ;;  %v16921_v40 = vld [vmem:[#allocation132_spill] sm:$0xff] }
 0x2bb   : > { %v7009_v24 = vrot.slane %v16917_v55, 4  ;;  %v15425_v58 = vadd.f32 %v6121_v48, %v5597_v59  ;;  %v5602_v42 = vadd.f32 %v10284_v11, %v16918_v3  ;;  %v7013_v39 = vshll.u32 %v9345_v10, 16 }
 0x2bc   : > { %10524 = vmatprep.mubr.msk.bf16.mxu0 %vm1108_vm3, %v9544_v17  ;;  %v7006_v38 = vsel %vm11032_vm4, %v7001_v34, %v7005_v36  ;;  %v7836_v33 = vrot.slane %v10883_v51, 5  ;;  %v7839_v5 = vrot.slane %v9345_v10, 5  ;;  %10454 = vmatprep.mubr.msk.bf16.mxu1 %vm1108_vm3, %v9456_v35  ;;  %v5600_v15 = vadd.f32 %v5417_v57, %v16920_v32  ;;  %v10358_v55 = vpop.f32.mrf.mxu0  ;;  %v10285_v34 = vpop.f32.mrf.mxu1  ;;  %v16925_v35 = vld [vmem:[#allocation133_spill] sm:$0xff] }
 0x2bd   : > { %v7010_v50 = vor.u32 %v7009_v24, %v7005_v36  ;;  %v15432_v44 = vadd.f32 %v10354_v54, %v5602_v42  ;;  %v7015_v48 = vrot.slane %v7013_v39, 5  ;;  %v16922_v59 = vshrl.u32 %v16921_v40, 16  ;;  %v10884_v42 = vld [vmem:[%s11005_s7 + $0x158] sm:$0xf] }
 0x2be   : > { %v7837_v24 = vsel %vm11451_vm7, %v7835_v19, %v7836_v33  ;;  %v7838_v51 = vrot.slane %v7836_v33, 4  ;;  %v16923_v10 = vshll.u32 %v16921_v40, 16  ;;  %v15441_v11 = vadd.f32 %v6134_v25, %v5600_v15  ;;  %v15447_v57 = vpop.f32.mrf.mxu0  ;;  %v5420_v33 = vpop.f32.mrf.mxu1  ;;  %v10885_v25 = vld [vmem:[%s11005_s7 + $0x15c] sm:$0xf] }
 0x2bf   : > { %16919 = vst [vmem:[#allocation8_spill] sm:$0xff] %v15432_v44  ;;  %v7020_v8 = vrot.slane %v16922_v59, 4  ;;  %v7011_v45 = vrot.slane %v7010_v50, 4  ;;  %v5603_v54 = vadd.f32 %v10285_v34, %v14759_v1  ;;  %v7027_v36 = vshll.u32 %v10884_v42, 16 }
 0x2c0   : > { %v7023_v17 = vrot.slane %v16923_v10, 5  ;;  %16924 = vst [vmem:[#allocation104_spill] sm:$0xff] %v15441_v11  ;;  %v16926_v3 = vshrl.u32 %v16925_v35, 16  ;;  %v7840_v19 = vsel %vm11451_vm7, %v7838_v51, %v7839_v5  ;;  %v7037_v15 = vshll.u32 %v10885_v25, 16  ;;  %v10359_v10 = vpop.f32.mrf.mxu0 }
 0x2c1   : > { %v7016_v50 = vsel %vm11032_vm4, %v7011_v45, %v7015_v48  ;;  %v9545_v1 = vcombine.low %v7837_v24, %v7840_v19  ;;  %v15454_v59 = vadd.f32 %v10355_v9, %v5603_v54  ;;  %v5601_v34 = vadd.f32 %v5420_v33, %v14776_v7  ;;  %v10288_v45 = vpop.f32.mrf.mxu1 }
 0x2c2   : > { %v7033_v39 = vrot.slane %v16926_v3, 4  ;;  %v7024_v32 = vor.u32 %v7023_v17, %v7020_v8  ;;  %v9457_v40 = vcombine.low %v7006_v38, %v7016_v50  ;;  %v7029_v3 = vrot.slane %v7027_v36, 5  ;;  %v10886_v38 = vld [vmem:[%s11005_s7 + $0x154] sm:$0xf]  ;;  %v6153_v51 = vpop.f32.mrf.mxu0  ;;  %v9350_v50 = vld [vmem:[%s11005_s7 + $0x164] sm:$0x1] }
 0x2c3   : > { %16927 = vst [vmem:[#allocation106_spill] sm:$0xff] %v15454_v59  ;;  %v7039_v11 = vrot.slane %v7037_v15, 5  ;;  %v7041_v48 = vshrl.u32 %v10885_v25, 16  ;;  %10525 = vmatmul.mubr.msk.bf16.gmra.mxu0 %vm1108_vm3, %v9545_v1  ;;  %v15459_v5 = vadd.f32 %v6137_v27, %v5601_v34  ;;  %v9510_v8 = vrot.slane %v10886_v38, 9  ;;  %v5433_v19 = vpop.f32.mrf.mxu1  ;;  %v10887_v15 = vld [vmem:[%s11005_s7 + $0x160] sm:$0xf] }
 0x2c4   : > { %v7025_v35 = vrot.slane %v7024_v32, 4  ;;  %10455 = vmatmul.mubr.msk.bf16.gmra.mxu1 %vm1108_vm3, %v9457_v40  ;;  %v7843_v9 = vrot.slane %v10884_v42, 5  ;;  %v7846_v24 = vrot.slane %v10885_v25, 5  ;;  %v7034_v17 = vor.u32 %v7033_v39, %v7029_v3  ;;  %v10362_v1 = vpop.f32.mrf.mxu0  ;;  %v16930_v38 = vld [vmem:[#allocation137_spill] sm:$0xff]  ;;  %s8722_s7 = sshll.u32 %s10910_s12, 6  ;;  %s8723_s12 = sshll.u32 %s16978_s13, 7 }
 0x2c5   : > { %16928 = vst [vmem:[#allocation7_spill] sm:$0xff] %v15459_v5  ;;  %v7043_v54 = vrot.slane %v7041_v48, 4  ;;  %v5606_v36 = vadd.f32 %v10288_v45, %v14785_v29  ;;  %v7047_v40 = vshll.u32 %v10887_v15, 16  ;;  %v7057_v45 = vshll.u32 %v9350_v50, 16  ;;  %p187_p6 = scmp.lt.s32.totalorder %s8722_s7, 127 }
 0x2c6   : > { %v7030_v7 = vsel %vm11032_vm4, %v7025_v35, %v7029_v3  ;;  %v7844_v33 = vsel %vm11451_vm7, %v9510_v8, %v7843_v9  ;;  %v7845_v32 = vrot.slane %v7843_v9, 4  ;;  %v7848_v27 = vrot.slane %v7846_v24, 4  ;;  %v10289_v3 = vpop.f32.mrf.mxu1  ;;  %v6166_v8 = vpop.f32.mrf.mxu0 }
 0x2c7   : > { %v7035_v42 = vrot.slane %v7034_v17, 4  ;;  %v7044_v25 = vor.u32 %v7043_v54, %v7039_v11  ;;  %v15469_v34 = vadd.f32 %v10358_v55, %v5606_v36  ;;  %v16931_v35 = vshrl.u32 %v16930_v38, 16  ;;  %s16980_s7 = smov (!%p187_p6, %s8722_s7), 127 }
 0x2c8   : > { %v7847_v29 = vsel %vm11451_vm7, %v7845_v32, %v7846_v24  ;;  %v7049_v48 = vrot.slane %v7047_v40, 5  ;;  %v7849_v5 = vrot.slane %v10887_v15, 5  ;;  %v7852_v17 = vrot.slane %v9350_v50, 5  ;;  %v5436_v54 = vpop.f32.mrf.mxu1  ;;  %v10363_v38 = vpop.f32.mrf.mxu0  ;;  %s190_s21 = sadd.s32 %s8723_s12, %s16980_s7 }
 0x2c9   : > { %16929 = vst [vmem:[#allocation48_spill] sm:$0xff] %v15469_v34  ;;  %v7053_v39 = vrot.slane %v16931_v35, 4  ;;  %v7040_v9 = vsel %vm11032_vm4, %v7035_v42, %v7039_v11  ;;  %v7045_v59 = vrot.slane %v7044_v25, 4  ;;  %v9546_v44 = vcombine.low %v7844_v33, %v7847_v29  ;;  %s8724_s13 = sshll.u32 %s190_s21, 3 }
 0x2ca   : > { %v9458_v55 = vcombine.low %v7030_v7, %v7040_v9  ;;  %v7059_v34 = vrot.slane %v7057_v45, 5  ;;  %v7850_v24 = vsel %vm11451_vm7, %v7848_v27, %v7849_v5  ;;  %v7851_v32 = vrot.slane %v7849_v5, 4  ;;  %v10292_v35 = vpop.f32.mrf.mxu1  ;;  %s15609_s26 = scalar_lea.vmem %s15817_s3, %s8724_s13 }
 0x2cb   : > { %v7054_v36 = vor.u32 %v7053_v39, %v7049_v48  ;;  %10528 = vmatprep.mubr.msk.bf16.mxu0 %vm1108_vm3, %v9546_v44  ;;  %v5604_v15 = vadd.f32 %v5433_v19, %v14799_v62  ;;  %v5607_v40 = vadd.f32 %v10289_v3, %v14808_v22  ;;  %v7050_v11 = vsel %vm11032_vm4, %v7045_v59, %v7049_v48  ;;  %v6169_v44 = vpop.f32.mrf.mxu0 }
 0x2cc   : > { %10458 = vmatprep.mubr.msk.bf16.mxu1 %vm1108_vm3, %v9458_v55  ;;  %v5605_v50 = vadd.f32 %v5436_v54, %v14823_v21  ;;  %v5610_v33 = vadd.f32 %v10292_v35, %v14832_v52  ;;  %v7853_v27 = vsel %vm11451_vm7, %v7851_v32, %v7852_v17  ;;  %v5449_v22 = vpop.f32.mrf.mxu1 }
 0x2cd   : > { %v7055_v7 = vrot.slane %v7054_v36, 4  ;;  %v15490_v5 = vadd.f32 %v15447_v57, %v5604_v15  ;;  %v15492_v62 = vadd.f32 %v10359_v10, %v5607_v40  ;;  %v9547_v42 = vcombine.low %v7850_v24, %v7853_v27  ;;  %v10366_v21 = vpop.f32.mrf.mxu0 }
 0x2ce   : > { %v15496_v59 = vadd.f32 %v6153_v51, %v5605_v50  ;;  %v15498_v25 = vadd.f32 %v10362_v1, %v5610_v33  ;;  %v5608_v39 = vadd.f32 %v5449_v22, %v14851_v2  ;;  %v10293_v37 = vpop.f32.mrf.mxu1  ;;  %v16932_v50 = vld [vmem:[#allocation20_spill] sm:$0xff]  ;;  %v16933_v22 = vld [vmem:[#allocation42_spill] sm:$0xff] }
 0x2cf   : > { %v7060_v19 = vsel %vm11032_vm4, %v7055_v7, %v7059_v34  ;;  %10529 = vmatmul.mubr.msk.bf16.gmra.mxu0 %vm1108_vm3, %v9547_v42  ;;  %v5611_v57 = vadd.f32 %v10293_v37, %v14864_v16  ;;  %v6182_v10 = vpop.f32.mrf.mxu0 }
 0x2d0   : > { %v9459_v52 = vcombine.low %v7050_v11, %v7060_v19  ;;  %v15504_v3 = vadd.f32 %v6166_v8, %v5608_v39  ;;  %v5452_v0 = vpop.f32.mrf.mxu1 }
 0x2d1   : > { %v15506_v34 = vadd.f32 %v10363_v38, %v5611_v57  ;;  %v5609_v51 = vadd.f32 %v5452_v0, %v14873_v47  ;;  %v10367_v1 = vpop.f32.mrf.mxu0 }
 0x2d2   : > { %10459 = vmatmul.mubr.msk.bf16.gmra.mxu1 %vm1108_vm3, %v9459_v52  ;;  %v10296_v29 = vpop.f32.mrf.mxu1  ;;  %v16934_v52 = vld [vmem:[#allocation19_spill] sm:$0xff] }
 0x2d3   : > { %v15509_v48 = vadd.f32 %v6169_v44, %v5609_v51  ;;  %v5614_v2 = vadd.f32 %v10296_v29, %v14881_v4  ;;  %v6185_v45 = vpop.f32.mrf.mxu0 }
 0x2d4   : > { %v5465_v9 = vpop.f32.mrf.mxu1 }
 0x2d5   : > { %v15512_v17 = vadd.f32 %v10366_v21, %v5614_v2  ;;  %v5612_v16 = vadd.f32 %v5465_v9, %v14898_v28  ;;  %v10370_v54 = vpop.f32.mrf.mxu0  ;;  %v16936_v2 = vld [vmem:[#allocation59_spill] sm:$0xff] }
 0x2d6   : > { %v10297_v8 = vpop.f32.mrf.mxu1 }
 0x2d7   : > { %v15515_v55 = vadd.f32 %v6182_v10, %v5612_v16  ;;  %v5615_v36 = vadd.f32 %v10297_v8, %v14911_v60  ;;  %v6198_v38 = vpop.f32.mrf.mxu0  ;;  %v16935_v10 = vld [vmem:[#allocation4_spill] sm:$0xff]  ;;  %v16937_v8 = vld [vmem:[#allocation23_spill] sm:$0xff] }
 0x2d8   : > { %v5468_v47 = vpop.f32.mrf.mxu1 }
 0x2d9   : > { %v15518_v24 = vadd.f32 %v10367_v1, %v5615_v36  ;;  %v5613_v32 = vadd.f32 %v5468_v47, %v14920_v18  ;;  %v10371_v15 = vpop.f32.mrf.mxu0 }
 0x2da   : > { %v10300_v4 = vpop.f32.mrf.mxu1 }
 0x2db   : > { %v15521_v40 = vadd.f32 %v6185_v45, %v5613_v32  ;;  %v5618_v35 = vadd.f32 %v10300_v4, %v14933_v30  ;;  %v6201_v11 = vpop.f32.mrf.mxu0 }
 0x2dc   : > { %v5481_v28 = vpop.f32.mrf.mxu1 }
 0x2dd   : > { %v15524_v7 = vadd.f32 %v10370_v54, %v5618_v35  ;;  %v5616_v33 = vadd.f32 %v5481_v28, %v16932_v50  ;;  %v10374_v44 = vpop.f32.mrf.mxu0 }
 0x2de   : > { %v10301_v60 = vpop.f32.mrf.mxu1 }
 0x2df   : > { %v15527_v27 = vadd.f32 %v6198_v38, %v5616_v33  ;;  %v5619_v19 = vadd.f32 %v10301_v60, %v16933_v22  ;;  %v6214_v42 = vpop.f32.mrf.mxu0 }
 0x2e0   : > { %v5484_v18 = vpop.f32.mrf.mxu1 }
 0x2e1   : > { %v15530_v21 = vadd.f32 %v10371_v15, %v5619_v19  ;;  %v5617_v39 = vadd.f32 %v5484_v18, %v16934_v52  ;;  %v10375_v37 = vpop.f32.mrf.mxu0  ;;  %v16938_v18 = vld [vmem:[#allocation32_spill] sm:$0xff] }
 0x2e2   : > { %v10304_v30 = vpop.f32.mrf.mxu1 }
 0x2e3   : > { %v15533_v57 = vadd.f32 %v6201_v11, %v5617_v39  ;;  %v5622_v0 = vadd.f32 %v10304_v30, %v16935_v10  ;;  %v6217_v51 = vpop.f32.mrf.mxu0  ;;  %v16939_v30 = vld [vmem:[#allocation92_spill] sm:$0xff] }
 0x2e4   : > { %v5497_v1 = vpop.f32.mrf.mxu1 }
 0x2e5   : > { %v15536_v29 = vadd.f32 %v10374_v44, %v5622_v0  ;;  %v5620_v45 = vadd.f32 %v5497_v1, %v16936_v2  ;;  %v10378_v9 = vpop.f32.mrf.mxu0 }
 0x2e6   : > { %v10305_v16 = vpop.f32.mrf.mxu1 }
 0x2e7   : > { %v15539_v54 = vadd.f32 %v6214_v42, %v5620_v45  ;;  %v5623_v36 = vadd.f32 %v10305_v16, %v16937_v8  ;;  %v6230_v38 = vpop.f32.mrf.mxu0 }
 0x2e8   : > { %v5500_v47 = vpop.f32.mrf.mxu1 }
 0x2e9   : > { %v15542_v32 = vadd.f32 %v10375_v37, %v5623_v36  ;;  %v5621_v15 = vadd.f32 %v5500_v47, %v15021_v49  ;;  %v10379_v4 = vpop.f32.mrf.mxu0 }
 0x2ea   : > { %v10308_v35 = vpop.f32.mrf.mxu1 }
 0x2eb   : > { %v15545_v11 = vadd.f32 %v6217_v51, %v5621_v15  ;;  %v5626_v28 = vadd.f32 %v10308_v35, %v15036_v46  ;;  %v6233_v50 = vpop.f32.mrf.mxu0 }
 0x2ec   : > { %v5513_v33 = vpop.f32.mrf.mxu1 }
 0x2ed   : > { %v15548_v44 = vadd.f32 %v10378_v9, %v5626_v28  ;;  %v5624_v60 = vadd.f32 %v5513_v33, %v15051_v23  ;;  %v10382_v22 = vpop.f32.mrf.mxu0  ;;  %v16940_v9 = vld [vmem:[#allocation25_spill] sm:$0xff] }
 0x2ee   : > { %v10309_v19 = vpop.f32.mrf.mxu1 }
 0x2ef   : > { %v15551_v42 = vadd.f32 %v6230_v38, %v5624_v60  ;;  %v5627_v52 = vadd.f32 %v10309_v19, %v16938_v18  ;;  %v6246_v39 = vpop.f32.mrf.mxu0  ;;  %v16941_v60 = vld [vmem:[#allocation36_spill] sm:$0xff] }
 0x2f0   : > { %v5516_v49 = vpop.f32.mrf.mxu1 }
 0x2f1   : > { %v15554_v37 = vadd.f32 %v10379_v4, %v5627_v52  ;;  %v5625_v10 = vadd.f32 %v5516_v49, %v16939_v30  ;;  %v10383_v0 = vpop.f32.mrf.mxu0 }
 0x2f2   : > { %v10312_v46 = vpop.f32.mrf.mxu1 }
 0x2f3   : > { %v15557_v51 = vadd.f32 %v6233_v50, %v5625_v10  ;;  %v5630_v1 = vadd.f32 %v10312_v46, %v15083_v56  ;;  %v6249_v2 = vpop.f32.mrf.mxu0 }
 0x2f4   : > { %v5529_v23 = vpop.f32.mrf.mxu1 }
 0x2f5   : > { %v15560_v45 = vadd.f32 %v10382_v22, %v5630_v1  ;;  %v5628_v16 = vadd.f32 %v5529_v23, %v16940_v9  ;;  %v10386_v8 = vpop.f32.mrf.mxu0  ;;  %v16942_v1 = vld [vmem:[#allocation95_spill] sm:$0xff] }
 0x2f6   : > { %v10313_v36 = vpop.f32.mrf.mxu1 }
 0x2f7   : > { %v15563_v38 = vadd.f32 %v6246_v39, %v5628_v16  ;;  %v5631_v47 = vadd.f32 %v10313_v36, %v15109_v63  ;;  %v6262_v15 = vpop.f32.mrf.mxu0 }
 0x2f8   : > { %v5532_v4 = vpop.f32.mrf.mxu1 }
 0x2f9   : > { %v15566_v35 = vadd.f32 %v10383_v0, %v5631_v47  ;;  %v5629_v28 = vadd.f32 %v5532_v4, %v15124_v6  ;;  %v10387_v56 = vpop.f32.mrf.mxu0 }
 0x2fa   : > { %v10316_v50 = vpop.f32.mrf.mxu1 }
 0x2fb   : > { %v15569_v33 = vadd.f32 %v6249_v2, %v5629_v28  ;;  %v5634_v22 = vadd.f32 %v10316_v50, %v16941_v60  ;;  %v6265_v19 = vpop.f32.mrf.mxu0 }
 0x2fc   : > { %v5545_v18 = vpop.f32.mrf.mxu1 }
 0x2fd   : > { %v15572_v52 = vadd.f32 %v10386_v8, %v5634_v22  ;;  %v5632_v39 = vadd.f32 %v5545_v18, %v15147_v20  ;;  %v10390_v63 = vpop.f32.mrf.mxu0  ;;  %v16944_v18 = vld [vmem:[#allocation98_spill] sm:$0xff] }
 0x2fe   : > { %v10317_v49 = vpop.f32.mrf.mxu1 }
 0x2ff   : > { %v15575_v30 = vadd.f32 %v6262_v15, %v5632_v39  ;;  %v5635_v10 = vadd.f32 %v10317_v49, %v15156_v43  ;;  %v6278_v0 = vpop.f32.mrf.mxu0 }
 0x300   : > { %v5548_v6 = vpop.f32.mrf.mxu1 }
 0x301   : > { %v15579_v46 = vadd.f32 %v10387_v56, %v5635_v10  ;;  %v5633_v2 = vadd.f32 %v5548_v6, %v16942_v1  ;;  %v10391_v23 = vpop.f32.mrf.mxu0  ;;  %v16943_v56 = vld [vmem:[#allocation124_spill] sm:$0xff] }
 0x302   : > { %v10320_v9 = vpop.f32.mrf.mxu1 }
 0x303   : > { %v15582_v16 = vadd.f32 %v6265_v19, %v5633_v2  ;;  %v5638_v20 = vadd.f32 %v10320_v9, %v15180_v41  ;;  %v6281_v8 = vpop.f32.mrf.mxu0 }
 0x304   : > { %v5561_v36 = vpop.f32.mrf.mxu1 }
 0x305   : > { %v15585_v47 = vadd.f32 %v10390_v63, %v5638_v20  ;;  %v5636_v43 = vadd.f32 %v5561_v36, %v15199_v53  ;;  %v10470_v15 = vpop.f32.mrf.mxu0  ;;  %v16945_v53 = vld [vmem:[#allocation49_spill] sm:$0xff] }
 0x306   : > { %v10321_v4 = vpop.f32.mrf.mxu1 }
 0x307   : > { %v15588_v28 = vadd.f32 %v6278_v0, %v5636_v43  ;;  %v5639_v50 = vadd.f32 %v10321_v4, %v16943_v56  ;;  %v8104_v60 = vpop.f32.mrf.mxu0  ;;  %v15601_v0 = vld [vmem:[%s15816_s2] ss:$0 sm:$0xff] }
 0x308   : > { %v5564_v22 = vpop.f32.mrf.mxu1 }
 0x309   : > { %v15592_v19 = vadd.f32 %v10391_v23, %v5639_v50  ;;  %v5637_v41 = vadd.f32 %v5564_v22, %v16944_v18  ;;  %v10471_v39 = vpop.f32.mrf.mxu0  ;;  %v16946_v23 = vld [vmem:[#allocation27_spill] sm:$0xff] }
 0x30a   : > { %v10400_v49 = vpop.f32.mrf.mxu1 }
 0x30b   : > { %v15595_v63 = vadd.f32 %v6281_v8, %v5637_v41  ;;  %v7568_v10 = vadd.f32 %v10400_v49, %v16945_v53  ;;  %v8107_v6 = vpop.f32.mrf.mxu0  ;;  %v16947_v41 = vld [vmem:[#allocation39_spill] sm:$0xff] }
 0x30c   : > { %v7311_v1 = vpop.f32.mrf.mxu1 }
 0x30d   : > { %v8361_v2 = vadd.f32 %v10470_v15, %v7568_v10  ;;  %v7566_v9 = vadd.f32 %v7311_v1, %v16946_v23  ;;  %v10474_v20 = vpop.f32.mrf.mxu0 }
 0x30e   : > { %v10401_v36 = vpop.f32.mrf.mxu1 }
 0x30f   : > { %v8432_v43 = vadd.f32 %v15601_v0, %v8361_v2  ;;  %v8359_v4 = vadd.f32 %v8104_v60, %v7566_v9  ;;  %v7569_v8 = vadd.f32 %v10401_v36, %v15253_v12  ;;  %v8120_v56 = vpop.f32.mrf.mxu0  ;;  %v16948_v2 = vld [vmem:[#allocation100_spill] sm:$0xff] }
 0x310   : > { %v7314_v50 = vpop.f32.mrf.mxu1 }
 0x311   : > { %v8496_v22 = vmax.f32 %v8432_v43, 0.0  ;;  %v8430_v15 = vadd.f32 %v15601_v0, %v8359_v4  ;;  %v8362_v18 = vadd.f32 %v10471_v39, %v7569_v8  ;;  %v7567_v49 = vadd.f32 %v7314_v50, %v16947_v41  ;;  %v10475_v53 = vpop.f32.mrf.mxu0 }
 0x312   : > { %v10404_v60 = vpop.f32.mrf.mxu1 }
 0x313   : > { %8560 = vst [vmem:[%s15609_s26 + $0x10] sm:$0xff] %v8496_v22  ;;  %v8494_v12 = vmax.f32 %v8430_v15, 0.0  ;;  %v8433_v10 = vadd.f32 %v15601_v0, %v8362_v18  ;;  %v8360_v1 = vadd.f32 %v8107_v6, %v7567_v49  ;;  %v7572_v23 = vadd.f32 %v10404_v60, %v16948_v2  ;;  %v8123_v9 = vpop.f32.mrf.mxu0 }
 0x314   : > { %v7327_v36 = vpop.f32.mrf.mxu1 }
 0x315   : > { %8558 = vst [vmem:[%s15609_s26] sm:$0xff] %v8494_v12  ;;  %v8497_v43 = vmax.f32 %v8433_v10, 0.0  ;;  %v8431_v4 = vadd.f32 %v15601_v0, %v8360_v1  ;;  %v8365_v39 = vadd.f32 %v10474_v20, %v7572_v23  ;;  %v7570_v8 = vadd.f32 %v7327_v36, %v15287_v31  ;;  %v10478_v50 = vpop.f32.mrf.mxu0 }
 0x316   : > { %v10405_v41 = vpop.f32.mrf.mxu1 }
 0x317   : > { %8561 = vst [vmem:[%s15609_s26 + $0x18] sm:$0xff] %v8497_v43  ;;  %v8495_v22 = vmax.f32 %v8431_v4, 0.0  ;;  %v8436_v15 = vadd.f32 %v15601_v0, %v8365_v39  ;;  %v8363_v6 = vadd.f32 %v8120_v56, %v7570_v8  ;;  %v7573_v18 = vadd.f32 %v10405_v41, %v15290_v13  ;;  %v8136_v49 = vpop.f32.mrf.mxu0  ;;  %v16949_v43 = vld [vmem:[#allocation89_spill] sm:$0xff] }
 0x318   : > { %v7330_v60 = vpop.f32.mrf.mxu1 }
 0x319   : > { %8559 = vst [vmem:[%s15609_s26 + $0x8] sm:$0xff] %v8495_v22  ;;  %v8500_v12 = vmax.f32 %v8436_v15, 0.0  ;;  %v8434_v10 = vadd.f32 %v15601_v0, %v8363_v6  ;;  %v8366_v20 = vadd.f32 %v10475_v53, %v7573_v18  ;;  %v7571_v31 = vadd.f32 %v7330_v60, %v15298_v14  ;;  %v10479_v1 = vpop.f32.mrf.mxu0  ;;  %v16950_v22 = vld [vmem:[#allocation101_spill] sm:$0xff] }
 0x31a   : > { %v10408_v2 = vpop.f32.mrf.mxu1 }
 0x31b   : > { %8564 = vst [vmem:[%s15609_s26 + $0x30] sm:$0xff] %v8500_v12  ;;  %v8498_v23 = vmax.f32 %v8434_v10, 0.0  ;;  %v8437_v36 = vadd.f32 %v15601_v0, %v8366_v20  ;;  %v8364_v56 = vadd.f32 %v8123_v9, %v7571_v31  ;;  %v7576_v13 = vadd.f32 %v10408_v2, %v16949_v43  ;;  %v8139_v4 = vpop.f32.mrf.mxu0  ;;  %v16951_v12 = vld [vmem:[#allocation87_spill] sm:$0xff] }
 0x31c   : > { %v7343_v39 = vpop.f32.mrf.mxu1 }
 0x31d   : > { %8562 = vst [vmem:[%s15609_s26 + $0x20] sm:$0xff] %v8498_v23  ;;  %v8501_v8 = vmax.f32 %v8437_v36, 0.0  ;;  %v8435_v41 = vadd.f32 %v15601_v0, %v8364_v56  ;;  %v8369_v53 = vadd.f32 %v10478_v50, %v7576_v13  ;;  %v7574_v14 = vadd.f32 %v7343_v39, %v16950_v22  ;;  %v10482_v15 = vpop.f32.mrf.mxu0  ;;  %v16952_v36 = vld [vmem:[#allocation54_spill] sm:$0xff] }
 0x31e   : > { %v10409_v6 = vpop.f32.mrf.mxu1 }
 0x31f   : > { %8565 = vst [vmem:[%s15609_s26 + $0x38] sm:$0xff] %v8501_v8  ;;  %v8499_v18 = vmax.f32 %v8435_v41, 0.0  ;;  %v8440_v60 = vadd.f32 %v15601_v0, %v8369_v53  ;;  %v8367_v9 = vadd.f32 %v8136_v49, %v7574_v14  ;;  %v7577_v10 = vadd.f32 %v10409_v6, %v16951_v12  ;;  %v8152_v20 = vpop.f32.mrf.mxu0  ;;  %v16953_v41 = vld [vmem:[#allocation102_spill] sm:$0xff] }
 0x320   : > { %v7346_v31 = vpop.f32.mrf.mxu1 }
 0x321   : > { %8563 = vst [vmem:[%s15609_s26 + $0x28] sm:$0xff] %v8499_v18  ;;  %v8504_v2 = vmax.f32 %v8440_v60, 0.0  ;;  %v8438_v23 = vadd.f32 %v15601_v0, %v8367_v9  ;;  %v8370_v50 = vadd.f32 %v10479_v1, %v7577_v10  ;;  %v7575_v56 = vadd.f32 %v7346_v31, %v16952_v36  ;;  %v10483_v43 = vpop.f32.mrf.mxu0  ;;  %v16954_v60 = vld [vmem:[#allocation6_spill] sm:$0xff] }
 0x322   : > { %v10412_v13 = vpop.f32.mrf.mxu1 }
 0x323   : > { %8568 = vst [vmem:[%s15609_s26 + $0x50] sm:$0xff] %v8504_v2  ;;  %v8502_v39 = vmax.f32 %v8438_v23, 0.0  ;;  %v8441_v8 = vadd.f32 %v15601_v0, %v8370_v50  ;;  %v8368_v49 = vadd.f32 %v8139_v4, %v7575_v56  ;;  %v7580_v53 = vadd.f32 %v10412_v13, %v16953_v41  ;;  %v8155_v22 = vpop.f32.mrf.mxu0  ;;  %v16955_v23 = vld [vmem:[#allocation33_spill] sm:$0xff] }
 0x324   : > { %v7359_v14 = vpop.f32.mrf.mxu1 }
 0x325   : > { %8566 = vst [vmem:[%s15609_s26 + $0x40] sm:$0xff] %v8502_v39  ;;  %v8505_v6 = vmax.f32 %v8441_v8, 0.0  ;;  %v8439_v18 = vadd.f32 %v15601_v0, %v8368_v49  ;;  %v8373_v1 = vadd.f32 %v10482_v15, %v7580_v53  ;;  %v7578_v9 = vadd.f32 %v7359_v14, %v16954_v60  ;;  %v10486_v12 = vpop.f32.mrf.mxu0  ;;  %v16956_v8 = vld [vmem:[#allocation5_spill] sm:$0xff] }
 0x326   : > { %v10413_v10 = vpop.f32.mrf.mxu1 }
 0x327   : > { %8569 = vst [vmem:[%s15609_s26 + $0x58] sm:$0xff] %v8505_v6  ;;  %v8503_v31 = vmax.f32 %v8439_v18, 0.0  ;;  %v8444_v2 = vadd.f32 %v15601_v0, %v8373_v1  ;;  %v8371_v4 = vadd.f32 %v8152_v20, %v7578_v9  ;;  %v7581_v50 = vadd.f32 %v10413_v10, %v16955_v23  ;;  %v8168_v36 = vpop.f32.mrf.mxu0  ;;  %v16957_v18 = vld [vmem:[#allocation17_spill] sm:$0xff] }
 0x328   : > { %v7362_v56 = vpop.f32.mrf.mxu1 }
 0x329   : > { %8567 = vst [vmem:[%s15609_s26 + $0x48] sm:$0xff] %v8503_v31  ;;  %v8508_v13 = vmax.f32 %v8444_v2, 0.0  ;;  %v8442_v39 = vadd.f32 %v15601_v0, %v8371_v4  ;;  %v8374_v15 = vadd.f32 %v10483_v43, %v7581_v50  ;;  %v7579_v49 = vadd.f32 %v7362_v56, %v16956_v8  ;;  %v10487_v41 = vpop.f32.mrf.mxu0  ;;  %v16958_v2 = vld [vmem:[#allocation40_spill] sm:$0xff] }
 0x32a   : > { %v10416_v53 = vpop.f32.mrf.mxu1 }
 0x32b   : > { %8572 = vst [vmem:[%s15609_s26 + $0x70] sm:$0xff] %v8508_v13  ;;  %v8506_v14 = vmax.f32 %v8442_v39, 0.0  ;;  %v8445_v6 = vadd.f32 %v15601_v0, %v8374_v15  ;;  %v8372_v20 = vadd.f32 %v8155_v22, %v7579_v49  ;;  %v7584_v1 = vadd.f32 %v10416_v53, %v16957_v18  ;;  %v8171_v60 = vpop.f32.mrf.mxu0  ;;  %v16959_v39 = vld [vmem:[#allocation10_spill] sm:$0xff] }
 0x32c   : > { %v7375_v9 = vpop.f32.mrf.mxu1 }
 0x32d   : > { %8570 = vst [vmem:[%s15609_s26 + $0x60] sm:$0xff] %v8506_v14  ;;  %v8509_v10 = vmax.f32 %v8445_v6, 0.0  ;;  %v8443_v31 = vadd.f32 %v15601_v0, %v8372_v20  ;;  %v8377_v43 = vadd.f32 %v10486_v12, %v7584_v1  ;;  %v7582_v4 = vadd.f32 %v7375_v9, %v16958_v2  ;;  %v10490_v23 = vpop.f32.mrf.mxu0 }
 0x32e   : > { %v10417_v50 = vpop.f32.mrf.mxu1 }
 0x32f   : > { %8573 = vst [vmem:[%s15609_s26 + $0x78] sm:$0xff] %v8509_v10  ;;  %v8507_v56 = vmax.f32 %v8443_v31, 0.0  ;;  %v8448_v13 = vadd.f32 %v15601_v0, %v8377_v43  ;;  %v8375_v22 = vadd.f32 %v8168_v36, %v7582_v4  ;;  %v7585_v15 = vadd.f32 %v10417_v50, %v16959_v39  ;;  %v8184_v8 = vpop.f32.mrf.mxu0  ;;  %v16960_v50 = vld [vmem:[#allocation91_spill] sm:$0xff] }
 0x330   : > { %v7378_v49 = vpop.f32.mrf.mxu1 }
 0x331   : > { %8571 = vst [vmem:[%s15609_s26 + $0x68] sm:$0xff] %v8507_v56  ;;  %v8512_v53 = vmax.f32 %v8448_v13, 0.0  ;;  %v8446_v14 = vadd.f32 %v15601_v0, %v8375_v22  ;;  %v8378_v12 = vadd.f32 %v10487_v41, %v7585_v15  ;;  %v7583_v6 = vadd.f32 %v7378_v49, %v15398_v26  ;;  %v10491_v20 = vpop.f32.mrf.mxu0  ;;  %v16961_v15 = vld [vmem:[#allocation103_spill] sm:$0xff] }
 0x332   : > { %v10420_v18 = vpop.f32.mrf.mxu1 }
 0x333   : > { %8576 = vst [vmem:[%s15609_s26 + $0x90] sm:$0xff] %v8512_v53  ;;  %v8510_v1 = vmax.f32 %v8446_v14, 0.0  ;;  %v8449_v9 = vadd.f32 %v15601_v0, %v8378_v12  ;;  %v8376_v36 = vadd.f32 %v8171_v60, %v7583_v6  ;;  %v7588_v10 = vadd.f32 %v10420_v18, %v15401_v61  ;;  %v8187_v31 = vpop.f32.mrf.mxu0 }
 0x334   : > { %v7391_v43 = vpop.f32.mrf.mxu1 }
 0x335   : > { %8574 = vst [vmem:[%s15609_s26 + $0x80] sm:$0xff] %v8510_v1  ;;  %v8513_v2 = vmax.f32 %v8449_v9, 0.0  ;;  %v8447_v4 = vadd.f32 %v15601_v0, %v8376_v36  ;;  %v8381_v41 = vadd.f32 %v10490_v23, %v7588_v10  ;;  %v7586_v26 = vadd.f32 %v7391_v43, %v16960_v50  ;;  %v10494_v56 = vpop.f32.mrf.mxu0  ;;  %v16962_v10 = vld [vmem:[#allocation8_spill] sm:$0xff] }
 0x336   : > { %v10421_v13 = vpop.f32.mrf.mxu1 }
 0x337   : > { %8577 = vst [vmem:[%s15609_s26 + $0x98] sm:$0xff] %v8513_v2  ;;  %v8511_v22 = vmax.f32 %v8447_v4, 0.0  ;;  %v8452_v39 = vadd.f32 %v15601_v0, %v8381_v41  ;;  %v8379_v60 = vadd.f32 %v8184_v8, %v7586_v26  ;;  %v7589_v61 = vadd.f32 %v10421_v13, %v16961_v15  ;;  %v8200_v49 = vpop.f32.mrf.mxu0  ;;  %v16963_v26 = vld [vmem:[#allocation104_spill] sm:$0xff]  ;;  %v16964_v15 = vld [vmem:[#allocation106_spill] sm:$0xff] }
 0x338   : > { %v7394_v53 = vpop.f32.mrf.mxu1 }
 0x339   : > { %8575 = vst [vmem:[%s15609_s26 + $0x88] sm:$0xff] %v8511_v22  ;;  %v8516_v14 = vmax.f32 %v8452_v39, 0.0  ;;  %v8450_v12 = vadd.f32 %v15601_v0, %v8379_v60  ;;  %v8382_v23 = vadd.f32 %v10491_v20, %v7589_v61  ;;  %v7587_v6 = vadd.f32 %v7394_v53, %v15425_v58  ;;  %v10495_v18 = vpop.f32.mrf.mxu0 }
 0x33a   : > { %v10424_v1 = vpop.f32.mrf.mxu1 }
 0x33b   : > { %8580 = vst [vmem:[%s15609_s26 + $0xb0] sm:$0xff] %v8516_v14  ;;  %v8514_v9 = vmax.f32 %v8450_v12, 0.0  ;;  %v8453_v36 = vadd.f32 %v15601_v0, %v8382_v23  ;;  %v8380_v8 = vadd.f32 %v8187_v31, %v7587_v6  ;;  %v7592_v43 = vadd.f32 %v10424_v1, %v16962_v10  ;;  %v8203_v2 = vpop.f32.mrf.mxu0  ;;  %v16965_v6 = vld [vmem:[#allocation7_spill] sm:$0xff] }
 0x33c   : > { %v7407_v4 = vpop.f32.mrf.mxu1 }
 0x33d   : > { %8578 = vst [vmem:[%s15609_s26 + $0xa0] sm:$0xff] %v8514_v9  ;;  %v8517_v41 = vmax.f32 %v8453_v36, 0.0  ;;  %v8451_v50 = vadd.f32 %v15601_v0, %v8380_v8  ;;  %v8385_v20 = vadd.f32 %v10494_v56, %v7592_v43  ;;  %v7590_v58 = vadd.f32 %v7407_v4, %v16963_v26  ;;  %v10498_v13 = vpop.f32.mrf.mxu0  ;;  %v16966_v43 = vld [vmem:[#allocation48_spill] sm:$0xff] }
 0x33e   : > { %v10425_v22 = vpop.f32.mrf.mxu1 }
 0x33f   : > { %8581 = vst [vmem:[%s15609_s26 + $0xb8] sm:$0xff] %v8517_v41  ;;  %v8515_v39 = vmax.f32 %v8451_v50, 0.0  ;;  %v8456_v60 = vadd.f32 %v15601_v0, %v8385_v20  ;;  %v8383_v31 = vadd.f32 %v8200_v49, %v7590_v58  ;;  %v7593_v61 = vadd.f32 %v10425_v22, %v16964_v15  ;;  %v8216_v53 = vpop.f32.mrf.mxu0 }
 0x340   : > { %v7410_v14 = vpop.f32.mrf.mxu1 }
 0x341   : > { %8579 = vst [vmem:[%s15609_s26 + $0xa8] sm:$0xff] %v8515_v39  ;;  %v8520_v12 = vmax.f32 %v8456_v60, 0.0  ;;  %v8454_v23 = vadd.f32 %v15601_v0, %v8383_v31  ;;  %v8386_v56 = vadd.f32 %v10495_v18, %v7593_v61  ;;  %v7591_v1 = vadd.f32 %v7410_v14, %v16965_v6  ;;  %v10499_v9 = vpop.f32.mrf.mxu0 }
 0x342   : > { %v10428_v36 = vpop.f32.mrf.mxu1 }
 0x343   : > { %8584 = vst [vmem:[%s15609_s26 + $0xd0] sm:$0xff] %v8520_v12  ;;  %v8518_v8 = vmax.f32 %v8454_v23, 0.0  ;;  %v8457_v10 = vadd.f32 %v15601_v0, %v8386_v56  ;;  %v8384_v49 = vadd.f32 %v8203_v2, %v7591_v1  ;;  %v7596_v4 = vadd.f32 %v10428_v36, %v16966_v43  ;;  %v8219_v41 = vpop.f32.mrf.mxu0 }
 0x344   : > { %v7423_v50 = vpop.f32.mrf.mxu1 }
 0x345   : > { %8582 = vst [vmem:[%s15609_s26 + $0xc0] sm:$0xff] %v8518_v8  ;;  %v8521_v20 = vmax.f32 %v8457_v10, 0.0  ;;  %v8455_v26 = vadd.f32 %v15601_v0, %v8384_v49  ;;  %v8389_v18 = vadd.f32 %v10498_v13, %v7596_v4  ;;  %v7594_v58 = vadd.f32 %v7423_v50, %v15490_v5  ;;  %v10502_v22 = vpop.f32.mrf.mxu0 }
 0x346   : > { %v10429_v39 = vpop.f32.mrf.mxu1 }
 0x347   : > { %8585 = vst [vmem:[%s15609_s26 + $0xd8] sm:$0xff] %v8521_v20  ;;  %v8519_v60 = vmax.f32 %v8455_v26, 0.0  ;;  %v8460_v31 = vadd.f32 %v15601_v0, %v8389_v18  ;;  %v8387_v2 = vadd.f32 %v8216_v53, %v7594_v58  ;;  %v7597_v15 = vadd.f32 %v10429_v39, %v15492_v62  ;;  %v8232_v61 = vpop.f32.mrf.mxu0 }
 0x348   : > { %v7426_v14 = vpop.f32.mrf.mxu1 }
 0x349   : > { %8583 = vst [vmem:[%s15609_s26 + $0xc8] sm:$0xff] %v8519_v60  ;;  %v8524_v12 = vmax.f32 %v8460_v31, 0.0  ;;  %v8458_v23 = vadd.f32 %v15601_v0, %v8387_v2  ;;  %v8390_v13 = vadd.f32 %v10499_v9, %v7597_v15  ;;  %v7595_v5 = vadd.f32 %v7426_v14, %v15496_v59  ;;  %v10503_v56 = vpop.f32.mrf.mxu0 }
 0x34a   : > { %v10432_v6 = vpop.f32.mrf.mxu1 }
 0x34b   : > { %8588 = vst [vmem:[%s15609_s26 + $0xf0] sm:$0xff] %v8524_v12  ;;  %v8522_v1 = vmax.f32 %v8458_v23, 0.0  ;;  %v8461_v36 = vadd.f32 %v15601_v0, %v8390_v13  ;;  %v8388_v53 = vadd.f32 %v8219_v41, %v7595_v5  ;;  %v7600_v62 = vadd.f32 %v10432_v6, %v15498_v25  ;;  %v8235_v8 = vpop.f32.mrf.mxu0 }
 0x34c   : > { %v7439_v10 = vpop.f32.mrf.mxu1 }
 0x34d   : > { %8586 = vst [vmem:[%s15609_s26 + $0xe0] sm:$0xff] %v8522_v1  ;;  %v8525_v49 = vmax.f32 %v8461_v36, 0.0  ;;  %v8459_v43 = vadd.f32 %v15601_v0, %v8388_v53  ;;  %v8393_v9 = vadd.f32 %v10502_v22, %v7600_v62  ;;  %v7598_v59 = vadd.f32 %v7439_v10, %v15504_v3  ;;  %v10506_v4 = vpop.f32.mrf.mxu0 }
 0x34e   : > { %v10433_v50 = vpop.f32.mrf.mxu1 }
 0x34f   : > { %8589 = vst [vmem:[%s15609_s26 + $0xf8] sm:$0xff] %v8525_v49  ;;  %v8523_v20 = vmax.f32 %v8459_v43, 0.0  ;;  %v8464_v26 = vadd.f32 %v15601_v0, %v8393_v9  ;;  %v8391_v41 = vadd.f32 %v8232_v61, %v7598_v59  ;;  %v7601_v25 = vadd.f32 %v10433_v50, %v15506_v34  ;;  %v8248_v18 = vpop.f32.mrf.mxu0 }
 0x350   : > { %v7442_v58 = vpop.f32.mrf.mxu1 }
 0x351   : > { %8587 = vst [vmem:[%s15609_s26 + $0xe8] sm:$0xff] %v8523_v20  ;;  %v8528_v39 = vmax.f32 %v8464_v26, 0.0  ;;  %v8462_v60 = vadd.f32 %v15601_v0, %v8391_v41  ;;  %v8394_v22 = vadd.f32 %v10503_v56, %v7601_v25  ;;  %v7599_v3 = vadd.f32 %v7442_v58, %v15509_v48  ;;  %v10507_v31 = vpop.f32.mrf.mxu0 }
 0x352   : > { %v10436_v2 = vpop.f32.mrf.mxu1 }
 0x353   : > { %8592 = vst [vmem:[%s15609_s26 + $0x110] sm:$0xff] %v8528_v39  ;;  %v8526_v15 = vmax.f32 %v8462_v60, 0.0  ;;  %v8465_v14 = vadd.f32 %v15601_v0, %v8394_v22  ;;  %v8392_v61 = vadd.f32 %v8235_v8, %v7599_v3  ;;  %v7604_v34 = vadd.f32 %v10436_v2, %v15512_v17  ;;  %v8251_v12 = vpop.f32.mrf.mxu0 }
 0x354   : > { %v7455_v23 = vpop.f32.mrf.mxu1 }
 0x355   : > { %8590 = vst [vmem:[%s15609_s26 + $0x100] sm:$0xff] %v8526_v15  ;;  %v8529_v13 = vmax.f32 %v8465_v14, 0.0  ;;  %v8463_v5 = vadd.f32 %v15601_v0, %v8392_v61  ;;  %v8397_v56 = vadd.f32 %v10506_v4, %v7604_v34  ;;  %v7602_v48 = vadd.f32 %v7455_v23, %v15515_v55  ;;  %v10510_v6 = vpop.f32.mrf.mxu0 }
 0x356   : > { %v10437_v1 = vpop.f32.mrf.mxu1 }
 0x357   : > { %8593 = vst [vmem:[%s15609_s26 + $0x118] sm:$0xff] %v8529_v13  ;;  %v8527_v36 = vmax.f32 %v8463_v5, 0.0  ;;  %v8468_v53 = vadd.f32 %v15601_v0, %v8397_v56  ;;  %v8395_v62 = vadd.f32 %v8248_v18, %v7602_v48  ;;  %v7605_v17 = vadd.f32 %v10437_v1, %v15518_v24  ;;  %v8264_v8 = vpop.f32.mrf.mxu0 }
 0x358   : > { %v7458_v10 = vpop.f32.mrf.mxu1 }
 0x359   : > { %8591 = vst [vmem:[%s15609_s26 + $0x108] sm:$0xff] %v8527_v36  ;;  %v8532_v49 = vmax.f32 %v8468_v53, 0.0  ;;  %v8466_v43 = vadd.f32 %v15601_v0, %v8395_v62  ;;  %v8398_v9 = vadd.f32 %v10507_v31, %v7605_v17  ;;  %v7603_v55 = vadd.f32 %v7458_v10, %v15521_v40  ;;  %v10511_v59 = vpop.f32.mrf.mxu0 }
 0x35a   : > { %v10440_v4 = vpop.f32.mrf.mxu1 }
 0x35b   : > { %8596 = vst [vmem:[%s15609_s26 + $0x130] sm:$0xff] %v8532_v49  ;;  %v8530_v50 = vmax.f32 %v8466_v43, 0.0  ;;  %v8469_v20 = vadd.f32 %v15601_v0, %v8398_v9  ;;  %v8396_v26 = vadd.f32 %v8251_v12, %v7603_v55  ;;  %v7608_v24 = vadd.f32 %v10440_v4, %v15524_v7  ;;  %v8267_v41 = vpop.f32.mrf.mxu0 }
 0x35c   : > { %v7471_v25 = vpop.f32.mrf.mxu1 }
 0x35d   : > { %8594 = vst [vmem:[%s15609_s26 + $0x120] sm:$0xff] %v8530_v50  ;;  %v8533_v18 = vmax.f32 %v8469_v20, 0.0  ;;  %v8467_v58 = vadd.f32 %v15601_v0, %v8396_v26  ;;  %v8401_v39 = vadd.f32 %v10510_v6, %v7608_v24  ;;  %v7606_v40 = vadd.f32 %v7471_v25, %v15527_v27  ;;  %v10514_v60 = vpop.f32.mrf.mxu0 }
 0x35e   : > { %v10441_v22 = vpop.f32.mrf.mxu1 }
 0x35f   : > { %8597 = vst [vmem:[%s15609_s26 + $0x138] sm:$0xff] %v8533_v18  ;;  %v8531_v3 = vmax.f32 %v8467_v58, 0.0  ;;  %v8472_v31 = vadd.f32 %v15601_v0, %v8401_v39  ;;  %v8399_v2 = vadd.f32 %v8264_v8, %v7606_v40  ;;  %v7609_v7 = vadd.f32 %v10441_v22, %v15530_v21  ;;  %v8280_v15 = vpop.f32.mrf.mxu0 }
 0x360   : > { %v7474_v14 = vpop.f32.mrf.mxu1 }
 0x361   : > { %8595 = vst [vmem:[%s15609_s26 + $0x128] sm:$0xff] %v8531_v3  ;;  %v8536_v61 = vmax.f32 %v8472_v31, 0.0  ;;  %v8470_v34 = vadd.f32 %v15601_v0, %v8399_v2  ;;  %v8402_v12 = vadd.f32 %v10511_v59, %v7609_v7  ;;  %v7607_v27 = vadd.f32 %v7474_v14, %v15533_v57  ;;  %v10515_v23 = vpop.f32.mrf.mxu0 }
 0x362   : > { %v10444_v13 = vpop.f32.mrf.mxu1 }
 0x363   : > { %8600 = vst [vmem:[%s15609_s26 + $0x150] sm:$0xff] %v8536_v61  ;;  %v8534_v5 = vmax.f32 %v8470_v34, 0.0  ;;  %v8473_v56 = vadd.f32 %v15601_v0, %v8402_v12  ;;  %v8400_v48 = vadd.f32 %v8267_v41, %v7607_v27  ;;  %v7612_v21 = vadd.f32 %v10444_v13, %v15536_v29  ;;  %v8283_v6 = vpop.f32.mrf.mxu0 }
 0x364   : > { %v7487_v1 = vpop.f32.mrf.mxu1 }
 0x365   : > { %8598 = vst [vmem:[%s15609_s26 + $0x140] sm:$0xff] %v8534_v5  ;;  %v8537_v36 = vmax.f32 %v8473_v56, 0.0  ;;  %v8471_v53 = vadd.f32 %v15601_v0, %v8400_v48  ;;  %v8405_v62 = vadd.f32 %v10514_v60, %v7612_v21  ;;  %v7610_v57 = vadd.f32 %v7487_v1, %v15539_v54  ;;  %v10518_v29 = vpop.f32.mrf.mxu0 }
 0x366   : > { %v10445_v17 = vpop.f32.mrf.mxu1 }
 0x367   : > { %8601 = vst [vmem:[%s15609_s26 + $0x158] sm:$0xff] %v8537_v36  ;;  %v8535_v8 = vmax.f32 %v8471_v53, 0.0  ;;  %v8476_v10 = vadd.f32 %v15601_v0, %v8405_v62  ;;  %v8403_v49 = vadd.f32 %v8280_v15, %v7610_v57  ;;  %v7613_v43 = vadd.f32 %v10445_v17, %v15542_v32  ;;  %v8296_v54 = vpop.f32.mrf.mxu0 }
 0x368   : > { %v7490_v9 = vpop.f32.mrf.mxu1 }
 0x369   : > { %8599 = vst [vmem:[%s15609_s26 + $0x148] sm:$0xff] %v8535_v8  ;;  %v8540_v55 = vmax.f32 %v8476_v10, 0.0  ;;  %v8474_v59 = vadd.f32 %v15601_v0, %v8403_v49  ;;  %v8406_v4 = vadd.f32 %v10515_v23, %v7613_v43  ;;  %v7611_v50 = vadd.f32 %v7490_v9, %v15545_v11  ;;  %v10519_v40 = vpop.f32.mrf.mxu0 }
 0x36a   : > { %v10448_v20 = vpop.f32.mrf.mxu1 }
 0x36b   : > { %8604 = vst [vmem:[%s15609_s26 + $0x170] sm:$0xff] %v8540_v55  ;;  %v8538_v26 = vmax.f32 %v8474_v59, 0.0  ;;  %v8477_v24 = vadd.f32 %v15601_v0, %v8406_v4  ;;  %v8404_v41 = vadd.f32 %v8283_v6, %v7611_v50  ;;  %v7616_v32 = vadd.f32 %v10448_v20, %v15548_v44 }
 0x36c   : > { %v7503_v25 = vpop.f32.mrf.mxu1 }
 0x36d   : > { %8602 = vst [vmem:[%s15609_s26 + $0x160] sm:$0xff] %v8538_v26  ;;  %v8541_v18 = vmax.f32 %v8477_v24, 0.0  ;;  %v8475_v58 = vadd.f32 %v15601_v0, %v8404_v41  ;;  %v8409_v39 = vadd.f32 %v10518_v29, %v7616_v32  ;;  %v7614_v11 = vadd.f32 %v7503_v25, %v15551_v42  ;;  %v8299_v42 = vpop.f32.mrf.mxu0 }
 0x36e   : > { %v10449_v60 = vpop.f32.mrf.mxu1 }
 0x36f   : > { %8605 = vst [vmem:[%s15609_s26 + $0x178] sm:$0xff] %v8541_v18  ;;  %v8539_v22 = vmax.f32 %v8475_v58, 0.0  ;;  %v8480_v3 = vadd.f32 %v15601_v0, %v8409_v39  ;;  %v8407_v31 = vadd.f32 %v8296_v54, %v7614_v11  ;;  %v7617_v2 = vadd.f32 %v10449_v60, %v15554_v37 }
 0x370   : > { %v7506_v44 = vpop.f32.mrf.mxu1 }
 0x371   : > { %8603 = vst [vmem:[%s15609_s26 + $0x168] sm:$0xff] %v8539_v22  ;;  %v8544_v7 = vmax.f32 %v8480_v3, 0.0  ;;  %v8478_v15 = vadd.f32 %v15601_v0, %v8407_v31  ;;  %v8410_v14 = vadd.f32 %v10519_v40, %v7617_v2  ;;  %v7615_v61 = vadd.f32 %v7506_v44, %v15557_v51 }
 0x373   : > { %8608 = vst [vmem:[%s15609_s26 + $0x190] sm:$0xff] %v8544_v7  ;;  %v8542_v34 = vmax.f32 %v8478_v15, 0.0  ;;  %v8481_v12 = vadd.f32 %v15601_v0, %v8410_v14  ;;  %v8408_v27 = vadd.f32 %v8299_v42, %v7615_v61 }
 0x374   : > { %v10522_v5 = vpop.f32.mrf.mxu0 }
 0x375   : > { %8606 = vst [vmem:[%s15609_s26 + $0x180] sm:$0xff] %v8542_v34  ;;  %v8545_v23 = vmax.f32 %v8481_v12, 0.0  ;;  %v8479_v37 = vadd.f32 %v15601_v0, %v8408_v27  ;;  %v10452_v13 = vpop.f32.mrf.mxu1 }
 0x376   : > { %v7620_v56 = vadd.f32 %v10452_v13, %v15560_v45  ;;  %v8312_v51 = vpop.f32.mrf.mxu0 }
 0x377   : > { %8609 = vst [vmem:[%s15609_s26 + $0x198] sm:$0xff] %v8545_v23  ;;  %v8543_v48 = vmax.f32 %v8479_v37, 0.0  ;;  %v7519_v21 = vpop.f32.mrf.mxu1 }
 0x378   : > { %v8413_v6 = vadd.f32 %v10522_v5, %v7620_v56  ;;  %v7618_v1 = vadd.f32 %v7519_v21, %v15563_v38  ;;  %v10523_v53 = vpop.f32.mrf.mxu0 }
 0x379   : > { %8607 = vst [vmem:[%s15609_s26 + $0x188] sm:$0xff] %v8543_v48  ;;  %v10453_v36 = vpop.f32.mrf.mxu1 }
 0x37a   : > { %v8484_v62 = vadd.f32 %v15601_v0, %v8413_v6  ;;  %v8411_v57 = vadd.f32 %v8312_v51, %v7618_v1  ;;  %v7621_v17 = vadd.f32 %v10453_v36, %v15566_v35  ;;  %v8315_v29 = vpop.f32.mrf.mxu0 }
 0x37b   : > { %v7522_v8 = vpop.f32.mrf.mxu1 }
 0x37c   : > { %v8548_v45 = vmax.f32 %v8484_v62, 0.0  ;;  %v8482_v10 = vadd.f32 %v15601_v0, %v8411_v57  ;;  %v8414_v49 = vadd.f32 %v10523_v53, %v7621_v17  ;;  %v7619_v43 = vadd.f32 %v7522_v8, %v15569_v33 }
 0x37e   : > { %8612 = vst [vmem:[%s15609_s26 + $0x1b0] sm:$0xff] %v8548_v45  ;;  %v8546_v38 = vmax.f32 %v8482_v10, 0.0  ;;  %v8485_v9 = vadd.f32 %v15601_v0, %v8414_v49  ;;  %v8412_v55 = vadd.f32 %v8315_v29, %v7619_v43 }
 0x380   : > { %8610 = vst [vmem:[%s15609_s26 + $0x1a0] sm:$0xff] %v8546_v38  ;;  %v8549_v59 = vmax.f32 %v8485_v9, 0.0  ;;  %v8483_v4 = vadd.f32 %v15601_v0, %v8412_v55 }
 0x382   : > { %8613 = vst [vmem:[%s15609_s26 + $0x1b8] sm:$0xff] %v8549_v59  ;;  %v8547_v35 = vmax.f32 %v8483_v4, 0.0 }
 0x383   : > { %v10526_v54 = vpop.f32.mrf.mxu0 }
 0x384   : > { %v10456_v50 = vpop.f32.mrf.mxu1  ;;  %8611 = vst [vmem:[%s15609_s26 + $0x1a8] sm:$0xff] %v8547_v35 }
 0x385   : > { %v7624_v20 = vadd.f32 %v10456_v50, %v15572_v52  ;;  %v8328_v33 = vpop.f32.mrf.mxu0 }
 0x386   : > { %v7535_v26 = vpop.f32.mrf.mxu1 }
 0x387   : > { %v8417_v24 = vadd.f32 %v10526_v54, %v7624_v20  ;;  %v7622_v41 = vadd.f32 %v7535_v26, %v15575_v30  ;;  %v10527_v25 = vpop.f32.mrf.mxu0 }
 0x388   : > { %v10457_v32 = vpop.f32.mrf.mxu1 }
 0x389   : > { %v8488_v18 = vadd.f32 %v15601_v0, %v8417_v24  ;;  %v8415_v58 = vadd.f32 %v8328_v33, %v7622_v41  ;;  %v7625_v39 = vadd.f32 %v10457_v32, %v15579_v46  ;;  %v8331_v3 = vpop.f32.mrf.mxu0 }
 0x38a   : > { %v7538_v11 = vpop.f32.mrf.mxu1 }
 0x38b   : > { %v8552_v40 = vmax.f32 %v8488_v18, 0.0  ;;  %v8486_v60 = vadd.f32 %v15601_v0, %v8415_v58  ;;  %v8418_v52 = vadd.f32 %v10527_v25, %v7625_v39  ;;  %v7623_v22 = vadd.f32 %v7538_v11, %v15582_v16 }
 0x38d   : > { %8616 = vst [vmem:[%s15609_s26 + $0x1d0] sm:$0xff] %v8552_v40  ;;  %v8550_v30 = vmax.f32 %v8486_v60, 0.0  ;;  %v8489_v31 = vadd.f32 %v15601_v0, %v8418_v52  ;;  %v8416_v2 = vadd.f32 %v8331_v3, %v7623_v22 }
 0x38f   : > { %8614 = vst [vmem:[%s15609_s26 + $0x1c0] sm:$0xff] %v8550_v30  ;;  %v8553_v44 = vmax.f32 %v8489_v31, 0.0  ;;  %v8487_v7 = vadd.f32 %v15601_v0, %v8416_v2  ;;  %v10530_v15 = vpop.f32.mrf.mxu0 }
 0x391   : > { %8617 = vst [vmem:[%s15609_s26 + $0x1d8] sm:$0xff] %v8553_v44  ;;  %v8551_v46 = vmax.f32 %v8487_v7, 0.0  ;;  %v8344_v42 = vpop.f32.mrf.mxu0 }
 0x392   : > { %v10460_v14 = vpop.f32.mrf.mxu1 }
 0x393   : > { %v7628_v61 = vadd.f32 %v10460_v14, %v15585_v47  ;;  %8615 = vst [vmem:[%s15609_s26 + $0x1c8] sm:$0xff] %v8551_v46  ;;  %v10531_v23 = vpop.f32.mrf.mxu0 }
 0x394   : > { %v7551_v16 = vpop.f32.mrf.mxu1 }
 0x395   : > { %v8421_v34 = vadd.f32 %v10530_v15, %v7628_v61  ;;  %v7626_v12 = vadd.f32 %v7551_v16, %v15588_v28  ;;  %v8347_v6 = vpop.f32.mrf.mxu0 }
 0x396   : > { %v10461_v27 = vpop.f32.mrf.mxu1 }
 0x397   : > { %v8492_v37 = vadd.f32 %v15601_v0, %v8421_v34  ;;  %v8419_v13 = vadd.f32 %v8344_v42, %v7626_v12  ;;  %v7629_v5 = vadd.f32 %v10461_v27, %v15592_v19 }
 0x398   : > { %v7554_v56 = vpop.f32.mrf.mxu1 }
 0x399   : > { %v8556_v48 = vmax.f32 %v8492_v37, 0.0  ;;  %v8490_v47 = vadd.f32 %v15601_v0, %v8419_v13  ;;  %v8422_v21 = vadd.f32 %v10531_v23, %v7629_v5  ;;  %v7627_v51 = vadd.f32 %v7554_v56, %v15595_v63 }
 0x39b   : > { %8620 = vst [vmem:[%s15609_s26 + $0x1f0] sm:$0xff] %v8556_v48  ;;  %v8554_v28 = vmax.f32 %v8490_v47, 0.0  ;;  %v8493_v1 = vadd.f32 %v15601_v0, %v8422_v21  ;;  %v8420_v36 = vadd.f32 %v8347_v6, %v7627_v51 }
 0x39d   : > { %8618 = vst [vmem:[%s15609_s26 + $0x1e0] sm:$0xff] %v8554_v28  ;;  %v8557_v53 = vmax.f32 %v8493_v1, 0.0  ;;  %v8491_v62 = vadd.f32 %v15601_v0, %v8420_v36 }
 0x39f   : > { %8621 = vst [vmem:[%s15609_s26 + $0x1f8] sm:$0xff] %v8557_v53  ;;  %v8555_v19 = vmax.f32 %v8491_v62, 0.0 }
 0x3a1   : > { %8619 = vst [vmem:[%s15609_s26 + $0x1e8] sm:$0xff] %v8555_v19 }
 0x3a2 PF: > { %s13_s16 = sadd.s32 1, %s10926_s16   ;;  %s16967_s12 = smov %s10918_s14 }
 0x3a3   : > { %p10_p7 = scmp.ge.s32.totalorder %s13_s16, 6   ;;  %s16968_s13 = smov %s10922_s15 }
 0x3a4   : > { %s16969_s14 = smov %s16972_s17  ;;  %s16970_s15 = smov %s16976_s18 }
 0x3a5   :  { %12 = sbr.rel (!%p10_p7) target bundleno = 3 (0x3), region = 73 }

</bundles_post_ra>
